<compile_context>
chip_gen: v5e
topology: v5e:2x2
jax: 0.10.0
libtpu: 0.0.40
codegen_flags: <defaults>
</compile_context>

<pallas_src>
import functools

import jax
import jax.numpy as jnp
from jax.experimental import pallas as pl
from jax.experimental.pallas import tpu as pltpu

LANE = 128


# ----------------------------- in-kernel math helpers -----------------------------

def _erf(x):
    # Abramowitz & Stegun 7.1.26 (max abs err ~1.5e-7) -> matches exact-erf GELU to f32 noise.
    a1, a2, a3, a4, a5 = 0.254829592, -0.284496736, 1.421413741, -1.453152027, 1.061405429
    p = 0.3275911
    s = jnp.where(x >= 0.0, 1.0, -1.0)
    z = jnp.abs(x)
    t = 1.0 / (1.0 + p * z)
    poly = ((((a5 * t + a4) * t + a3) * t + a2) * t + a1) * t
    return s * (1.0 - poly * jnp.exp(-z * z))


def _gelu_exact(x):
    return 0.5 * x * (1.0 + _erf(x * 0.7071067811865476))


def _sigmoid(x):
    return 1.0 / (1.0 + jnp.exp(-x))


# ----------------------------------- kernel ---------------------------------------

def mbconv_residual_kernel(x_ref, w1_ref, b1_ref, mask_ref, dww_ref, b2_ref,
                           wse1_ref, wse2_ref, w3_ref, b3_ref, o_ref, *, W):
    # x_ref:    (HW, C)     f32   one image, channels-last (leading image dim squeezed)
    # w1_ref:   (C, Hdp)    bf16  expansion 1x1 conv (BN folded)
    # b1_ref:   (1, Hdp)    f32
    # mask_ref: (9, HW, 1)  f32   per-tap spatial validity masks (pad=1 boundary handling)
    # dww_ref:  (9, 1, Hdp) f32   per-tap per-channel depthwise weights (BN folded)
    # b2_ref:   (1, Hdp)    f32
    # wse1/2:   (Hdp, Sep) / (Sep, Hdp)  bf16  squeeze-excitation linears
    # w3_ref:   (Hdp, C)    bf16  projection 1x1 conv (BN folded)
    # b3_ref:   (1, C)      f32
    x = x_ref[...]                                               # (HW, C) f32
    HW = x.shape[0]

    # --- expansion 1x1 conv + folded BN + exact GELU (bf16 MXU, f32 accumulate) ---
    h = jnp.dot(x.astype(jnp.bfloat16), w1_ref[...],
                preferred_element_type=jnp.float32) + b1_ref[...]
    h = _gelu_exact(h)                                           # (HW, Hdp) f32

    # --- depthwise 3x3 conv (pad=1, stride=1) + folded BN + GELU ---
    # Tap (dy, dx) needs h[row + dy*W + dx]; done with an XLU sublane roll of the whole
    # (HW, Hdp) tile plus a precomputed (HW, 1) boundary mask, then the per-channel tap
    # weight on the VPU.  No O(HW^2) matmuls, no sel tensor.
    acc = None
    for dy in (-1, 0, 1):
        for dx in (-1, 0, 1):
            t = (dy + 1) * 3 + (dx + 1)
            if dy == 0 and dx == 0:
                contrib = h * dww_ref[t]                         # center tap: no shift/mask
            else:
                s = dy * W + dx
                shifted = pltpu.roll(h, shift=(-s) % HW, axis=0)  # shifted[i] = h[i + s]
                contrib = (shifted * mask_ref[t]) * dww_ref[t]
            acc = contrib if acc is None else acc + contrib
    h2 = _gelu_exact(acc + b2_ref[...])                          # (HW, Hdp) f32

    # --- squeeze-excitation gate (global mean over HW, two tiny matmuls) ---
    pooled = jnp.sum(h2, axis=0, keepdims=True) * (1.0 / HW)     # (1, Hdp)
    g = jnp.dot(pooled.astype(jnp.bfloat16), wse1_ref[...],
                preferred_element_type=jnp.float32)
    g = g * _sigmoid(g)                                          # SiLU, f32
    g = jnp.dot(g.astype(jnp.bfloat16), wse2_ref[...],
                preferred_element_type=jnp.float32)
    h2 = h2 * _sigmoid(g)                                        # gate broadcast (1, Hdp)

    # --- projection 1x1 conv + folded BN, Dropsample(prob=0)=identity, residual add ---
    y = jnp.dot(h2.astype(jnp.bfloat16), w3_ref[...],
                preferred_element_type=jnp.float32) + b3_ref[...]
    o_ref[...] = (y + x).astype(o_ref.dtype)


# --------------------------------- host wrapper ------------------------------------

def _round_up(n, m):
    return ((n + m - 1) // m) * m


def _bn_fold(w, b, gamma, beta, mean, var, eps=1e-5):
    # Eval-mode BatchNorm folded into the preceding conv (scale over output channels).
    scale = gamma / jnp.sqrt(var + eps)
    return w * scale, (b - mean) * scale + beta


def make_params(key, C, expansion_rate=4, shrinkage_rate=0.25):
    """Deterministic MBConv parameters (convs + BN buffers), BN already folded."""
    Hd = int(expansion_rate * C)
    Se = max(1, int(Hd * shrinkage_rate))
    ks = list(jax.random.split(key, 20))

    def nrm(shape, scale=1.0):
        return scale * jax.random.normal(ks.pop(), shape, dtype=jnp.float32)

    w1, b1 = nrm((C, Hd), 0.3), nrm((Hd,), 0.05)
    w1, b1 = _bn_fold(w1, b1, 1.0 + nrm((Hd,), 0.1), nrm((Hd,), 0.05),
                      nrm((Hd,), 0.05), 1.0 + 0.1 * jnp.abs(nrm((Hd,))))

    dw, b2 = nrm((3, 3, Hd), 0.3), nrm((Hd,), 0.05)
    dw, b2 = _bn_fold(dw, b2, 1.0 + nrm((Hd,), 0.1), nrm((Hd,), 0.05),
                      nrm((Hd,), 0.05), 1.0 + 0.1 * jnp.abs(nrm((Hd,))))

    wse1, wse2 = nrm((Hd, Se), 0.3), nrm((Se, Hd), 0.3)

    w3, b3 = nrm((Hd, C), 0.3), nrm((C,), 0.05)
    w3, b3 = _bn_fold(w3, b3, 1.0 + nrm((C,), 0.1), nrm((C,), 0.05),
                      nrm((C,), 0.05), 1.0 + 0.1 * jnp.abs(nrm((C,))))

    return dict(w1=w1, b1=b1, dw=dw, b2=b2, wse1=wse1, wse2=wse2, w3=w3, b3=b3)


def prepare(params):
    """Lane-pad only the hidden dims (Hd, SE) to 128; keep the true C on I/O-facing dims."""
    C, Hd = params["w1"].shape
    Se = params["wse1"].shape[1]
    Hdp, Sep = _round_up(Hd, LANE), _round_up(Se, LANE)
    return dict(
        w1=jnp.pad(params["w1"], ((0, 0), (0, Hdp - Hd))).astype(jnp.bfloat16),      # (C, Hdp)
        b1=jnp.pad(params["b1"][None, :], ((0, 0), (0, Hdp - Hd))),                   # (1, Hdp)
        dww=jnp.pad(params["dw"].reshape(9, 1, Hd), ((0, 0), (0, 0), (0, Hdp - Hd))),  # (9,1,Hdp)
        b2=jnp.pad(params["b2"][None, :], ((0, 0), (0, Hdp - Hd))),                   # (1, Hdp)
        wse1=jnp.pad(params["wse1"], ((0, Hdp - Hd), (0, Sep - Se))).astype(jnp.bfloat16),
        wse2=jnp.pad(params["wse2"], ((0, Sep - Se), (0, Hdp - Hd))).astype(jnp.bfloat16),
        w3=jnp.pad(params["w3"], ((0, Hdp - Hd), (0, 0))).astype(jnp.bfloat16),       # (Hdp, C)
        b3=params["b3"][None, :],                                                     # (1, C)
    )


def _dw_boundary_masks(H, W):
    """(9, HW, 1) f32 validity masks for the 9 taps of a 3x3 depthwise conv with pad=1."""
    HW = H * W
    idx = jnp.arange(HW, dtype=jnp.int32)
    y, x = idx // W, idx % W
    masks = []
    for dy in (-1, 0, 1):
        for dx in (-1, 0, 1):
            valid = ((y + dy >= 0) & (y + dy < H) & (x + dx >= 0) & (x + dx < W))
            masks.append(valid.astype(jnp.float32))
    return jnp.stack(masks).reshape(9, HW, 1)


def mbconv_residual_nhwc(x_nhwc, padded):
    """x_nhwc: (N, H, W, C) f32, channels-last (no NCHW<->NHWC transposes needed)."""
    N, H, W, C = x_nhwc.shape
    HW = H * W
    assert HW % 8 == 0, "H*W must be a multiple of 8 (sublane tiling)"
    Hdp = padded["w1"].shape[1]
    Sep = padded["wse1"].shape[1]

    x_flat = x_nhwc.reshape(N, HW, C)
    masks = _dw_boundary_masks(H, W)

    weight_bytes = sum(int(v.size) * v.dtype.itemsize for v in padded.values())
    weight_bytes += int(masks.size) * masks.dtype.itemsize

    # Advisory cost for XLA scheduling (per whole call).
    flops = N * (2 * HW * C * Hdp + 18 * HW * Hdp + 4 * Hdp * Sep + 2 * HW * Hdp * C)
    transcendentals = N * (2 * HW * Hdp + 2 * Hdp)
    bytes_accessed = 2 * N * HW * C * 4 + weight_bytes

    # Scoped-VMEM budget from the actual buffers (intermediates + I/O blocks + constants).
    vmem_est = 6 * HW * Hdp * 4 + 2 * 2 * HW * C * 4 + weight_bytes
    vmem_limit = int(min(max(2 * vmem_est, 32 * 1024 * 1024), 100 * 1024 * 1024))

    const = dict(pipeline_mode=pl.Buffered(1))   # single-buffer constant-index operands

    out = pl.pallas_call(
        functools.partial(mbconv_residual_kernel, W=W),
        out_shape=jax.ShapeDtypeStruct((N, HW, C), jnp.float32),
        grid_spec=pltpu.PrefetchScalarGridSpec(
            num_scalar_prefetch=0,
            grid=(N,),
            in_specs=[
                pl.BlockSpec((pl.Squeezed(), HW, C), lambda n: (n, 0, 0)),   # activations
                pl.BlockSpec((C, Hdp), lambda n: (0, 0), **const),           # expansion weight
                pl.BlockSpec((1, Hdp), lambda n: (0, 0), **const),           # expansion bias
                pl.BlockSpec((9, HW, 1), lambda n: (0, 0, 0), **const),      # depthwise masks
                pl.BlockSpec((9, 1, Hdp), lambda n: (0, 0, 0), **const),     # depthwise tap weights
                pl.BlockSpec((1, Hdp), lambda n: (0, 0), **const),           # depthwise bias
                pl.BlockSpec((Hdp, Sep), lambda n: (0, 0), **const),         # SE reduce weight
                pl.BlockSpec((Sep, Hdp), lambda n: (0, 0), **const),         # SE expand weight
                pl.BlockSpec((Hdp, C), lambda n: (0, 0), **const),           # projection weight
                pl.BlockSpec((1, C), lambda n: (0, 0), **const),             # projection bias
            ],
            out_specs=pl.BlockSpec((pl.Squeezed(), HW, C), lambda n: (n, 0, 0)),
        ),
        compiler_params=pltpu.CompilerParams(
            dimension_semantics=("parallel",),
            vmem_limit_bytes=vmem_limit,
        ),
        cost_estimate=pl.CostEstimate(flops=int(flops),
                                      transcendentals=int(transcendentals),
                                      bytes_accessed=int(bytes_accessed)),
    )(x_flat, padded["w1"], padded["b1"], masks, padded["dww"], padded["b2"],
      padded["wse1"], padded["wse2"], padded["w3"], padded["b3"])

    return out.reshape(N, H, W, C)


# ------------------------------- pure-JAX reference --------------------------------

def reference_nhwc(x, p):
    N, H, W, C = x.shape
    Hd = p["w1"].shape[1]
    xr = x.reshape(N, H * W, C)

    h = jnp.dot(xr.astype(jnp.bfloat16), p["w1"].astype(jnp.bfloat16),
                preferred_element_type=jnp.float32) + p["b1"]
    h = jax.nn.gelu(h, approximate=False)

    h4 = h.reshape(N, H, W, Hd)
    hp = jnp.pad(h4, ((0, 0), (1, 1), (1, 1), (0, 0)))
    acc = jnp.zeros_like(h4)
    for ky in range(3):
        for kx in range(3):
            acc = acc + hp[:, ky:ky + H, kx:kx + W, :] * p["dw"][ky, kx, :]
    h2 = jax.nn.gelu(acc + p["b2"], approximate=False)

    pooled = h2.mean(axis=(1, 2))                                  # (N, Hd)
    g = jnp.dot(pooled.astype(jnp.bfloat16), p["wse1"].astype(jnp.bfloat16),
                preferred_element_type=jnp.float32)
    g = jax.nn.silu(g)
    g = jnp.dot(g.astype(jnp.bfloat16), p["wse2"].astype(jnp.bfloat16),
                preferred_element_type=jnp.float32)
    h2 = h2 * jax.nn.sigmoid(g)[:, None, None, :]

    y = jnp.dot(h2.reshape(N, H * W, Hd).astype(jnp.bfloat16),
                p["w3"].astype(jnp.bfloat16), preferred_element_type=jnp.float32)
    y = y + p["b3"]
    return (y + xr).reshape(N, H, W, C)


# ------------------------------------- main -----------------------------------------

if __name__ == "__main__":
    key = jax.random.PRNGKey(0)
    kx, kp = jax.random.split(key)

    N, H, W, C = 2, 16, 16, 4                 # NHWC (channels-last)
    x = jax.random.normal(kx, (N, H, W, C), dtype=jnp.float32)

    params = make_params(kp, C)               # MBConv with BN folded (eval mode)
    padded = prepare(params)

    out = jax.block_until_ready(mbconv_residual_nhwc(x, padded))
    ref = reference_nhwc(x, params)

    assert out.shape == x.shape and out.dtype == x.dtype
    max_err = float(jnp.max(jnp.abs(out - ref)))
    assert jnp.allclose(out, ref, atol=2e-3, rtol=2e-3), f"mismatch vs reference: {max_err}"

    print("KERNEL_OK")
</pallas_src>

<mosaic_0001>
module attributes {stable_mosaic.version = 11 : i64} {
  func.func @mbconv_residual_kernel(%arg0: i32, %arg1: memref<1x256x4xf32, #tpu.memory_space<vmem>>, %arg2: memref<4x128xbf16, #tpu.memory_space<vmem>>, %arg3: memref<1x128xf32, #tpu.memory_space<vmem>>, %arg4: memref<9x256x1xf32, #tpu.memory_space<vmem>>, %arg5: memref<9x1x128xf32, #tpu.memory_space<vmem>>, %arg6: memref<1x128xf32, #tpu.memory_space<vmem>>, %arg7: memref<128x128xbf16, #tpu.memory_space<vmem>>, %arg8: memref<128x128xbf16, #tpu.memory_space<vmem>>, %arg9: memref<128x4xbf16, #tpu.memory_space<vmem>>, %arg10: memref<1x4xf32, #tpu.memory_space<vmem>>, %arg11: memref<1x256x4xf32, #tpu.memory_space<vmem>>) attributes {dimension_semantics = [#tpu.dimension_semantics<parallel>], iteration_bounds = array<i64: 2>, scalar_prefetch = 0 : i64, scratch_operands = 0 : i64, tpu.core_type = #tpu.core_type<tc>, window_params = [{transform_indices = @transform_0, window_bounds = array<i64: 1, 256, 4>}, {pipeline_mode = #tpu.pipeline_mode<synchronous>, transform_indices = @transform_1, window_bounds = array<i64: 4, 128>}, {pipeline_mode = #tpu.pipeline_mode<synchronous>, transform_indices = @transform_2, window_bounds = array<i64: 1, 128>}, {pipeline_mode = #tpu.pipeline_mode<synchronous>, transform_indices = @transform_3, window_bounds = array<i64: 9, 256, 1>}, {pipeline_mode = #tpu.pipeline_mode<synchronous>, transform_indices = @transform_4, window_bounds = array<i64: 9, 1, 128>}, {pipeline_mode = #tpu.pipeline_mode<synchronous>, transform_indices = @transform_5, window_bounds = array<i64: 1, 128>}, {pipeline_mode = #tpu.pipeline_mode<synchronous>, transform_indices = @transform_6, window_bounds = array<i64: 128, 128>}, {pipeline_mode = #tpu.pipeline_mode<synchronous>, transform_indices = @transform_7, window_bounds = array<i64: 128, 128>}, {pipeline_mode = #tpu.pipeline_mode<synchronous>, transform_indices = @transform_8, window_bounds = array<i64: 128, 4>}, {pipeline_mode = #tpu.pipeline_mode<synchronous>, transform_indices = @transform_9, window_bounds = array<i64: 1, 4>}, {transform_indices = @transform_10, window_bounds = array<i64: 1, 256, 4>}]} {
    %c0 = arith.constant 0 : index
    %c0_0 = arith.constant 0 : index
    %c0_1 = arith.constant 0 : index
    %0 = vector.load %arg1[%c0, %c0_0, %c0_1] : memref<1x256x4xf32, #tpu.memory_space<vmem>>, vector<1x256x4xf32>
    %1 = vector.shape_cast %0 : vector<1x256x4xf32> to vector<256x4xf32>
    %2 = arith.truncf %1 : vector<256x4xf32> to vector<256x4xbf16>
    %c0_2 = arith.constant 0 : index
    %c0_3 = arith.constant 0 : index
    %3 = vector.load %arg2[%c0_2, %c0_3] : memref<4x128xbf16, #tpu.memory_space<vmem>>, vector<4x128xbf16>
    %cst = arith.constant dense<0.000000e+00> : vector<256x128xf32>
    %4 = tpu.matmul %2, %3, %cst {dimension_numbers = #tpu.dot_dimension_numbers<[1], [0], [0], [1], [0, 0, 1, 1], [], []>} : vector<256x4xbf16>, vector<4x128xbf16>, vector<256x128xf32> -> vector<256x128xf32>
    %c0_4 = arith.constant 0 : index
    %c0_5 = arith.constant 0 : index
    %5 = vector.load %arg3[%c0_4, %c0_5] : memref<1x128xf32, #tpu.memory_space<vmem>>, vector<1x128xf32>
    %6 = vector.broadcast %5 : vector<1x128xf32> to vector<256x128xf32>
    %7 = arith.addf %4, %6 : vector<256x128xf32>
    %cst_6 = arith.constant 5.000000e-01 : f32
    %8 = vector.broadcast %cst_6 : f32 to vector<256x128xf32>
    %9 = arith.mulf %8, %7 : vector<256x128xf32>
    %cst_7 = arith.constant 0.707106769 : f32
    %10 = vector.broadcast %cst_7 : f32 to vector<256x128xf32>
    %11 = arith.mulf %7, %10 : vector<256x128xf32>
    %cst_8 = arith.constant 0.000000e+00 : f32
    %12 = vector.broadcast %cst_8 : f32 to vector<256x128xf32>
    %13 = arith.cmpf oge, %11, %12 : vector<256x128xf32>
    %cst_9 = arith.constant 1.000000e+00 : f32
    %cst_10 = arith.constant -1.000000e+00 : f32
    %14 = vector.broadcast %cst_9 : f32 to vector<256x128xf32>
    %15 = vector.broadcast %cst_10 : f32 to vector<256x128xf32>
    %16 = arith.select %13, %14, %15 : vector<256x128xi1>, vector<256x128xf32>
    %17 = math.absf %11 : vector<256x128xf32>
    %cst_11 = arith.constant 0.327591091 : f32
    %18 = vector.broadcast %cst_11 : f32 to vector<256x128xf32>
    %19 = arith.mulf %18, %17 : vector<256x128xf32>
    %cst_12 = arith.constant 1.000000e+00 : f32
    %20 = vector.broadcast %cst_12 : f32 to vector<256x128xf32>
    %21 = arith.addf %20, %19 : vector<256x128xf32>
    %cst_13 = arith.constant 1.000000e+00 : f32
    %22 = vector.broadcast %cst_13 : f32 to vector<256x128xf32>
    %23 = arith.divf %22, %21 : vector<256x128xf32>
    %cst_14 = arith.constant 1.06140542 : f32
    %24 = vector.broadcast %cst_14 : f32 to vector<256x128xf32>
    %25 = arith.mulf %24, %23 : vector<256x128xf32>
    %cst_15 = arith.constant -1.45315206 : f32
    %26 = vector.broadcast %cst_15 : f32 to vector<256x128xf32>
    %27 = arith.addf %25, %26 : vector<256x128xf32>
    %28 = arith.mulf %27, %23 : vector<256x128xf32>
    %cst_16 = arith.constant 1.42141378 : f32
    %29 = vector.broadcast %cst_16 : f32 to vector<256x128xf32>
    %30 = arith.addf %28, %29 : vector<256x128xf32>
    %31 = arith.mulf %30, %23 : vector<256x128xf32>
    %cst_17 = arith.constant -0.284496725 : f32
    %32 = vector.broadcast %cst_17 : f32 to vector<256x128xf32>
    %33 = arith.addf %31, %32 : vector<256x128xf32>
    %34 = arith.mulf %33, %23 : vector<256x128xf32>
    %cst_18 = arith.constant 0.254829586 : f32
    %35 = vector.broadcast %cst_18 : f32 to vector<256x128xf32>
    %36 = arith.addf %34, %35 : vector<256x128xf32>
    %37 = arith.mulf %36, %23 : vector<256x128xf32>
    %cst_19 = arith.constant 0.000000e+00 : f32
    %38 = vector.broadcast %cst_19 : f32 to vector<256x128xf32>
    %39 = arith.subf %38, %17 : vector<256x128xf32>
    %40 = arith.mulf %39, %17 : vector<256x128xf32>
    %41 = math.exp %40 : vector<256x128xf32>
    %42 = arith.mulf %37, %41 : vector<256x128xf32>
    %cst_20 = arith.constant 1.000000e+00 : f32
    %43 = vector.broadcast %cst_20 : f32 to vector<256x128xf32>
    %44 = arith.subf %43, %42 : vector<256x128xf32>
    %45 = arith.mulf %16, %44 : vector<256x128xf32>
    %cst_21 = arith.constant 1.000000e+00 : f32
    %46 = vector.broadcast %cst_21 : f32 to vector<256x128xf32>
    %47 = arith.addf %46, %45 : vector<256x128xf32>
    %48 = arith.mulf %9, %47 : vector<256x128xf32>
    %c17_i32 = arith.constant 17 : i32
    %49 = tpu.dynamic_rotate %48 by %c17_i32 dim 0 : vector<256x128xf32>, i32 -> vector<256x128xf32>
    %c0_22 = arith.constant 0 : index
    %c0_23 = arith.constant 0 : index
    %c0_24 = arith.constant 0 : index
    %50 = vector.load %arg4[%c0_22, %c0_23, %c0_24] : memref<9x256x1xf32, #tpu.memory_space<vmem>>, vector<1x256x1xf32>
    %51 = vector.shape_cast %50 : vector<1x256x1xf32> to vector<256x1xf32>
    %52 = vector.broadcast %51 : vector<256x1xf32> to vector<256x128xf32>
    %53 = arith.mulf %49, %52 : vector<256x128xf32>
    %c0_25 = arith.constant 0 : index
    %c0_26 = arith.constant 0 : index
    %c0_27 = arith.constant 0 : index
    %54 = vector.load %arg5[%c0_25, %c0_26, %c0_27] : memref<9x1x128xf32, #tpu.memory_space<vmem>>, vector<1x1x128xf32>
    %55 = vector.shape_cast %54 : vector<1x1x128xf32> to vector<1x128xf32>
    %56 = vector.broadcast %55 : vector<1x128xf32> to vector<256x128xf32>
    %57 = arith.mulf %53, %56 : vector<256x128xf32>
    %c16_i32 = arith.constant 16 : i32
    %58 = tpu.dynamic_rotate %48 by %c16_i32 dim 0 : vector<256x128xf32>, i32 -> vector<256x128xf32>
    %c1 = arith.constant 1 : index
    %c0_28 = arith.constant 0 : index
    %c0_29 = arith.constant 0 : index
    %59 = vector.load %arg4[%c1, %c0_28, %c0_29] : memref<9x256x1xf32, #tpu.memory_space<vmem>>, vector<1x256x1xf32>
    %60 = vector.shape_cast %59 : vector<1x256x1xf32> to vector<256x1xf32>
    %61 = vector.broadcast %60 : vector<256x1xf32> to vector<256x128xf32>
    %62 = arith.mulf %58, %61 : vector<256x128xf32>
    %c1_30 = arith.constant 1 : index
    %c0_31 = arith.constant 0 : index
    %c0_32 = arith.constant 0 : index
    %63 = vector.load %arg5[%c1_30, %c0_31, %c0_32] : memref<9x1x128xf32, #tpu.memory_space<vmem>>, vector<1x1x128xf32>
    %64 = vector.shape_cast %63 : vector<1x1x128xf32> to vector<1x128xf32>
    %65 = vector.broadcast %64 : vector<1x128xf32> to vector<256x128xf32>
    %66 = arith.mulf %62, %65 : vector<256x128xf32>
    %67 = arith.addf %57, %66 : vector<256x128xf32>
    %c15_i32 = arith.constant 15 : i32
    %68 = tpu.dynamic_rotate %48 by %c15_i32 dim 0 : vector<256x128xf32>, i32 -> vector<256x128xf32>
    %c2 = arith.constant 2 : index
    %c0_33 = arith.constant 0 : index
    %c0_34 = arith.constant 0 : index
    %69 = vector.load %arg4[%c2, %c0_33, %c0_34] : memref<9x256x1xf32, #tpu.memory_space<vmem>>, vector<1x256x1xf32>
    %70 = vector.shape_cast %69 : vector<1x256x1xf32> to vector<256x1xf32>
    %71 = vector.broadcast %70 : vector<256x1xf32> to vector<256x128xf32>
    %72 = arith.mulf %68, %71 : vector<256x128xf32>
    %c2_35 = arith.constant 2 : index
    %c0_36 = arith.constant 0 : index
    %c0_37 = arith.constant 0 : index
    %73 = vector.load %arg5[%c2_35, %c0_36, %c0_37] : memref<9x1x128xf32, #tpu.memory_space<vmem>>, vector<1x1x128xf32>
    %74 = vector.shape_cast %73 : vector<1x1x128xf32> to vector<1x128xf32>
    %75 = vector.broadcast %74 : vector<1x128xf32> to vector<256x128xf32>
    %76 = arith.mulf %72, %75 : vector<256x128xf32>
    %77 = arith.addf %67, %76 : vector<256x128xf32>
    %c1_i32 = arith.constant 1 : i32
    %78 = tpu.dynamic_rotate %48 by %c1_i32 dim 0 : vector<256x128xf32>, i32 -> vector<256x128xf32>
    %c3 = arith.constant 3 : index
    %c0_38 = arith.constant 0 : index
    %c0_39 = arith.constant 0 : index
    %79 = vector.load %arg4[%c3, %c0_38, %c0_39] : memref<9x256x1xf32, #tpu.memory_space<vmem>>, vector<1x256x1xf32>
    %80 = vector.shape_cast %79 : vector<1x256x1xf32> to vector<256x1xf32>
    %81 = vector.broadcast %80 : vector<256x1xf32> to vector<256x128xf32>
    %82 = arith.mulf %78, %81 : vector<256x128xf32>
    %c3_40 = arith.constant 3 : index
    %c0_41 = arith.constant 0 : index
    %c0_42 = arith.constant 0 : index
    %83 = vector.load %arg5[%c3_40, %c0_41, %c0_42] : memref<9x1x128xf32, #tpu.memory_space<vmem>>, vector<1x1x128xf32>
    %84 = vector.shape_cast %83 : vector<1x1x128xf32> to vector<1x128xf32>
    %85 = vector.broadcast %84 : vector<1x128xf32> to vector<256x128xf32>
    %86 = arith.mulf %82, %85 : vector<256x128xf32>
    %87 = arith.addf %77, %86 : vector<256x128xf32>
    %c4 = arith.constant 4 : index
    %c0_43 = arith.constant 0 : index
    %c0_44 = arith.constant 0 : index
    %88 = vector.load %arg5[%c4, %c0_43, %c0_44] : memref<9x1x128xf32, #tpu.memory_space<vmem>>, vector<1x1x128xf32>
    %89 = vector.shape_cast %88 : vector<1x1x128xf32> to vector<1x128xf32>
    %90 = vector.broadcast %89 : vector<1x128xf32> to vector<256x128xf32>
    %91 = arith.mulf %48, %90 : vector<256x128xf32>
    %92 = arith.addf %87, %91 : vector<256x128xf32>
    %c255_i32 = arith.constant 255 : i32
    %93 = tpu.dynamic_rotate %48 by %c255_i32 dim 0 : vector<256x128xf32>, i32 -> vector<256x128xf32>
    %c5 = arith.constant 5 : index
    %c0_45 = arith.constant 0 : index
    %c0_46 = arith.constant 0 : index
    %94 = vector.load %arg4[%c5, %c0_45, %c0_46] : memref<9x256x1xf32, #tpu.memory_space<vmem>>, vector<1x256x1xf32>
    %95 = vector.shape_cast %94 : vector<1x256x1xf32> to vector<256x1xf32>
    %96 = vector.broadcast %95 : vector<256x1xf32> to vector<256x128xf32>
    %97 = arith.mulf %93, %96 : vector<256x128xf32>
    %c5_47 = arith.constant 5 : index
    %c0_48 = arith.constant 0 : index
    %c0_49 = arith.constant 0 : index
    %98 = vector.load %arg5[%c5_47, %c0_48, %c0_49] : memref<9x1x128xf32, #tpu.memory_space<vmem>>, vector<1x1x128xf32>
    %99 = vector.shape_cast %98 : vector<1x1x128xf32> to vector<1x128xf32>
    %100 = vector.broadcast %99 : vector<1x128xf32> to vector<256x128xf32>
    %101 = arith.mulf %97, %100 : vector<256x128xf32>
    %102 = arith.addf %92, %101 : vector<256x128xf32>
    %c241_i32 = arith.constant 241 : i32
    %103 = tpu.dynamic_rotate %48 by %c241_i32 dim 0 : vector<256x128xf32>, i32 -> vector<256x128xf32>
    %c6 = arith.constant 6 : index
    %c0_50 = arith.constant 0 : index
    %c0_51 = arith.constant 0 : index
    %104 = vector.load %arg4[%c6, %c0_50, %c0_51] : memref<9x256x1xf32, #tpu.memory_space<vmem>>, vector<1x256x1xf32>
    %105 = vector.shape_cast %104 : vector<1x256x1xf32> to vector<256x1xf32>
    %106 = vector.broadcast %105 : vector<256x1xf32> to vector<256x128xf32>
    %107 = arith.mulf %103, %106 : vector<256x128xf32>
    %c6_52 = arith.constant 6 : index
    %c0_53 = arith.constant 0 : index
    %c0_54 = arith.constant 0 : index
    %108 = vector.load %arg5[%c6_52, %c0_53, %c0_54] : memref<9x1x128xf32, #tpu.memory_space<vmem>>, vector<1x1x128xf32>
    %109 = vector.shape_cast %108 : vector<1x1x128xf32> to vector<1x128xf32>
    %110 = vector.broadcast %109 : vector<1x128xf32> to vector<256x128xf32>
    %111 = arith.mulf %107, %110 : vector<256x128xf32>
    %112 = arith.addf %102, %111 : vector<256x128xf32>
    %c240_i32 = arith.constant 240 : i32
    %113 = tpu.dynamic_rotate %48 by %c240_i32 dim 0 : vector<256x128xf32>, i32 -> vector<256x128xf32>
    %c7 = arith.constant 7 : index
    %c0_55 = arith.constant 0 : index
    %c0_56 = arith.constant 0 : index
    %114 = vector.load %arg4[%c7, %c0_55, %c0_56] : memref<9x256x1xf32, #tpu.memory_space<vmem>>, vector<1x256x1xf32>
    %115 = vector.shape_cast %114 : vector<1x256x1xf32> to vector<256x1xf32>
    %116 = vector.broadcast %115 : vector<256x1xf32> to vector<256x128xf32>
    %117 = arith.mulf %113, %116 : vector<256x128xf32>
    %c7_57 = arith.constant 7 : index
    %c0_58 = arith.constant 0 : index
    %c0_59 = arith.constant 0 : index
    %118 = vector.load %arg5[%c7_57, %c0_58, %c0_59] : memref<9x1x128xf32, #tpu.memory_space<vmem>>, vector<1x1x128xf32>
    %119 = vector.shape_cast %118 : vector<1x1x128xf32> to vector<1x128xf32>
    %120 = vector.broadcast %119 : vector<1x128xf32> to vector<256x128xf32>
    %121 = arith.mulf %117, %120 : vector<256x128xf32>
    %122 = arith.addf %112, %121 : vector<256x128xf32>
    %c239_i32 = arith.constant 239 : i32
    %123 = tpu.dynamic_rotate %48 by %c239_i32 dim 0 : vector<256x128xf32>, i32 -> vector<256x128xf32>
    %c8 = arith.constant 8 : index
    %c0_60 = arith.constant 0 : index
    %c0_61 = arith.constant 0 : index
    %124 = vector.load %arg4[%c8, %c0_60, %c0_61] : memref<9x256x1xf32, #tpu.memory_space<vmem>>, vector<1x256x1xf32>
    %125 = vector.shape_cast %124 : vector<1x256x1xf32> to vector<256x1xf32>
    %126 = vector.broadcast %125 : vector<256x1xf32> to vector<256x128xf32>
    %127 = arith.mulf %123, %126 : vector<256x128xf32>
    %c8_62 = arith.constant 8 : index
    %c0_63 = arith.constant 0 : index
    %c0_64 = arith.constant 0 : index
    %128 = vector.load %arg5[%c8_62, %c0_63, %c0_64] : memref<9x1x128xf32, #tpu.memory_space<vmem>>, vector<1x1x128xf32>
    %129 = vector.shape_cast %128 : vector<1x1x128xf32> to vector<1x128xf32>
    %130 = vector.broadcast %129 : vector<1x128xf32> to vector<256x128xf32>
    %131 = arith.mulf %127, %130 : vector<256x128xf32>
    %132 = arith.addf %122, %131 : vector<256x128xf32>
    %c0_65 = arith.constant 0 : index
    %c0_66 = arith.constant 0 : index
    %133 = vector.load %arg6[%c0_65, %c0_66] : memref<1x128xf32, #tpu.memory_space<vmem>>, vector<1x128xf32>
    %134 = vector.broadcast %133 : vector<1x128xf32> to vector<256x128xf32>
    %135 = arith.addf %132, %134 : vector<256x128xf32>
    %cst_67 = arith.constant 5.000000e-01 : f32
    %136 = vector.broadcast %cst_67 : f32 to vector<256x128xf32>
    %137 = arith.mulf %136, %135 : vector<256x128xf32>
    %cst_68 = arith.constant 0.707106769 : f32
    %138 = vector.broadcast %cst_68 : f32 to vector<256x128xf32>
    %139 = arith.mulf %135, %138 : vector<256x128xf32>
    %cst_69 = arith.constant 0.000000e+00 : f32
    %140 = vector.broadcast %cst_69 : f32 to vector<256x128xf32>
    %141 = arith.cmpf oge, %139, %140 : vector<256x128xf32>
    %cst_70 = arith.constant 1.000000e+00 : f32
    %cst_71 = arith.constant -1.000000e+00 : f32
    %142 = vector.broadcast %cst_70 : f32 to vector<256x128xf32>
    %143 = vector.broadcast %cst_71 : f32 to vector<256x128xf32>
    %144 = arith.select %141, %142, %143 : vector<256x128xi1>, vector<256x128xf32>
    %145 = math.absf %139 : vector<256x128xf32>
    %cst_72 = arith.constant 0.327591091 : f32
    %146 = vector.broadcast %cst_72 : f32 to vector<256x128xf32>
    %147 = arith.mulf %146, %145 : vector<256x128xf32>
    %cst_73 = arith.constant 1.000000e+00 : f32
    %148 = vector.broadcast %cst_73 : f32 to vector<256x128xf32>
    %149 = arith.addf %148, %147 : vector<256x128xf32>
    %cst_74 = arith.constant 1.000000e+00 : f32
    %150 = vector.broadcast %cst_74 : f32 to vector<256x128xf32>
    %151 = arith.divf %150, %149 : vector<256x128xf32>
    %cst_75 = arith.constant 1.06140542 : f32
    %152 = vector.broadcast %cst_75 : f32 to vector<256x128xf32>
    %153 = arith.mulf %152, %151 : vector<256x128xf32>
    %cst_76 = arith.constant -1.45315206 : f32
    %154 = vector.broadcast %cst_76 : f32 to vector<256x128xf32>
    %155 = arith.addf %153, %154 : vector<256x128xf32>
    %156 = arith.mulf %155, %151 : vector<256x128xf32>
    %cst_77 = arith.constant 1.42141378 : f32
    %157 = vector.broadcast %cst_77 : f32 to vector<256x128xf32>
    %158 = arith.addf %156, %157 : vector<256x128xf32>
    %159 = arith.mulf %158, %151 : vector<256x128xf32>
    %cst_78 = arith.constant -0.284496725 : f32
    %160 = vector.broadcast %cst_78 : f32 to vector<256x128xf32>
    %161 = arith.addf %159, %160 : vector<256x128xf32>
    %162 = arith.mulf %161, %151 : vector<256x128xf32>
    %cst_79 = arith.constant 0.254829586 : f32
    %163 = vector.broadcast %cst_79 : f32 to vector<256x128xf32>
    %164 = arith.addf %162, %163 : vector<256x128xf32>
    %165 = arith.mulf %164, %151 : vector<256x128xf32>
    %cst_80 = arith.constant 0.000000e+00 : f32
    %166 = vector.broadcast %cst_80 : f32 to vector<256x128xf32>
    %167 = arith.subf %166, %145 : vector<256x128xf32>
    %168 = arith.mulf %167, %145 : vector<256x128xf32>
    %169 = math.exp %168 : vector<256x128xf32>
    %170 = arith.mulf %165, %169 : vector<256x128xf32>
    %cst_81 = arith.constant 1.000000e+00 : f32
    %171 = vector.broadcast %cst_81 : f32 to vector<256x128xf32>
    %172 = arith.subf %171, %170 : vector<256x128xf32>
    %173 = arith.mulf %144, %172 : vector<256x128xf32>
    %cst_82 = arith.constant 1.000000e+00 : f32
    %174 = vector.broadcast %cst_82 : f32 to vector<256x128xf32>
    %175 = arith.addf %174, %173 : vector<256x128xf32>
    %176 = arith.mulf %137, %175 : vector<256x128xf32>
    %cst_83 = arith.constant dense<0.000000e+00> : vector<128xf32>
    %177 = vector.multi_reduction <add>, %176, %cst_83 [0] : vector<256x128xf32> to vector<128xf32>
    %178 = vector.shape_cast %177 : vector<128xf32> to vector<1x128xf32>
    %cst_84 = arith.constant 3.906250e-03 : f32
    %179 = vector.broadcast %cst_84 : f32 to vector<1x128xf32>
    %180 = arith.mulf %178, %179 : vector<1x128xf32>
    %181 = arith.truncf %180 : vector<1x128xf32> to vector<1x128xbf16>
    %c0_85 = arith.constant 0 : index
    %c0_86 = arith.constant 0 : index
    %182 = vector.load %arg7[%c0_85, %c0_86] : memref<128x128xbf16, #tpu.memory_space<vmem>>, vector<128x128xbf16>
    %cst_87 = arith.constant dense<0.000000e+00> : vector<1x128xf32>
    %183 = tpu.matmul %181, %182, %cst_87 {dimension_numbers = #tpu.dot_dimension_numbers<[1], [0], [0], [1], [0, 0, 1, 1], [], []>} : vector<1x128xbf16>, vector<128x128xbf16>, vector<1x128xf32> -> vector<1x128xf32>
    %cst_88 = arith.constant 0.000000e+00 : f32
    %184 = vector.broadcast %cst_88 : f32 to vector<1x128xf32>
    %185 = arith.subf %184, %183 : vector<1x128xf32>
    %186 = math.exp %185 : vector<1x128xf32>
    %cst_89 = arith.constant 1.000000e+00 : f32
    %187 = vector.broadcast %cst_89 : f32 to vector<1x128xf32>
    %188 = arith.addf %187, %186 : vector<1x128xf32>
    %cst_90 = arith.constant 1.000000e+00 : f32
    %189 = vector.broadcast %cst_90 : f32 to vector<1x128xf32>
    %190 = arith.divf %189, %188 : vector<1x128xf32>
    %191 = arith.mulf %183, %190 : vector<1x128xf32>
    %192 = arith.truncf %191 : vector<1x128xf32> to vector<1x128xbf16>
    %c0_91 = arith.constant 0 : index
    %c0_92 = arith.constant 0 : index
    %193 = vector.load %arg8[%c0_91, %c0_92] : memref<128x128xbf16, #tpu.memory_space<vmem>>, vector<128x128xbf16>
    %cst_93 = arith.constant dense<0.000000e+00> : vector<1x128xf32>
    %194 = tpu.matmul %192, %193, %cst_93 {dimension_numbers = #tpu.dot_dimension_numbers<[1], [0], [0], [1], [0, 0, 1, 1], [], []>} : vector<1x128xbf16>, vector<128x128xbf16>, vector<1x128xf32> -> vector<1x128xf32>
    %cst_94 = arith.constant 0.000000e+00 : f32
    %195 = vector.broadcast %cst_94 : f32 to vector<1x128xf32>
    %196 = arith.subf %195, %194 : vector<1x128xf32>
    %197 = math.exp %196 : vector<1x128xf32>
    %cst_95 = arith.constant 1.000000e+00 : f32
    %198 = vector.broadcast %cst_95 : f32 to vector<1x128xf32>
    %199 = arith.addf %198, %197 : vector<1x128xf32>
    %cst_96 = arith.constant 1.000000e+00 : f32
    %200 = vector.broadcast %cst_96 : f32 to vector<1x128xf32>
    %201 = arith.divf %200, %199 : vector<1x128xf32>
    %202 = vector.broadcast %201 : vector<1x128xf32> to vector<256x128xf32>
    %203 = arith.mulf %176, %202 : vector<256x128xf32>
    %204 = arith.truncf %203 : vector<256x128xf32> to vector<256x128xbf16>
    %c0_97 = arith.constant 0 : index
    %c0_98 = arith.constant 0 : index
    %205 = vector.load %arg9[%c0_97, %c0_98] : memref<128x4xbf16, #tpu.memory_space<vmem>>, vector<128x4xbf16>
    %cst_99 = arith.constant dense<0.000000e+00> : vector<256x4xf32>
    %206 = tpu.matmul %204, %205, %cst_99 {dimension_numbers = #tpu.dot_dimension_numbers<[1], [0], [0], [1], [0, 0, 1, 1], [], []>} : vector<256x128xbf16>, vector<128x4xbf16>, vector<256x4xf32> -> vector<256x4xf32>
    %c0_100 = arith.constant 0 : index
    %c0_101 = arith.constant 0 : index
    %207 = vector.load %arg10[%c0_100, %c0_101] : memref<1x4xf32, #tpu.memory_space<vmem>>, vector<1x4xf32>
    %208 = vector.broadcast %207 : vector<1x4xf32> to vector<256x4xf32>
    %209 = arith.addf %206, %208 : vector<256x4xf32>
    %210 = arith.addf %209, %1 : vector<256x4xf32>
    %c0_102 = arith.constant 0 : index
    %c0_103 = arith.constant 0 : index
    %c0_104 = arith.constant 0 : index
    %211 = vector.load %arg11[%c0_102, %c0_103, %c0_104] : memref<1x256x4xf32, #tpu.memory_space<vmem>>, vector<1x256x4xf32>
    %212 = vector.shape_cast %211 : vector<1x256x4xf32> to vector<256x4xf32>
    %213 = vector.shape_cast %210 : vector<256x4xf32> to vector<1x256x4xf32>
    tpu.vector_store %arg11[%c0_102, %c0_103, %c0_104], %213 {strides = array<i32>} : memref<1x256x4xf32, #tpu.memory_space<vmem>>, vector<1x256x4xf32>,
    return
  }
  func.func @transform_0(%arg0: i32) -> (i32, i32, i32) {
    %c0_i32 = arith.constant 0 : i32
    %c0_i32_0 = arith.constant 0 : i32
    %c0_i32_1 = arith.constant 0 : i32
    return %arg0, %c0_i32, %c0_i32_0 : i32, i32, i32
  }
  func.func @transform_1(%arg0: i32) -> (i32, i32) {
    %c0_i32 = arith.constant 0 : i32
    %c0_i32_0 = arith.constant 0 : i32
    %c0_i32_1 = arith.constant 0 : i32
    return %c0_i32, %c0_i32_0 : i32, i32
  }
  func.func @transform_2(%arg0: i32) -> (i32, i32) {
    %c0_i32 = arith.constant 0 : i32
    %c0_i32_0 = arith.constant 0 : i32
    %c0_i32_1 = arith.constant 0 : i32
    return %c0_i32, %c0_i32_0 : i32, i32
  }
  func.func @transform_3(%arg0: i32) -> (i32, i32, i32) {
    %c0_i32 = arith.constant 0 : i32
    %c0_i32_0 = arith.constant 0 : i32
    %c0_i32_1 = arith.constant 0 : i32
    %c0_i32_2 = arith.constant 0 : i32
    return %c0_i32, %c0_i32_0, %c0_i32_1 : i32, i32, i32
  }
  func.func @transform_4(%arg0: i32) -> (i32, i32, i32) {
    %c0_i32 = arith.constant 0 : i32
    %c0_i32_0 = arith.constant 0 : i32
    %c0_i32_1 = arith.constant 0 : i32
    %c0_i32_2 = arith.constant 0 : i32
    return %c0_i32, %c0_i32_0, %c0_i32_1 : i32, i32, i32
  }
  func.func @transform_5(%arg0: i32) -> (i32, i32) {
    %c0_i32 = arith.constant 0 : i32
    %c0_i32_0 = arith.constant 0 : i32
    %c0_i32_1 = arith.constant 0 : i32
    return %c0_i32, %c0_i32_0 : i32, i32
  }
  func.func @transform_6(%arg0: i32) -> (i32, i32) {
    %c0_i32 = arith.constant 0 : i32
    %c0_i32_0 = arith.constant 0 : i32
    %c0_i32_1 = arith.constant 0 : i32
    return %c0_i32, %c0_i32_0 : i32, i32
  }
  func.func @transform_7(%arg0: i32) -> (i32, i32) {
    %c0_i32 = arith.constant 0 : i32
    %c0_i32_0 = arith.constant 0 : i32
    %c0_i32_1 = arith.constant 0 : i32
    return %c0_i32, %c0_i32_0 : i32, i32
  }
  func.func @transform_8(%arg0: i32) -> (i32, i32) {
    %c0_i32 = arith.constant 0 : i32
    %c0_i32_0 = arith.constant 0 : i32
    %c0_i32_1 = arith.constant 0 : i32
    return %c0_i32, %c0_i32_0 : i32, i32
  }
  func.func @transform_9(%arg0: i32) -> (i32, i32) {
    %c0_i32 = arith.constant 0 : i32
    %c0_i32_0 = arith.constant 0 : i32
    %c0_i32_1 = arith.constant 0 : i32
    return %c0_i32, %c0_i32_0 : i32, i32
  }
  func.func @transform_10(%arg0: i32) -> (i32, i32, i32) {
    %c0_i32 = arith.constant 0 : i32
    %c0_i32_0 = arith.constant 0 : i32
    %c0_i32_1 = arith.constant 0 : i32
    return %arg0, %c0_i32, %c0_i32_0 : i32, i32, i32
  }
}

</mosaic_0001>

<bundles_post_ra>
// kernel: tpu_custom_call.1
= control target key start
LH: loop header
LB: loop body
LE: loop exit
PB: predicated region body
PF: predicated region fallthrough
CT: control target
= control target key end

     0   :  { %s7042_s13 = smov 0   ;;  %s13555_s0 = inlined_call_operand.vmem [shape: f32[2,256,4], index: 0, kind: input, shape index: {}]   ;;  %s13556_s1 = inlined_call_operand.vmem [shape: bf16[4,128], index: 1, kind: input, shape index: {}]   ;;  %s13557_s2 = inlined_call_operand.vmem [shape: f32[1,128], index: 2, kind: input, shape index: {}]   ;;  %s13558_s3 = inlined_call_operand.vmem [shape: f32[9,256,1], index: 3, kind: input, shape index: {}]   ;;  %s13559_s4 = inlined_call_operand.vmem [shape: f32[9,1,128], index: 4, kind: input, shape index: {}]   ;;  %s13560_s5 = inlined_call_operand.vmem [shape: f32[1,128], index: 5, kind: input, shape index: {}]   ;;  %s13561_s6 = inlined_call_operand.vmem [shape: bf16[128,128], index: 6, kind: input, shape index: {}]   ;;  %s13562_s7 = inlined_call_operand.vmem [shape: bf16[128,128], index: 7, kind: input, shape index: {}]   ;;  %s13563_s8 = inlined_call_operand.vmem [shape: bf16[128,4], index: 8, kind: input, shape index: {}]   ;;  %s13564_s9 = inlined_call_operand.vmem [shape: f32[1,4], index: 9, kind: input, shape index: {}]   ;;  %s13565_s10 = inlined_call_operand.vmem [shape: f32[2,256,4], index: 10, kind: output, shape index: {}]  }
   0x1 LB: > { %s6229_s14 = sadd.s32 4294967295, %s6983_s13   ;;  %p6233_p0 = scmp.ge.s32.totalorder %s6983_s13, 1  ;;  %s6983_s13 = sphi %s7042_s13, %s20_s13  }
   0x2   : > { %p312_p1 = scmp.lt.s32.totalorder %s6983_s13, 3 }
   0x4   : > { %p313_p2 = pnand %p6233_p0, %p312_p1 }
   0x6   : > { %316 = sbr.rel (%p313_p2) target bundleno = 1778 (0x6f2), region = 60 }
   0xb   : > { %v1907_v0 = vld [vmem:[%s13558_s3 + $0x20] sm:$0xff]  ;;  %v1905_v1 = vld [vmem:[%s13558_s3 + $0x10] sm:$0xff]  ;;  %vm463_vm0 = vcmask 1041408   ;;  %p350_p3 = scmp.lt.s32.totalorder %s6229_s14, 1  ;;  %v6985_v3 = vmov 0   ;;  %vm414_vm1 = vcmask 31744  }
   0xc   : > { %v1903_v2 = vld [vmem:[%s13558_s3] sm:$0xff]  ;;  %6631 = vset.pattern.permute.xlu2 %v6985_v3  ;;  %6630 = vset.pattern.permute.xlu1 %v6985_v3  ;;  %v1908_v11 = vld [vmem:[%s13558_s3 + $0x28] sm:$0xff]  ;;  %v1906_v13 = vld [vmem:[%s13558_s3 + $0x18] sm:$0xff] }
   0xd   : > { %v409_v4 = vld [vmem:[%s13556_s1] sm:$0x3]  ;;  %6629 = vset.pattern.permute.xlu0 %v6985_v3  ;;  %1957 = vperm.xlu2 %6631, %v1907_v0   ;;  %s14693_s14 = smov (!%p350_p3, %s6229_s14), 1  ;;  %v1904_v14 = vld [vmem:[%s13558_s3 + $0x8] sm:$0xff]  ;;  %v1910_v16 = vld [vmem:[%s13558_s3 + $0x38] sm:$0xff] }
   0xe   : > { %v465_v5 = vsel %vm463_vm0, %v409_v4, 0  ;;  %1947 = vperm.xlu1 %6630, %v1905_v1   ;;  %1937 = vperm.xlu0 %6629, %v1903_v2   ;;  %s6584_s23 = sshll.u32 %s14693_s14, 8  ;;  %v1911_v15 = vld [vmem:[%s13558_s3 + $0x40] sm:$0xff]  ;;  %v1909_v17 = vld [vmem:[%s13558_s3 + $0x30] sm:$0xff]  ;;  %v1914_v24 = vld [vmem:[%s13558_s3 + $0x58] sm:$0xff] }
   0xf   : > { %474 = vmatpush.bf16.msra.mxu0 %v465_v5  ;;  %6610 = vmatpush.bf16.msra.mxu2 %v465_v5  ;;  %s7070_s26 = scalar_lea.vmem %s13555_s0, %s6584_s23  ;;  %v1913_v25 = vld [vmem:[%s13558_s3 + $0x50] sm:$0xff]  ;;  %v1912_v26 = vld [vmem:[%s13558_s3 + $0x48] sm:$0xff]  ;;  %v1915_v29 = vld [vmem:[%s13558_s3 + $0x60] sm:$0xff]  ;;  %s13423_s24 = scalar_lea.vmem %s13565_s10, %s6584_s23 }
  0x10   : > { %v361_v6 = vld [vmem:[%s7070_s26] sm:$0xff]  ;;  %v362_v7 = vld [vmem:[%s7070_s26 + $0x8] sm:$0xff]  ;;  %v363_v18 = vld [vmem:[%s7070_s26 + $0x10] sm:$0xff] }
  0x11   : > { %v381_v8 = vld [vmem:[%s7070_s26 + $0xa0] sm:$0xff]  ;;  %v393_v9 = vpack.c.bf16 %v362_v7, %v361_v6  ;;  %v382_v10 = vld [vmem:[%s7070_s26 + $0xa8] sm:$0xff]  ;;  %v364_v19 = vld [vmem:[%s7070_s26 + $0x18] sm:$0xff] }
  0x12   : > { %v403_v12 = vpack.c.bf16 %v382_v10, %v381_v8  ;;  %v383_v20 = vld [vmem:[%s7070_s26 + $0xb0] sm:$0xff]  ;;  %v384_v21 = vld [vmem:[%s7070_s26 + $0xb8] sm:$0xff]  ;;  %v394_v22 = vpack.c.bf16 %v364_v19, %v363_v18  ;;  %v1916_v28 = vld [vmem:[%s13558_s3 + $0x68] sm:$0xff] }
  0x13   : > { %6238 = vmatmul.msk.bf16.vlgmr.msra.gmra.mxu0 %vm414_vm1, %v393_v9  ;;  %v404_v23 = vpack.c.bf16 %v384_v21, %v383_v20  ;;  %v1917_v27 = vld [vmem:[%s13558_s3 + $0x70] sm:$0xff]  ;;  %v365_v30 = vld [vmem:[%s7070_s26 + $0x20] sm:$0xff]  ;;  %v366_v31 = vld [vmem:[%s7070_s26 + $0x28] sm:$0xff] }
  0x14   : > { %6248 = vmatmul.msk.bf16.vlgmr.msra.gmra.mxu2 %vm414_vm1, %v403_v12  ;;  %v385_v32 = vld [vmem:[%s7070_s26 + $0xc0] sm:$0xff]  ;;  %v386_v33 = vld [vmem:[%s7070_s26 + $0xc8] sm:$0xff]  ;;  %v395_v34 = vpack.c.bf16 %v366_v31, %v365_v30  ;;  %v1918_v38 = vld [vmem:[%s13558_s3 + $0x78] sm:$0xff] }
  0x15   : > { %1962 = vperm.xlu2 %6631, %v1908_v11   ;;  %v405_v35 = vpack.c.bf16 %v386_v33, %v385_v32  ;;  %v1920_v36 = vld [vmem:[%s13558_s3 + $0x88] sm:$0xff]  ;;  %v1919_v37 = vld [vmem:[%s13558_s3 + $0x80] sm:$0xff]  ;;  %v1922_v40 = vld [vmem:[%s13558_s3 + $0x98] sm:$0xff] }
  0x16   : > { %1952 = vperm.xlu1 %6630, %v1906_v13   ;;  %1942 = vperm.xlu0 %6629, %v1904_v14   ;;  %v1923_v39 = vld [vmem:[%s13558_s3 + $0xa0] sm:$0xff]  ;;  %v1921_v41 = vld [vmem:[%s13558_s3 + $0x90] sm:$0xff]  ;;  %v368_v43 = vld [vmem:[%s7070_s26 + $0x38] sm:$0xff] }
  0x17   : > { %v367_v42 = vld [vmem:[%s7070_s26 + $0x30] sm:$0xff]  ;;  %v388_v45 = vld [vmem:[%s7070_s26 + $0xd8] sm:$0xff]  ;;  %v1924_v50 = vld [vmem:[%s13558_s3 + $0xa8] sm:$0xff] }
  0x18   : > { %v387_v44 = vld [vmem:[%s7070_s26 + $0xd0] sm:$0xff]  ;;  %v396_v46 = vpack.c.bf16 %v368_v43, %v367_v42  ;;  %v1926_v48 = vld [vmem:[%s13558_s3 + $0xb8] sm:$0xff]  ;;  %v1928_v52 = vld [vmem:[%s13558_s3 + $0xc8] sm:$0xff] }
  0x19   : > { %v406_v47 = vpack.c.bf16 %v388_v45, %v387_v44  ;;  %v1925_v49 = vld [vmem:[%s13558_s3 + $0xb0] sm:$0xff]  ;;  %v1927_v53 = vld [vmem:[%s13558_s3 + $0xc0] sm:$0xff]  ;;  %v370_v55 = vld [vmem:[%s7070_s26 + $0x48] sm:$0xff] }
  0x1a   : > { %v1929_v51 = vld [vmem:[%s13558_s3 + $0xd0] sm:$0xff]  ;;  %v369_v54 = vld [vmem:[%s7070_s26 + $0x40] sm:$0xff]  ;;  %v390_v57 = vld [vmem:[%s7070_s26 + $0xe8] sm:$0xff] }
  0x1b   : > { %v389_v56 = vld [vmem:[%s7070_s26 + $0xe0] sm:$0xff]  ;;  %v397_v58 = vpack.c.bf16 %v370_v55, %v369_v54  ;;  %v1932_v60 = vld [vmem:[%s13558_s3 + $0xe8] sm:$0xff]  ;;  %v1930_v62 = vld [vmem:[%s13558_s3 + $0xd8] sm:$0xff] }
  0x1c   : > { %v407_v59 = vpack.c.bf16 %v390_v57, %v389_v56  ;;  %v1931_v61 = vld [vmem:[%s13558_s3 + $0xe0] sm:$0xff]  ;;  %v1934_v0 = vld [vmem:[%s13558_s3 + $0xf8] sm:$0xff]  ;;  %v1933_v1 = vld [vmem:[%s13558_s3 + $0xf0] sm:$0xff] }
  0x1d   : > { %1977 = vperm.xlu2 %6631, %v1911_v15   ;;  %v6254_v63 = vld [vmem:[%s13558_s3 + $0x100] sm:$0xff]  ;;  %v371_v2 = vld [vmem:[%s7070_s26 + $0x50] sm:$0xff]  ;;  %v372_v3 = vld [vmem:[%s7070_s26 + $0x58] sm:$0xff] }
  0x1e   : > { %1972 = vperm.xlu1 %6630, %v1910_v16   ;;  %1967 = vperm.xlu0 %6629, %v1909_v17   ;;  %v391_v4 = vld [vmem:[%s7070_s26 + $0xf0] sm:$0xff]  ;;  %v392_v5 = vld [vmem:[%s7070_s26 + $0xf8] sm:$0xff]  ;;  %v398_v6 = vpack.c.bf16 %v372_v3, %v371_v2  ;;  %v6255_v10 = vld [vmem:[%s13558_s3 + $0x108] sm:$0xff] }
  0x1f   : > { %v408_v7 = vpack.c.bf16 %v392_v5, %v391_v4  ;;  %v6257_v8 = vld [vmem:[%s13558_s3 + $0x118] sm:$0xff]  ;;  %v6256_v9 = vld [vmem:[%s13558_s3 + $0x110] sm:$0xff]  ;;  %v6259_v12 = vld [vmem:[%s13558_s3 + $0x128] sm:$0xff] }
  0x20   : > { %v6260_v11 = vld [vmem:[%s13558_s3 + $0x130] sm:$0xff]  ;;  %v6258_v13 = vld [vmem:[%s13558_s3 + $0x120] sm:$0xff]  ;;  %v374_v15 = vld [vmem:[%s7070_s26 + $0x68] sm:$0xff] }
  0x21   : > { %v373_v14 = vld [vmem:[%s7070_s26 + $0x60] sm:$0xff]  ;;  %v6263_v17 = vld [vmem:[%s13558_s3 + $0x148] sm:$0xff]  ;;  %v6261_v19 = vld [vmem:[%s13558_s3 + $0x138] sm:$0xff] }
  0x22   : > { %v399_v16 = vpack.c.bf16 %v374_v15, %v373_v14  ;;  %v6262_v18 = vld [vmem:[%s13558_s3 + $0x140] sm:$0xff]  ;;  %v6265_v21 = vld [vmem:[%s13558_s3 + $0x158] sm:$0xff]  ;;  %v6271_v30 = vld [vmem:[%s13558_s3 + $0x188] sm:$0xff] }
  0x23   : > { %6239 = vmatmul.msk.bf16.gmra.mxu0 %vm414_vm1, %v394_v22  ;;  %v6266_v20 = vld [vmem:[%s13558_s3 + $0x160] sm:$0xff]  ;;  %v6264_v22 = vld [vmem:[%s13558_s3 + $0x150] sm:$0xff]  ;;  %v378_v33 = vld [vmem:[%s7070_s26 + $0x88] sm:$0xff] }
  0x24   : > { %6249 = vmatmul.msk.bf16.gmra.mxu2 %vm414_vm1, %v404_v23  ;;  %v375_v23 = vld [vmem:[%s7070_s26 + $0x70] sm:$0xff]  ;;  %v6270_v31 = vld [vmem:[%s13558_s3 + $0x180] sm:$0xff]  ;;  %v380_v43 = vld [vmem:[%s7070_s26 + $0x98] sm:$0xff] }
  0x25   : > { %1992 = vperm.xlu2 %6631, %v1914_v24   ;;  %v376_v24 = vld [vmem:[%s7070_s26 + $0x78] sm:$0xff]  ;;  %v377_v32 = vld [vmem:[%s7070_s26 + $0x80] sm:$0xff]  ;;  %v379_v42 = vld [vmem:[%s7070_s26 + $0x90] sm:$0xff] }
  0x26   : > { %1987 = vperm.xlu1 %6630, %v1913_v25   ;;  %1982 = vperm.xlu0 %6629, %v1912_v26   ;;  %v400_v25 = vpack.c.bf16 %v376_v24, %v375_v23  ;;  %v6269_v26 = vld [vmem:[%s13558_s3 + $0x178] sm:$0xff]  ;;  %v7286_v44 = vld [vmem:[%s13557_s2] ss:$0 sm:$0xff]  ;;  %v402_v45 = vpack.c.bf16 %v380_v43, %v379_v42  ;;  %v6283_v54 = vld [vmem:[%s13558_s3 + $0x1e8] sm:$0xff] }
  0x27   : > { %v6282_v55 = vld [vmem:[%s13558_s3 + $0x1e0] sm:$0xff]  ;;  %v6289_v24 = vld [vmem:[%s13558_s3 + $0x210] sm:$0xff] }
  0x2d   : > { %2007 = vperm.xlu2 %6631, %v1917_v27   ;;  %v6268_v27 = vld [vmem:[%s13558_s3 + $0x170] sm:$0xff] }
  0x2e   : > { %2002 = vperm.xlu1 %6630, %v1916_v28   ;;  %1997 = vperm.xlu0 %6629, %v1915_v29   ;;  %v6267_v28 = vld [vmem:[%s13558_s3 + $0x168] sm:$0xff]  ;;  %v6272_v29 = vld [vmem:[%s13558_s3 + $0x190] sm:$0xff] }
  0x33   : > { %6240 = vmatmul.msk.bf16.gmra.mxu0 %vm414_vm1, %v395_v34  ;;  %v401_v34 = vpack.c.bf16 %v378_v33, %v377_v32 }
  0x34   : > { %6250 = vmatmul.msk.bf16.gmra.mxu2 %vm414_vm1, %v405_v35  ;;  %v6275_v35 = vld [vmem:[%s13558_s3 + $0x1a8] sm:$0xff] }
  0x35   : > { %2022 = vperm.xlu2 %6631, %v1920_v36   ;;  %v6274_v36 = vld [vmem:[%s13558_s3 + $0x1a0] sm:$0xff] }
  0x36   : > { %2017 = vperm.xlu1 %6630, %v1919_v37   ;;  %2012 = vperm.xlu0 %6629, %v1918_v38   ;;  %v6273_v37 = vld [vmem:[%s13558_s3 + $0x198] sm:$0xff] }
  0x3d   : > { %2037 = vperm.xlu2 %6631, %v1923_v39   ;;  %v6278_v39 = vld [vmem:[%s13558_s3 + $0x1c0] sm:$0xff] }
  0x3e   : > { %2032 = vperm.xlu1 %6630, %v1922_v40   ;;  %2027 = vperm.xlu0 %6629, %v1921_v41   ;;  %v6277_v40 = vld [vmem:[%s13558_s3 + $0x1b8] sm:$0xff]  ;;  %v6276_v41 = vld [vmem:[%s13558_s3 + $0x1b0] sm:$0xff] }
  0x43   : > { %6241 = vmatmul.msk.bf16.gmra.mxu0 %vm414_vm1, %v396_v46 }
  0x44   : > { %6251 = vmatmul.msk.bf16.gmra.mxu2 %vm414_vm1, %v406_v47 }
  0x45   : > { %2052 = vperm.xlu2 %6631, %v1926_v48   ;;  %v6281_v48 = vld [vmem:[%s13558_s3 + $0x1d8] sm:$0xff] }
  0x46   : > { %2047 = vperm.xlu1 %6630, %v1925_v49   ;;  %2042 = vperm.xlu0 %6629, %v1924_v50   ;;  %v6280_v49 = vld [vmem:[%s13558_s3 + $0x1d0] sm:$0xff]  ;;  %v6279_v50 = vld [vmem:[%s13558_s3 + $0x1c8] sm:$0xff] }
  0x4d   : > { %2067 = vperm.xlu2 %6631, %v1929_v51  }
  0x4e   : > { %2062 = vperm.xlu1 %6630, %v1928_v52   ;;  %2057 = vperm.xlu0 %6629, %v1927_v53   ;;  %v6284_v53 = vld [vmem:[%s13558_s3 + $0x1f0] sm:$0xff] }
  0x53   : > { %6242 = vmatmul.msk.bf16.gmra.mxu0 %vm414_vm1, %v397_v58 }
  0x54   : > { %6252 = vmatmul.msk.bf16.gmra.mxu2 %vm414_vm1, %v407_v59 }
  0x55   : > { %2082 = vperm.xlu2 %6631, %v1932_v60  }
  0x56   : > { %2077 = vperm.xlu1 %6630, %v1931_v61   ;;  %2072 = vperm.xlu0 %6629, %v1930_v62   ;;  %v6288_v61 = vld [vmem:[%s13558_s3 + $0x208] sm:$0xff]  ;;  %v6287_v62 = vld [vmem:[%s13558_s3 + $0x200] sm:$0xff] }
  0x5d   : > { %2198 = vperm.xlu2 %6631, %v6254_v63   ;;  %v6285_v63 = vld [vmem:[%s13558_s3 + $0x1f8] sm:$0xff] }
  0x5e   : > { %2092 = vperm.xlu1 %6630, %v1934_v0   ;;  %2087 = vperm.xlu0 %6629, %v1933_v1  }
  0x63   : > { %6243 = vmatmul.msk.bf16.gmra.mxu0 %vm414_vm1, %v398_v6 }
  0x64   : > { %6253 = vmatmul.msk.bf16.gmra.mxu2 %vm414_vm1, %v408_v7 }
  0x65   : > { %2213 = vperm.xlu2 %6631, %v6257_v8  }
  0x66   : > { %2208 = vperm.xlu1 %6630, %v6256_v9   ;;  %2203 = vperm.xlu0 %6629, %v6255_v10  }
  0x6d   : > { %2228 = vperm.xlu2 %6631, %v6260_v11   ;;  %v7335_v11 = vpop.permute.xlu2 %1957 }
  0x6e   : > { %2223 = vperm.xlu1 %6630, %v6259_v12   ;;  %2218 = vperm.xlu0 %6629, %v6258_v13   ;;  %13821 = vst [vmem:[#allocation2_spill] sm:$0xff] %v7335_v11 }
  0x73   : > { %6244 = vmatmul.msk.bf16.gmra.mxu0 %vm414_vm1, %v399_v16 }
  0x75   : > { %2243 = vperm.xlu2 %6631, %v6263_v17  }
  0x76   : > { %2238 = vperm.xlu1 %6630, %v6262_v18   ;;  %2233 = vperm.xlu0 %6629, %v6261_v19   ;;  %v6291_v19 = vld [vmem:[%s13558_s3 + $0x220] sm:$0xff] }
  0x7d   : > { %2258 = vperm.xlu2 %6631, %v6266_v20   ;;  %v6290_v20 = vld [vmem:[%s13558_s3 + $0x218] sm:$0xff] }
  0x7e   : > { %2253 = vperm.xlu1 %6630, %v6265_v21   ;;  %2248 = vperm.xlu0 %6629, %v6264_v22   ;;  %v7348_v22 = vpop.permute.xlu2 %1962 }
  0x7f   : > { %13822 = vst [vmem:[#allocation3_spill] sm:$0xff] %v7348_v22  ;;  %v6312_v22 = vld [vmem:[%s13558_s3 + $0x2c8] sm:$0xff] }
  0x83   : > { %6245 = vmatmul.msk.bf16.gmra.mxu0 %vm414_vm1, %v400_v25 }
  0x85   : > { %2273 = vperm.xlu2 %6631, %v6269_v26  }
  0x86   : > { %2268 = vperm.xlu1 %6630, %v6268_v27   ;;  %2263 = vperm.xlu0 %6629, %v6267_v28  }
  0x8d   : > { %2288 = vperm.xlu2 %6631, %v6272_v29  }
  0x8e   : > { %2283 = vperm.xlu1 %6630, %v6271_v30   ;;  %2278 = vperm.xlu0 %6629, %v6270_v31  }
  0x93   : > { %6246 = vmatmul.msk.bf16.gmra.mxu0 %vm414_vm1, %v401_v34 }
  0x95   : > { %2303 = vperm.xlu2 %6631, %v6275_v35  }
  0x96   : > { %2298 = vperm.xlu1 %6630, %v6274_v36   ;;  %2293 = vperm.xlu0 %6629, %v6273_v37  }
  0x97   : > { %v7270_v38 = vpop.f32.mrf.mxu2 }
  0x9d   : > { %2318 = vperm.xlu2 %6631, %v6278_v39  }
  0x9e   : > { %2313 = vperm.xlu1 %6630, %v6277_v40   ;;  %2308 = vperm.xlu0 %6629, %v6276_v41   ;;  %v7362_v41 = vpop.permute.xlu2 %1977 }
  0x9f   : > { %v528_v46 = vpop.f32.mrf.mxu2  ;;  %13823 = vst [vmem:[#allocation4_spill] sm:$0xff] %v7362_v41 }
  0xa0   : > { %v7289_v47 = vadd.f32 %v7286_v44, %v528_v46 }
  0xa2   : > { %v7302_v51 = vmul.f32 0.70710677, %v7289_v47 }
  0xa3   : > { %6247 = vmatmul.msk.bf16.gmra.mxu0 %vm414_vm1, %v402_v45 }
  0xa4   : > { %v7305_v52 = vand.u32 2147483647, %v7302_v51  ;;  %vm641_vm15 = vcmp.ge.f32.partialorder %v7302_v51, 0.0 }
  0xa5   : > { %2333 = vperm.xlu2 %6631, %v6281_v48  }
  0xa6   : > { %2328 = vperm.xlu1 %6630, %v6280_v49   ;;  %2323 = vperm.xlu0 %6629, %v6279_v50   ;;  %v737_v56 = vmul.f32 0.3275911, %v7305_v52  ;;  %v1569_v32 = vsub.f32 0.0, %v7305_v52 }
  0xa7   : > { %v531_v58 = vpop.f32.mrf.mxu2 }
  0xa8   : > { %v769_v57 = vadd.f32 1.0, %v737_v56  ;;  %v7327_v1 = vadd.f32 %v7286_v44, %v531_v58  ;;  %v1601_v42 = vmul.f32 %v1569_v32, %v7305_v52 }
  0xaa   : > { %6644 = vrcp.f32 %v769_v57  ;;  %v1106_v0 = vand.u32 2147483648, %v769_v57  ;;  %vm1100_vm2 = vweird.f32 %v769_v57  ;;  %v1104_v3 = vand.u32 2147483647, %v769_v57 }
  0xab   : > { %v7330_v6 = vmul.f32 0.70710677, %v7327_v1  ;;  %v1654_v50 = vmul.f32 1.442695, %v1601_v42 }
  0xac   : > { %v1107_v5 = vor.u32 1.1754944e-38, %v1106_v0  ;;  %vm1105_vm5 = vcmp.eq.f32.partialorder %v1104_v3, 8.507059e+37  ;;  %v7371_v0 = vpop.permute.xlu1 %1947 }
  0xad   : > { %2348 = vperm.xlu2 %6631, %v6284_v53   ;;  %v706_v10 = vand.u32 2147483647, %v7330_v6  ;;  %13825 = vst [vmem:[#allocation6_spill] sm:$0xff] %v7371_v0  ;;  %vm642_vm14 = vcmp.ge.f32.partialorder %v7330_v6, 0.0 }
  0xae   : > { %2343 = vperm.xlu1 %6630, %v6283_v54   ;;  %2338 = vperm.xlu0 %6629, %v6282_v55  }
  0xaf   : > { %v738_v12 = vmul.f32 0.3275911, %v706_v10  ;;  %v533_v15 = vpop.f32.mrf.mxu2  ;;  %v1570_v34 = vsub.f32 0.0, %v706_v10 }
  0xb0   : > { %v6645_v59 = vpop.eup %6644  ;;  %v7339_v17 = vadd.f32 %v7286_v44, %v533_v15 }
  0xb1   : > { %v1096_v60 = vmul.f32 %v6645_v59, %v769_v57  ;;  %vm1101_vm3 = vweird.f32 %v6645_v59  ;;  %v770_v14 = vadd.f32 1.0, %v738_v12  ;;  %v1602_v48 = vmul.f32 %v1570_v34, %v706_v10 }
  0xb2   : > { %vm1102_vm4 = vmor %vm1100_vm2, %vm1101_vm3  ;;  %v7351_v23 = vmul.f32 0.70710677, %v7339_v17 }
  0xb3   : > { %v1097_v2 = vsub.f32 1.0, %v1096_v60  ;;  %6646 = vrcp.f32 %v770_v14  ;;  %vm1115_vm6 = vweird.f32 %v770_v14  ;;  %v1121_v26 = vand.u32 2147483648, %v770_v14 }
  0xb4   : > { %v1119_v29 = vand.u32 2147483647, %v770_v14  ;;  %v7357_v30 = vand.u32 2147483647, %v7351_v23  ;;  %v1656_v56 = vmul.f32 1.442695, %v1602_v48 }
  0xb5   : > { %2562 = vperm.xlu2 %6631, %v6288_v61   ;;  %v1098_v4 = vmul.f32 %v6645_v59, %v1097_v2  ;;  %v1122_v33 = vor.u32 1.1754944e-38, %v1121_v26  ;;  %v6293_v26 = vld [vmem:[%s13558_s3 + $0x230] sm:$0xff] }
  0xb6   : > { %2557 = vperm.xlu1 %6630, %v6287_v62   ;;  %2353 = vperm.xlu0 %6629, %v6285_v63   ;;  %vm1120_vm9 = vcmp.eq.f32.partialorder %v1119_v29, 8.507059e+37  ;;  %v739_v37 = vmul.f32 0.3275911, %v7357_v30  ;;  %v7369_v63 = vpop.permute.xlu2 %1992 }
  0xb7   : > { %v1099_v7 = vadd.f32 %v6645_v59, %v1098_v4  ;;  %v536_v53 = vpop.f32.mrf.mxu2  ;;  %13824 = vst [vmem:[#allocation5_spill] sm:$0xff] %v7369_v63  ;;  %v7373_v4 = vpop.permute.xlu0 %1937 }
  0xb8   : > { %v771_v40 = vadd.f32 1.0, %v739_v37  ;;  %13826 = vst [vmem:[#allocation7_spill] sm:$0xff] %v7373_v4  ;;  %v7404_v37 = vpop.permute.xlu1 %1952 }
  0xb9   : > { %v1103_v8 = vsel %vm1102_vm4, %v6645_v59, %v1099_v7  ;;  %v6647_v21 = vpop.eup %6646  ;;  %v7367_v59 = vadd.f32 %v7286_v44, %v536_v53  ;;  %13830 = vst [vmem:[#allocation9_spill] sm:$0xff] %v7404_v37 }
  0xba   : > { %v7332_v9 = vsel %vm1105_vm5, %v1107_v5, %v1103_v8  ;;  %v1111_v25 = vmul.f32 %v6647_v21, %v770_v14  ;;  %vm1116_vm7 = vweird.f32 %v6647_v21  ;;  %6648 = vrcp.f32 %v771_v40 }
  0xbb   : > { %v1281_v13 = vmul.f32 1.0614054, %v7332_v9  ;;  %vm1117_vm8 = vmor %vm1115_vm6, %vm1116_vm7  ;;  %6650 = vpow2.f32 %v1654_v50  ;;  %v1136_v62 = vand.u32 2147483648, %v771_v40  ;;  %vm1130_vm10 = vweird.f32 %v771_v40 }
  0xbc   : > { %v1112_v28 = vsub.f32 1.0, %v1111_v25  ;;  %6652 = vpow2.f32 %v1656_v56  ;;  %v1134_v3 = vand.u32 2147483647, %v771_v40  ;;  %v7376_v7 = vmul.f32 0.70710677, %v7367_v59 }
  0xbd   : > { %v1313_v16 = vadd.f32 -1.4531521, %v1281_v13  ;;  %2577 = vperm.xlu2 %6631, %v6291_v19   ;;  %v1137_v14 = vor.u32 1.1754944e-38, %v1136_v62  ;;  %v577_v62 = vmul.f32 0.5, %v7289_v47  ;;  %vm643_vm5 = vcmp.ge.f32.partialorder %v7351_v23, 0.0 }
  0xbe   : > { %2572 = vperm.xlu1 %6630, %v6290_v20   ;;  %2567 = vperm.xlu0 %6629, %v6289_v24   ;;  %v1113_v31 = vmul.f32 %v6647_v21, %v1112_v28  ;;  %v7384_v15 = vand.u32 2147483647, %v7376_v7  ;;  %vm1135_vm13 = vcmp.eq.f32.partialorder %v1134_v3, 8.507059e+37 }
  0xbf   : > { %v1345_v18 = vmul.f32 %v1313_v16, %v7332_v9  ;;  %v538_v47 = vpop.f32.mrf.mxu2 }
  0xc0   : > { %v1114_v36 = vadd.f32 %v6647_v21, %v1113_v31  ;;  %v6649_v57 = vpop.eup %6648  ;;  %v740_v24 = vmul.f32 0.3275911, %v7384_v15 }
  0xc1   : > { %v1377_v27 = vadd.f32 1.4214138, %v1345_v18  ;;  %v1126_v60 = vmul.f32 %v6649_v57, %v771_v40  ;;  %vm1131_vm11 = vweird.f32 %v6649_v57  ;;  %v6651_v16 = vpop.eup %6650 }
  0xc2   : > { %v1118_v39 = vsel %vm1117_vm8, %v6647_v21, %v1114_v36  ;;  %vm7379_vm12 = vmor %vm1130_vm10, %vm1131_vm11  ;;  %v6653_v19 = vpop.eup %6652  ;;  %v1571_v21 = vsub.f32 0.0, %v7357_v30  ;;  %v772_v32 = vadd.f32 1.0, %v740_v24  ;;  %v7402_v36 = vpop.permute.xlu2 %2007  ;;  %v6297_v24 = vld [vmem:[%s13558_s3 + $0x250] sm:$0xff]  ;;  %vm644_vm11 = vcmp.ge.f32.partialorder %v7376_v7, 0.0 }
  0xc3   : > { %v1409_v35 = vmul.f32 %v1377_v27, %v7332_v9  ;;  %v1123_v43 = vsel %vm1120_vm9, %v1122_v33, %v1118_v39  ;;  %v1127_v2 = vsub.f32 1.0, %v1126_v60  ;;  %v6292_v27 = vld [vmem:[%s13558_s3 + $0x228] sm:$0xff]  ;;  %13829 = vst [vmem:[#allocation8_spill] sm:$0xff] %v7402_v36  ;;  %v13570_v39 = vmov -1.0   ;;  %v6301_v7 = vld [vmem:[%s13558_s3 + $0x270] sm:$0xff] }
  0xc4   : > { %v1282_v46 = vmul.f32 1.0614054, %v1123_v43  ;;  %6654 = vrcp.f32 %v772_v32  ;;  %v674_v40 = vsel %vm642_vm14, 1.0, %v13570_v39  ;;  %v673_v51 = vsel %vm641_vm15, 1.0, %v13570_v39 }
  0xc5   : > { %v1441_v45 = vadd.f32 -0.28449672, %v1409_v35  ;;  %v1128_v8 = vmul.f32 %v6649_v57, %v1127_v2  ;;  %v1603_v35 = vmul.f32 %v1571_v21, %v7357_v30  ;;  %vm1145_vm0 = vweird.f32 %v772_v32 }
  0xc6   : > { %v1314_v49 = vadd.f32 -1.4531521, %v1282_v46  ;;  %2587 = vperm.xlu1 %6630, %v6293_v26   ;;  %2582 = vperm.xlu0 %6629, %v6292_v27   ;;  %v1151_v6 = vand.u32 2147483648, %v772_v32  ;;  %v1868_v21 = vlaneseq  ;;  %v675_v23 = vsel %vm643_vm5, 1.0, %v13570_v39 }
  0xc7   : > { %v1473_v54 = vmul.f32 %v1441_v45, %v7332_v9  ;;  %v1129_v18 = vadd.f32 %v6649_v57, %v1128_v8  ;;  %v1658_v30 = vmul.f32 1.442695, %v1603_v35 }
  0xc8   : > { %v1346_v55 = vmul.f32 %v1314_v49, %v1123_v43 }
  0xc9   : > { %v1505_v52 = vadd.f32 0.2548296, %v1473_v54  ;;  %v1133_v25 = vsel %vm7379_vm12, %v6649_v57, %v1129_v18  ;;  %6656 = vpow2.f32 %v1658_v30  ;;  %v579_v30 = vmul.f32 0.5, %v7339_v17 }
  0xca   : > { %v1378_v58 = vadd.f32 1.4214138, %v1346_v55  ;;  %v1138_v31 = vsel %vm1135_vm13, %v1137_v14, %v1133_v25  ;;  %v6655_v53 = vpop.eup %6654  ;;  %v578_v55 = vmul.f32 0.5, %v7327_v1  ;;  %v7414_v3 = vpop.permute.xlu2 %2022  ;;  %v1152_v14 = vor.u32 1.1754944e-38, %v1151_v6  ;;  %v6295_v25 = vld [vmem:[%s13558_s3 + $0x240] sm:$0xff] }
  0xcb   : > { %v1537_v10 = vmul.f32 %v1505_v52, %v7332_v9  ;;  %v6294_v9 = vld [vmem:[%s13558_s3 + $0x238] sm:$0xff]  ;;  %v1283_v33 = vmul.f32 1.0614054, %v1138_v31  ;;  %v1141_v57 = vmul.f32 %v6655_v53, %v772_v32  ;;  %vm1146_vm2 = vweird.f32 %v6655_v53  ;;  %13832 = vst [vmem:[#allocation11_spill] sm:$0xff] %v7414_v3 }
  0xcc   : > { %v1410_v61 = vmul.f32 %v1378_v58, %v1123_v43  ;;  %2592 = vperm.xlu2 %6631, %v6294_v9   ;;  %vm7422_vm3 = vmor %vm1145_vm0, %vm1146_vm2  ;;  %v6296_v9 = vld [vmem:[%s13558_s3 + $0x248] sm:$0xff]  ;;  %v1572_v17 = vsub.f32 0.0, %v7384_v15 }
  0xcd   : > { %v1697_v28 = vmul.f32 %v6651_v16, %v1537_v10  ;;  %v1315_v42 = vadd.f32 -1.4531521, %v1283_v33  ;;  %v1142_v52 = vsub.f32 1.0, %v1141_v57  ;;  %v7446_v33 = vadd.f32 %v7286_v44, %v538_v47 }
  0xce   : > { %v1442_v5 = vadd.f32 -0.28449672, %v1410_v61  ;;  %v1149_v61 = vand.u32 2147483647, %v772_v32  ;;  %2602 = vperm.xlu1 %6630, %v6296_v9   ;;  %v7443_v32 = vshrl.u32 %v1868_v21, 7  ;;  %2597 = vperm.xlu0 %6629, %v6295_v25   ;;  %v1604_v47 = vmul.f32 %v1572_v17, %v7384_v15  ;;  %v7497_v25 = vpop.f32.mrf.mxu0 }
  0xcf   : > { %v1729_v45 = vsub.f32 1.0, %v1697_v28  ;;  %v1347_v48 = vmul.f32 %v1315_v42, %v1138_v31  ;;  %v1143_v10 = vmul.f32 %v6655_v53, %v1142_v52 }
  0xd0   : > { %v1474_v12 = vmul.f32 %v1442_v5, %v1123_v43  ;;  %v7416_v5 = vpop.permute.xlu1 %1972  ;;  %vm1150_vm4 = vcmp.eq.f32.partialorder %v1149_v61, 8.507059e+37  ;;  %13839 = vst [vmem:[#allocation16_spill] sm:$0xff] %v7443_v32  ;;  %vm1870_vm6 = vcmp.lt.s32.totalorder %v7443_v32, 1  ;;  %v6300_v61 = vld [vmem:[%s13558_s3 + $0x268] sm:$0xff] }
  0xd1   : > { %v1379_v50 = vadd.f32 1.4214138, %v1347_v48  ;;  %v1761_v54 = vmul.f32 %v1729_v45, %v673_v51  ;;  %13833 = vst [vmem:[#allocation12_spill] sm:$0xff] %v7416_v5  ;;  %v1144_v18 = vadd.f32 %v6655_v53, %v1143_v10  ;;  %v6299_v10 = vld [vmem:[%s13558_s3 + $0x260] sm:$0xff] }
  0xd2   : > { %v1506_v20 = vadd.f32 0.2548296, %v1474_v12  ;;  %v7462_v48 = vpop.permute.xlu2 %2037 }
  0xd3   : > { %v1411_v56 = vmul.f32 %v1379_v50, %v1138_v31  ;;  %v1793_v2 = vadd.f32 1.0, %v1761_v54  ;;  %v1148_v27 = vsel %vm7422_vm3, %v6655_v53, %v1144_v18  ;;  %13841 = vst [vmem:[#allocation18_spill] sm:$0xff] %v7462_v48 }
  0xd4   : > { %v1538_v29 = vmul.f32 %v1506_v20, %v1123_v43  ;;  %v7409_v43 = vpop.permute.xlu0 %1942  ;;  %2607 = vperm.xlu2 %6631, %v6297_v24   ;;  %v7440_v28 = vsel %vm1150_vm4, %v1152_v14, %v1148_v27  ;;  %v1660_v27 = vmul.f32 1.442695, %v1604_v47 }
  0xd5   : > { %13831 = vst [vmem:[#allocation10_spill] sm:$0xff] %v7409_v43  ;;  %v1443_v60 = vadd.f32 -0.28449672, %v1411_v56  ;;  %v7426_v20 = vmul.f32 %v1793_v2, %v577_v62  ;;  %v1284_v35 = vmul.f32 1.0614054, %v7440_v28 }
  0xd6   : > { %v1698_v34 = vmul.f32 %v6653_v19, %v1538_v29  ;;  %v6657_v19 = vpop.eup %6656  ;;  %2617 = vperm.xlu1 %6630, %v6299_v10  }
  0xd7   : > { %v1475_v8 = vmul.f32 %v1443_v60, %v1138_v31  ;;  %13838 = vst [vmem:[#allocation15_spill] sm:$0xff] %v7426_v20  ;;  %v1316_v45 = vadd.f32 -1.4531521, %v1284_v35 }
  0xd8   : > { %v1730_v46 = vsub.f32 1.0, %v1698_v34 }
  0xd9   : > { %v1507_v16 = vadd.f32 0.2548296, %v1475_v8  ;;  %v1348_v56 = vmul.f32 %v1316_v45, %v7440_v28 }
  0xda   : > { %v1762_v49 = vmul.f32 %v1730_v46, %v674_v40  ;;  %v7452_v40 = vmul.f32 0.70710677, %v7446_v33  ;;  %v7483_v62 = vpop.permute.xlu2 %2052 }
  0xdb   : > { %v1539_v26 = vmul.f32 %v1507_v16, %v1138_v31  ;;  %v13568_v31 = vrot.slane %v7426_v20, 7  ;;  %v1380_v6 = vadd.f32 1.4214138, %v1348_v56  ;;  %13846 = vst [vmem:[#allocation23_spill] sm:$0xff] %v7483_v62  ;;  %v6298_v16 = vld [vmem:[%s13558_s3 + $0x258] sm:$0xff] }
  0xdc   : > { %v1794_v58 = vadd.f32 1.0, %v1762_v49  ;;  %v7418_v1 = vpop.permute.xlu0 %1967  ;;  %v709_v51 = vand.u32 2147483647, %v7452_v40  ;;  %v7464_v49 = vpop.permute.xlu1 %1987  ;;  %2622 = vperm.xlu2 %6631, %v6300_v61   ;;  %2612 = vperm.xlu0 %6629, %v6298_v16   ;;  %vm645_vm12 = vcmp.ge.f32.partialorder %v7452_v40, 0.0 }
  0xdd   : > { %13834 = vst [vmem:[#allocation13_spill] sm:$0xff] %v7418_v1  ;;  %v1699_v34 = vmul.f32 %v6657_v19, %v1539_v26  ;;  %v1412_v8 = vmul.f32 %v1380_v6, %v7440_v28  ;;  %v7506_v6 = vpop.f32.mrf.mxu0 }
  0xde   : > { %v7420_v12 = vmul.f32 %v1794_v58, %v578_v55  ;;  %13842 = vst [vmem:[#allocation19_spill] sm:$0xff] %v7464_v49  ;;  %v741_v54 = vmul.f32 0.3275911, %v709_v51 }
  0xdf   : > { %v1731_v42 = vsub.f32 1.0, %v1699_v34  ;;  %v1444_v21 = vadd.f32 -0.28449672, %v1412_v8 }
  0xe0   : > { %13835 = vst [vmem:[#allocation14_spill] sm:$0xff] %v7420_v12  ;;  %v1858_v29 = vrot.slane %v7420_v12, 7  ;;  %v773_v57 = vadd.f32 1.0, %v741_v54 }
  0xe1   : > { %v1763_v50 = vmul.f32 %v1731_v42, %v675_v23  ;;  %v1476_v34 = vmul.f32 %v1444_v21, %v7440_v28  ;;  %v1573_v23 = vsub.f32 0.0, %v709_v51 }
  0xe2   : > { %v7459_v46 = vsel %vm1870_vm6, %v13568_v31, %v1858_v29  ;;  %6658 = vrcp.f32 %v773_v57  ;;  %vm1160_vm7 = vweird.f32 %v773_v57  ;;  %v1166_v19 = vand.u32 2147483648, %v773_v57  ;;  %v7500_v42 = vpop.permute.xlu2 %2067 }
  0xe3   : > { %13840 = vst [vmem:[#allocation17_spill] sm:$0xff] %v7459_v46  ;;  %v1795_v55 = vadd.f32 1.0, %v1763_v50  ;;  %v1164_v9 = vand.u32 2147483647, %v773_v57  ;;  %6660 = vpow2.f32 %v1660_v27  ;;  %v1508_v54 = vadd.f32 0.2548296, %v1476_v34 }
  0xe4   : > { %v7467_v53 = vpop.permute.xlu0 %1982  ;;  %v7485_v2 = vpop.permute.xlu1 %2002  ;;  %13849 = vst [vmem:[#allocation26_spill] sm:$0xff] %v7500_v42  ;;  %v1605_v56 = vmul.f32 %v1573_v23, %v709_v51  ;;  %v6302_v34 = vld [vmem:[%s13558_s3 + $0x278] sm:$0xff]  ;;  %2627 = vperm.xlu0 %6629, %v6301_v7   ;;  %v6305_v7 = vld [vmem:[%s13558_s3 + $0x290] sm:$0xff] }
  0xe5   : > { %13843 = vst [vmem:[#allocation20_spill] sm:$0xff] %v7467_v53  ;;  %v7470_v58 = vmul.f32 %v1795_v55, %v579_v30  ;;  %vm1165_vm10 = vcmp.eq.f32.partialorder %v1164_v9, 8.507059e+37  ;;  %v1540_v17 = vmul.f32 %v1508_v54, %v7440_v28  ;;  %v676_v28 = vsel %vm644_vm11, 1.0, %v13570_v39  ;;  %v481_v27 = vpop.f32.mrf.mxu0  ;;  %2632 = vperm.xlu1 %6630, %v6302_v34   ;;  %v6306_v34 = vld [vmem:[%s13558_s3 + $0x298] sm:$0xff] }
  0xe6   : > { %13847 = vst [vmem:[#allocation24_spill] sm:$0xff] %v7485_v2  ;;  %v1662_v10 = vmul.f32 1.442695, %v1605_v56 }
  0xe7   : > { %13844 = vst [vmem:[#allocation21_spill] sm:$0xff] %v7470_v58  ;;  %v13566_v60 = vrot.slane %v7470_v58, 7 }
  0xe8   : > { %v6659_v13 = vpop.eup %6658  ;;  %6662 = vpow2.f32 %v1662_v10 }
  0xe9   : > { %v7477_v52 = vsel %vm1870_vm6, %v1858_v29, %v13566_v60  ;;  %v1156_v18 = vmul.f32 %v6659_v13, %v773_v57  ;;  %vm1161_vm8 = vweird.f32 %v6659_v13  ;;  %v1167_v29 = vor.u32 1.1754944e-38, %v1166_v19  ;;  %v6661_v8 = vpop.eup %6660 }
  0xea   : > { %13845 = vst [vmem:[#allocation22_spill] sm:$0xff] %v7477_v52  ;;  %vm1162_vm9 = vmor %vm1160_vm7, %vm1161_vm8 }
  0xeb   : > { %v1157_v24 = vsub.f32 1.0, %v1156_v18  ;;  %v7509_v18 = vpop.permute.xlu2 %2082 }
  0xec   : > { %v7491_v14 = vpop.permute.xlu0 %1997  ;;  %v7502_v15 = vpop.permute.xlu1 %2017  ;;  %13852 = vst [vmem:[#allocation29_spill] sm:$0xff] %v7509_v18 }
  0xed   : > { %13848 = vst [vmem:[#allocation25_spill] sm:$0xff] %v7491_v14  ;;  %v1158_v26 = vmul.f32 %v6659_v13, %v1157_v24  ;;  %2647 = vperm.xlu1 %6630, %v6305_v7   ;;  %v7637_v14 = vadd.f32 %v7286_v44, %v7497_v25 }
  0xee   : > { %13850 = vst [vmem:[#allocation27_spill] sm:$0xff] %v7502_v15 }
  0xef   : > { %v1159_v35 = vadd.f32 %v6659_v13, %v1158_v26  ;;  %v6303_v26 = vld [vmem:[%s13558_s3 + $0x280] sm:$0xff]  ;;  %13868 = vst [vmem:[#allocation45_spill] sm:$0xff] %v7637_v14  ;;  %v7656_v25 = vmul.f32 0.70710677, %v7637_v14 }
  0xf0   : > { %2637 = vperm.xlu2 %6631, %v6303_v26  }
  0xf1   : > { %v1163_v45 = vsel %vm1162_vm9, %v6659_v13, %v1159_v35  ;;  %v1700_v13 = vmul.f32 %v6661_v8, %v1540_v17  ;;  %v6663_v35 = vpop.eup %6662  ;;  %v677_v17 = vsel %vm645_vm12, 1.0, %v13570_v39  ;;  %13872 = vst [vmem:[#allocation49_spill] sm:$0xff] %v7656_v25 }
  0xf2   : > { %v1168_v50 = vsel %vm1165_vm10, %v1167_v29, %v1163_v45 }
  0xf3   : > { %v1285_v55 = vmul.f32 1.0614054, %v1168_v50  ;;  %v1732_v24 = vsub.f32 1.0, %v1700_v13  ;;  %v7527_v54 = vpop.permute.xlu2 %2198 }
  0xf4   : > { %v7504_v30 = vpop.permute.xlu0 %2012  ;;  %v7511_v47 = vpop.permute.xlu1 %2032  ;;  %13855 = vst [vmem:[#allocation32_spill] sm:$0xff] %v7527_v54 }
  0xf5   : > { %13851 = vst [vmem:[#allocation28_spill] sm:$0xff] %v7504_v30  ;;  %v1317_v57 = vadd.f32 -1.4531521, %v1285_v55  ;;  %v1764_v23 = vmul.f32 %v1732_v24, %v676_v28  ;;  %v6307_v30 = vld [vmem:[%s13558_s3 + $0x2a0] sm:$0xff] }
  0xf6   : > { %13853 = vst [vmem:[#allocation30_spill] sm:$0xff] %v7511_v47 }
  0xf7   : > { %v1349_v61 = vmul.f32 %v1317_v57, %v1168_v50  ;;  %v1796_v8 = vadd.f32 1.0, %v1764_v23 }
  0xf8   : > { %2652 = vperm.xlu2 %6631, %v6306_v34  }
  0xf9   : > { %v1381_v16 = vadd.f32 1.4214138, %v1349_v61  ;;  %v580_v61 = vmul.f32 0.5, %v7367_v59 }
  0xfb   : > { %v1413_v19 = vmul.f32 %v1381_v16, %v1168_v50  ;;  %v581_v16 = vmul.f32 0.5, %v7446_v33  ;;  %v7540_v24 = vpop.permute.xlu2 %2213 }
  0xfc   : > { %v7513_v21 = vpop.permute.xlu0 %2027  ;;  %v7529_v55 = vpop.permute.xlu1 %2047  ;;  %13860 = vst [vmem:[#allocation37_spill] sm:$0xff] %v7540_v24 }
  0xfd   : > { %13854 = vst [vmem:[#allocation31_spill] sm:$0xff] %v7513_v21  ;;  %v1445_v51 = vadd.f32 -0.28449672, %v1413_v19  ;;  %v483_v19 = vpop.f32.mrf.mxu0 }
  0xfe   : > { %13856 = vst [vmem:[#allocation33_spill] sm:$0xff] %v7529_v55 }
  0xff   : > { %v1477_v9 = vmul.f32 %v1445_v51, %v1168_v50  ;;  %v7536_v51 = vmul.f32 %v1796_v8, %v580_v61 }
 0x101   : > { %v1509_v29 = vadd.f32 0.2548296, %v1477_v9  ;;  %13858 = vst [vmem:[#allocation35_spill] sm:$0xff] %v7536_v51  ;;  %v13567_v28 = vrot.slane %v7536_v51, 7 }
 0x103   : > { %v1541_v45 = vmul.f32 %v1509_v29, %v1168_v50  ;;  %v7557_v29 = vadd.f32 %v7286_v44, %v481_v27 }
 0x104   : > { %v7531_v57 = vpop.permute.xlu0 %2042  ;;  %v7542_v9 = vpop.permute.xlu1 %2062 }
 0x105   : > { %v1701_v56 = vmul.f32 %v6663_v35, %v1541_v45  ;;  %13857 = vst [vmem:[#allocation34_spill] sm:$0xff] %v7531_v57  ;;  %v6304_v35 = vld [vmem:[%s13558_s3 + $0x288] sm:$0xff]  ;;  %v7568_v23 = vpop.f32.mrf.mxu0  ;;  %v7571_v27 = vmul.f32 0.70710677, %v7557_v29  ;;  %v7573_v45 = vpop.permute.xlu2 %2228 }
 0x106   : > { %2642 = vperm.xlu0 %6629, %v6304_v35   ;;  %13862 = vst [vmem:[#allocation39_spill] sm:$0xff] %v7573_v45 }
 0x107   : > { %v1733_v10 = vsub.f32 1.0, %v1701_v56  ;;  %v7584_v8 = vand.u32 2147483647, %v7571_v27 }
 0x109   : > { %v1765_v13 = vmul.f32 %v1733_v10, %v677_v17  ;;  %v7579_v17 = vadd.f32 %v7286_v44, %v7270_v38  ;;  %v7587_v10 = vadd.f32 %v7286_v44, %v483_v19 }
 0x10b   : > { %v1797_v40 = vadd.f32 1.0, %v1765_v13  ;;  %v7594_v13 = vmul.f32 0.70710677, %v7579_v17  ;;  %v7598_v38 = vmul.f32 0.70710677, %v7587_v10 }
 0x10c   : > { %v7546_v59 = vpop.permute.xlu0 %2057  ;;  %v7575_v56 = vpop.permute.xlu1 %2077 }
 0x10d   : > { %v7538_v50 = vmul.f32 %v1797_v40, %v581_v16  ;;  %13863 = vst [vmem:[#allocation40_spill] sm:$0xff] %v7575_v56  ;;  %v7591_v16 = vadd.f32 %v7286_v44, %v7506_v6  ;;  %v718_v40 = vmul.f32 0.3275911, %v7584_v8  ;;  %v488_v34 = vpop.f32.mrf.mxu0  ;;  %v7604_v35 = vand.u32 2147483647, %v7594_v13  ;;  %v7608_v60 = vpop.permute.xlu2 %2243 }
 0x10e   : > { %13865 = vst [vmem:[#allocation42_spill] sm:$0xff] %v7608_v60  ;;  %2657 = vperm.xlu0 %6629, %v6307_v30   ;;  %v7642_v63 = vadd.f32 %v7286_v44, %v488_v34  ;;  %v7669_v34 = vand.u32 2147483647, %v7656_v25 }
 0x10f   : > { %13859 = vst [vmem:[#allocation36_spill] sm:$0xff] %v7538_v50  ;;  %v13569_v26 = vrot.slane %v7538_v50, 7  ;;  %v7601_v7 = vmul.f32 0.70710677, %v7591_v16  ;;  %v7606_v19 = vadd.f32 1.0, %v718_v40  ;;  %v6309_v40 = vld [vmem:[%s13558_s3 + $0x2b0] sm:$0xff] }
 0x110   : > { %13864 = vst [vmem:[#allocation41_spill] sm:$0xff] %v7591_v16  ;;  %v736_v39 = vmul.f32 0.3275911, %v7604_v35  ;;  %2667 = vperm.xlu2 %6631, %v6309_v40   ;;  %v7662_v30 = vmul.f32 0.70710677, %v7642_v63  ;;  %v1568_v51 = vsub.f32 0.0, %v7604_v35 }
 0x111   : > { %v7554_v33 = vsel %vm1870_vm6, %v13567_v28, %v13569_v26  ;;  %v7613_v28 = vand.u32 2147483647, %v7598_v38  ;;  %v7618_v26 = vand.u32 2147483647, %v7601_v7  ;;  %6664 = vrcp.f32 %v7606_v19  ;;  %13874 = vst [vmem:[#allocation51_spill] sm:$0xff] %v7669_v34 }
 0x112   : > { %13861 = vst [vmem:[#allocation38_spill] sm:$0xff] %v7554_v33  ;;  %v7633_v36 = vadd.f32 1.0, %v736_v39  ;;  %vm815_vm13 = vweird.f32 %v7606_v19  ;;  %v821_v25 = vand.u32 2147483648, %v7606_v19  ;;  %v819_v41 = vand.u32 2147483647, %v7606_v19 }
 0x113   : > { %v719_v3 = vmul.f32 0.3275911, %v7613_v28  ;;  %v717_v21 = vmul.f32 0.3275911, %v7618_v26 }
 0x114   : > { %v7581_v61 = vpop.permute.xlu0 %2072  ;;  %v7610_v6 = vpop.permute.xlu1 %2092  ;;  %6666 = vrcp.f32 %v7633_v36  ;;  %vm820_vm0 = vcmp.eq.f32.partialorder %v819_v41, 8.507059e+37  ;;  %vm1085_vm2 = vweird.f32 %v7633_v36 }
 0x115   : > { %13866 = vst [vmem:[#allocation43_spill] sm:$0xff] %v7610_v6  ;;  %v6308_v6 = vld [vmem:[%s13558_s3 + $0x2a8] sm:$0xff]  ;;  %v491_v47 = vpop.f32.mrf.mxu0  ;;  %v7639_v15 = vadd.f32 1.0, %v719_v3  ;;  %v7646_v40 = vadd.f32 1.0, %v717_v21 }
 0x116   : > { %2662 = vperm.xlu1 %6630, %v6308_v6   ;;  %v7648_v6 = vpop.permute.xlu2 %2258  ;;  %v7666_v21 = vadd.f32 %v7286_v44, %v491_v47  ;;  %v716_v47 = vmul.f32 0.3275911, %v7669_v34 }
 0x117   : > { %v7644_v2 = vpop.eup %6664  ;;  %13869 = vst [vmem:[#allocation46_spill] sm:$0xff] %v7648_v6  ;;  %6668 = vrcp.f32 %v7639_v15  ;;  %vm830_vm4 = vweird.f32 %v7639_v15  ;;  %vm800_vm8 = vweird.f32 %v7646_v40 }
 0x118   : > { %v811_v3 = vmul.f32 %v7644_v2, %v7606_v19  ;;  %6670 = vrcp.f32 %v7646_v40  ;;  %13873 = vst [vmem:[#allocation50_spill] sm:$0xff] %v7666_v21  ;;  %v7679_v0 = vmul.f32 0.70710677, %v7666_v21  ;;  %vm816_vm14 = vweird.f32 %v7644_v2  ;;  %2682 = vperm.xlu2 %6631, %v6312_v22  }
 0x119   : > { %vm7722_vm15 = vmor %vm815_vm13, %vm816_vm14 }
 0x11a   : > { %v812_v48 = vsub.f32 1.0, %v811_v3  ;;  %v7699_v56 = vand.u32 2147483647, %v7679_v0 }
 0x11c   : > { %v7615_v31 = vpop.permute.xlu0 %2087  ;;  %v7650_v43 = vpop.permute.xlu1 %2208  ;;  %v813_v3 = vmul.f32 %v7644_v2, %v812_v48  ;;  %v7707_v48 = vadd.f32 %v7286_v44, %v7568_v23  ;;  %v6311_v23 = vld [vmem:[%s13558_s3 + $0x2c0] sm:$0xff]  ;;  %v722_v1 = vmul.f32 0.3275911, %v7699_v56 }
 0x11d   : > { %13867 = vst [vmem:[#allocation44_spill] sm:$0xff] %v7615_v31  ;;  %v7671_v6 = vpop.f32.mrf.mxu0 }
 0x11e   : > { %13870 = vst [vmem:[#allocation47_spill] sm:$0xff] %v7650_v43  ;;  %v7676_v43 = vand.u32 2147483647, %v7662_v30  ;;  %v7688_v37 = vpop.permute.xlu2 %2273  ;;  %v814_v55 = vadd.f32 %v7644_v2, %v813_v3  ;;  %2677 = vperm.xlu1 %6630, %v6311_v23   ;;  %v7733_v49 = vmul.f32 0.70710677, %v7707_v48 }
 0x11f   : > { %13875 = vst [vmem:[#allocation52_spill] sm:$0xff] %v7688_v37  ;;  %v7709_v37 = vadd.f32 1.0, %v716_v47 }
 0x120   : > { %v721_v18 = vmul.f32 0.3275911, %v7676_v43  ;;  %13878 = vst [vmem:[#allocation55_spill] sm:$0xff] %v7707_v48  ;;  %v818_v11 = vsel %vm7722_vm15, %v7644_v2, %v814_v55  ;;  %v7754_v2 = vand.u32 2147483647, %v7733_v49 }
 0x121   : > { %13881 = vst [vmem:[#allocation56_spill] sm:$0xff] %v7733_v49  ;;  %6672 = vrcp.f32 %v7709_v37  ;;  %vm785_vm15 = vweird.f32 %v7709_v37 }
 0x122   : > { %v7714_v53 = vadd.f32 1.0, %v721_v18  ;;  %v6310_v18 = vld [vmem:[%s13558_s3 + $0x2b8] sm:$0xff] }
 0x123   : > { %2672 = vperm.xlu0 %6629, %v6310_v18  }
 0x124   : > { %v7653_v39 = vpop.permute.xlu0 %2203  ;;  %v7690_v57 = vpop.permute.xlu1 %2223  ;;  %6674 = vrcp.f32 %v7714_v53 }
 0x125   : > { %13871 = vst [vmem:[#allocation48_spill] sm:$0xff] %v7653_v39  ;;  %v7673_v39 = vpop.eup %6666  ;;  %v7727_v3 = vpop.f32.mrf.mxu0 }
 0x126   : > { %v7681_v54 = vpop.eup %6668  ;;  %v1081_v24 = vmul.f32 %v7673_v39, %v7633_v36  ;;  %13876 = vst [vmem:[#allocation53_spill] sm:$0xff] %v7690_v57  ;;  %vm1086_vm3 = vweird.f32 %v7673_v39  ;;  %v7746_v23 = vpop.permute.xlu2 %2288  ;;  %v804_v57 = vand.u32 2147483647, %v7646_v40 }
 0x127   : > { %v7683_v4 = vpop.eup %6670  ;;  %v826_v14 = vmul.f32 %v7681_v54, %v7639_v15  ;;  %13882 = vst [vmem:[#allocation57_spill] sm:$0xff] %v7746_v23  ;;  %vm831_vm5 = vweird.f32 %v7681_v54  ;;  %vm7765_vm7 = vmor %vm1085_vm2, %vm1086_vm3  ;;  %vm860_vm2 = vweird.f32 %v7714_v53 }
 0x128   : > { %v796_v42 = vmul.f32 %v7683_v4, %v7646_v40  ;;  %v1082_v62 = vsub.f32 1.0, %v1081_v24  ;;  %v7771_v23 = vpop.eup %6672  ;;  %vm801_vm9 = vweird.f32 %v7683_v4  ;;  %vm7781_vm10 = vmor %vm830_vm4, %vm831_vm5  ;;  %vm7821_vm14 = vcmp.eq.f32.partialorder %v804_v57, 8.507059e+37 }
 0x129   : > { %v827_v24 = vsub.f32 1.0, %v826_v14  ;;  %v822_v14 = vor.u32 1.1754944e-38, %v821_v25  ;;  %v1091_v25 = vand.u32 2147483648, %v7633_v36  ;;  %vm7797_vm12 = vmor %vm800_vm8, %vm801_vm9  ;;  %v791_v57 = vand.u32 2147483648, %v7709_v37 }
 0x12a   : > { %v797_v19 = vsub.f32 1.0, %v796_v42  ;;  %v1083_v5 = vmul.f32 %v7673_v39, %v1082_v62  ;;  %v7744_v42 = vadd.f32 1.0, %v722_v1  ;;  %v1089_v62 = vand.u32 2147483647, %v7633_v36 }
 0x12b   : > { %v828_v22 = vmul.f32 %v7681_v54, %v827_v24  ;;  %v7759_v24 = vsel %vm820_vm0, %v822_v14, %v818_v11  ;;  %v7777_v14 = vpop.eup %6674  ;;  %v1092_v36 = vor.u32 1.1754944e-38, %v1091_v25  ;;  %v781_v1 = vmul.f32 %v7771_v23, %v7709_v37 }
 0x12c   : > { %v7694_v31 = vpop.permute.xlu0 %2218  ;;  %v7748_v18 = vpop.permute.xlu1 %2238  ;;  %v798_v41 = vmul.f32 %v7683_v4, %v797_v19  ;;  %v1084_v47 = vadd.f32 %v7673_v39, %v1083_v5  ;;  %v836_v19 = vand.u32 2147483648, %v7639_v15  ;;  %v834_v5 = vand.u32 2147483647, %v7639_v15 }
 0x12d   : > { %13877 = vst [vmem:[#allocation54_spill] sm:$0xff] %v7694_v31  ;;  %v829_v11 = vadd.f32 %v7681_v54, %v828_v22  ;;  %6676 = vrcp.f32 %v7744_v42  ;;  %v720_v31 = vmul.f32 0.3275911, %v7754_v2  ;;  %vm1090_vm11 = vcmp.eq.f32.partialorder %v1089_v62, 8.507059e+37  ;;  %v7791_v25 = vpop.f32.mrf.mxu0 }
 0x12e   : > { %13883 = vst [vmem:[#allocation58_spill] sm:$0xff] %v7748_v18  ;;  %v1262_v18 = vmul.f32 1.0614054, %v7759_v24  ;;  %v1088_v22 = vsel %vm7765_vm7, %v7673_v39, %v1084_v47  ;;  %v799_v15 = vadd.f32 %v7683_v4, %v798_v41  ;;  %v837_v20 = vor.u32 1.1754944e-38, %v836_v19 }
 0x12f   : > { %v833_v39 = vsel %vm7781_vm10, %v7681_v54, %v829_v11  ;;  %vm7806_vm13 = vcmp.eq.f32.partialorder %v834_v5, 8.507059e+37  ;;  %v856_v41 = vmul.f32 %v7777_v14, %v7714_v53  ;;  %v7814_v48 = vadd.f32 1.0, %v720_v31  ;;  %v7825_v11 = vpop.permute.xlu2 %2303  ;;  %v6314_v31 = vld [vmem:[%s13558_s3 + $0x2d8] sm:$0xff] }
 0x130   : > { %v1294_v45 = vadd.f32 -1.4531521, %v1262_v18  ;;  %v803_v60 = vsel %vm7797_vm12, %v7683_v4, %v799_v15  ;;  %13895 = vst [vmem:[#allocation60_spill] sm:$0xff] %v7825_v11  ;;  %v6315_v18 = vld [vmem:[%s13558_s3 + $0x2e0] sm:$0xff]  ;;  %v6313_v4 = vld [vmem:[%s13558_s3 + $0x2d0] sm:$0xff]  ;;  %2692 = vperm.xlu1 %6630, %v6314_v31   ;;  %v782_v15 = vsub.f32 1.0, %v781_v1  ;;  %vm786_vm0 = vweird.f32 %v7771_v23 }
 0x131   : > { %2697 = vperm.xlu2 %6631, %v6315_v18   ;;  %v1550_v11 = vsub.f32 0.0, %v7584_v8  ;;  %v857_v16 = vsub.f32 1.0, %v856_v41  ;;  %2687 = vperm.xlu0 %6629, %v6313_v4   ;;  %6678 = vrcp.f32 %v7814_v48  ;;  %v7861_v62 = vor.u32 1.1754944e-38, %v791_v57 }
 0x132   : > { %v1326_v49 = vmul.f32 %v1294_v45, %v7759_v24  ;;  %v1600_v41 = vmul.f32 %v1568_v51, %v7604_v35  ;;  %v783_v45 = vmul.f32 %v7771_v23, %v782_v15  ;;  %vm861_vm3 = vweird.f32 %v7777_v14  ;;  %v7904_v15 = vld [vmem:[%s13557_s2] ss:$0 sm:$0xff] }
 0x133   : > { %v7816_v19 = vpop.eup %6676  ;;  %v858_v18 = vmul.f32 %v7777_v14, %v857_v16  ;;  %v1582_v58 = vmul.f32 %v1550_v11, %v7584_v8  ;;  %v6317_v16 = vld [vmem:[%s13558_s3 + $0x2f0] sm:$0xff]  ;;  %v7887_v8 = vmul.f32 0.5, %v7579_v17  ;;  %vm640_vm4 = vcmp.ge.f32.partialorder %v7594_v13, 0.0  ;;  %vm7919_vm5 = vmor %vm860_vm2, %vm861_vm3  ;;  %v6321_v13 = vld [vmem:[%s13558_s3 + $0x308] sm:$0xff] }
 0x134   : > { %v7756_v55 = vpop.permute.xlu0 %2233  ;;  %v7827_v5 = vpop.permute.xlu1 %2253  ;;  %v7890_v11 = vmul.f32 1.442695, %v1600_v41  ;;  %v7897_v51 = vadd.f32 %v7771_v23, %v783_v45  ;;  %v864_v17 = vand.u32 2147483647, %v7714_v53  ;;  %vm875_vm7 = vweird.f32 %v7744_v42 }
 0x135   : > { %13884 = vst [vmem:[#allocation59_spill] sm:$0xff] %v7756_v55  ;;  %v806_v55 = vand.u32 2147483648, %v7646_v40  ;;  %v7812_v40 = vsel %vm1090_vm11, %v1092_v36, %v1088_v22  ;;  %v7843_v36 = vsel %vm7806_vm13, %v837_v20, %v833_v39  ;;  %v871_v20 = vmul.f32 %v7816_v19, %v7744_v42  ;;  %v7870_v31 = vpop.f32.mrf.mxu0  ;;  %vm7958_vm11 = vmor %vm785_vm15, %vm786_vm0 }
 0x136   : > { %13896 = vst [vmem:[#allocation61_spill] sm:$0xff] %v7827_v5  ;;  %v1280_v5 = vmul.f32 1.0614054, %v7812_v40  ;;  %v1263_v1 = vmul.f32 1.0614054, %v7843_v36  ;;  %vm876_vm8 = vweird.f32 %v7816_v19  ;;  %vm7946_vm10 = vcmp.eq.f32.partialorder %v864_v17, 8.507059e+37 }
 0x137   : > { %v807_v47 = vor.u32 1.1754944e-38, %v806_v55  ;;  %v1549_v55 = vsub.f32 0.0, %v7618_v26  ;;  %v789_v39 = vand.u32 2147483647, %v7709_v37  ;;  %13898 = vst [vmem:[#allocation63_spill] sm:$0xff] %v7870_v31  ;;  %v872_v57 = vsub.f32 1.0, %v871_v20  ;;  %vm7975_vm12 = vmor %vm875_vm7, %vm876_vm8 }
 0x138   : > { %v1312_v4 = vadd.f32 -1.4531521, %v1280_v5  ;;  %v1295_v21 = vadd.f32 -1.4531521, %v1263_v1  ;;  %13900 = vst [vmem:[#allocation65_spill] sm:$0xff] %v7887_v8  ;;  %2707 = vperm.xlu1 %6630, %v6317_v16   ;;  %v6316_v5 = vld [vmem:[%s13558_s3 + $0x2e8] sm:$0xff]  ;;  %v7908_v20 = vadd.f32 %v7904_v15, %v7671_v6  ;;  %v2319_v1 = vpop.permute.xlu2 %2318 }
 0x139   : > { %v7851_v34 = vsel %vm7821_vm14, %v807_v47, %v803_v60  ;;  %v541_v47 = vpop.f32.mrf.mxu2  ;;  %v7867_v54 = vmul.f32 %v1549_v55, %v7618_v26  ;;  %v6318_v26 = vld [vmem:[%s13558_s3 + $0x2f8] sm:$0xff]  ;;  %v859_v55 = vadd.f32 %v7777_v14, %v858_v18  ;;  %2702 = vperm.xlu0 %6629, %v6316_v5   ;;  %v873_v6 = vmul.f32 %v7816_v19, %v872_v57 }
 0x13a   : > { %v1261_v60 = vmul.f32 1.0614054, %v7851_v34  ;;  %v7876_v35 = vadd.f32 %v7286_v44, %v541_v47  ;;  %v866_v44 = vand.u32 2147483648, %v7714_v53  ;;  %2712 = vperm.xlu2 %6631, %v6318_v26   ;;  %13901 = vst [vmem:[#allocation66_spill] sm:$0xff] %v7908_v20  ;;  %v7913_v26 = vmul.f32 1.442695, %v1582_v58 }
 0x13b   : > { %v7937_v53 = vadd.f32 %v7904_v15, %v7727_v3  ;;  %vm7939_vm9 = vcmp.eq.f32.partialorder %v789_v39, 8.507059e+37  ;;  %v879_v17 = vand.u32 2147483647, %v7744_v42  ;;  %v2380_v18 = vmul.f32 %v2319_v1, %v7420_v12  ;;  %v8018_v12 = vld [vmem:[%s13559_s4] ss:$0 sm:$0xff] }
 0x13c   : > { %v7845_v22 = vpop.permute.xlu0 %2248  ;;  %13899 = vst [vmem:[#allocation64_spill] sm:$0xff] %v7876_v35  ;;  %v7910_v41 = vpop.permute.xlu1 %2268  ;;  %v1293_v47 = vadd.f32 -1.4531521, %v1261_v60  ;;  %v1327_v60 = vmul.f32 %v1295_v21, %v7843_v36  ;;  %v867_v5 = vor.u32 1.1754944e-38, %v866_v44  ;;  %v863_v21 = vsel %vm7919_vm5, %v7777_v14, %v859_v55  ;;  %v7965_v14 = vld [vmem:[%s13559_s4 + $0x1] ss:$0 sm:$0xff] }
 0x13d   : > { %13897 = vst [vmem:[#allocation62_spill] sm:$0xff] %v7845_v22  ;;  %v1358_v22 = vadd.f32 1.4214138, %v1326_v49  ;;  %v7884_v49 = vpop.eup %6678  ;;  %v881_v44 = vand.u32 2147483648, %v7744_v42  ;;  %v874_v55 = vadd.f32 %v7816_v19, %v873_v6  ;;  %v7982_v6 = vpop.f32.mrf.mxu0  ;;  %v13918_v8 = vmov -1.0  }
 0x13e   : > { %13902 = vst [vmem:[#allocation67_spill] sm:$0xff] %v7910_v41  ;;  %v1344_v41 = vmul.f32 %v1312_v4, %v7812_v40  ;;  %v841_v58 = vmul.f32 %v7884_v49, %v7814_v48  ;;  %v1325_v31 = vmul.f32 %v1293_v47, %v7851_v34  ;;  %v7987_v1 = vsel %vm640_vm4, 1.0, %v13918_v8  ;;  %v6320_v4 = vld [vmem:[%s13558_s3 + $0x300] sm:$0xff] }
 0x13f   : > { %v1390_v45 = vmul.f32 %v1358_v22, %v7759_v24  ;;  %v7931_v22 = vmul.f32 0.70710677, %v7876_v35  ;;  %13907 = vst [vmem:[#allocation70_spill] sm:$0xff] %v7937_v53  ;;  %v7991_v47 = vsel %vm7946_vm10, %v867_v5, %v863_v21  ;;  %v2119_v42 = vmul.f32 %v7546_v59, %v7459_v46 }
 0x140   : > { %v842_v37 = vsub.f32 1.0, %v841_v58  ;;  %13917 = vst [vmem:[#allocation72_spill] sm:$0xff] %v7982_v6  ;;  %v6322_v58 = vld [vmem:[%s13558_s3 + $0x310] sm:$0xff]  ;;  %v788_v59 = vsel %vm7958_vm11, %v7771_v23, %v7897_v51  ;;  %v1376_v5 = vadd.f32 1.4214138, %v1344_v41  ;;  %v882_v21 = vor.u32 1.1754944e-38, %v881_v44  ;;  %2856 = vperm.xlu1 %6630, %v6321_v13  }
 0x141   : > { %13906 = vst [vmem:[#allocation69_spill] sm:$0xff] %v7931_v22  ;;  %v1422_v39 = vadd.f32 -0.28449672, %v1390_v45  ;;  %v7980_v35 = vand.u32 2147483647, %v7931_v22  ;;  %v1551_v46 = vsub.f32 0.0, %v7613_v28  ;;  %v543_v51 = vpop.f32.mrf.mxu2  ;;  %v2417_v41 = vmul.f32 %v7965_v14, %v2380_v18  ;;  %2851 = vperm.xlu0 %6629, %v6320_v4   ;;  %v2334_v22 = vpop.permute.xlu2 %2333 }
 0x142   : > { %13919 = vst [vmem:[#allocation73_spill] sm:$0xff] %v7987_v1  ;;  %2861 = vperm.xlu2 %6631, %v6322_v58   ;;  %vm8023_vm13 = vcmp.eq.f32.partialorder %v879_v17, 8.507059e+37  ;;  %v1357_v44 = vadd.f32 1.4214138, %v1325_v31  ;;  %v843_v58 = vmul.f32 %v7884_v49, %v842_v37  ;;  %v1265_v13 = vmul.f32 1.0614054, %v7991_v47 }
 0x143   : > { %v742_v17 = vmul.f32 0.3275911, %v7980_v35  ;;  %vm845_vm14 = vweird.f32 %v7814_v48  ;;  %vm846_vm15 = vweird.f32 %v7884_v49  ;;  %v851_v37 = vand.u32 2147483648, %v7814_v48 }
 0x144   : > { %v7924_v16 = vpop.permute.xlu0 %2263  ;;  %v1297_v1 = vadd.f32 -1.4531521, %v1265_v13  ;;  %vm8062_vm0 = vmor %vm845_vm14, %vm846_vm15  ;;  %6680 = vpow2.f32 %v7913_v26  ;;  %vm621_vm3 = vcmp.ge.f32.partialorder %v7601_v7, 0.0  ;;  %vm622_vm4 = vcmp.ge.f32.partialorder %v7571_v27, 0.0 }
 0x145   : > { %13905 = vst [vmem:[#allocation68_spill] sm:$0xff] %v7924_v16  ;;  %v7952_v16 = vmul.f32 0.70710677, %v7908_v20  ;;  %v1359_v20 = vadd.f32 1.4214138, %v1327_v60  ;;  %v8074_v57 = vpop.f32.mrf.mxu0  ;;  %vm623_vm5 = vcmp.ge.f32.partialorder %v7598_v38, 0.0  ;;  %v8208_v38 = vadd.f32 %v7904_v15, %v7791_v25 }
 0x146   : > { %v7996_v60 = vmul.f32 0.70710677, %v7937_v53  ;;  %v878_v53 = vsel %vm7975_vm12, %v7816_v19, %v874_v55  ;;  %v1454_v19 = vmul.f32 %v1422_v39, %v7759_v24  ;;  %v2155_v55 = vmul.f32 %v8018_v12, %v2119_v42  ;;  %13929 = vst [vmem:[#allocation79_spill] sm:$0xff] %v8074_v57 }
 0x147   : > { %13912 = vst [vmem:[#allocation71_spill] sm:$0xff] %v7952_v16  ;;  %v8012_v6 = vand.u32 2147483647, %v7952_v16  ;;  %v1391_v3 = vmul.f32 %v1359_v20, %v7843_v36  ;;  %v8031_v16 = vpop.permute.xlu1 %2283  ;;  %v8045_v31 = vsel %vm8023_vm13, %v882_v21, %v878_v53  ;;  %v1583_v39 = vmul.f32 %v1551_v46, %v7613_v28 }
 0x148   : > { %13920 = vst [vmem:[#allocation74_spill] sm:$0xff] %v7996_v60  ;;  %v8037_v45 = vand.u32 2147483647, %v7996_v60  ;;  %v8051_v42 = vadd.f32 %v7904_v15, %v543_v51  ;;  %v8053_v4 = vadd.f32 %v2417_v41, %v2155_v55  ;;  %v849_v60 = vand.u32 2147483647, %v7814_v48 }
 0x149   : > { %13923 = vst [vmem:[#allocation75_spill] sm:$0xff] %v8031_v16  ;;  %v723_v20 = vmul.f32 0.3275911, %v8012_v6  ;;  %v1423_v16 = vadd.f32 -0.28449672, %v1391_v3  ;;  %v8060_v53 = vsel %vm7939_vm9, %v7861_v62, %v788_v59  ;;  %v8067_v21 = vadd.f32 1.0, %v742_v17 }
 0x14a   : > { %13925 = vst [vmem:[#allocation77_spill] sm:$0xff] %v8053_v4  ;;  %v1266_v28 = vmul.f32 1.0614054, %v8045_v31  ;;  %v724_v23 = vmul.f32 0.3275911, %v8037_v45  ;;  %v1408_v51 = vmul.f32 %v1376_v5, %v7812_v40  ;;  %v1389_v62 = vmul.f32 %v1357_v44, %v7851_v34  ;;  %v6681_v46 = vpop.eup %6680 }
 0x14b   : > { %13926 = vst [vmem:[#allocation78_spill] sm:$0xff] %v8060_v53  ;;  %v1486_v41 = vadd.f32 0.2548296, %v1454_v19  ;;  %v8072_v48 = vadd.f32 1.0, %v723_v20  ;;  %v1618_v59 = vmul.f32 1.442695, %v1583_v39  ;;  %v1455_v13 = vmul.f32 %v1423_v16, %v7843_v36  ;;  %v8093_v39 = vpop.permute.xlu2 %2348 }
 0x14c   : > { %v8039_v18 = vpop.permute.xlu0 %2278  ;;  %v852_v3 = vor.u32 1.1754944e-38, %v851_v37  ;;  %vm850_vm2 = vcmp.eq.f32.partialorder %v849_v60, 8.507059e+37  ;;  %v1329_v26 = vmul.f32 %v1297_v1, %v7991_v47  ;;  %v1298_v19 = vadd.f32 -1.4531521, %v1266_v28  ;;  %13930 = vst [vmem:[#allocation80_spill] sm:$0xff] %v8093_v39 }
 0x14d   : > { %13924 = vst [vmem:[#allocation76_spill] sm:$0xff] %v8039_v18  ;;  %v844_v18 = vadd.f32 %v7884_v49, %v843_v58  ;;  %v8078_v58 = vmul.f32 0.70710677, %v8051_v42  ;;  %v2122_v55 = vmul.f32 %v7581_v61, %v7554_v33  ;;  %6682 = vrcp.f32 %v8067_v21 }
 0x14e   : > { %v8088_v44 = vadd.f32 1.0, %v724_v23  ;;  %v1260_v17 = vmul.f32 1.0614054, %v8060_v53  ;;  %v1440_v20 = vadd.f32 -0.28449672, %v1408_v51  ;;  %6684 = vrcp.f32 %v8072_v48  ;;  %13941 = vst [vmem:[#allocation91_spill] sm:$0xff] %v8208_v38 }
 0x14f   : > { %v848_v5 = vsel %vm8062_vm0, %v7884_v49, %v844_v18  ;;  %v1614_v16 = vmul.f32 1.442695, %v7867_v54  ;;  %v8095_v49 = vpop.permute.xlu1 %2298  ;;  %v1421_v1 = vadd.f32 -0.28449672, %v1389_v62  ;;  %v8100_v61 = vand.u32 2147483647, %v8078_v58 }
 0x150   : > { %13931 = vst [vmem:[#allocation81_spill] sm:$0xff] %v8095_v49  ;;  %v8097_v60 = vsel %vm850_vm2, %v852_v3, %v848_v5  ;;  %v2383_v18 = vmul.f32 %v2334_v22, %v7538_v50  ;;  %v1518_v28 = vmul.f32 %v1486_v41, %v7759_v24  ;;  %v1487_v54 = vadd.f32 0.2548296, %v1455_v13  ;;  %v6325_v13 = vld [vmem:[%s13558_s3 + $0x328] sm:$0xff] }
 0x151   : > { %6686 = vpow2.f32 %v1618_v59  ;;  %v1361_v23 = vadd.f32 1.4214138, %v1329_v26  ;;  %v1330_v51 = vmul.f32 %v1298_v19, %v8045_v31  ;;  %v2158_v57 = vmul.f32 %v8018_v12, %v2122_v55  ;;  %2876 = vperm.xlu2 %6631, %v6325_v13  }
 0x152   : > { %6688 = vrcp.f32 %v8088_v44  ;;  %v2420_v62 = vmul.f32 %v7965_v14, %v2383_v18  ;;  %v1264_v22 = vmul.f32 1.0614054, %v8097_v60  ;;  %v1553_v3 = vsub.f32 0.0, %v7676_v43  ;;  %v8128_v18 = vpop.f32.mrf.mxu0 }
 0x153   : > { %6690 = vpow2.f32 %v7890_v11  ;;  %v8114_v24 = vpop.eup %6682  ;;  %v743_v41 = vmul.f32 0.3275911, %v8100_v61  ;;  %v1292_v5 = vadd.f32 -1.4531521, %v1260_v17  ;;  %v1472_v26 = vmul.f32 %v1440_v20, %v7812_v40  ;;  %13934 = vst [vmem:[#allocation84_spill] sm:$0xff] %v8128_v18 }
 0x154   : > { %v8103_v37 = vpop.permute.xlu0 %2293  ;;  %6692 = vpow2.f32 %v1614_v16  ;;  %v8118_v59 = vadd.f32 %v2420_v62, %v2158_v57  ;;  %v8123_v11 = vpop.eup %6684  ;;  %v1453_v19 = vmul.f32 %v1421_v1, %v7851_v34  ;;  %v1393_v55 = vmul.f32 %v1361_v23, %v7991_v47  ;;  %v6324_v57 = vld [vmem:[%s13558_s3 + $0x320] sm:$0xff]  ;;  %v6323_v62 = vld [vmem:[%s13558_s3 + $0x318] sm:$0xff] }
 0x155   : > { %13932 = vst [vmem:[#allocation82_spill] sm:$0xff] %v8103_v37  ;;  %v546_v16 = vpop.f32.mrf.mxu2  ;;  %v8139_v17 = vsel %vm621_vm3, 1.0, %v13918_v8  ;;  %v1678_v20 = vmul.f32 %v6681_v46, %v1518_v28  ;;  %v1519_v1 = vmul.f32 %v1487_v54, %v7843_v36  ;;  %v1362_v23 = vadd.f32 1.4214138, %v1330_v51  ;;  %2871 = vperm.xlu1 %6630, %v6324_v57   ;;  %2866 = vperm.xlu0 %6629, %v6323_v62  }
 0x156   : > { %13933 = vst [vmem:[#allocation83_spill] sm:$0xff] %v8118_v59  ;;  %v654_v37 = vsel %vm622_vm4, 1.0, %v13918_v8  ;;  %v1296_v18 = vadd.f32 -1.4531521, %v1264_v22  ;;  %v1585_v49 = vmul.f32 %v1553_v3, %v7676_v43  ;;  %v1554_v33 = vsub.f32 0.0, %v7699_v56  ;;  %v8163_v3 = vpop.permute.xlu2 %2562 }
 0x157   : > { %v6687_v13 = vpop.eup %6686  ;;  %v1171_v7 = vmul.f32 %v8114_v24, %v8067_v21  ;;  %v886_v36 = vmul.f32 %v8123_v11, %v8072_v48  ;;  %v8153_v46 = vadd.f32 1.0, %v743_v41  ;;  %v8156_v28 = vadd.f32 %v7904_v15, %v546_v16  ;;  %13936 = vst [vmem:[#allocation86_spill] sm:$0xff] %v8163_v3  ;;  %v8165_v57 = vpop.permute.xlu1 %2313 }
 0x158   : > { %v8147_v39 = vpop.eup %6688  ;;  %v8161_v54 = vmul.f32 %v1292_v5, %v8060_v53  ;;  %v1504_v43 = vadd.f32 0.2548296, %v1472_v26  ;;  %v1485_v51 = vadd.f32 0.2548296, %v1453_v19  ;;  %v1425_v22 = vadd.f32 -0.28449672, %v1393_v55 }
 0x159   : > { %13935 = vst [vmem:[#allocation85_spill] sm:$0xff] %v8156_v28  ;;  %v8158_v27 = vpop.eup %6690  ;;  %v1710_v59 = vsub.f32 1.0, %v1678_v20  ;;  %v8170_v41 = vmul.f32 %v6687_v13, %v1519_v1  ;;  %v1394_v16 = vmul.f32 %v1362_v23, %v8045_v31  ;;  %v1328_v5 = vmul.f32 %v1296_v18, %v8097_v60 }
 0x15a   : > { %13937 = vst [vmem:[#allocation87_spill] sm:$0xff] %v8165_v57  ;;  %v8167_v62 = vpop.eup %6692  ;;  %v1622_v26 = vmul.f32 1.442695, %v1585_v49  ;;  %v1586_v19 = vmul.f32 %v1554_v33, %v7699_v56  ;;  %v901_v55 = vmul.f32 %v8147_v39, %v8088_v44  ;;  %v1172_v3 = vsub.f32 1.0, %v1171_v7 }
 0x15b   : > { %v887_v57 = vsub.f32 1.0, %v886_v36  ;;  %6694 = vrcp.f32 %v8153_v46  ;;  %v8181_v20 = vmul.f32 0.70710677, %v8156_v28  ;;  %v8184_v1 = vmul.f32 %v1504_v43, %v7812_v40 }
 0x15c   : > { %v8173_v4 = vpop.permute.xlu0 %2308  ;;  %v8187_v23 = vmul.f32 %v1485_v51, %v7851_v34  ;;  %v8190_v49 = vmul.f32 0.5, %v7557_v29  ;;  %v1457_v33 = vmul.f32 %v1425_v22, %v7991_v47  ;;  %v8193_v56 = vmul.f32 %v1710_v59, %v654_v37  ;;  %v8199_v34 = vpop.f32.mrf.mxu0 }
 0x15d   : > { %13938 = vst [vmem:[#allocation88_spill] sm:$0xff] %v8173_v4  ;;  %v655_v18 = vsel %vm623_vm5, 1.0, %v13918_v8  ;;  %v1711_v13 = vsub.f32 1.0, %v8170_v41  ;;  %v1426_v7 = vadd.f32 -0.28449672, %v1394_v16  ;;  %6696 = vpow2.f32 %v1622_v26 }
 0x15e   : > { %13939 = vst [vmem:[#allocation89_spill] sm:$0xff] %v8181_v20  ;;  %v1360_v36 = vadd.f32 1.4214138, %v1328_v5  ;;  %v1624_v40 = vmul.f32 1.442695, %v1586_v19  ;;  %v902_v43 = vsub.f32 1.0, %v901_v55  ;;  %v1173_v29 = vmul.f32 %v8114_v24, %v1172_v3  ;;  %v8222_v26 = vpop.permute.xlu2 %2577 }
 0x15f   : > { %13940 = vst [vmem:[#allocation90_spill] sm:$0xff] %v8199_v34  ;;  %v888_v51 = vmul.f32 %v8123_v11, %v887_v57  ;;  %v8204_v37 = vand.u32 2147483647, %v8181_v20  ;;  %v1489_v59 = vadd.f32 0.2548296, %v1457_v33  ;;  %vm1175_vm7 = vweird.f32 %v8067_v21  ;;  %v8224_v19 = vpop.permute.xlu1 %2328  ;;  %v6328_v55 = vld [vmem:[%s13558_s3 + $0x340] sm:$0xff] }
 0x160   : > { %vm1176_vm8 = vweird.f32 %v8114_v24  ;;  %v1179_v22 = vand.u32 2147483647, %v8067_v21  ;;  %v1458_v3 = vmul.f32 %v1426_v7, %v8045_v31  ;;  %v1181_v57 = vand.u32 2147483648, %v8067_v21  ;;  %13942 = vst [vmem:[#allocation92_spill] sm:$0xff] %v8222_v26  ;;  %v6327_v33 = vld [vmem:[%s13558_s3 + $0x338] sm:$0xff]  ;;  %v6326_v7 = vld [vmem:[%s13558_s3 + $0x330] sm:$0xff]  ;;  %2891 = vperm.xlu2 %6631, %v6328_v55  }
 0x161   : > { %v8213_v41 = vpop.eup %6694  ;;  %vm890_vm9 = vweird.f32 %v8072_v48  ;;  %vm891_vm10 = vweird.f32 %v8123_v11  ;;  %6698 = vpow2.f32 %v1624_v40  ;;  %v894_v25 = vand.u32 2147483647, %v8072_v48  ;;  %13943 = vst [vmem:[#allocation93_spill] sm:$0xff] %v8224_v19  ;;  %vm8240_vm11 = vmor %vm1175_vm7, %vm1176_vm8  ;;  %2886 = vperm.xlu1 %6630, %v6327_v33   ;;  %2881 = vperm.xlu0 %6629, %v6326_v7  }
 0x162   : > { %v896_v16 = vand.u32 2147483648, %v8072_v48  ;;  %v903_v5 = vmul.f32 %v8147_v39, %v902_v43  ;;  %v1174_v40 = vadd.f32 %v8114_v24, %v1173_v29  ;;  %v889_v34 = vadd.f32 %v8123_v11, %v888_v51  ;;  %vm8256_vm12 = vmor %vm890_vm9, %vm891_vm10 }
 0x163   : > { %v744_v19 = vmul.f32 0.3275911, %v8204_v37  ;;  %v8247_v4 = vmul.f32 0.70710677, %v8208_v38  ;;  %v6697_v29 = vpop.eup %6696  ;;  %v1521_v50 = vmul.f32 %v1489_v59, %v7991_v47  ;;  %v1186_v51 = vmul.f32 %v8213_v41, %v8153_v46 }
 0x164   : > { %v8249_v26 = vpop.permute.xlu0 %2323  ;;  %vm905_vm13 = vweird.f32 %v8088_v44  ;;  %vm906_vm14 = vweird.f32 %v8147_v39  ;;  %v1490_v55 = vadd.f32 0.2548296, %v1458_v3  ;;  %vm8264_vm15 = vcmp.eq.f32.partialorder %v1179_v22, 8.507059e+37  ;;  %v8295_v43 = vpop.f32.mrf.mxu0 }
 0x165   : > { %13946 = vst [vmem:[#allocation94_spill] sm:$0xff] %v8247_v4  ;;  %v1182_v47 = vor.u32 1.1754944e-38, %v1181_v57  ;;  %v911_v48 = vand.u32 2147483648, %v8088_v44  ;;  %vm8269_vm0 = vcmp.eq.f32.partialorder %v894_v25, 8.507059e+37  ;;  %v897_v38 = vor.u32 1.1754944e-38, %v896_v16  ;;  %vm8281_vm2 = vmor %vm905_vm13, %vm906_vm14 }
 0x166   : > { %v904_v20 = vadd.f32 %v8147_v39, %v903_v5  ;;  %v909_v28 = vand.u32 2147483647, %v8088_v44  ;;  %v1178_v3 = vsel %vm8240_vm11, %v8114_v24, %v1174_v40  ;;  %v893_v22 = vsel %vm8256_vm12, %v8123_v11, %v889_v34  ;;  %13955 = vst [vmem:[#allocation95_spill] sm:$0xff] %v8295_v43 }
 0x167   : > { %v8285_v25 = vadd.f32 1.0, %v744_v19  ;;  %v8288_v16 = vand.u32 2147483647, %v8247_v4  ;;  %v6699_v5 = vpop.eup %6698  ;;  %v8292_v44 = vmul.f32 %v8158_v27, %v8184_v1  ;;  %v1743_v7 = vmul.f32 %v1711_v13, %v655_v18  ;;  %v6331_v4 = vld [vmem:[%s13558_s3 + $0x358] sm:$0xff]  ;;  %v6330_v27 = vld [vmem:[%s13558_s3 + $0x350] sm:$0xff]  ;;  %v6329_v1 = vld [vmem:[%s13558_s3 + $0x348] sm:$0xff] }
 0x168   : > { %v1392_v24 = vmul.f32 %v1360_v36, %v8097_v60  ;;  %v1187_v40 = vsub.f32 1.0, %v1186_v51  ;;  %v559_v11 = vmul.f32 0.5, %v7587_v10  ;;  %v1681_v34 = vmul.f32 %v6697_v29, %v1521_v50  ;;  %2906 = vperm.xlu2 %6631, %v6331_v4  }
 0x169   : > { %v1522_v19 = vmul.f32 %v1490_v55, %v8045_v31  ;;  %v912_v21 = vor.u32 1.1754944e-38, %v911_v48  ;;  %v8310_v18 = vsel %vm8264_vm15, %v1182_v47, %v1178_v3  ;;  %v8314_v50 = vsel %vm8269_vm0, %v897_v38, %v893_v22  ;;  %2901 = vperm.xlu1 %6630, %v6330_v27   ;;  %2896 = vperm.xlu0 %6629, %v6329_v1  }
 0x16a   : > { %v908_v10 = vsel %vm8281_vm2, %v8147_v39, %v904_v20  ;;  %vm8319_vm3 = vcmp.eq.f32.partialorder %v909_v28, 8.507059e+37  ;;  %v1774_v13 = vadd.f32 1.0, %v8193_v56  ;;  %v1552_v36 = vsub.f32 0.0, %v7754_v2  ;;  %v8329_v28 = vpop.permute.xlu2 %2592  ;;  %v8331_v20 = vpop.permute.xlu1 %2343 }
 0x16b   : > { %6700 = vrcp.f32 %v8285_v25  ;;  %v725_v29 = vmul.f32 0.3275911, %v8288_v16  ;;  %v1775_v38 = vadd.f32 1.0, %v1743_v7  ;;  %v1424_v51 = vadd.f32 -0.28449672, %v1392_v24  ;;  %13958 = vst [vmem:[#allocation96_spill] sm:$0xff] %v8331_v20 }
 0x16c   : > { %vm625_vm4 = vcmp.ge.f32.partialorder %v7662_v30, 0.0  ;;  %v1188_v39 = vmul.f32 %v8213_v41, %v1187_v40  ;;  %v1682_v56 = vmul.f32 %v6699_v5, %v1522_v19  ;;  %v1286_v55 = vmul.f32 1.0614054, %v8310_v18  ;;  %v8339_v47 = vpop.permute.xlu0 %2338 }
 0x16d   : > { %v1267_v33 = vmul.f32 1.0614054, %v8314_v50  ;;  %v8337_v4 = vsel %vm8319_vm3, %v912_v21, %v908_v10  ;;  %13959 = vst [vmem:[#allocation97_spill] sm:$0xff] %v8339_v47  ;;  %v1713_v48 = vsub.f32 1.0, %v1681_v34  ;;  %vm1190_vm5 = vweird.f32 %v8153_v46 }
 0x16e   : > { %vm1191_vm7 = vweird.f32 %v8213_v41  ;;  %v1194_v30 = vand.u32 2147483647, %v8153_v46  ;;  %v657_v59 = vsel %vm625_vm4, 1.0, %v13918_v8  ;;  %vm626_vm8 = vcmp.ge.f32.partialorder %v7679_v0, 0.0 }
 0x16f   : > { %v1196_v3 = vand.u32 2147483648, %v8153_v46  ;;  %v8347_v22 = vadd.f32 1.0, %v725_v29  ;;  %v8350_v57 = vmul.f32 %v1774_v13, %v8190_v49  ;;  %v1584_v5 = vmul.f32 %v1552_v36, %v7754_v2  ;;  %vm8363_vm9 = vmor %vm1190_vm5, %vm1191_vm7  ;;  %v548_v49 = vpop.f32.mrf.mxu2 }
 0x170   : > { %v1189_v7 = vadd.f32 %v8213_v41, %v1188_v39  ;;  %v1268_v24 = vmul.f32 1.0614054, %v8337_v4  ;;  %v8357_v34 = vmul.f32 %v1775_v38, %v559_v11  ;;  %v1714_v19 = vsub.f32 1.0, %v1682_v56  ;;  %v8373_v11 = vpop.f32.mrf.mxu0 }
 0x171   : > { %v8355_v40 = vpop.eup %6700  ;;  %v1318_v21 = vadd.f32 -1.4531521, %v1286_v55  ;;  %v1299_v0 = vadd.f32 -1.4531521, %v1267_v33  ;;  %v1456_v2 = vmul.f32 %v1424_v51, %v8097_v60  ;;  %v1745_v27 = vmul.f32 %v1713_v48, %v657_v59  ;;  %13964 = vst [vmem:[#allocation98_spill] sm:$0xff] %v8373_v11 }
 0x172   : > { %v658_v1 = vsel %vm626_vm8, 1.0, %v13918_v8  ;;  %vm8369_vm10 = vcmp.eq.f32.partialorder %v1194_v30, 8.507059e+37  ;;  %v1197_v31 = vor.u32 1.1754944e-38, %v1196_v3  ;;  %6702 = vrcp.f32 %v8347_v22  ;;  %v8392_v59 = vpop.permute.xlu2 %2607  ;;  %v8394_v3 = vpop.permute.xlu1 %2557 }
 0x173   : > { %v13610_v46 = vrot.slane %v8350_v57, 1  ;;  %v13611_v13 = vrot.slane %v8357_v34, 1  ;;  %v1193_v36 = vsel %vm8363_vm9, %v8213_v41, %v1189_v7  ;;  %v1300_v29 = vadd.f32 -1.4531521, %v1268_v24  ;;  %13965 = vst [vmem:[#allocation99_spill] sm:$0xff] %v8394_v3 }
 0x174   : > { %v1201_v38 = vmul.f32 %v8355_v40, %v8285_v25  ;;  %vm2489_vm11 = vcmp.lt.s32.totalorder %v7443_v32, 7  ;;  %v8385_v51 = vadd.f32 1.4214138, %v8161_v54  ;;  %v1746_v39 = vmul.f32 %v1714_v19, %v658_v1 }
 0x175   : > { %v1350_v56 = vmul.f32 %v1318_v21, %v8310_v18  ;;  %v1331_v55 = vmul.f32 %v1299_v0, %v8314_v50  ;;  %v1488_v33 = vadd.f32 0.2548296, %v1456_v2  ;;  %v1620_v48 = vmul.f32 1.442695, %v1584_v5  ;;  %v6334_v2 = vld [vmem:[%s13558_s3 + $0x370] sm:$0xff] }
 0x176   : > { %v561_v30 = vmul.f32 0.5, %v7642_v63  ;;  %v2120_v41 = vmul.f32 %v7542_v9, %v7477_v52  ;;  %v1777_v7 = vadd.f32 1.0, %v1745_v27  ;;  %v1555_v54 = vsub.f32 0.0, %v8012_v6  ;;  %v8409_v9 = vpop.permute.xlu0 %2353  ;;  %v6333_v27 = vld [vmem:[%s13558_s3 + $0x368] sm:$0xff]  ;;  %2921 = vperm.xlu2 %6631, %v6334_v2  }
 0x177   : > { %v8399_v24 = vsel %vm8369_vm10, %v1197_v31, %v1193_v36  ;;  %v8407_v63 = vsel %vm2489_vm11, %v13610_v46, %v13611_v13  ;;  %13966 = vst [vmem:[#allocation100_spill] sm:$0xff] %v8409_v9  ;;  %v1728_v5 = vsub.f32 1.0, %v8292_v44  ;;  %v8414_v19 = vmul.f32 %v8167_v62, %v8187_v23  ;;  %v6332_v44 = vld [vmem:[%s13558_s3 + $0x360] sm:$0xff]  ;;  %2916 = vperm.xlu1 %6630, %v6333_v27  }
 0x178   : > { %v1332_v21 = vmul.f32 %v1300_v29, %v8337_v4  ;;  %v1202_v0 = vsub.f32 1.0, %v1201_v38  ;;  %v8426_v1 = vpop.eup %6702  ;;  %v13967_v62 = vld [vmem:[#allocation50_spill] sm:$0xff]  ;;  %v1778_v10 = vadd.f32 1.0, %v1746_v39  ;;  %v1382_v31 = vadd.f32 1.4214138, %v1350_v56  ;;  %2911 = vperm.xlu0 %6629, %v6332_v44  }
 0x179   : > { %v562_v23 = vmul.f32 0.5, %v13967_v62  ;;  %v1363_v36 = vadd.f32 1.4214138, %v1331_v55  ;;  %v1520_v29 = vmul.f32 %v1488_v33, %v8097_v60  ;;  %6704 = vpow2.f32 %v1620_v48  ;;  %v8443_v33 = vpop.f32.mrf.mxu0 }
 0x17a   : > { %v2156_v38 = vmul.f32 %v8018_v12, %v2120_v41  ;;  %v1287_v46 = vmul.f32 1.0614054, %v8399_v24  ;;  %v8432_v13 = vmul.f32 %v1777_v7, %v561_v30  ;;  %v1574_v9 = vsub.f32 0.0, %v7980_v35  ;;  %13969 = vst [vmem:[#allocation101_spill] sm:$0xff] %v8443_v33 }
 0x17b   : > { %v1587_v11 = vmul.f32 %v1555_v54, %v8012_v6  ;;  %v8437_v39 = vadd.f32 %v7904_v15, %v548_v49  ;;  %v1364_v56 = vadd.f32 1.4214138, %v1332_v21  ;;  %v1556_v55 = vsub.f32 0.0, %v8037_v45  ;;  %v13971_v6 = vld [vmem:[#allocation21_spill] sm:$0xff] }
 0x17c   : > { %v1203_v60 = vmul.f32 %v8355_v40, %v1202_v0  ;;  %v916_v12 = vmul.f32 %v8426_v1, %v8347_v22  ;;  %v8445_v48 = vmul.f32 %v1778_v10, %v562_v23  ;;  %v1414_v30 = vmul.f32 %v1382_v31, %v8310_v18  ;;  %v8463_v10 = vpop.permute.xlu2 %2622  ;;  %v8465_v31 = vpop.permute.xlu1 %2572 }
 0x17d   : > { %13968 = vst [vmem:[#allocation50_spill] sm:$0xff] %v8437_v39  ;;  %v1395_v41 = vmul.f32 %v1363_v36, %v8314_v50  ;;  %v2381_v7 = vmul.f32 %v8249_v26, %v13971_v6  ;;  %v1319_v54 = vadd.f32 -1.4531521, %v1287_v46  ;;  %vm1205_vm12 = vweird.f32 %v8285_v25 }
 0x17e   : > { %13970 = vst [vmem:[#allocation102_spill] sm:$0xff] %v8445_v48  ;;  %vm1206_vm13 = vweird.f32 %v8355_v40  ;;  %v1211_v21 = vand.u32 2147483648, %v8285_v25  ;;  %v8455_v0 = vmul.f32 0.70710677, %v8437_v39  ;;  %v13613_v2 = vrot.slane %v8432_v13, 1  ;;  %v14006_v39 = vld [vmem:[#allocation70_spill] sm:$0xff] }
 0x17f   : > { %v2418_v49 = vmul.f32 %v7965_v14, %v2381_v7  ;;  %v13612_v27 = vrot.slane %v8445_v48, 1  ;;  %v6705_v44 = vpop.eup %6704  ;;  %v1396_v62 = vmul.f32 %v1364_v56, %v8337_v4  ;;  %v1204_v26 = vadd.f32 %v8355_v40, %v1203_v60  ;;  %13973 = vst [vmem:[#allocation104_spill] sm:$0xff] %v8463_v10  ;;  %vm8472_vm14 = vmor %vm1205_vm12, %vm1206_vm13  ;;  %v13979_v7 = vld [vmem:[#allocation73_spill] sm:$0xff] }
 0x180   : > { %13972 = vst [vmem:[#allocation103_spill] sm:$0xff] %v8455_v0  ;;  %v1209_v46 = vand.u32 2147483647, %v8285_v25  ;;  %v917_v23 = vsub.f32 1.0, %v916_v12  ;;  %v1606_v36 = vmul.f32 %v1574_v9, %v7980_v35  ;;  %v1427_v43 = vadd.f32 -0.28449672, %v1395_v41  ;;  %v8486_v35 = vpop.permute.xlu0 %2567 }
 0x181   : > { %13974 = vst [vmem:[#allocation105_spill] sm:$0xff] %v8465_v31  ;;  %v8476_v56 = vadd.f32 %v2418_v49, %v2156_v38  ;;  %v8484_v60 = vsel %vm2489_vm11, %v13613_v2, %v13612_v27  ;;  %v1709_v9 = vsub.f32 1.0, %v8414_v19  ;;  %v1626_v12 = vmul.f32 1.442695, %v1587_v11  ;;  %v13980_v11 = vld [vmem:[#allocation56_spill] sm:$0xff] }
 0x182   : > { %13977 = vst [vmem:[#allocation106_spill] sm:$0xff] %v8484_v60  ;;  %v1351_v25 = vmul.f32 %v1319_v54, %v8399_v24  ;;  %v1588_v41 = vmul.f32 %v1556_v55, %v8037_v45  ;;  %v1760_v38 = vmul.f32 %v1728_v5, %v13979_v7  ;;  %v1446_v49 = vadd.f32 -0.28449672, %v1414_v30  ;;  %v521_v30 = vpop.f32.mrf.mxu0 }
 0x183   : > { %13978 = vst [vmem:[#allocation107_spill] sm:$0xff] %v8486_v35  ;;  %v1212_v10 = vor.u32 1.1754944e-38, %v1211_v21  ;;  %v8493_v3 = vand.u32 2147483647, %v8455_v0  ;;  %v1428_v33 = vadd.f32 -0.28449672, %v1396_v62  ;;  %v1208_v27 = vsel %vm8472_vm14, %v8355_v40, %v1204_v26 }
 0x184   : > { %vm1210_vm15 = vcmp.eq.f32.partialorder %v1209_v46, 8.507059e+37  ;;  %v918_v19 = vmul.f32 %v8426_v1, %v917_v23  ;;  %vm624_vm0 = vcmp.ge.f32.partialorder %v13980_v11, 0.0  ;;  %v1680_v54 = vmul.f32 %v6705_v44, %v1520_v29  ;;  %v6337_v29 = vld [vmem:[%s13558_s3 + $0x388] sm:$0xff]  ;;  %v6335_v23 = vld [vmem:[%s13558_s3 + $0x378] sm:$0xff]  ;;  %v8537_v7 = vpop.permute.xlu1 %2587 }
 0x185   : > { %v1664_v2 = vmul.f32 1.442695, %v1606_v36  ;;  %v1459_v45 = vmul.f32 %v1427_v43, %v8314_v50  ;;  %v1383_v5 = vadd.f32 1.4214138, %v1351_v25  ;;  %v1628_v55 = vmul.f32 1.442695, %v1588_v41  ;;  %2936 = vperm.xlu2 %6631, %v6337_v29   ;;  %2926 = vperm.xlu0 %6629, %v6335_v23   ;;  %v8535_v41 = vpop.permute.xlu2 %2637 }
 0x186   : > { %vm920_vm2 = vweird.f32 %v8347_v22  ;;  %vm921_vm3 = vweird.f32 %v8426_v1  ;;  %6706 = vpow2.f32 %v1626_v12  ;;  %v8503_v21 = vsel %vm1210_vm15, %v1212_v10, %v1208_v27  ;;  %v6336_v43 = vld [vmem:[%s13558_s3 + $0x380] sm:$0xff]  ;;  %13983 = vst [vmem:[#allocation73_spill] sm:$0xff] %v8535_v41 }
 0x187   : > { %v926_v40 = vand.u32 2147483648, %v8347_v22  ;;  %v745_v62 = vmul.f32 0.3275911, %v8493_v3  ;;  %v1478_v44 = vmul.f32 %v1446_v49, %v8310_v18  ;;  %v1460_v26 = vmul.f32 %v1428_v33, %v8337_v4  ;;  %2931 = vperm.xlu1 %6630, %v6336_v43   ;;  %vm8526_vm4 = vmor %vm920_vm2, %vm921_vm3 }
 0x188   : > { %v919_v46 = vadd.f32 %v8426_v1, %v918_v19  ;;  %v924_v27 = vand.u32 2147483647, %v8347_v22  ;;  %v1741_v10 = vmul.f32 %v1709_v9, %v8139_v17  ;;  %v1712_v36 = vsub.f32 1.0, %v1680_v54  ;;  %v8541_v54 = vpop.permute.xlu0 %2582 }
 0x189   : > { %v1491_v14 = vadd.f32 0.2548296, %v1459_v45  ;;  %v1575_v12 = vsub.f32 0.0, %v8100_v61  ;;  %v656_v25 = vsel %vm624_vm0, 1.0, %v13918_v8  ;;  %6708 = vpow2.f32 %v1664_v2  ;;  %13984 = vst [vmem:[#allocation56_spill] sm:$0xff] %v8541_v54 }
 0x18a   : > { %v1415_v17 = vmul.f32 %v1383_v5, %v8399_v24  ;;  %v1288_v9 = vmul.f32 1.0614054, %v8503_v21  ;;  %v1792_v49 = vadd.f32 1.0, %v1760_v38  ;;  %6710 = vpow2.f32 %v1628_v55  ;;  %v13992_v55 = vld [vmem:[#allocation71_spill] sm:$0xff] }
 0x18b   : > { %v927_v22 = vor.u32 1.1754944e-38, %v926_v40  ;;  %v8539_v19 = vadd.f32 1.0, %v745_v62  ;;  %v1510_v45 = vadd.f32 0.2548296, %v1478_v44  ;;  %v1492_v29 = vadd.f32 0.2548296, %v1460_v26 }
 0x18c   : > { %v923_v2 = vsel %vm8526_vm4, %v8426_v1, %v919_v46  ;;  %vm925_vm5 = vcmp.eq.f32.partialorder %v924_v27, 8.507059e+37  ;;  %v6707_v11 = vpop.eup %6706  ;;  %v1744_v5 = vmul.f32 %v1712_v36, %v656_v25  ;;  %v1523_v43 = vmul.f32 %v1491_v14, %v8314_v50  ;;  %v13986_v40 = vld [vmem:[#allocation41_spill] sm:$0xff]  ;;  %v6340_v50 = vld [vmem:[%s13558_s3 + $0x3a0] sm:$0xff]  ;;  %v6338_v1 = vld [vmem:[%s13558_s3 + $0x390] sm:$0xff]  ;;  %v523_v25 = vpop.f32.mrf.mxu0 }
 0x18d   : > { %v1607_v23 = vmul.f32 %v1575_v12, %v8100_v61  ;;  %v557_v62 = vmul.f32 0.5, %v13986_v40  ;;  %v1447_v41 = vadd.f32 -0.28449672, %v1415_v17  ;;  %v1320_v35 = vadd.f32 -1.4531521, %v1288_v9  ;;  %v6339_v61 = vld [vmem:[%s13558_s3 + $0x398] sm:$0xff]  ;;  %2951 = vperm.xlu2 %6631, %v6340_v50   ;;  %2941 = vperm.xlu0 %6629, %v6338_v1  }
 0x18e   : > { %v8552_v44 = vmul.f32 %v8385_v51, %v8060_v53  ;;  %v1773_v26 = vadd.f32 1.0, %v1741_v10  ;;  %v8554_v33 = vsel %vm925_vm5, %v927_v22, %v923_v2  ;;  %6712 = vrcp.f32 %v8539_v19  ;;  %v13988_v51 = vld [vmem:[#allocation65_spill] sm:$0xff]  ;;  %v13990_v10 = vld [vmem:[#allocation55_spill] sm:$0xff] }
 0x18f   : > { %v6709_v46 = vpop.eup %6708  ;;  %v8567_v27 = vmul.f32 %v1792_v49, %v13988_v51  ;;  %v560_v36 = vmul.f32 0.5, %v13990_v10  ;;  %v1542_v14 = vmul.f32 %v1510_v45, %v8310_v18  ;;  %v1524_v12 = vmul.f32 %v1492_v29, %v8337_v4  ;;  %2946 = vperm.xlu1 %6630, %v6339_v61   ;;  %v8579_v4 = vpop.permute.xlu2 %2652 }
 0x190   : > { %13987 = vst [vmem:[#allocation41_spill] sm:$0xff] %v8552_v44  ;;  %v6711_v17 = vpop.eup %6710  ;;  %v1776_v9 = vadd.f32 1.0, %v1744_v5  ;;  %v1683_v22 = vmul.f32 %v6707_v11, %v1523_v43  ;;  %v1666_v2 = vmul.f32 1.442695, %v1607_v23  ;;  %v8573_v40 = vadd.f32 %v7904_v15, %v521_v30  ;;  %v8581_v45 = vpop.permute.xlu1 %2602  ;;  %v13995_v11 = vld [vmem:[#allocation64_spill] sm:$0xff]  ;;  %v13996_v30 = vld [vmem:[#allocation69_spill] sm:$0xff] }
 0x191   : > { %13989 = vst [vmem:[#allocation65_spill] sm:$0xff] %v8567_v27  ;;  %vm627_vm7 = vcmp.ge.f32.partialorder %v13992_v55, 0.0  ;;  %v1479_v49 = vmul.f32 %v1447_v41, %v8399_v24  ;;  %v1352_v51 = vmul.f32 %v1320_v35, %v8503_v21  ;;  %v1269_v18 = vmul.f32 1.0614054, %v8554_v33  ;;  %v8592_v23 = vpop.permute.xlu0 %2597  ;;  %v13999_v35 = vld [vmem:[#allocation74_spill] sm:$0xff]  ;;  %v551_v55 = vpop.f32.mrf.mxu2 }
 0x192   : > { %13991 = vst [vmem:[#allocation55_spill] sm:$0xff] %v8573_v40  ;;  %v8583_v29 = vmul.f32 %v1773_v26, %v557_v62  ;;  %v8586_v5 = vmul.f32 0.5, %v13995_v11  ;;  %vm646_vm8 = vcmp.ge.f32.partialorder %v13996_v30, 0.0  ;;  %v8590_v43 = vadd.f32 %v7904_v15, %v523_v25  ;;  %v6341_v30 = vld [vmem:[%s13558_s3 + $0x3a8] sm:$0xff] }
 0x193   : > { %13993 = vst [vmem:[#allocation71_spill] sm:$0xff] %v8579_v4  ;;  %v1702_v41 = vmul.f32 %v6709_v46, %v1542_v14  ;;  %vm628_vm9 = vcmp.ge.f32.partialorder %v13999_v35, 0.0  ;;  %v1684_v50 = vmul.f32 %v6711_v17, %v1524_v12  ;;  %v1576_v61 = vsub.f32 0.0, %v8204_v37 }
 0x194   : > { %13994 = vst [vmem:[#allocation108_spill] sm:$0xff] %v8583_v29  ;;  %v8596_v1 = vpop.eup %6712  ;;  %v659_v62 = vsel %vm627_vm7, 1.0, %v13918_v8  ;;  %v1715_v26 = vsub.f32 1.0, %v1683_v22  ;;  %6714 = vpow2.f32 %v1666_v2  ;;  %v8602_v10 = vmul.f32 0.70710677, %v8573_v40 }
 0x195   : > { %13997 = vst [vmem:[#allocation64_spill] sm:$0xff] %v8590_v43  ;;  %v8604_v25 = vmul.f32 %v1776_v9, %v560_v36  ;;  %v1511_v11 = vadd.f32 0.2548296, %v1479_v49  ;;  %v1384_v46 = vadd.f32 1.4214138, %v1352_v51  ;;  %v678_v12 = vsel %vm646_vm8, 1.0, %v13918_v8  ;;  %2956 = vperm.xlu0 %6629, %v6341_v30  }
 0x196   : > { %13998 = vst [vmem:[#allocation69_spill] sm:$0xff] %v8592_v23  ;;  %v1301_v14 = vadd.f32 -1.4531521, %v1269_v18  ;;  %vm647_vm10 = vcmp.ge.f32.partialorder %v8078_v58, 0.0  ;;  %v660_v17 = vsel %vm628_vm9, 1.0, %v13918_v8  ;;  %v6343_v36 = vld [vmem:[%s13558_s3 + $0x3b8] sm:$0xff]  ;;  %v1608_v49 = vmul.f32 %v1576_v61, %v8204_v37 }
 0x197   : > { %14000 = vst [vmem:[#allocation74_spill] sm:$0xff] %v8602_v10  ;;  %v8612_v22 = vmul.f32 0.70710677, %v8590_v43  ;;  %v1734_v9 = vsub.f32 1.0, %v1702_v41  ;;  %v1716_v2 = vsub.f32 1.0, %v1684_v50  ;;  %v1216_v51 = vmul.f32 %v8596_v1, %v8539_v19  ;;  %2966 = vperm.xlu2 %6631, %v6343_v36   ;;  %v6342_v18 = vld [vmem:[%s13558_s3 + $0x3b0] sm:$0xff]  ;;  %v8637_v31 = vpop.permute.xlu2 %2667 }
 0x198   : > { %v1747_v35 = vmul.f32 %v1715_v26, %v659_v62  ;;  %v1557_v4 = vsub.f32 0.0, %v8288_v16  ;;  %v8628_v41 = vand.u32 2147483647, %v8602_v10  ;;  %2961 = vperm.xlu1 %6630, %v6342_v18   ;;  %v14001_v50 = vld [vmem:[#allocation66_spill] sm:$0xff]  ;;  %v1543_v36 = vmul.f32 %v1511_v11, %v8399_v24  ;;  %v8639_v62 = vpop.permute.xlu1 %2617  ;;  %v14007_v10 = vld [vmem:[#allocation39_spill] sm:$0xff] }
 0x199   : > { %v8631_v37 = vand.u32 2147483647, %v8612_v22  ;;  %v563_v61 = vmul.f32 0.5, %v14001_v50  ;;  %v1416_v23 = vmul.f32 %v1384_v46, %v8503_v21  ;;  %v1333_v54 = vmul.f32 %v1301_v14, %v8554_v33  ;;  %14002 = vst [vmem:[#allocation66_spill] sm:$0xff] %v8637_v31  ;;  %v8653_v11 = vpop.permute.xlu0 %2612 }
 0x19a   : > { %14003 = vst [vmem:[#allocation109_spill] sm:$0xff] %v8639_v62  ;;  %v6715_v26 = vpop.eup %6714  ;;  %v8642_v20 = vmul.f32 0.5, %v8051_v42  ;;  %v8647_v18 = vsel %vm647_vm10, 1.0, %v13918_v8  ;;  %v8650_v30 = vadd.f32 %v7904_v15, %v551_v55  ;;  %v1766_v46 = vmul.f32 %v1734_v9, %v678_v12  ;;  %v14008_v12 = vld [vmem:[#allocation85_spill] sm:$0xff] }
 0x19b   : > { %v735_v24 = vmul.f32 0.3275911, %v8631_v37  ;;  %14005 = vst [vmem:[#allocation111_spill] sm:$0xff] %v8653_v11  ;;  %v1748_v14 = vmul.f32 %v1716_v2, %v660_v17  ;;  %v1668_v50 = vmul.f32 1.442695, %v1608_v49  ;;  %v1217_v62 = vsub.f32 1.0, %v1216_v51 }
 0x19c   : > { %14004 = vst [vmem:[#allocation110_spill] sm:$0xff] %v8650_v30  ;;  %v1779_v40 = vadd.f32 1.0, %v1747_v35  ;;  %v1589_v42 = vmul.f32 %v1557_v4, %v8288_v16  ;;  %v734_v47 = vmul.f32 0.3275911, %v8628_v41  ;;  %v8659_v58 = vmul.f32 %v6715_v26, %v1543_v36  ;;  %v6346_v16 = vld [vmem:[%s13558_s3 + $0x3d0] sm:$0xff]  ;;  %v553_v35 = vpop.f32.mrf.mxu2 }
 0x19d   : > { %v8657_v52 = vadd.f32 1.0, %v735_v24  ;;  %v564_v15 = vmul.f32 0.5, %v14006_v39  ;;  %v1448_v55 = vadd.f32 -0.28449672, %v1416_v23  ;;  %v1365_v31 = vadd.f32 1.4214138, %v1333_v54 }
 0x19e   : > { %v2362_v11 = vmul.f32 %v14007_v10, %v8604_v25  ;;  %v8665_v17 = vmul.f32 0.5, %v14008_v12  ;;  %v8668_v9 = vmul.f32 0.70710677, %v8650_v30  ;;  %v6345_v39 = vld [vmem:[%s13558_s3 + $0x3c8] sm:$0xff]  ;;  %v6344_v54 = vld [vmem:[%s13558_s3 + $0x3c0] sm:$0xff]  ;;  %v8680_v4 = vadd.f32 1.0, %v1766_v46 }
 0x19f   : > { %6716 = vrcp.f32 %v8657_v52  ;;  %v1780_v23 = vadd.f32 1.0, %v1748_v14  ;;  %v1218_v10 = vmul.f32 %v8596_v1, %v1217_v62  ;;  %v1226_v2 = vand.u32 2147483648, %v8539_v19  ;;  %2981 = vperm.xlu2 %6631, %v6346_v16   ;;  %2971 = vperm.xlu0 %6629, %v6344_v54   ;;  %v8692_v62 = vpop.permute.xlu2 %2682  ;;  %v14015_v16 = vld [vmem:[#allocation89_spill] sm:$0xff] }
 0x1a0   : > { %14009 = vst [vmem:[#allocation70_spill] sm:$0xff] %v8668_v9  ;;  %v8684_v49 = vmul.f32 %v1779_v40, %v563_v61  ;;  %6718 = vpow2.f32 %v1668_v50  ;;  %v1630_v51 = vmul.f32 1.442695, %v1589_v42  ;;  %v8686_v36 = vadd.f32 1.0, %v734_v47  ;;  %2976 = vperm.xlu1 %6630, %v6345_v39   ;;  %v8694_v14 = vpop.permute.xlu1 %2632  ;;  %v6909_v39 = vld [vmem:[%s13557_s2] ss:$0 sm:$0xff] }
 0x1a1   : > { %v1735_v26 = vsub.f32 1.0, %v8659_v58  ;;  %v1480_v24 = vmul.f32 %v1448_v55, %v8503_v21  ;;  %v1397_v46 = vmul.f32 %v1365_v31, %v8554_v33  ;;  %vm1220_vm12 = vweird.f32 %v8539_v19  ;;  %14011 = vst [vmem:[#allocation85_spill] sm:$0xff] %v8694_v14  ;;  %v8702_v50 = vpop.permute.xlu0 %2627 }
 0x1a2   : > { %14010 = vst [vmem:[#allocation39_spill] sm:$0xff] %v8684_v49  ;;  %vm1221_vm13 = vweird.f32 %v8596_v1  ;;  %v1224_v40 = vand.u32 2147483647, %v8539_v19  ;;  %v8699_v47 = vand.u32 2147483647, %v8668_v9  ;;  %v2461_v61 = vrot.slane %v8604_v25, 1 }
 0x1a3   : > { %14013 = vst [vmem:[#allocation113_spill] sm:$0xff] %v8702_v50  ;;  %v8704_v42 = vmul.f32 %v1780_v23, %v564_v15  ;;  %v1219_v31 = vadd.f32 %v8596_v1, %v1218_v10  ;;  %v1227_v58 = vor.u32 1.1754944e-38, %v1226_v2  ;;  %v2464_v55 = vrot.slane %v8684_v49, 1  ;;  %vm8733_vm15 = vmor %vm1220_vm12, %vm1221_vm13 }
 0x1a4   : > { %14012 = vst [vmem:[#allocation112_spill] sm:$0xff] %v8699_v47  ;;  %vm648_vm14 = vcmp.ge.f32.partialorder %v14015_v16, 0.0  ;;  %v8714_v54 = vadd.f32 %v6909_v39, %v553_v35  ;;  %6720 = vrcp.f32 %v8686_v36  ;;  %v14017_v15 = vrot.slane %v8432_v13, 1  ;;  %v6348_v39 = vld [vmem:[%s13558_s3 + $0x3e0] sm:$0xff] }
 0x1a5   : > { %14014 = vst [vmem:[#allocation114_spill] sm:$0xff] %v8704_v42  ;;  %v8708_v12 = vpop.eup %6716  ;;  %v14018_v10 = vrot.slane %v8357_v34, 1  ;;  %v1512_v50 = vadd.f32 0.2548296, %v1480_v24  ;;  %v1429_v14 = vadd.f32 -0.28449672, %v1397_v46  ;;  %vm1070_vm0 = vweird.f32 %v8657_v52 }
 0x1a6   : > { %14016 = vst [vmem:[#allocation89_spill] sm:$0xff] %v8714_v54  ;;  %v8721_v23 = vsel %vm2489_vm11, %v2461_v61, %v14017_v15  ;;  %v1066_v15 = vmul.f32 %v8708_v12, %v8657_v52  ;;  %v6719_v30 = vpop.eup %6718  ;;  %v746_v19 = vmul.f32 0.3275911, %v8699_v47  ;;  %v1076_v46 = vand.u32 2147483648, %v8657_v52  ;;  %v8868_v16 = vld [vmem:[%s13559_s4 + $0x2] ss:$0 sm:$0xff] }
 0x1a7   : > { %v8727_v2 = vsel %vm2489_vm11, %v14018_v10, %v2461_v61  ;;  %v8743_v61 = vld [vmem:[%s13559_s4 + $0x1] ss:$0 sm:$0xff]  ;;  %v6349_v10 = vld [vmem:[%s13558_s3 + $0x3e8] sm:$0xff]  ;;  %vm1071_vm2 = vweird.f32 %v8708_v12  ;;  %v1074_v9 = vand.u32 2147483647, %v8657_v52  ;;  %v14023_v47 = vrot.slane %v8704_v42, 1 }
 0x1a8   : > { %14019 = vst [vmem:[#allocation115_spill] sm:$0xff] %v8727_v2  ;;  %v8746_v24 = vmul.f32 %v8743_v61, %v2362_v11  ;;  %v6347_v2 = vld [vmem:[%s13558_s3 + $0x3d8] sm:$0xff]  ;;  %v1067_v11 = vsub.f32 1.0, %v1066_v15  ;;  %2996 = vperm.xlu2 %6631, %v6349_v10   ;;  %6722 = vpow2.f32 %v1630_v51  ;;  %v1223_v53 = vsel %vm8733_vm15, %v8596_v1, %v1219_v31  ;;  %2991 = vperm.xlu1 %6630, %v6348_v39   ;;  %v8787_v1 = vpop.permute.xlu2 %2697  ;;  %vm8798_vm4 = vmor %vm1070_vm0, %vm1071_vm2 }
 0x1a9   : > { %v8766_v0 = vsel %vm2489_vm11, %v2464_v55, %v14023_v47  ;;  %vm8771_vm3 = vcmp.eq.f32.partialorder %v1224_v40, 8.507059e+37  ;;  %v8776_v15 = vmul.f32 0.70710677, %v8714_v54  ;;  %v1767_v44 = vmul.f32 %v1735_v26, %v8647_v18  ;;  %2986 = vperm.xlu0 %6629, %v6347_v2   ;;  %14030 = vst [vmem:[#allocation120_spill] sm:$0xff] %v8787_v1  ;;  %v8789_v40 = vpop.permute.xlu1 %2647  ;;  %v8804_v10 = vpop.permute.xlu0 %2642 }
 0x1aa   : > { %14022 = vst [vmem:[#allocation116_spill] sm:$0xff] %v8746_v24  ;;  %v1461_v43 = vmul.f32 %v1429_v14, %v8554_v33  ;;  %v1068_v47 = vmul.f32 %v8708_v12, %v1067_v11  ;;  %v14028_v51 = vrot.slane %v8445_v48, 1  ;;  %v8791_v31 = vpop.eup %6720  ;;  %v1544_v39 = vmul.f32 %v1512_v50, %v8503_v21  ;;  %v14063_v24 = vld [vmem:[#allocation36_spill] sm:$0xff] }
 0x1ab   : > { %14024 = vst [vmem:[#allocation117_spill] sm:$0xff] %v8766_v0  ;;  %v1077_v26 = vor.u32 1.1754944e-38, %v1076_v46  ;;  %v13629_v14 = vrot.slane %v8567_v27, 1  ;;  %v8808_v11 = vsel %vm8771_vm3, %v1227_v58, %v1223_v53  ;;  %v8810_v21 = vadd.f32 1.0, %v746_v19  ;;  %v14038_v53 = vld [vmem:[#allocation35_spill] sm:$0xff] }
 0x1ac   : > { %14027 = vst [vmem:[#allocation118_spill] sm:$0xff] %v8776_v15  ;;  %v8785_v35 = vsel %vm2489_vm11, %v14028_v51, %v2464_v55  ;;  %v14034_v55 = vld [vmem:[#allocation15_spill] sm:$0xff]  ;;  %v1069_v50 = vadd.f32 %v8708_v12, %v1068_v47  ;;  %vm1075_vm5 = vcmp.eq.f32.partialorder %v1074_v9, 8.507059e+37  ;;  %v8814_v52 = vand.u32 2147483647, %v8776_v15 }
 0x1ad   : > { %14029 = vst [vmem:[#allocation119_spill] sm:$0xff] %v8785_v35  ;;  %v13630_v2 = vrot.slane %v14034_v55, 1  ;;  %v6355_v19 = vld [vmem:[%s13558_s3 + $0x508] sm:$0xff]  ;;  %v1799_v9 = vadd.f32 1.0, %v1767_v44  ;;  %v1493_v47 = vadd.f32 0.2548296, %v1461_v43  ;;  %v1051_v51 = vmul.f32 %v8791_v31, %v8686_v36 }
 0x1ae   : > { %14031 = vst [vmem:[#allocation121_spill] sm:$0xff] %v8789_v40  ;;  %v1704_v38 = vmul.f32 %v6719_v30, %v1544_v39  ;;  %v1289_v58 = vmul.f32 1.0614054, %v8808_v11  ;;  %v14039_v44 = vrot.slane %v14038_v53, 1  ;;  %v14040_v43 = vrot.slane %v13971_v6, 1  ;;  %v14042_v39 = vld [vmem:[#allocation53_spill] sm:$0xff] }
 0x1af   : > { %14035 = vst [vmem:[#allocation122_spill] sm:$0xff] %v8804_v10  ;;  %v8822_v46 = vsel %vm2489_vm11, %v13629_v14, %v13630_v2  ;;  %v1073_v10 = vsel %vm8798_vm4, %v8708_v12, %v1069_v50  ;;  %v6354_v14 = vld [vmem:[%s13558_s3 + $0x500] sm:$0xff]  ;;  %v6723_v2 = vpop.eup %6722  ;;  %v6350_v12 = vld [vmem:[%s13558_s3 + $0x3f0] sm:$0xff]  ;;  %v680_v30 = vsel %vm648_vm14, 1.0, %v13918_v8  ;;  %v2361_v18 = vmul.f32 %v14042_v39, %v8357_v34 }
 0x1b0   : > { %14036 = vst [vmem:[#allocation123_spill] sm:$0xff] %v8814_v52  ;;  %v8838_v40 = vsel %vm1075_vm5, %v1077_v26, %v1073_v10  ;;  %v8846_v35 = vsel %vm2489_vm11, %v14040_v43, %v14039_v44  ;;  %v14043_v26 = vld [vmem:[#allocation54_spill] sm:$0xff]  ;;  %3219 = vperm.xlu2 %6631, %v6355_v19   ;;  %v8861_v44 = vmul.f32 %v8680_v4, %v8586_v5  ;;  %6724 = vrcp.f32 %v8810_v21  ;;  %v8876_v54 = vpop.permute.xlu2 %2712 }
 0x1b1   : > { %14037 = vst [vmem:[#allocation124_spill] sm:$0xff] %v8822_v46  ;;  %v2360_v10 = vmul.f32 %v14043_v26, %v8350_v57  ;;  %v1279_v50 = vmul.f32 1.0614054, %v8838_v40  ;;  %v747_v43 = vmul.f32 0.3275911, %v8814_v52  ;;  %v2740_v39 = vmul.f32 %v8692_v62, %v8846_v35  ;;  %3214 = vperm.xlu1 %6630, %v6354_v14   ;;  %3001 = vperm.xlu0 %6629, %v6350_v12   ;;  %v8878_v15 = vpop.permute.xlu1 %2662  ;;  %v8882_v62 = vpop.permute.xlu0 %2657 }
 0x1b2   : > { %14041 = vst [vmem:[#allocation125_spill] sm:$0xff] %v8846_v35  ;;  %v8873_v26 = vmul.f32 %v1799_v9, %v8642_v20  ;;  %v1525_v19 = vmul.f32 %v1493_v47, %v8554_v33  ;;  %v1052_v5 = vsub.f32 1.0, %v1051_v51  ;;  %v1736_v1 = vsub.f32 1.0, %v1704_v38  ;;  %v14049_v20 = vld [vmem:[#allocation42_spill] sm:$0xff]  ;;  %v14051_v51 = vld [vmem:[#allocation91_spill] sm:$0xff] }
 0x1b3   : > { %14044 = vst [vmem:[#allocation53_spill] sm:$0xff] %v8861_v44  ;;  %v1311_v4 = vadd.f32 -1.4531521, %v1279_v50  ;;  %v1321_v52 = vadd.f32 -1.4531521, %v1289_v58  ;;  %v2777_v46 = vmul.f32 %v8868_v16, %v2740_v39  ;;  %v2365_v14 = vmul.f32 %v14049_v20, %v8684_v49  ;;  %v14053_v39 = vld [vmem:[#allocation94_spill] sm:$0xff] }
 0x1b4   : > { %14045 = vst [vmem:[#allocation54_spill] sm:$0xff] %v8873_v26  ;;  %v8887_v33 = vmul.f32 %v8743_v61, %v2361_v18  ;;  %v8890_v9 = vmul.f32 %v8743_v61, %v2360_v10  ;;  %v8894_v38 = vmul.f32 0.5, %v14051_v51  ;;  %v8896_v58 = vadd.f32 1.0, %v747_v43  ;;  %v6388_v18 = vld [vmem:[%s13558_s3 + $0x608] sm:$0xff]  ;;  %v6387_v43 = vld [vmem:[%s13558_s3 + $0x600] sm:$0xff] }
 0x1b5   : > { %14046 = vst [vmem:[#allocation126_spill] sm:$0xff] %v8876_v54  ;;  %v1343_v47 = vmul.f32 %v1311_v4, %v8838_v40  ;;  %v8899_v12 = vadd.f32 %v2777_v46, %v8476_v56  ;;  %v13642_v50 = vrot.slane %v8873_v26, 1  ;;  %vm629_vm7 = vcmp.ge.f32.partialorder %v14053_v39, 0.0 }
 0x1b6   : > { %14047 = vst [vmem:[#allocation127_spill] sm:$0xff] %v8878_v15  ;;  %v1685_v10 = vmul.f32 %v6723_v2, %v1525_v19  ;;  %v1053_v20 = vmul.f32 %v8791_v31, %v1052_v5  ;;  %v8910_v51 = vpop.eup %6724  ;;  %v1768_v56 = vmul.f32 %v1736_v1, %v680_v30  ;;  %v1353_v46 = vmul.f32 %v1321_v52, %v8808_v11  ;;  %v6356_v19 = vld [vmem:[%s13558_s3 + $0x510] sm:$0xff]  ;;  %v14058_v15 = vld [vmem:[#allocation58_spill] sm:$0xff] }
 0x1b7   : > { %14048 = vst [vmem:[#allocation128_spill] sm:$0xff] %v8882_v62  ;;  %v1375_v4 = vadd.f32 1.4214138, %v1343_v47  ;;  %v1577_v27 = vsub.f32 0.0, %v8493_v3  ;;  %v14054_v35 = vrot.slane %v8861_v44, 1  ;;  %vm1055_vm8 = vweird.f32 %v8686_v36 }
 0x1b8   : > { %14050 = vst [vmem:[#allocation42_spill] sm:$0xff] %v8887_v33  ;;  %vm1056_vm9 = vweird.f32 %v8791_v31  ;;  %v1061_v1 = vand.u32 2147483648, %v8686_v36  ;;  %v1567_v52 = vsub.f32 0.0, %v8631_v37  ;;  %3513 = vperm.xlu2 %6631, %v6388_v18   ;;  %v8930_v30 = vmul.f32 %v8743_v61, %v2365_v14  ;;  %v8941_v14 = vpop.permute.xlu2 %2861 }
 0x1b9   : > { %14052 = vst [vmem:[#allocation91_spill] sm:$0xff] %v8899_v12  ;;  %v8920_v2 = vsel %vm2489_vm11, %v14054_v35, %v13642_v50  ;;  %v661_v35 = vsel %vm629_vm7, 1.0, %v13918_v8  ;;  %6726 = vrcp.f32 %v8896_v58  ;;  %v1407_v5 = vmul.f32 %v1375_v4, %v8838_v40  ;;  %3508 = vperm.xlu1 %6630, %v6387_v43   ;;  %3224 = vperm.xlu0 %6629, %v6356_v19   ;;  %v2678_v62 = vpop.permute.xlu1 %2677  ;;  %vm8953_vm10 = vmor %vm1055_vm8, %vm1056_vm9  ;;  %v8957_v43 = vpop.permute.xlu0 %2672 }
 0x1ba   : > { %14055 = vst [vmem:[#allocation94_spill] sm:$0xff] %v8920_v2  ;;  %v1717_v47 = vsub.f32 1.0, %v1685_v10  ;;  %v1231_v50 = vmul.f32 %v8910_v51, %v8810_v21  ;;  %v1054_v54 = vadd.f32 %v8791_v31, %v1053_v20  ;;  %v1059_v18 = vand.u32 2147483647, %v8686_v36  ;;  %v6420_v2 = vld [vmem:[%s13558_s3 + $0x700] sm:$0xff] }
 0x1bb   : > { %14056 = vst [vmem:[#allocation129_spill] sm:$0xff] %v8930_v30  ;;  %v1800_v12 = vadd.f32 1.0, %v1768_v56  ;;  %v8944_v39 = vmul.f32 %v1577_v27, %v8493_v3  ;;  %v2364_v4 = vmul.f32 %v14058_v15, %v8445_v48  ;;  %v1239_v10 = vand.u32 2147483647, %v8810_v21  ;;  %v14062_v56 = vld [vmem:[#allocation14_spill] sm:$0xff] }
 0x1bc   : > { %14057 = vst [vmem:[#allocation130_spill] sm:$0xff] %v8941_v14  ;;  %v1385_v19 = vadd.f32 1.4214138, %v1353_v46  ;;  %vm1235_vm12 = vweird.f32 %v8810_v21  ;;  %v1062_v3 = vor.u32 1.1754944e-38, %v1061_v1  ;;  %v1599_v27 = vmul.f32 %v1567_v52, %v8631_v37  ;;  %v6389_v37 = vld [vmem:[%s13558_s3 + $0x610] sm:$0xff] }
 0x1bd   : > { %14061 = vst [vmem:[#allocation58_spill] sm:$0xff] %v8957_v43  ;;  %v2479_v15 = vrot.slane %v14062_v56, 1  ;;  %v1439_v14 = vadd.f32 -0.28449672, %v1407_v5  ;;  %v13645_v30 = vrot.slane %v8432_v13, 7  ;;  %v2482_v33 = vrot.slane %v14063_v24, 1 }
 0x1be   : > { %v1749_v43 = vmul.f32 %v1717_v47, %v661_v35  ;;  %v1232_v46 = vsub.f32 1.0, %v1231_v50  ;;  %v1058_v1 = vsel %vm8953_vm10, %v8791_v31, %v1054_v54  ;;  %vm1060_vm13 = vcmp.eq.f32.partialorder %v1059_v18, 8.507059e+37  ;;  %v6357_v54 = vld [vmem:[%s13558_s3 + $0x518] sm:$0xff] }
 0x1bf   : > { %v8974_v52 = vpop.eup %6726  ;;  %v14064_v5 = vrot.slane %v13971_v6, 1  ;;  %v14066_v35 = vrot.slane %v14034_v55, 1  ;;  %v14068_v31 = vrot.slane %v8604_v25, 7  ;;  %v14069_v18 = vrot.slane %v8861_v44, 1  ;;  %v14089_v6 = vld [vmem:[#allocation83_spill] sm:$0xff] }
 0x1c0   : > { %v1650_v56 = vmul.f32 1.442695, %v1599_v27  ;;  %3802 = vperm.xlu2 %6631, %v6420_v2   ;;  %vm1236_vm14 = vweird.f32 %v8910_v51  ;;  %v14073_v2 = vrot.slane %v14038_v53, 1  ;;  %v1781_v27 = vadd.f32 1.0, %v1749_v43  ;;  %v6390_v43 = vld [vmem:[%s13558_s3 + $0x618] sm:$0xff] }
 0x1c1   : > { %v8980_v36 = vsel %vm2489_vm11, %v2479_v15, %v14064_v5  ;;  %v8986_v50 = vsel %vm2489_vm11, %v14066_v35, %v2479_v15  ;;  %v8997_v47 = vsel %vm1870_vm6, %v14068_v31, %v13645_v30  ;;  %v9003_v20 = vsel %vm2489_vm11, %v2482_v33, %v14069_v18  ;;  %3518 = vperm.xlu1 %6630, %v6389_v37   ;;  %vm9064_vm15 = vmor %vm1235_vm12, %vm1236_vm14 }
 0x1c2   : > { %14065 = vst [vmem:[#allocation131_spill] sm:$0xff] %v8980_v36  ;;  %v9006_v15 = vmul.f32 %v1800_v12, %v8665_v17  ;;  %v1417_v5 = vmul.f32 %v1385_v19, %v8808_v11  ;;  %v1241_v35 = vand.u32 2147483648, %v8810_v21  ;;  %v1471_v31 = vmul.f32 %v1439_v14, %v8838_v40  ;;  %3229 = vperm.xlu0 %6629, %v6357_v54   ;;  %v9018_v12 = vpop.permute.xlu2 %2876  ;;  %v2693_v19 = vpop.permute.xlu1 %2692  ;;  %v6421_v21 = vld [vmem:[%s13558_s3 + $0x708] sm:$0xff] }
 0x1c3   : > { %14067 = vst [vmem:[#allocation132_spill] sm:$0xff] %v8986_v50  ;;  %v9011_v50 = vsel %vm1060_vm13, %v1062_v3, %v1058_v1  ;;  %v2739_v30 = vmul.f32 %v2678_v62, %v8980_v36  ;;  %v1233_v18 = vmul.f32 %v8910_v51, %v1232_v46  ;;  %v1246_v17 = vmul.f32 %v8974_v52, %v8896_v58  ;;  %v9029_v1 = vpop.permute.xlu0 %2687  ;;  %v6358_v36 = vld [vmem:[%s13558_s3 + $0x520] sm:$0xff]  ;;  %v14079_v62 = vld [vmem:[#allocation59_spill] sm:$0xff] }
 0x1c4   : > { %14070 = vst [vmem:[#allocation133_spill] sm:$0xff] %v9003_v20  ;;  %v9024_v3 = vsel %vm2489_vm11, %v14073_v2, %v2482_v33  ;;  %v13651_v14 = vrot.slane %v8704_v42, 7  ;;  %v13652_v37 = vrot.slane %v8684_v49, 7  ;;  %v1278_v54 = vmul.f32 1.0614054, %v9011_v50  ;;  %v14076_v2 = vld [vmem:[#allocation77_spill] sm:$0xff] }
 0x1c5   : > { %14071 = vst [vmem:[#allocation134_spill] sm:$0xff] %v9006_v15  ;;  %v2776_v46 = vmul.f32 %v8868_v16, %v2739_v30  ;;  %6728 = vpow2.f32 %v1650_v56  ;;  %v1503_v33 = vadd.f32 0.2548296, %v1471_v31  ;;  %v13661_v56 = vrot.slane %v9006_v15, 1 }
 0x1c6   : > { %14072 = vst [vmem:[#allocation135_spill] sm:$0xff] %v9018_v12  ;;  %v2742_v12 = vmul.f32 %v2693_v19, %v9003_v20  ;;  %v9047_v30 = vsel %vm1870_vm6, %v13652_v37, %v13651_v14  ;;  %v9051_v19 = vmul.f32 %v8743_v61, %v2364_v4  ;;  %v1234_v31 = vadd.f32 %v8910_v51, %v1233_v18 }
 0x1c7   : > { %14074 = vst [vmem:[#allocation136_spill] sm:$0xff] %v9024_v3  ;;  %v9036_v3 = vadd.f32 %v2776_v46, %v14076_v2  ;;  %v1247_v46 = vsub.f32 1.0, %v1246_v17  ;;  %v2363_v20 = vmul.f32 %v14079_v62, %v8432_v13  ;;  %vm9068_vm0 = vcmp.eq.f32.partialorder %v1239_v10, 8.507059e+37 }
 0x1c8   : > { %14075 = vst [vmem:[#allocation137_spill] sm:$0xff] %v9029_v1  ;;  %v2779_v2 = vmul.f32 %v8868_v16, %v2742_v12  ;;  %v14084_v18 = vrot.slane %v8350_v57, 7  ;;  %v14085_v17 = vrot.slane %v8583_v29, 7  ;;  %v14086_v62 = vrot.slane %v8873_v26, 1  ;;  %v14088_v1 = vld [vmem:[#allocation62_spill] sm:$0xff]  ;;  %3523 = vperm.xlu2 %6631, %v6390_v43  }
 0x1c9   : > { %14077 = vst [vmem:[#allocation77_spill] sm:$0xff] %v9036_v3  ;;  %v1449_v37 = vadd.f32 -0.28449672, %v1417_v5  ;;  %v2366_v3 = vmul.f32 %v14088_v1, %v8704_v42  ;;  %v1310_v29 = vadd.f32 -1.4531521, %v1278_v54  ;;  %v1242_v53 = vor.u32 1.1754944e-38, %v1241_v35  ;;  %3234 = vperm.xlu1 %6630, %v6358_v36  }
 0x1ca   : > { %14078 = vst [vmem:[#allocation138_spill] sm:$0xff] %v9047_v30  ;;  %v9078_v12 = vsel %vm1870_vm6, %v14085_v17, %v14084_v18  ;;  %v9089_v10 = vsel %vm2489_vm11, %v14086_v62, %v13661_v56  ;;  %v9094_v18 = vadd.f32 %v2779_v2, %v14089_v6  ;;  %v9097_v17 = vmul.f32 %v1781_v27, %v8894_v38  ;;  %v14091_v6 = vld [vmem:[#allocation92_spill] sm:$0xff]  ;;  %v14092_v43 = vld [vmem:[#allocation2_spill] sm:$0xff]  ;;  %v9109_v35 = vpop.permute.xlu2 %2891  ;;  %v9111_v27 = vpop.permute.xlu1 %2707 }
 0x1cb   : > { %14087 = vst [vmem:[#allocation59_spill] sm:$0xff] %v9089_v10  ;;  %v1256_v15 = vand.u32 2147483648, %v8896_v58  ;;  %v1535_v26 = vmul.f32 %v1503_v33, %v8838_v40  ;;  %v6729_v62 = vpop.eup %6728  ;;  %v1238_v5 = vsel %vm9064_vm15, %v8910_v51, %v1234_v31  ;;  %v1248_v1 = vmul.f32 %v8974_v52, %v1247_v46  ;;  %3807 = vperm.xlu0 %6629, %v6421_v21   ;;  %v9119_v33 = vpop.permute.xlu0 %2702  ;;  %v14095_v21 = vld [vmem:[#allocation12_spill] sm:$0xff] }
 0x1cc   : > { %14090 = vst [vmem:[#allocation62_spill] sm:$0xff] %v9097_v17  ;;  %v2719_v54 = vmul.f32 %v14091_v6, %v8407_v63  ;;  %v2099_v38 = vmul.f32 %v14092_v43, %v9078_v12  ;;  %v9114_v40 = vmul.f32 1.442695, %v8944_v39  ;;  %v2400_v36 = vmul.f32 %v8743_v61, %v2363_v20 }
 0x1cd   : > { %14093 = vst [vmem:[#allocation83_spill] sm:$0xff] %v9109_v35  ;;  %v1254_v51 = vand.u32 2147483647, %v8896_v58  ;;  %v13662_v14 = vrot.slane %v9097_v17, 1  ;;  %v9122_v31 = vmul.f32 %v1449_v37, %v8808_v11  ;;  %v9125_v46 = vmul.f32 %v8743_v61, %v2366_v3  ;;  %v6454_v37 = vld [vmem:[%s13558_s3 + $0x808] sm:$0xff] }
 0x1ce   : > { %14094 = vst [vmem:[#allocation92_spill] sm:$0xff] %v9119_v33  ;;  %v1342_v2 = vmul.f32 %v1310_v29, %v9011_v50  ;;  %v2102_v39 = vmul.f32 %v14095_v21, %v8997_v47  ;;  %v9132_v20 = vsel %vm9068_vm0, %v1242_v53, %v1238_v5  ;;  %vm1250_vm2 = vweird.f32 %v8896_v58  ;;  %v9148_v53 = vld [vmem:[%s13559_s4] ss:$0 sm:$0xff] }
 0x1cf   : > { %v9135_v6 = vor.u32 1.1754944e-38, %v1256_v15  ;;  %v1695_v43 = vmul.f32 %v6729_v62, %v1535_v26  ;;  %v9141_v3 = vadd.f32 %v8974_v52, %v1248_v1  ;;  %vm1251_vm3 = vweird.f32 %v8974_v52  ;;  %v6453_v26 = vld [vmem:[%s13558_s3 + $0x800] sm:$0xff] }
 0x1d0   : > { %v2756_v29 = vmul.f32 %v8868_v16, %v2719_v54  ;;  %v2135_v15 = vmul.f32 %v9148_v53, %v2099_v38  ;;  %vm9154_vm4 = vcmp.eq.f32.partialorder %v1254_v51, 8.507059e+37  ;;  %v2722_v62 = vmul.f32 %v8329_v28, %v8484_v60  ;;  %v6422_v54 = vld [vmem:[%s13558_s3 + $0x710] sm:$0xff]  ;;  %4101 = vperm.xlu2 %6631, %v6454_v37   ;;  %v14105_v37 = vld [vmem:[#allocation13_spill] sm:$0xff]  ;;  %vm9206_vm7 = vmor %vm1250_vm2, %vm1251_vm3 }
 0x1d1   : > { %v14098_v5 = vrot.slane %v8704_v42, 1  ;;  %vm639_vm5 = vcmp.ge.f32.partialorder %v8612_v22, 0.0  ;;  %v1839_v38 = vrot.slane %v8357_v34, 7  ;;  %v1374_v51 = vadd.f32 1.4214138, %v1342_v2  ;;  %4096 = vperm.xlu1 %6630, %v6453_v26  }
 0x1d2   : > { %v2721_v28 = vmul.f32 %v8537_v7, %v8721_v23  ;;  %v2138_v21 = vmul.f32 %v9148_v53, %v2102_v39  ;;  %v2429_v56 = vadd.f32 %v8890_v9, %v2135_v15  ;;  %v1727_v33 = vsub.f32 1.0, %v1695_v43  ;;  %v9192_v9 = vpop.permute.xlu2 %2906  ;;  %v9194_v43 = vpop.permute.xlu1 %2856 }
 0x1d3   : > { %v9166_v1 = vsel %vm2489_vm11, %v14098_v5, %v13662_v14  ;;  %v14100_v5 = vld [vmem:[#allocation19_spill] sm:$0xff]  ;;  %v14101_v22 = vrot.slane %v8604_v25, 7  ;;  %v14102_v2 = vrot.slane %v8350_v57, 7  ;;  %v671_v39 = vsel %vm639_vm5, 1.0, %v13918_v8  ;;  %3812 = vperm.xlu0 %6629, %v6422_v54   ;;  %14103 = vst [vmem:[#allocation12_spill] sm:$0xff] %v9192_v9 }
 0x1d4   : > { %14099 = vst [vmem:[#allocation2_spill] sm:$0xff] %v9166_v1  ;;  %v2105_v14 = vmul.f32 %v14100_v5, %v9047_v30  ;;  %v9198_v26 = vadd.f32 %v2756_v29, %v2429_v56  ;;  %v14106_v5 = vld [vmem:[#allocation3_spill] sm:$0xff]  ;;  %v2759_v54 = vmul.f32 %v8868_v16, %v2722_v62  ;;  %v9214_v56 = vpop.permute.xlu0 %2851  ;;  %v1842_v29 = vrot.slane %v8445_v48, 7 }
 0x1d5   : > { %v9183_v10 = vsel %vm1870_vm6, %v1839_v38, %v14101_v22  ;;  %v9189_v7 = vsel %vm1870_vm6, %v14102_v2, %v1839_v38  ;;  %14104 = vst [vmem:[#allocation19_spill] sm:$0xff] %v9194_v43  ;;  %v1566_v2 = vsub.f32 0.0, %v8628_v41  ;;  %v2432_v43 = vadd.f32 %v2400_v36, %v2138_v21  ;;  %v14111_v21 = vld [vmem:[#allocation20_spill] sm:$0xff] }
 0x1d6   : > { %v2101_v15 = vmul.f32 %v14105_v37, %v9183_v10  ;;  %v2100_v22 = vmul.f32 %v14106_v5, %v9189_v7  ;;  %v2725_v37 = vmul.f32 %v8392_v59, %v9166_v1  ;;  %v2758_v5 = vmul.f32 %v8868_v16, %v2721_v28  ;;  %v6423_v59 = vld [vmem:[%s13558_s3 + $0x718] sm:$0xff] }
 0x1d7   : > { %v1406_v35 = vmul.f32 %v1374_v51, %v9011_v50  ;;  %v1759_v30 = vmul.f32 %v1727_v33, %v671_v39  ;;  %v2141_v62 = vmul.f32 %v9148_v53, %v2105_v14  ;;  %v14109_v1 = vrot.slane %v8684_v49, 7  ;;  %v6391_v14 = vld [vmem:[%s13558_s3 + $0x620] sm:$0xff] }
 0x1d8   : > { %v2137_v9 = vmul.f32 %v9148_v53, %v2101_v15  ;;  %v2136_v58 = vmul.f32 %v9148_v53, %v2100_v22  ;;  %v1253_v36 = vsel %vm9206_vm7, %v8974_v52, %v9141_v3  ;;  %v2724_v33 = vmul.f32 %v8581_v45, %v8766_v0  ;;  %v14110_v51 = vld [vmem:[#allocation42_spill] sm:$0xff]  ;;  %v6359_v15 = vld [vmem:[%s13558_s3 + $0x528] sm:$0xff]  ;;  %v14114_v22 = vld [vmem:[#allocation116_spill] sm:$0xff]  ;;  %3817 = vperm.xlu2 %6631, %v6423_v59  }
 0x1d9   : > { %v9229_v60 = vsel %vm1870_vm6, %v1842_v29, %v14109_v1  ;;  %v1598_v1 = vmul.f32 %v1566_v2, %v8628_v41  ;;  %v9249_v52 = vadd.f32 %v2759_v54, %v2432_v43  ;;  %v14112_v45 = vrot.slane %v8432_v13, 7  ;;  %v14116_v2 = vld [vmem:[#allocation4_spill] sm:$0xff]  ;;  %3528 = vperm.xlu1 %6630, %v6391_v14   ;;  %v14119_v14 = vld [vmem:[#allocation41_spill] sm:$0xff] }
 0x1da   : > { %v9241_v28 = vadd.f32 %v14110_v51, %v2136_v58  ;;  %v2104_v39 = vmul.f32 %v14111_v21, %v9229_v60  ;;  %v2431_v38 = vadd.f32 %v14114_v22, %v2137_v9  ;;  %v2762_v58 = vmul.f32 %v8868_v16, %v2725_v37  ;;  %v14115_v51 = vld [vmem:[#allocation64_spill] sm:$0xff]  ;;  %v9272_v59 = vpop.permute.xlu2 %2921  ;;  %v14120_v22 = vld [vmem:[#allocation51_spill] sm:$0xff] }
 0x1db   : > { %v9255_v3 = vsel %vm1870_vm6, %v14112_v45, %v1842_v29  ;;  %v575_v21 = vmul.f32 0.5, %v14115_v51  ;;  %v1438_v43 = vadd.f32 -0.28449672, %v1406_v35  ;;  %v1791_v54 = vadd.f32 1.0, %v1759_v30  ;;  %3239 = vperm.xlu0 %6629, %v6359_v15   ;;  %14117 = vst [vmem:[#allocation3_spill] sm:$0xff] %v9272_v59  ;;  %v14118_v35 = vld [vmem:[#allocation129_spill] sm:$0xff] }
 0x1dc   : > { %14113 = vst [vmem:[#allocation13_spill] sm:$0xff] %v9255_v3  ;;  %v2140_v41 = vmul.f32 %v9148_v53, %v2104_v39  ;;  %v2103_v48 = vmul.f32 %v14116_v2, %v9255_v3  ;;  %v9263_v0 = vadd.f32 %v2758_v5, %v2431_v38  ;;  %v2435_v29 = vadd.f32 %v9125_v46, %v2141_v62  ;;  %v2872_v39 = vpop.permute.xlu1 %2871  ;;  %v14134_v59 = vld [vmem:[#allocation112_spill] sm:$0xff] }
 0x1dd   : > { %v9269_v9 = vsel %vm9154_vm4, %v9135_v6, %v1253_v36  ;;  %v2761_v37 = vmul.f32 %v8868_v16, %v2724_v33  ;;  %v1420_v5 = vadd.f32 -0.28449672, %v14119_v14  ;;  %v14121_v46 = vsub.f32 0.0, %v14120_v22  ;;  %v9284_v6 = vld [vmem:[%s13559_s4 + $0x3] ss:$0 sm:$0xff]  ;;  %v9287_v33 = vpop.permute.xlu0 %2866 }
 0x1de   : > { %v2139_v45 = vmul.f32 %v9148_v53, %v2103_v48  ;;  %v2434_v30 = vadd.f32 %v14118_v35, %v2140_v41  ;;  %v1290_v4 = vmul.f32 1.0614054, %v9132_v20  ;;  %v3013_v36 = vmul.f32 %v2872_v39, %v9183_v10  ;;  %v6392_v39 = vld [vmem:[%s13558_s3 + $0x628] sm:$0xff] }
 0x1df   : > { %v1580_v62 = vmul.f32 %v14121_v46, %v14120_v22  ;;  %6730 = vpow2.f32 %v9114_v40  ;;  %v1648_v48 = vmul.f32 1.442695, %v1598_v1  ;;  %v9293_v38 = vadd.f32 %v2762_v58, %v2435_v29 }
 0x1e0   : > { %v9291_v15 = vadd.f32 %v9051_v19, %v2139_v45  ;;  %v1291_v51 = vmul.f32 1.0614054, %v9269_v9  ;;  %v1470_v41 = vmul.f32 %v1438_v43, %v9011_v50  ;;  %v9297_v2 = vmul.f32 %v1791_v54, %v575_v21  ;;  %v6360_v19 = vld [vmem:[%s13558_s3 + $0x530] sm:$0xff]  ;;  %v14124_v43 = vld [vmem:[#allocation78_spill] sm:$0xff]  ;;  %3533 = vperm.xlu2 %6631, %v6392_v39  }
 0x1e1   : > { %14122 = vst [vmem:[#allocation42_spill] sm:$0xff] %v9293_v38  ;;  %v3050_v35 = vmul.f32 %v9284_v6, %v3013_v36  ;;  %v1513_v40 = vadd.f32 0.2548296, %v9122_v31  ;;  %v9307_v1 = vadd.f32 %v2761_v37, %v2434_v30  ;;  %v1322_v58 = vadd.f32 -1.4531521, %v1290_v4  ;;  %v6455_v21 = vld [vmem:[%s13558_s3 + $0x810] sm:$0xff]  ;;  %3244 = vperm.xlu1 %6630, %v6360_v19  }
 0x1e2   : > { %14123 = vst [vmem:[#allocation20_spill] sm:$0xff] %v9297_v2  ;;  %v1452_v54 = vmul.f32 %v1420_v5, %v14124_v43  ;;  %v1612_v45 = vmul.f32 1.442695, %v1580_v62  ;;  %6732 = vpow2.f32 %v1648_v48  ;;  %v1323_v31 = vadd.f32 -1.4531521, %v1291_v51  ;;  %v9319_v46 = vpop.permute.xlu2 %2936  ;;  %v14126_v48 = vld [vmem:[#allocation65_spill] sm:$0xff] }
 0x1e3   : > { %v9310_v29 = vadd.f32 %v3050_v35, %v9198_v26  ;;  %v1502_v14 = vadd.f32 0.2548296, %v1470_v41  ;;  %v13675_v22 = vrot.slane %v9297_v2, 7  ;;  %v13674_v37 = vrot.slane %v8861_v44, 7  ;;  %4106 = vperm.xlu0 %6629, %v6455_v21   ;;  %14125 = vst [vmem:[#allocation116_spill] sm:$0xff] %v9319_v46  ;;  %v6361_v21 = vld [vmem:[%s13558_s3 + $0x538] sm:$0xff] }
 0x1e4   : > { %v1545_v26 = vmul.f32 %v1513_v40, %v8808_v11  ;;  %v2887_v4 = vpop.permute.xlu1 %2886  ;;  %v1354_v36 = vmul.f32 %v1322_v58, %v9132_v20  ;;  %v13676_v51 = vrot.slane %v14126_v48, 7  ;;  %v14127_v41 = vrot.slane %v14063_v24, 7 }
 0x1e5   : > { %v6731_v30 = vpop.eup %6730  ;;  %v3016_v5 = vmul.f32 %v2887_v4, %v9229_v60  ;;  %v2882_v62 = vpop.permute.xlu0 %2881  ;;  %v1484_v11 = vadd.f32 0.2548296, %v1452_v54  ;;  %6734 = vpow2.f32 %v1612_v45  ;;  %v1355_v40 = vmul.f32 %v1323_v31, %v9269_v9 }
 0x1e6   : > { %v9330_v35 = vsel %vm1870_vm6, %v14127_v41, %v13674_v37  ;;  %v3015_v39 = vmul.f32 %v2882_v62, %v9255_v3  ;;  %v1534_v19 = vmul.f32 %v1502_v14, %v9011_v50  ;;  %v9345_v54 = vsel %vm1870_vm6, %v13675_v22, %v13676_v51  ;;  %v6456_v50 = vld [vmem:[%s13558_s3 + $0x818] sm:$0xff]  ;;  %v6424_v62 = vld [vmem:[%s13558_s3 + $0x720] sm:$0xff]  ;;  %v14132_v22 = vld [vmem:[#allocation103_spill] sm:$0xff] }
 0x1e7   : > { %14128 = vst [vmem:[#allocation64_spill] sm:$0xff] %v9330_v35  ;;  %v3053_v58 = vmul.f32 %v9284_v6, %v3016_v5  ;;  %v1705_v4 = vmul.f32 %v6731_v30, %v1545_v26  ;;  %v1386_v14 = vadd.f32 1.4214138, %v1354_v36  ;;  %v14131_v30 = vld [vmem:[#allocation33_spill] sm:$0xff]  ;;  %vm649_vm8 = vcmp.ge.f32.partialorder %v14132_v22, 0.0  ;;  %v14145_v22 = vld [vmem:[#allocation87_spill] sm:$0xff] }
 0x1e8   : > { %14129 = vst [vmem:[#allocation4_spill] sm:$0xff] %v9345_v54  ;;  %v6733_v45 = vpop.eup %6732  ;;  %v3052_v31 = vmul.f32 %v9284_v6, %v3015_v39  ;;  %3249 = vperm.xlu2 %6631, %v6361_v21   ;;  %v2117_v26 = vmul.f32 %v14131_v30, %v9345_v54  ;;  %v1516_v39 = vmul.f32 %v1484_v11, %v14124_v43  ;;  %v1387_v36 = vadd.f32 1.4214138, %v1355_v40  ;;  %v14133_v51 = vld [vmem:[#allocation49_spill] sm:$0xff]  ;;  %v14137_v11 = vld [vmem:[#allocation74_spill] sm:$0xff]  ;;  %v14142_v30 = vld [vmem:[#allocation124_spill] sm:$0xff] }
 0x1e9   : > { %v9352_v5 = vadd.f32 %v3053_v58, %v9249_v52  ;;  %v1694_v52 = vmul.f32 %v6733_v45, %v1534_v19  ;;  %4111 = vperm.xlu1 %6630, %v6456_v50   ;;  %vm620_vm9 = vcmp.ge.f32.partialorder %v14133_v51, 0.0  ;;  %v1737_v46 = vsub.f32 1.0, %v1705_v4 }
 0x1ea   : > { %v9359_v37 = vadd.f32 %v3052_v31, %v9263_v0  ;;  %v1578_v41 = vsub.f32 0.0, %v14134_v59  ;;  %v14135_v0 = vld [vmem:[#allocation88_spill] sm:$0xff]  ;;  %v2952_v21 = vpop.permute.xlu2 %2951  ;;  %v1418_v43 = vmul.f32 %v1386_v14, %v9132_v20  ;;  %vm638_vm10 = vcmp.ge.f32.partialorder %v14137_v11, 0.0  ;;  %v14143_v14 = vld [vmem:[#allocation66_spill] sm:$0xff] }
 0x1eb   : > { %v6735_v58 = vpop.eup %6734  ;;  %v2378_v31 = vmul.f32 %v14135_v0, %v14126_v48  ;;  %3822 = vperm.xlu0 %6629, %v6424_v62   ;;  %v9374_v40 = vmul.f32 %v2952_v21, %v9345_v54  ;;  %v14139_v45 = vrot.slane %v9097_v17, 7  ;;  %v14140_v4 = vrot.slane %v8704_v42, 7 }
 0x1ec   : > { %14130 = vst [vmem:[#allocation129_spill] sm:$0xff] %v9359_v37  ;;  %v9369_v38 = vpop.permute.xlu1 %2901  ;;  %v681_v62 = vsel %vm649_vm8, 1.0, %v13918_v8  ;;  %v2737_v0 = vmul.f32 %v14143_v14, %v14142_v30  ;;  %v2153_v11 = vmul.f32 %v9148_v53, %v2117_v26  ;;  %v1676_v54 = vmul.f32 %v6735_v58, %v1516_v39  ;;  %v6425_v39 = vld [vmem:[%s13558_s3 + $0x728] sm:$0xff]  ;;  %v14147_v30 = vld [vmem:[#allocation93_spill] sm:$0xff] }
 0x1ed   : > { %14136 = vst [vmem:[#allocation41_spill] sm:$0xff] %v9369_v38  ;;  %v2897_v19 = vpop.permute.xlu0 %2896  ;;  %v9382_v50 = vsel %vm1870_vm6, %v14140_v4, %v14139_v45  ;;  %v1419_v24 = vmul.f32 %v1387_v36, %v9269_v9  ;;  %v14144_v38 = vld [vmem:[#allocation123_spill] sm:$0xff]  ;;  %v6457_v45 = vld [vmem:[%s13558_s3 + $0x820] sm:$0xff]  ;;  %v2379_v4 = vmul.f32 %v14145_v22, %v14034_v55  ;;  %v2415_v42 = vmul.f32 %v8743_v61, %v2378_v31  ;;  %v6393_v31 = vld [vmem:[%s13558_s3 + $0x630] sm:$0xff] }
 0x1ee   : > { %14138 = vst [vmem:[#allocation51_spill] sm:$0xff] %v9374_v40  ;;  %v3018_v21 = vmul.f32 %v2897_v19, %v9382_v50  ;;  %v1579_v17 = vsub.f32 0.0, %v14144_v38  ;;  %v1726_v40 = vsub.f32 1.0, %v1694_v52  ;;  %v670_v14 = vsel %vm638_vm10, 1.0, %v13918_v8  ;;  %v14146_v22 = vld [vmem:[#allocation35_spill] sm:$0xff] }
 0x1ef   : > { %14141 = vst [vmem:[#allocation78_spill] sm:$0xff] %v9382_v50  ;;  %v652_v36 = vsel %vm620_vm9, 1.0, %v13918_v8  ;;  %v1769_v52 = vmul.f32 %v1737_v46, %v681_v62  ;;  %v1450_v58 = vadd.f32 -0.28449672, %v1418_v43  ;;  %v1610_v19 = vmul.f32 %v1578_v41, %v14134_v59 }
 0x1f0   : > { %v3055_v26 = vmul.f32 %v9284_v6, %v3018_v21  ;;  %v2382_v50 = vmul.f32 %v14147_v30, %v14146_v22  ;;  %v2774_v21 = vmul.f32 %v8868_v16, %v2737_v0  ;;  %4116 = vperm.xlu2 %6631, %v6457_v45   ;;  %v2447_v3 = vadd.f32 %v2415_v42, %v2153_v11 }
 0x1f1   : > { %v1708_v51 = vsub.f32 1.0, %v1676_v54  ;;  %v1611_v46 = vmul.f32 %v1579_v17, %v14144_v38  ;;  %v1758_v43 = vmul.f32 %v1726_v40, %v670_v14  ;;  %3827 = vperm.xlu1 %6630, %v6425_v39   ;;  %v14149_v59 = vrot.slane %v14034_v55, 7  ;;  %v14153_v17 = vld [vmem:[#allocation23_spill] sm:$0xff]  ;;  %v14154_v54 = vld [vmem:[#allocation50_spill] sm:$0xff]  ;;  %v14167_v55 = vld [vmem:[#allocation40_spill] sm:$0xff] }
 0x1f2   : > { %v9415_v37 = vadd.f32 %v3055_v26, %v9307_v1  ;;  %v14150_v41 = vrot.slane %v14126_v48, 7  ;;  %v1451_v30 = vadd.f32 -0.28449672, %v1419_v24  ;;  %v2416_v0 = vmul.f32 %v8743_v61, %v2379_v4  ;;  %v2967_v1 = vpop.permute.xlu2 %2966  ;;  %v14155_v14 = vld [vmem:[#allocation22_spill] sm:$0xff]  ;;  %v14159_v4 = vld [vmem:[#allocation21_spill] sm:$0xff] }
 0x1f3   : > { %3538 = vperm.xlu0 %6629, %v6393_v31   ;;  %v9429_v42 = vadd.f32 %v2774_v21, %v2447_v3  ;;  %v585_v40 = vmul.f32 0.5, %v14154_v54  ;;  %v1672_v11 = vmul.f32 1.442695, %v1610_v19  ;;  %v9435_v26 = vmul.f32 %v2967_v1, %v14155_v14  ;;  %v14162_v1 = vld [vmem:[#allocation97_spill] sm:$0xff]  ;;  %v14163_v54 = vld [vmem:[#allocation55_spill] sm:$0xff] }
 0x1f4   : > { %14148 = vst [vmem:[#allocation33_spill] sm:$0xff] %v9415_v37  ;;  %v9424_v62 = vsel %vm1870_vm6, %v14150_v41, %v14149_v59  ;;  %v9427_v45 = vpop.permute.xlu1 %2916  ;;  %v14158_v24 = vrot.slane %v14146_v22, 7  ;;  %v14160_v31 = vrot.slane %v14159_v4, 7  ;;  %v1801_v3 = vadd.f32 1.0, %v1769_v52  ;;  %v6362_v22 = vld [vmem:[%s13558_s3 + $0x540] sm:$0xff] }
 0x1f5   : > { %14151 = vst [vmem:[#allocation103_spill] sm:$0xff] %v9424_v62  ;;  %v2118_v38 = vmul.f32 %v14153_v17, %v9424_v62  ;;  %v9437_v39 = vpop.permute.xlu0 %2911  ;;  %v1482_v21 = vmul.f32 %v1450_v58, %v9132_v20  ;;  %v2419_v41 = vmul.f32 %v8743_v61, %v2382_v50  ;;  %v2384_v17 = vmul.f32 %v14162_v1, %v8861_v44  ;;  %v6394_v50 = vld [vmem:[%s13558_s3 + $0x638] sm:$0xff]  ;;  %v14165_v1 = vld [vmem:[#allocation94_spill] sm:$0xff] }
 0x1f6   : > { %14152 = vst [vmem:[#allocation49_spill] sm:$0xff] %v9427_v45  ;;  %v9445_v59 = vsel %vm1870_vm6, %v14160_v31, %v14158_v24  ;;  %v574_v14 = vmul.f32 0.5, %v14163_v54  ;;  %v6426_v45 = vld [vmem:[%s13558_s3 + $0x730] sm:$0xff]  ;;  %v14164_v24 = vld [vmem:[#allocation26_spill] sm:$0xff]  ;;  %v1740_v52 = vmul.f32 %v1708_v51, %v652_v36  ;;  %v1483_v58 = vmul.f32 %v1451_v30, %v9269_v9  ;;  %v14169_v30 = vld [vmem:[#allocation45_spill] sm:$0xff] }
 0x1f7   : > { %14156 = vst [vmem:[#allocation112_spill] sm:$0xff] %v9435_v26  ;;  %v2154_v19 = vmul.f32 %v9148_v53, %v2118_v38  ;;  %v2121_v31 = vmul.f32 %v14164_v24, %v9445_v59  ;;  %v1674_v37 = vmul.f32 1.442695, %v1611_v46  ;;  %v14166_v54 = vld [vmem:[#allocation120_spill] sm:$0xff]  ;;  %v2123_v24 = vmul.f32 %v14167_v55, %v9330_v35 }
 0x1f8   : > { %14157 = vst [vmem:[#allocation88_spill] sm:$0xff] %v9437_v39  ;;  %v1790_v39 = vadd.f32 1.0, %v1758_v43  ;;  %v2743_v43 = vmul.f32 %v14166_v54, %v14165_v1  ;;  %v9472_v51 = vmul.f32 %v1801_v3, %v585_v40  ;;  %v1514_v46 = vadd.f32 0.2548296, %v1482_v21  ;;  %3832 = vperm.xlu2 %6631, %v6426_v45  }
 0x1f9   : > { %14161 = vst [vmem:[#allocation74_spill] sm:$0xff] %v9445_v59  ;;  %v9462_v38 = vadd.f32 %v2416_v0, %v2154_v19  ;;  %v2157_v36 = vmul.f32 %v9148_v53, %v2121_v31  ;;  %6736 = vpow2.f32 %v1672_v11  ;;  %v556_v0 = vmul.f32 0.5, %v14169_v30  ;;  %3543 = vperm.xlu1 %6630, %v6394_v50   ;;  %v14176_v31 = vld [vmem:[#allocation96_spill] sm:$0xff]  ;;  %v6395_v50 = vld [vmem:[%s13558_s3 + $0x640] sm:$0xff]  ;;  %v6363_v30 = vld [vmem:[%s13558_s3 + $0x548] sm:$0xff] }
 0x1fa   : > { %14168 = vst [vmem:[#allocation66_spill] sm:$0xff] %v9472_v51  ;;  %v2421_v19 = vmul.f32 %v8743_v61, %v2384_v17  ;;  %v9476_v4 = vmul.f32 %v1790_v39, %v574_v14  ;;  %v1772_v1 = vadd.f32 1.0, %v1740_v52  ;;  %v1515_v26 = vadd.f32 0.2548296, %v1483_v58  ;;  %v2982_v40 = vpop.permute.xlu2 %2981  ;;  %v14174_v39 = vld [vmem:[#allocation134_spill] sm:$0xff] }
 0x1fb   : > { %v9478_v54 = vadd.f32 %v2419_v41, %v2157_v36  ;;  %6738 = vpow2.f32 %v1674_v37  ;;  %v13688_v55 = vrot.slane %v9472_v51, 1  ;;  %3254 = vperm.xlu0 %6629, %v6362_v22   ;;  %v2780_v45 = vmul.f32 %v8868_v16, %v2743_v43  ;;  %v14175_v37 = vld [vmem:[#allocation54_spill] sm:$0xff] }
 0x1fc   : > { %14170 = vst [vmem:[#allocation123_spill] sm:$0xff] %v9476_v4  ;;  %v9481_v3 = vpop.permute.xlu1 %2931  ;;  %v2159_v11 = vmul.f32 %v9148_v53, %v2123_v24  ;;  %v9486_v21 = vmul.f32 %v2982_v40, %v9330_v35  ;;  %v1864_v41 = vrot.slane %v14174_v39, 7  ;;  %v1546_v17 = vmul.f32 %v1514_v46, %v9132_v20  ;;  %v14184_v35 = vld [vmem:[#allocation44_spill] sm:$0xff] }
 0x1fd   : > { %14171 = vst [vmem:[#allocation87_spill] sm:$0xff] %v9481_v3  ;;  %v9488_v14 = vpop.permute.xlu0 %2926  ;;  %v2385_v52 = vmul.f32 %v14176_v31, %v14175_v37  ;;  %v14177_v22 = vrot.slane %v14174_v39, 1  ;;  %v13690_v43 = vrot.slane %v9476_v4, 7  ;;  %v1863_v24 = vrot.slane %v14175_v37, 7 }
 0x1fe   : > { %14172 = vst [vmem:[#allocation93_spill] sm:$0xff] %v9486_v21  ;;  %v2453_v20 = vadd.f32 %v2421_v19, %v2159_v11  ;;  %v9507_v46 = vmul.f32 %v1772_v1, %v556_v0  ;;  %v1547_v31 = vmul.f32 %v1515_v26, %v9269_v9  ;;  %v14183_v9 = vld [vmem:[#allocation80_spill] sm:$0xff] }
 0x1ff   : > { %14173 = vst [vmem:[#allocation23_spill] sm:$0xff] %v9488_v14  ;;  %v9500_v58 = vsel %vm2489_vm11, %v14177_v22, %v13688_v55  ;;  %v6737_v36 = vpop.eup %6736  ;;  %v6458_v22 = vld [vmem:[%s13558_s3 + $0x828] sm:$0xff]  ;;  %v14180_v55 = vrot.slane %v9297_v2, 7  ;;  %v9527_v0 = vsel %vm1870_vm6, %v1863_v24, %v1864_v41  ;;  %v2386_v26 = vmul.f32 %v14183_v9, %v14174_v39  ;;  %v14187_v9 = vld [vmem:[#allocation29_spill] sm:$0xff] }
 0x200   : > { %14178 = vst [vmem:[#allocation50_spill] sm:$0xff] %v9500_v58  ;;  %v9529_v19 = vadd.f32 %v2780_v45, %v2453_v20  ;;  %v2745_v40 = vmul.f32 %v9111_v27, %v9500_v58  ;;  %3548 = vperm.xlu2 %6631, %v6395_v50   ;;  %v2125_v14 = vmul.f32 %v14184_v35, %v9527_v0  ;;  %v14188_v35 = vrot.slane %v9472_v51, 7  ;;  %v14195_v20 = vld [vmem:[#allocation118_spill] sm:$0xff]  ;;  %v14204_v39 = vld [vmem:[#allocation127_spill] sm:$0xff] }
 0x201   : > { %14179 = vst [vmem:[#allocation97_spill] sm:$0xff] %v9507_v46  ;;  %v9523_v1 = vsel %vm1870_vm6, %v13690_v43, %v14180_v55  ;;  %v6739_v11 = vpop.eup %6738  ;;  %v14185_v55 = vrot.slane %v8861_v44, 7  ;;  %v1706_v3 = vmul.f32 %v6737_v36, %v1546_v17  ;;  %v2422_v45 = vmul.f32 %v8743_v61, %v2385_v52  ;;  %3259 = vperm.xlu1 %6630, %v6363_v30   ;;  %v14191_v17 = vld [vmem:[#allocation34_spill] sm:$0xff] }
 0x202   : > { %14181 = vst [vmem:[#allocation55_spill] sm:$0xff] %v9523_v1  ;;  %v2997_v50 = vpop.permute.xlu2 %2996  ;;  %v9552_v58 = vsel %vm1870_vm6, %v1864_v41, %v14188_v35  ;;  %v2116_v52 = vmul.f32 %v14191_v17, %v9523_v1  ;;  %v2161_v36 = vmul.f32 %v9148_v53, %v2125_v14  ;;  %v14192_v30 = vld [vmem:[#allocation70_spill] sm:$0xff]  ;;  %vm651_vm13 = vcmp.ge.f32.partialorder %v14195_v20, 0.0  ;;  %v14196_v17 = vld [vmem:[#allocation60_spill] sm:$0xff]  ;;  %v14208_v20 = vld [vmem:[#allocation9_spill] sm:$0xff] }
 0x203   : > { %14182 = vst [vmem:[#allocation26_spill] sm:$0xff] %v9527_v0  ;;  %v9541_v43 = vsel %vm1870_vm6, %v14185_v55, %v1863_v24  ;;  %4121 = vperm.xlu0 %6629, %v6458_v22   ;;  %vm650_vm12 = vcmp.ge.f32.partialorder %v14192_v30, 0.0  ;;  %v1707_v55 = vmul.f32 %v6739_v11, %v1547_v31  ;;  %v2423_v41 = vmul.f32 %v8743_v61, %v2386_v26  ;;  %v14197_v1 = vld [vmem:[#allocation108_spill] sm:$0xff] }
 0x204   : > { %14186 = vst [vmem:[#allocation120_spill] sm:$0xff] %v9541_v43  ;;  %v2124_v37 = vmul.f32 %v14187_v9, %v9541_v43  ;;  %v9554_v24 = vpop.permute.xlu1 %2946  ;;  %v9561_v9 = vmul.f32 %v2997_v50, %v9552_v58  ;;  %v2782_v35 = vmul.f32 %v8868_v16, %v2745_v40  ;;  %v1738_v14 = vsub.f32 1.0, %v1706_v3 }
 0x205   : > { %14189 = vst [vmem:[#allocation40_spill] sm:$0xff] %v9552_v58  ;;  %v9563_v22 = vpop.permute.xlu0 %2941  ;;  %v14198_v31 = vrot.slane %v14126_v48, 1  ;;  %v14199_v11 = vrot.slane %v9297_v2, 1  ;;  %v682_v40 = vsel %vm650_vm12, 1.0, %v13918_v8  ;;  %v14201_v3 = vrot.slane %v14197_v1, 7 }
 0x206   : > { %14190 = vst [vmem:[#allocation45_spill] sm:$0xff] %v9554_v24  ;;  %v2160_v27 = vmul.f32 %v9148_v53, %v2124_v37  ;;  %v2377_v24 = vmul.f32 %v14196_v17, %v9297_v2  ;;  %v6364_v37 = vld [vmem:[%s13558_s3 + $0x550] sm:$0xff]  ;;  %v14202_v17 = vrot.slane %v9507_v46, 7  ;;  %v2152_v58 = vmul.f32 %v9148_v53, %v2116_v52 }
 0x207   : > { %14193 = vst [vmem:[#allocation96_spill] sm:$0xff] %v9561_v9  ;;  %v9578_v50 = vsel %vm2489_vm11, %v14199_v11, %v14198_v31  ;;  %v6459_v31 = vld [vmem:[%s13558_s3 + $0x830] sm:$0xff]  ;;  %v2455_v11 = vadd.f32 %v2423_v41, %v2161_v36  ;;  %v1770_v9 = vmul.f32 %v1738_v14, %v682_v40  ;;  %v14205_v36 = vrot.slane %v8350_v57, 1 }
 0x208   : > { %14194 = vst [vmem:[#allocation80_spill] sm:$0xff] %v9563_v22  ;;  %v9583_v26 = vadd.f32 %v2422_v45, %v2160_v27  ;;  %v9592_v30 = vsel %vm1870_vm6, %v14202_v17, %v14201_v3  ;;  %v1739_v22 = vsub.f32 1.0, %v1707_v55  ;;  %v6427_v45 = vld [vmem:[%s13558_s3 + $0x738] sm:$0xff]  ;;  %v683_v27 = vsel %vm651_vm13, 1.0, %v13918_v8  ;;  %3264 = vperm.xlu2 %6631, %v6364_v37  }
 0x209   : > { %14200 = vst [vmem:[#allocation44_spill] sm:$0xff] %v9578_v50  ;;  %v2736_v3 = vmul.f32 %v14204_v39, %v9578_v50  ;;  %v2414_v52 = vmul.f32 %v8743_v61, %v2377_v24  ;;  %v9607_v17 = vadd.f32 %v2782_v35, %v2455_v11  ;;  %v14206_v55 = vrot.slane %v14197_v1, 1  ;;  %4126 = vperm.xlu1 %6630, %v6459_v31   ;;  %v14210_v61 = vld [vmem:[#allocation37_spill] sm:$0xff]  ;;  %v14213_v31 = vld [vmem:[#allocation110_spill] sm:$0xff] }
 0x20a   : > { %14203 = vst [vmem:[#allocation29_spill] sm:$0xff] %v9592_v30  ;;  %v2098_v44 = vmul.f32 %v14208_v20, %v9592_v30  ;;  %v9619_v39 = vpop.permute.xlu2 %3219  ;;  %v2359_v24 = vmul.f32 %v14210_v61, %v14197_v1  ;;  %v1771_v35 = vmul.f32 %v1739_v22, %v683_v27  ;;  %v14211_v11 = vld [vmem:[#allocation105_spill] sm:$0xff]  ;;  %v1802_v30 = vadd.f32 1.0, %v1770_v9 }
 0x20b   : > { %v9615_v41 = vsel %vm2489_vm11, %v14206_v55, %v14205_v36  ;;  %3837 = vperm.xlu0 %6629, %v6427_v45   ;;  %14209 = vst [vmem:[#allocation70_spill] sm:$0xff] %v9619_v39  ;;  %v2446_v37 = vadd.f32 %v2414_v52, %v2152_v58  ;;  %v2773_v36 = vmul.f32 %v8868_v16, %v2736_v3  ;;  %v14212_v55 = vld [vmem:[#allocation17_spill] sm:$0xff]  ;;  %v586_v45 = vmul.f32 0.5, %v14213_v31 }
 0x20c   : > { %14207 = vst [vmem:[#allocation34_spill] sm:$0xff] %v9615_v41  ;;  %v2962_v14 = vpop.permute.xlu1 %2961  ;;  %v2718_v50 = vmul.f32 %v14211_v11, %v9615_v41  ;;  %v2134_v58 = vmul.f32 %v9148_v53, %v2098_v44  ;;  %v6460_v22 = vld [vmem:[%s13558_s3 + $0x838] sm:$0xff]  ;;  %v3012_v27 = vmul.f32 %v9287_v33, %v9189_v7  ;;  %v1803_v11 = vadd.f32 1.0, %v1771_v35  ;;  %v6396_v44 = vld [vmem:[%s13558_s3 + $0x648] sm:$0xff]  ;;  %v9647_v33 = vld [vmem:[%s13559_s4 + $0x1] ss:$0 sm:$0xff] }
 0x20d   : > { %v2957_v40 = vpop.permute.xlu0 %2956  ;;  %v3031_v21 = vmul.f32 %v2962_v14, %v14212_v55  ;;  %v2805_v61 = vadd.f32 %v2773_v36, %v2446_v37  ;;  %v6428_v14 = vld [vmem:[%s13558_s3 + $0x740] sm:$0xff]  ;;  %v9656_v35 = vmul.f32 %v1802_v30, %v586_v45  ;;  %v6429_v30 = vld [vmem:[%s13558_s3 + $0x748] sm:$0xff] }
 0x20e   : > { %v3030_v20 = vmul.f32 %v2957_v40, %v9424_v62  ;;  %v14214_v40 = vld [vmem:[#allocation89_spill] sm:$0xff]  ;;  %v2755_v37 = vmul.f32 %v8868_v16, %v2718_v50 }
 0x20f   : > { %v3068_v52 = vmul.f32 %v9284_v6, %v3031_v21  ;;  %v587_v9 = vmul.f32 0.5, %v14214_v40  ;;  %v2396_v21 = vmul.f32 %v9647_v33, %v2359_v24  ;;  %14215 = vst [vmem:[#allocation118_spill] sm:$0xff] %v9656_v35  ;;  %v3049_v40 = vmul.f32 %v9284_v6, %v3012_v27 }
 0x210   : > { %v3067_v3 = vmul.f32 %v9284_v6, %v3030_v20  ;;  %4131 = vperm.xlu2 %6631, %v6460_v22   ;;  %v13708_v45 = vrot.slane %v9656_v35, 7 }
 0x211   : > { %v9652_v36 = vadd.f32 %v3068_v52, %v9429_v42  ;;  %3842 = vperm.xlu1 %6630, %v6428_v14   ;;  %v2428_v31 = vadd.f32 %v2396_v21, %v2134_v58  ;;  %v9659_v55 = vmul.f32 %v1803_v11, %v587_v9  ;;  %v14218_v52 = vld [vmem:[#allocation38_spill] sm:$0xff]  ;;  %v13706_v9 = vrot.slane %v9656_v35, 1  ;;  %v6365_v11 = vld [vmem:[%s13558_s3 + $0x558] sm:$0xff]  ;;  %v14219_v21 = vld [vmem:[#allocation91_spill] sm:$0xff] }
 0x212   : > { %v9654_v20 = vadd.f32 %v3067_v3, %v2805_v61  ;;  %v3514_v62 = vpop.permute.xlu2 %3513 }
 0x213   : > { %3553 = vperm.xlu0 %6629, %v6396_v44   ;;  %14216 = vst [vmem:[#allocation60_spill] sm:$0xff] %v9659_v55  ;;  %v9662_v24 = vmul.f32 %v3514_v62, %v9189_v7  ;;  %v2787_v42 = vadd.f32 %v2755_v37, %v2428_v31  ;;  %v6397_v7 = vld [vmem:[%s13558_s3 + $0x650] sm:$0xff]  ;;  %v9678_v62 = vld [vmem:[%s13559_s4 + $0x4] ss:$0 sm:$0xff]  ;;  %v13707_v14 = vrot.slane %v9659_v55, 1  ;;  %v13710_v44 = vrot.slane %v9659_v55, 7 }
 0x214   : > { %v2977_v16 = vpop.permute.xlu1 %2976  ;;  %v14221_v31 = vld [vmem:[#allocation77_spill] sm:$0xff] }
 0x215   : > { %14217 = vst [vmem:[#allocation127_spill] sm:$0xff] %v9662_v24  ;;  %v2972_v50 = vpop.permute.xlu0 %2971  ;;  %v3034_v61 = vmul.f32 %v2977_v16, %v14218_v52  ;;  %v3081_v58 = vadd.f32 %v3049_v40, %v2787_v42  ;;  %v3118_v16 = vmul.f32 %v9678_v62, %v8357_v34  ;;  %v14223_v42 = vld [vmem:[#allocation101_spill] sm:$0xff]  ;;  %v14234_v52 = vld [vmem:[#allocation32_spill] sm:$0xff]  ;;  %v14235_v24 = vld [vmem:[#allocation6_spill] sm:$0xff] }
 0x216   : > { %v3033_v22 = vmul.f32 %v2972_v50, %v9445_v59  ;;  %v9697_v50 = vld [vmem:[%s13557_s2] ss:$0 sm:$0xff]  ;;  %v3119_v59 = vmul.f32 %v9678_v62, %v8604_v25 }
 0x217   : > { %v3071_v27 = vmul.f32 %v9284_v6, %v3034_v61  ;;  %v9701_v61 = vadd.f32 %v9697_v50, %v14223_v42  ;;  %v6398_v42 = vld [vmem:[%s13558_s3 + $0x658] sm:$0xff] }
 0x218   : > { %v3070_v3 = vmul.f32 %v9284_v6, %v3033_v22  ;;  %3847 = vperm.xlu2 %6631, %v6429_v30   ;;  %v14224_v22 = vrot.slane %v9472_v51, 7  ;;  %v2356_v51 = vmul.f32 %v14234_v52, %v9656_v35 }
 0x219   : > { %v9687_v37 = vadd.f32 %v3071_v27, %v14219_v21  ;;  %3558 = vperm.xlu1 %6630, %v6397_v7   ;;  %v9719_v21 = vsel %vm2489_vm11, %v13706_v9, %v13707_v14  ;;  %v14229_v9 = vld [vmem:[#allocation7_spill] sm:$0xff] }
 0x21a   : > { %v9690_v40 = vadd.f32 %v3070_v3, %v14221_v31  ;;  %v9709_v30 = vsel %vm1870_vm6, %v14224_v22, %v13708_v45  ;;  %v3803_v27 = vpop.permute.xlu2 %3802  ;;  %v9711_v3 = vadd.f32 %v3118_v16, %v3081_v58  ;;  %14226 = vst [vmem:[#allocation110_spill] sm:$0xff] %v9719_v21  ;;  %v14227_v22 = vrot.slane %v9507_v46, 7 }
 0x21b   : > { %14220 = vst [vmem:[#allocation9_spill] sm:$0xff] %v9687_v37  ;;  %3269 = vperm.xlu0 %6629, %v6365_v11   ;;  %v9722_v7 = vmul.f32 %v3803_v27, %v8350_v57  ;;  %v2095_v14 = vmul.f32 %v14229_v9, %v9709_v30  ;;  %v9737_v27 = vmul.f32 0.70710677, %v9701_v61  ;;  %v14238_v37 = vld [vmem:[#allocation107_spill] sm:$0xff] }
 0x21c   : > { %14222 = vst [vmem:[#allocation37_spill] sm:$0xff] %v9690_v40  ;;  %v2992_v31 = vpop.permute.xlu1 %2991  ;;  %v9731_v58 = vsel %vm1870_vm6, %v13710_v44, %v14227_v22  ;;  %v14230_v22 = vld [vmem:[#allocation99_spill] sm:$0xff] }
 0x21d   : > { %14225 = vst [vmem:[#allocation105_spill] sm:$0xff] %v9709_v30  ;;  %v3037_v11 = vmul.f32 %v2992_v31, %v9527_v0  ;;  %v2987_v16 = vpop.permute.xlu0 %2986  ;;  %v2715_v44 = vmul.f32 %v14230_v22, %v9719_v21  ;;  %v14231_v31 = vrot.slane %v14197_v1, 1  ;;  %v14232_v0 = vrot.slane %v9507_v46, 1  ;;  %v6461_v1 = vld [vmem:[%s13558_s3 + $0x840] sm:$0xff] }
 0x21e   : > { %14228 = vst [vmem:[#allocation89_spill] sm:$0xff] %v9731_v58  ;;  %v3036_v45 = vmul.f32 %v2987_v16, %v9541_v43  ;;  %v6366_v43 = vld [vmem:[%s13558_s3 + $0x560] sm:$0xff]  ;;  %v2097_v22 = vmul.f32 %v14235_v24, %v9731_v58  ;;  %v2131_v52 = vmul.f32 %v9148_v53, %v2095_v14  ;;  %v14237_v24 = vld [vmem:[#allocation47_spill] sm:$0xff]  ;;  %v2393_v14 = vmul.f32 %v9647_v33, %v2356_v51 }
 0x21f   : > { %v9753_v9 = vsel %vm2489_vm11, %v14232_v0, %v14231_v31  ;;  %v3074_v16 = vmul.f32 %v9284_v6, %v3037_v11  ;;  %v9768_v0 = vadd.f32 %v3119_v59, %v9310_v29  ;;  %v3009_v11 = vmul.f32 %v9214_v56, %v9731_v58  ;;  %v9789_v56 = vld [vmem:[%s13559_s4 + $0x2] ss:$0 sm:$0xff] }
 0x220   : > { %14233 = vst [vmem:[#allocation91_spill] sm:$0xff] %v9753_v9  ;;  %v3073_v21 = vmul.f32 %v9284_v6, %v3036_v45  ;;  %3563 = vperm.xlu2 %6631, %v6398_v42   ;;  %v2358_v40 = vmul.f32 %v14237_v24, %v9507_v46  ;;  %v9779_v45 = vand.u32 2147483647, %v9737_v27  ;;  %v2717_v39 = vmul.f32 %v14238_v37, %v9753_v9  ;;  %v14240_v37 = vld [vmem:[#allocation130_spill] sm:$0xff] }
 0x221   : > { %v9773_v31 = vadd.f32 %v3074_v16, %v9529_v19  ;;  %3274 = vperm.xlu1 %6630, %v6366_v43   ;;  %v2752_v59 = vmul.f32 %v9789_v56, %v2715_v44  ;;  %v3122_v42 = vmul.f32 %v9678_v62, %v8684_v49  ;;  %v3011_v16 = vmul.f32 %v14240_v37, %v9078_v12 }
 0x222   : > { %v9784_v29 = vadd.f32 %v3073_v21, %v9094_v18  ;;  %v3524_v19 = vpop.permute.xlu2 %3523  ;;  %v2133_v18 = vmul.f32 %v9148_v53, %v2097_v22  ;;  %v3046_v24 = vmul.f32 %v9284_v6, %v3009_v11  ;;  %v2425_v44 = vadd.f32 %v2393_v14, %v2131_v52  ;;  %v6367_v53 = vld [vmem:[%s13558_s3 + $0x568] sm:$0xff] }
 0x223   : > { %14236 = vst [vmem:[#allocation77_spill] sm:$0xff] %v9773_v31  ;;  %4136 = vperm.xlu0 %6629, %v6461_v1   ;;  %v9799_v43 = vmul.f32 %v3524_v19, %v8997_v47  ;;  %v9803_v1 = vadd.f32 %v3122_v42, %v9352_v5  ;;  %v2395_v51 = vmul.f32 %v9647_v33, %v2358_v40  ;;  %v6462_v5 = vld [vmem:[%s13558_s3 + $0x848] sm:$0xff]  ;;  %vm637_vm5 = vcmp.ge.f32.partialorder %v9737_v27, 0.0 }
 0x224   : > { %14239 = vst [vmem:[#allocation101_spill] sm:$0xff] %v9784_v29  ;;  %v3215_v21 = vpop.permute.xlu1 %3214  ;;  %v733_v29 = vmul.f32 0.3275911, %v9779_v45  ;;  %v2754_v31 = vmul.f32 %v9789_v56, %v2717_v39  ;;  %v2784_v11 = vadd.f32 %v2752_v59, %v2425_v44  ;;  %v3048_v52 = vmul.f32 %v9284_v6, %v3011_v16  ;;  %v6430_v39 = vld [vmem:[%s13558_s3 + $0x750] sm:$0xff] }
 0x225   : > { %v3002_v58 = vpop.permute.xlu0 %3001  ;;  %v3372_v22 = vmul.f32 %v3215_v21, %v9753_v9  ;;  %v2427_v40 = vadd.f32 %v2395_v51, %v2133_v18  ;;  %v3115_v14 = vmul.f32 %v9678_v62, %v9507_v46  ;;  %v14242_v51 = vld [vmem:[#allocation115_spill] sm:$0xff]  ;;  %v669_v27 = vsel %vm637_vm5, 1.0, %v13918_v8 }
 0x226   : > { %v3039_v37 = vmul.f32 %v3002_v58, %v9709_v30  ;;  %v9824_v58 = vld [vmem:[%s13559_s4 + $0x5] ss:$0 sm:$0xff]  ;;  %v3078_v59 = vadd.f32 %v3046_v24, %v2784_v11  ;;  %v9828_v42 = vadd.f32 1.0, %v733_v29  ;;  %v3117_v24 = vmul.f32 %v9678_v62, %v8350_v57  ;;  %v14244_v29 = vld [vmem:[#allocation56_spill] sm:$0xff]  ;;  %v14247_v30 = vld [vmem:[#allocation69_spill] sm:$0xff] }
 0x227   : > { %v2786_v18 = vadd.f32 %v2754_v31, %v2427_v40  ;;  %v3409_v21 = vmul.f32 %v9824_v58, %v3372_v22  ;;  %v2720_v11 = vmul.f32 %v14244_v29, %v14242_v51  ;;  %v9849_v31 = vld [vmem:[%s13559_s4 + $0x7] ss:$0 sm:$0xff]  ;;  %v6463_v40 = vld [vmem:[%s13558_s3 + $0x850] sm:$0xff] }
 0x228   : > { %v3076_v19 = vmul.f32 %v9284_v6, %v3039_v37  ;;  %3279 = vperm.xlu2 %6631, %v6367_v53   ;;  %v3147_v22 = vadd.f32 %v3115_v14, %v3078_v59  ;;  %6740 = vrcp.f32 %v9828_v42  ;;  %v3997_v14 = vmul.f32 %v9849_v31, %v9722_v7 }
 0x229   : > { %4141 = vperm.xlu1 %6630, %v6462_v5   ;;  %v3080_v53 = vadd.f32 %v3048_v52, %v2786_v18  ;;  %v6431_v18 = vld [vmem:[%s13558_s3 + $0x758] sm:$0xff]  ;;  %vm1040_vm14 = vweird.f32 %v9828_v42 }
 0x22a   : > { %v9831_v16 = vadd.f32 %v3076_v19, %v9607_v17  ;;  %v4102_v44 = vpop.permute.xlu2 %4101  ;;  %v9844_v17 = vld [vmem:[%s13559_s4 + $0x6] ss:$0 sm:$0xff]  ;;  %v3441_v19 = vadd.f32 %v3409_v21, %v3147_v22 }
 0x22b   : > { %3852 = vperm.xlu0 %6629, %v6430_v39   ;;  %v9835_v37 = vmul.f32 %v4102_v44, %v14242_v51  ;;  %14245 = vst [vmem:[#allocation32_spill] sm:$0xff] %v9844_v17  ;;  %v3149_v44 = vadd.f32 %v3117_v24, %v3080_v53 }
 0x22c   : > { %14241 = vst [vmem:[#allocation7_spill] sm:$0xff] %v9831_v16  ;;  %v3509_v9 = vpop.permute.xlu1 %3508 }
 0x22d   : > { %14243 = vst [vmem:[#allocation99_spill] sm:$0xff] %v9835_v37  ;;  %v3666_v5 = vmul.f32 %v3509_v9, %v9078_v12  ;;  %v3225_v52 = vpop.permute.xlu0 %3224  ;;  %v6399_v12 = vld [vmem:[%s13558_s3 + $0x660] sm:$0xff]  ;;  %v2757_v9 = vmul.f32 %v9789_v56, %v2720_v11 }
 0x22e   : > { %v3374_v57 = vmul.f32 %v3225_v52, %v8407_v63  ;;  %v6741_v52 = vpop.eup %6740 }
 0x22f   : > { %v3703_v39 = vmul.f32 %v9844_v17, %v3666_v5  ;;  %v9875_v7 = vadd.f32 %v2757_v9, %v9241_v28  ;;  %v6368_v28 = vld [vmem:[%s13558_s3 + $0x570] sm:$0xff]  ;;  %vm1041_vm15 = vweird.f32 %v6741_v52 }
 0x230   : > { %v3411_v59 = vmul.f32 %v9824_v58, %v3374_v57  ;;  %4146 = vperm.xlu2 %6631, %v6463_v40   ;;  %v14246_v57 = vld [vmem:[#allocation119_spill] sm:$0xff]  ;;  %vm1042_vm0 = vmor %vm1040_vm14, %vm1041_vm15 }
 0x231   : > { %v3735_v29 = vadd.f32 %v3703_v39, %v3441_v19  ;;  %3857 = vperm.xlu1 %6630, %v6431_v18   ;;  %v2723_v16 = vmul.f32 %v14247_v30, %v14246_v57  ;;  %v6432_v19 = vld [vmem:[%s13558_s3 + $0x760] sm:$0xff]  ;;  %v1036_v39 = vmul.f32 %v6741_v52, %v9828_v42  ;;  %v6400_v30 = vld [vmem:[%s13558_s3 + $0x668] sm:$0xff] }
 0x232   : > { %v3443_v21 = vadd.f32 %v3411_v59, %v3149_v44  ;;  %v3818_v22 = vpop.permute.xlu2 %3817  ;;  %v3706_v44 = vmul.f32 %v9844_v17, %v9799_v43 }
 0x233   : > { %3568 = vperm.xlu0 %6629, %v6399_v12   ;;  %v4029_v5 = vadd.f32 %v3997_v14, %v3735_v29  ;;  %v9869_v53 = vmul.f32 %v3818_v22, %v8432_v13  ;;  %v1037_v12 = vsub.f32 1.0, %v1036_v39 }
 0x234   : > { %v3519_v24 = vpop.permute.xlu1 %3518 }
 0x235   : > { %v3668_v11 = vmul.f32 %v3519_v24, %v9183_v10  ;;  %v3230_v37 = vpop.permute.xlu0 %3229 }
 0x236   : > { %v3375_v40 = vmul.f32 %v3230_v37, %v14242_v51  ;;  %v2760_v51 = vmul.f32 %v9789_v56, %v2723_v16 }
 0x237   : > { %v3705_v18 = vmul.f32 %v9844_v17, %v3668_v11  ;;  %v1038_v11 = vmul.f32 %v6741_v52, %v1037_v12 }
 0x238   : > { %v3412_v10 = vmul.f32 %v9824_v58, %v3375_v40  ;;  %3862 = vperm.xlu2 %6631, %v6432_v19   ;;  %v9903_v24 = vadd.f32 %v2760_v51, %v9291_v15  ;;  %v6464_v19 = vld [vmem:[%s13558_s3 + $0x858] sm:$0xff]  ;;  %v1046_v15 = vand.u32 2147483648, %v9828_v42 }
 0x239   : > { %v9891_v37 = vadd.f32 %v3705_v18, %v3443_v21  ;;  %3573 = vperm.xlu1 %6630, %v6400_v30   ;;  %v1039_v39 = vadd.f32 %v6741_v52, %v1038_v11  ;;  %v1044_v18 = vand.u32 2147483647, %v9828_v42 }
 0x23a   : > { %v3444_v59 = vadd.f32 %v3412_v10, %v9711_v3  ;;  %v3534_v9 = vpop.permute.xlu2 %3533  ;;  %v6401_v3 = vld [vmem:[%s13558_s3 + $0x670] sm:$0xff]  ;;  %v14250_v10 = vld [vmem:[#allocation117_spill] sm:$0xff] }
 0x23b   : > { %3284 = vperm.xlu0 %6629, %v6368_v28   ;;  %v9899_v29 = vmul.f32 %v3534_v9, %v9229_v60  ;;  %v6369_v60 = vld [vmem:[%s13558_s3 + $0x578] sm:$0xff]  ;;  %v1043_v9 = vsel %vm1042_vm0, %v6741_v52, %v1039_v39  ;;  %vm1045_vm2 = vcmp.eq.f32.partialorder %v1044_v18, 8.507059e+37 }
 0x23c   : > { %v9896_v14 = vadd.f32 %v3706_v44, %v3444_v59  ;;  %v3235_v22 = vpop.permute.xlu1 %3234  ;;  %v9928_v44 = vld [vmem:[%s13559_s4 + $0x8] ss:$0 sm:$0xff]  ;;  %v1047_v59 = vor.u32 1.1754944e-38, %v1046_v15 }
 0x23d   : > { %14248 = vst [vmem:[#allocation6_spill] sm:$0xff] %v9899_v29  ;;  %v3376_v16 = vmul.f32 %v3235_v22, %v8721_v23  ;;  %v3808_v21 = vpop.permute.xlu0 %3807 }
 0x23e   : > { %v9906_v43 = vmul.f32 %v3808_v21, %v8357_v34  ;;  %v9938_v21 = vsel %vm1045_vm2, %v1047_v59, %v1043_v9  ;;  %v14258_v9 = vld [vmem:[#allocation58_spill] sm:$0xff] }
 0x23f   : > { %v3413_v40 = vmul.f32 %v9824_v58, %v3376_v16 }
 0x240   : > { %14249 = vst [vmem:[#allocation47_spill] sm:$0xff] %v9906_v43  ;;  %3578 = vperm.xlu2 %6631, %v6401_v3   ;;  %v14253_v3 = vld [vmem:[#allocation63_spill] sm:$0xff] }
 0x241   : > { %v9920_v34 = vadd.f32 %v3413_v40, %v9768_v0  ;;  %3289 = vperm.xlu1 %6630, %v6369_v60   ;;  %v9942_v11 = vadd.f32 %v9697_v50, %v14253_v3 }
 0x242   : > { %v3250_v30 = vpop.permute.xlu2 %3249 }
 0x243   : > { %4151 = vperm.xlu0 %6629, %v6464_v19   ;;  %v3379_v28 = vmul.f32 %v3250_v30, %v14250_v10  ;;  %v9946_v40 = vmul.f32 0.70710677, %v9942_v11  ;;  %v14254_v19 = vld [vmem:[#allocation135_spill] sm:$0xff]  ;;  %v14255_v30 = vld [vmem:[#allocation72_spill] sm:$0xff]  ;;  %v14260_v10 = vld [vmem:[#allocation13_spill] sm:$0xff] }
 0x244   : > { %v4097_v51 = vpop.permute.xlu1 %4096  ;;  %v3014_v15 = vmul.f32 %v14254_v19, %v8997_v47 }
 0x245   : > { %v4254_v0 = vmul.f32 %v4097_v51, %v8407_v63  ;;  %v3416_v12 = vmul.f32 %v9824_v58, %v3379_v28  ;;  %v1277_v63 = vmul.f32 1.0614054, %v9938_v21  ;;  %v9949_v60 = vand.u32 2147483647, %v9946_v40 }
 0x246   : > { %v9959_v28 = vadd.f32 %v9697_v50, %v14255_v30  ;;  %v1565_v51 = vsub.f32 0.0, %v9779_v45  ;;  %vm630_vm14 = vcmp.ge.f32.partialorder %v9946_v40, 0.0 }
 0x247   : > { %v4291_v42 = vmul.f32 %v9928_v44, %v4254_v0  ;;  %v9934_v22 = vadd.f32 %v3416_v12, %v9803_v1  ;;  %v1309_v52 = vadd.f32 -1.4531521, %v1277_v63  ;;  %v3051_v0 = vmul.f32 %v9284_v6, %v3014_v15  ;;  %v14257_v12 = vld [vmem:[#allocation132_spill] sm:$0xff]  ;;  %v3813_v63 = vpop.permute.xlu0 %3812 }
 0x248   : > { %14256 = vst [vmem:[#allocation115_spill] sm:$0xff] %v9959_v28  ;;  %v9968_v47 = vmul.f32 0.70710677, %v9959_v28  ;;  %v1597_v3 = vmul.f32 %v1565_v51, %v9779_v45  ;;  %v14259_v45 = vld [vmem:[#allocation102_spill] sm:$0xff] }
 0x249   : > { %14251 = vst [vmem:[#allocation107_spill] sm:$0xff] %v9934_v22  ;;  %v9936_v16 = vadd.f32 %v4291_v42, %v4029_v5  ;;  %v1341_v1 = vmul.f32 %v1309_v52, %v9938_v21  ;;  %v726_v5 = vmul.f32 0.3275911, %v9949_v60  ;;  %v2738_v42 = vmul.f32 %v14258_v9, %v14257_v12  ;;  %v6370_v52 = vld [vmem:[%s13558_s3 + $0x580] sm:$0xff]  ;;  %v14261_v22 = vld [vmem:[#allocation129_spill] sm:$0xff] }
 0x24a   : > { %v4117_v19 = vpop.permute.xlu2 %4116  ;;  %v3083_v15 = vadd.f32 %v3051_v0, %v9875_v7  ;;  %v3121_v30 = vmul.f32 %v9678_v62, %v14259_v45  ;;  %v3962_v9 = vmul.f32 %v3813_v63, %v8604_v25  ;;  %3294 = vperm.xlu2 %6631, %v6370_v52   ;;  %v9993_v49 = vand.u32 2147483647, %v9968_v47 }
 0x24b   : > { %14252 = vst [vmem:[#allocation130_spill] sm:$0xff] %v9936_v16  ;;  %v1373_v39 = vadd.f32 1.4214138, %v1341_v1  ;;  %v9955_v18 = vadd.f32 1.0, %v726_v5  ;;  %v6465_v1 = vld [vmem:[%s13558_s3 + $0x860] sm:$0xff]  ;;  %v6433_v5 = vld [vmem:[%s13558_s3 + $0x768] sm:$0xff]  ;;  %v9987_v12 = vmul.f32 %v4117_v19, %v14246_v57  ;;  %v2775_v43 = vmul.f32 %v9789_v56, %v2738_v42 }
 0x24c   : > { %4156 = vperm.xlu1 %6630, %v6465_v1   ;;  %v3529_v16 = vpop.permute.xlu1 %3528  ;;  %3867 = vperm.xlu0 %6629, %v6433_v5   ;;  %v1646_v25 = vmul.f32 1.442695, %v1597_v3  ;;  %v727_v3 = vmul.f32 0.3275911, %v9993_v49  ;;  %vm631_vm15 = vcmp.ge.f32.partialorder %v9968_v47, 0.0 }
 0x24d   : > { %v1405_v59 = vmul.f32 %v1373_v39, %v9938_v21  ;;  %6742 = vrcp.f32 %v9955_v18  ;;  %v3120_v39 = vmul.f32 %v9678_v62, %v8432_v13  ;;  %v3670_v7 = vmul.f32 %v3529_v16, %v14260_v10  ;;  %v6466_v10 = vld [vmem:[%s13558_s3 + $0x868] sm:$0xff] }
 0x24e   : > { %v3153_v13 = vadd.f32 %v3121_v30, %v14261_v22  ;;  %v6434_v22 = vld [vmem:[%s13558_s3 + $0x770] sm:$0xff]  ;;  %v10009_v16 = vadd.f32 %v2775_v43, %v9462_v38  ;;  %6744 = vpow2.f32 %v1646_v25  ;;  %v14262_v30 = vld [vmem:[#allocation106_spill] sm:$0xff]  ;;  %vm935_vm3 = vweird.f32 %v9955_v18 }
 0x24f   : > { %v1437_v51 = vadd.f32 -0.28449672, %v1405_v59  ;;  %v3152_v0 = vadd.f32 %v3120_v39, %v3083_v15  ;;  %v3999_v59 = vmul.f32 %v9849_v31, %v3962_v9  ;;  %v3707_v63 = vmul.f32 %v9844_v17, %v3670_v7  ;;  %v3240_v5 = vpop.permute.xlu0 %3239  ;;  %v14263_v9 = vld [vmem:[#allocation114_spill] sm:$0xff]  ;;  %v14266_v17 = vld [vmem:[#allocation137_spill] sm:$0xff] }
 0x251   : > { %v1469_v1 = vmul.f32 %v1437_v51, %v9938_v21  ;;  %v4031_v19 = vadd.f32 %v3999_v59, %v9891_v37  ;;  %v10000_v42 = vadd.f32 %v3707_v63, %v9920_v34  ;;  %v6402_v37 = vld [vmem:[%s13558_s3 + $0x678] sm:$0xff]  ;;  %v3377_v51 = vmul.f32 %v3240_v5, %v14262_v30  ;;  %v14265_v63 = vld [vmem:[#allocation136_spill] sm:$0xff] }
 0x252   : > { %v3833_v15 = vpop.permute.xlu2 %3832  ;;  %4161 = vperm.xlu2 %6631, %v6466_v10   ;;  %v759_v59 = vadd.f32 1.0, %v727_v3  ;;  %v2741_v29 = vmul.f32 %v14266_v17, %v14265_v63  ;;  %v14267_v10 = vld [vmem:[#allocation138_spill] sm:$0xff] }
 0x253   : > { %v6743_v52 = vpop.eup %6742  ;;  %v1501_v39 = vadd.f32 0.2548296, %v1469_v1  ;;  %v10018_v7 = vmul.f32 %v3833_v15, %v14263_v9  ;;  %v3414_v25 = vmul.f32 %v9824_v58, %v3377_v51 }
 0x254   : > { %v931_v34 = vmul.f32 %v6743_v52, %v9955_v18  ;;  %3872 = vperm.xlu1 %6630, %v6434_v22   ;;  %v3245_v38 = vpop.permute.xlu1 %3244  ;;  %3583 = vperm.xlu0 %6629, %v6402_v37   ;;  %v14268_v22 = vld [vmem:[#allocation83_spill] sm:$0xff]  ;;  %6746 = vrcp.f32 %v759_v59  ;;  %vm936_vm4 = vweird.f32 %v6743_v52  ;;  %vm950_vm9 = vweird.f32 %v759_v59 }
 0x255   : > { %14264 = vst [vmem:[#allocation56_spill] sm:$0xff] %v10018_v7  ;;  %v3378_v43 = vmul.f32 %v3245_v38, %v14246_v57  ;;  %v1533_v5 = vmul.f32 %v1501_v39, %v9938_v21  ;;  %v3017_v28 = vmul.f32 %v14268_v22, %v14267_v10  ;;  %v10028_v15 = vadd.f32 %v3414_v25, %v3152_v0  ;;  %v6745_v7 = vpop.eup %6744  ;;  %vm937_vm7 = vmor %vm935_vm3, %vm936_vm4  ;;  %v14270_v22 = vld [vmem:[#allocation92_spill] sm:$0xff] }
 0x256   : > { %v932_v41 = vsub.f32 1.0, %v931_v34  ;;  %v2778_v57 = vmul.f32 %v9789_v56, %v2741_v29  ;;  %v939_v29 = vand.u32 2147483647, %v9955_v18 }
 0x257   : > { %v3415_v1 = vmul.f32 %v9824_v58, %v3378_v43  ;;  %v4107_v17 = vpop.permute.xlu0 %4106  ;;  %v1693_v38 = vmul.f32 %v6745_v7, %v1533_v5  ;;  %v3054_v34 = vmul.f32 %v9284_v6, %v3017_v28  ;;  %v3123_v28 = vmul.f32 %v9678_v62, %v14263_v9 }
 0x258   : > { %v933_v3 = vmul.f32 %v6743_v52, %v932_v41  ;;  %v4256_v51 = vmul.f32 %v4107_v17, %v8721_v23  ;;  %v10039_v0 = vadd.f32 %v2778_v57, %v9478_v54  ;;  %v941_v41 = vand.u32 2147483648, %v9955_v18  ;;  %v14269_v18 = vld [vmem:[#allocation59_spill] sm:$0xff] }
 0x259   : > { %v10030_v37 = vadd.f32 %v3415_v1, %v3153_v13  ;;  %v1725_v7 = vsub.f32 1.0, %v1693_v38  ;;  %v3086_v23 = vadd.f32 %v3054_v34, %v9903_v24  ;;  %vm940_vm8 = vcmp.eq.f32.partialorder %v939_v29, 8.507059e+37 }
 0x25a   : > { %v4293_v21 = vmul.f32 %v9928_v44, %v4256_v51  ;;  %v934_v13 = vadd.f32 %v6743_v52, %v933_v3  ;;  %v6747_v39 = vpop.eup %6746  ;;  %v942_v54 = vor.u32 1.1754944e-38, %v941_v41  ;;  %v2744_v57 = vmul.f32 %v14270_v22, %v14269_v18  ;;  %v14316_v18 = vld [vmem:[#allocation70_spill] sm:$0xff] }
 0x25b   : > { %v10049_v43 = vadd.f32 %v3123_v28, %v3086_v23  ;;  %v946_v25 = vmul.f32 %v6747_v39, %v759_v59  ;;  %v1757_v5 = vmul.f32 %v1725_v7, %v669_v27  ;;  %v573_v24 = vmul.f32 0.5, %v9701_v61 }
 0x25c   : > { %v10043_v6 = vadd.f32 %v4293_v21, %v4031_v19  ;;  %v938_v1 = vsel %vm937_vm7, %v6743_v52, %v934_v13  ;;  %v2781_v9 = vmul.f32 %v9789_v56, %v2744_v57  ;;  %vm951_vm10 = vweird.f32 %v6747_v39 }
 0x25d   : > { %v10053_v19 = vsel %vm940_vm8, %v942_v54, %v938_v1  ;;  %v947_v3 = vsub.f32 1.0, %v946_v25  ;;  %v1789_v17 = vadd.f32 1.0, %v1757_v5  ;;  %v956_v13 = vand.u32 2147483648, %v759_v59  ;;  %vm952_vm12 = vmor %vm950_vm9, %vm951_vm10  ;;  %v14275_v1 = vld [vmem:[#allocation18_spill] sm:$0xff] }
 0x25e   : > { %v1270_v38 = vmul.f32 1.0614054, %v10053_v19  ;;  %v10061_v52 = vadd.f32 %v2781_v9, %v9583_v26  ;;  %v954_v41 = vand.u32 2147483647, %v759_v59  ;;  %v13727_v28 = vrot.slane %v9476_v4, 1 }
 0x25f   : > { %v948_v34 = vmul.f32 %v6747_v39, %v947_v3  ;;  %v10058_v51 = vmul.f32 %v1789_v17, %v573_v24  ;;  %v957_v23 = vor.u32 1.1754944e-38, %v956_v13  ;;  %v14271_v27 = vrot.slane %v9476_v4, 7  ;;  %v14277_v17 = vld [vmem:[#allocation81_spill] sm:$0xff] }
 0x260   : > { %v1302_v21 = vadd.f32 -1.4531521, %v1270_v38  ;;  %vm955_vm13 = vcmp.eq.f32.partialorder %v954_v41, 8.507059e+37  ;;  %v14273_v59 = vrot.slane %v9297_v2, 1  ;;  %v4000_v22 = vmul.f32 %v9849_v31, %v9869_v53  ;;  %v6435_v38 = vld [vmem:[%s13558_s3 + $0x778] sm:$0xff]  ;;  %v6371_v53 = vld [vmem:[%s13558_s3 + $0x588] sm:$0xff] }
 0x261   : > { %v949_v29 = vadd.f32 %v6747_v39, %v948_v34  ;;  %v13728_v61 = vrot.slane %v10058_v51, 7  ;;  %v2376_v9 = vmul.f32 %v14277_v17, %v9476_v4  ;;  %v6403_v34 = vld [vmem:[%s13558_s3 + $0x680] sm:$0xff]  ;;  %3877 = vperm.xlu2 %6631, %v6435_v38   ;;  %v1558_v41 = vsub.f32 0.0, %v9949_v60  ;;  %3299 = vperm.xlu0 %6629, %v6371_v53  }
 0x262   : > { %v1334_v7 = vmul.f32 %v1302_v21, %v10053_v19  ;;  %v10080_v25 = vsel %vm2489_vm11, %v13727_v28, %v14273_v59  ;;  %v4112_v21 = vpop.permute.xlu1 %4111  ;;  %v4032_v13 = vadd.f32 %v4000_v22, %v9896_v14  ;;  %3588 = vperm.xlu1 %6630, %v6403_v34   ;;  %v10121_v17 = vld [vmem:[%s13559_s4 + $0x3] ss:$0 sm:$0xff] }
 0x263   : > { %v10072_v26 = vsel %vm1870_vm6, %v13728_v61, %v14271_v27  ;;  %v953_v54 = vsel %vm952_vm12, %v6747_v39, %v949_v29  ;;  %14274 = vst [vmem:[#allocation69_spill] sm:$0xff] %v10080_v25  ;;  %v14276_v39 = vld [vmem:[#allocation128_spill] sm:$0xff]  ;;  %v4257_v29 = vmul.f32 %v4112_v21, %v14262_v30  ;;  %v2413_v30 = vmul.f32 %v9647_v33, %v2376_v9  ;;  %v14303_v28 = vld [vmem:[#allocation86_spill] sm:$0xff] }
 0x264   : > { %14272 = vst [vmem:[#allocation119_spill] sm:$0xff] %v10072_v26  ;;  %v2115_v5 = vmul.f32 %v14275_v1, %v10072_v26  ;;  %v1366_v57 = vadd.f32 1.4214138, %v1334_v7  ;;  %v10086_v3 = vsel %vm955_vm13, %v957_v23, %v953_v54  ;;  %v2735_v24 = vmul.f32 %v14276_v39, %v10080_v25  ;;  %v10108_v23 = vld [vmem:[%s13559_s4] ss:$0 sm:$0xff] }
 0x265   : > { %v1271_v7 = vmul.f32 1.0614054, %v10086_v3  ;;  %v4294_v14 = vmul.f32 %v9928_v44, %v4257_v29  ;;  %v1590_v22 = vmul.f32 %v1558_v41, %v9949_v60 }
 0x266   : > { %v2151_v27 = vmul.f32 %v10108_v23, %v2115_v5  ;;  %v1398_v54 = vmul.f32 %v1366_v57, %v10053_v19  ;;  %v2772_v59 = vmul.f32 %v9789_v56, %v2735_v24  ;;  %v14279_v5 = vld [vmem:[#allocation51_spill] sm:$0xff] }
 0x267   : > { %v10115_v1 = vadd.f32 %v4294_v14, %v4032_v13  ;;  %v1303_v39 = vadd.f32 -1.4531521, %v1271_v7  ;;  %v3066_v38 = vmul.f32 %v10121_v17, %v14279_v5  ;;  %v1632_v21 = vmul.f32 1.442695, %v1590_v22  ;;  %v14281_v14 = vld [vmem:[#allocation112_spill] sm:$0xff]  ;;  %v14282_v22 = vld [vmem:[#allocation21_spill] sm:$0xff] }
 0x268   : > { %v2445_v57 = vadd.f32 %v2413_v30, %v2151_v27  ;;  %v1430_v34 = vadd.f32 -0.28449672, %v1398_v54  ;;  %v3135_v13 = vmul.f32 %v9678_v62, %v14126_v48  ;;  %v3069_v5 = vmul.f32 %v10121_v17, %v14281_v14  ;;  %v14285_v14 = vld [vmem:[#allocation79_spill] sm:$0xff] }
 0x269   : > { %14278 = vst [vmem:[#allocation63_spill] sm:$0xff] %v10115_v1  ;;  %v1335_v24 = vmul.f32 %v1303_v39, %v10086_v3  ;;  %6748 = vpow2.f32 %v1632_v21  ;;  %v1559_v27 = vsub.f32 0.0, %v9993_v49  ;;  %v3138_v39 = vmul.f32 %v9678_v62, %v14282_v22 }
 0x26a   : > { %v2804_v53 = vadd.f32 %v2772_v59, %v2445_v57  ;;  %v1462_v60 = vmul.f32 %v1430_v34, %v10053_v19  ;;  %v3101_v30 = vadd.f32 %v3069_v5, %v10009_v16  ;;  %v662_v16 = vsel %vm630_vm14, 1.0, %v13918_v8 }
 0x26b   : > { %v1367_v41 = vadd.f32 1.4214138, %v1335_v24  ;;  %v1591_v57 = vmul.f32 %v1559_v27, %v9993_v49  ;;  %v10150_v5 = vadd.f32 %v9697_v50, %v14285_v14  ;;  %v663_v14 = vsel %vm631_vm15, 1.0, %v13918_v8 }
 0x26c   : > { %v3098_v9 = vadd.f32 %v3066_v38, %v2804_v53  ;;  %v1494_v7 = vadd.f32 0.2548296, %v1462_v60  ;;  %v10140_v34 = vadd.f32 %v3138_v39, %v3101_v30  ;;  %v14284_v60 = vld [vmem:[#allocation93_spill] sm:$0xff]  ;;  %v4295_v39 = vmul.f32 %v9928_v44, %v9987_v12 }
 0x26d   : > { %v1399_v54 = vmul.f32 %v1367_v41, %v10086_v3  ;;  %v1634_v24 = vmul.f32 1.442695, %v1591_v57  ;;  %v3823_v41 = vpop.permute.xlu0 %3822  ;;  %v10161_v57 = vmul.f32 0.70710677, %v10150_v5  ;;  %v14290_v12 = vrot.slane %v9659_v55, 7 }
 0x26e   : > { %v10129_v29 = vadd.f32 %v3135_v13, %v3098_v9  ;;  %v1526_v59 = vmul.f32 %v1494_v7, %v10053_v19  ;;  %14283 = vst [vmem:[#allocation72_spill] sm:$0xff] %v10140_v34  ;;  %v3072_v19 = vmul.f32 %v10121_v17, %v14284_v60  ;;  %v3964_v7 = vmul.f32 %v3823_v41, %v14259_v45 }
 0x26f   : > { %v6749_v38 = vpop.eup %6748  ;;  %v1431_v53 = vadd.f32 -0.28449672, %v1399_v54  ;;  %6750 = vpow2.f32 %v1634_v24 }
 0x270   : > { %14280 = vst [vmem:[#allocation135_spill] sm:$0xff] %v10129_v29  ;;  %v1686_v21 = vmul.f32 %v6749_v38, %v1526_v59  ;;  %v4001_v40 = vmul.f32 %v9849_v31, %v3964_v7  ;;  %v3104_v54 = vadd.f32 %v3072_v19, %v10039_v0  ;;  %v14286_v59 = vld [vmem:[#allocation53_spill] sm:$0xff]  ;;  %v14293_v7 = vld [vmem:[#allocation10_spill] sm:$0xff] }
 0x271   : > { %v1463_v9 = vmul.f32 %v1431_v53, %v10086_v3  ;;  %v3141_v30 = vmul.f32 %v9678_v62, %v14286_v59  ;;  %v14287_v53 = vld [vmem:[#allocation84_spill] sm:$0xff] }
 0x272   : > { %v1718_v13 = vsub.f32 1.0, %v1686_v21  ;;  %v4033_v38 = vadd.f32 %v4001_v40, %v10000_v42  ;;  %v10165_v21 = vadd.f32 %v9697_v50, %v14287_v53  ;;  %v14291_v42 = vrot.slane %v9656_v35, 7 }
 0x273   : > { %v1495_v49 = vadd.f32 0.2548296, %v1463_v9  ;;  %v10167_v24 = vadd.f32 %v3141_v30, %v3104_v54  ;;  %v566_v9 = vmul.f32 0.5, %v9942_v11  ;;  %v14295_v54 = vld [vmem:[#allocation14_spill] sm:$0xff]  ;;  %v14296_v30 = vld [vmem:[#allocation15_spill] sm:$0xff] }
 0x274   : > { %v1750_v27 = vmul.f32 %v1718_v13, %v662_v16  ;;  %v10170_v60 = vadd.f32 %v4295_v39, %v4033_v38  ;;  %v10182_v16 = vand.u32 2147483647, %v10161_v57  ;;  %v10185_v41 = vmul.f32 0.70710677, %v10165_v21  ;;  %v14297_v38 = vld [vmem:[#allocation48_spill] sm:$0xff] }
 0x275   : > { %v1527_v45 = vmul.f32 %v1495_v49, %v10086_v3  ;;  %14288 = vst [vmem:[#allocation58_spill] sm:$0xff] %v10167_v24  ;;  %v6751_v0 = vpop.eup %6750  ;;  %v10178_v3 = vsel %vm1870_vm6, %v14291_v42, %v14290_v12  ;;  %v3137_v47 = vmul.f32 %v9678_v62, %v14295_v54  ;;  %v3136_v39 = vmul.f32 %v9678_v62, %v14296_v30 }
 0x276   : > { %v1782_v13 = vadd.f32 1.0, %v1750_v27  ;;  %14289 = vst [vmem:[#allocation102_spill] sm:$0xff] %v10170_v60  ;;  %v2096_v49 = vmul.f32 %v14293_v7, %v10178_v3  ;;  %v14294_v27 = vld [vmem:[#allocation96_spill] sm:$0xff]  ;;  %v14299_v12 = vrot.slane %v9659_v55, 1 }
 0x277   : > { %14292 = vst [vmem:[#allocation13_spill] sm:$0xff] %v10178_v3  ;;  %v1687_v19 = vmul.f32 %v6751_v0, %v1527_v45  ;;  %v3075_v40 = vmul.f32 %v10121_v17, %v14294_v27  ;;  %v2357_v45 = vmul.f32 %v14297_v38, %v9659_v55  ;;  %v728_v0 = vmul.f32 0.3275911, %v10182_v16  ;;  %v14304_v3 = vld [vmem:[#allocation29_spill] sm:$0xff] }
 0x278   : > { %v10187_v11 = vmul.f32 %v1782_v13, %v566_v9  ;;  %v10202_v9 = vand.u32 2147483647, %v10185_v41  ;;  %v14298_v13 = vrot.slane %v9507_v46, 1  ;;  %v10214_v27 = vadd.f32 %v3137_v47, %v9652_v36  ;;  %v14305_v46 = vld [vmem:[#allocation19_spill] sm:$0xff]  ;;  %v14308_v47 = vld [vmem:[#allocation62_spill] sm:$0xff] }
 0x279   : > { %v1719_v53 = vsub.f32 1.0, %v1687_v19  ;;  %v10217_v19 = vadd.f32 %v3136_v39, %v9654_v20  ;;  %v2132_v38 = vmul.f32 %v10108_v23, %v2096_v49  ;;  %v3010_v55 = vmul.f32 %v14305_v46, %v14304_v3  ;;  %v14310_v46 = vld [vmem:[#allocation41_spill] sm:$0xff] }
 0x27a   : > { %v10210_v42 = vsel %vm2489_vm11, %v14299_v12, %v14298_v13  ;;  %14301 = vst [vmem:[#allocation106_spill] sm:$0xff] %v10214_v27  ;;  %v10225_v24 = vadd.f32 %v3075_v40, %v10061_v52  ;;  %v2394_v13 = vmul.f32 %v9647_v33, %v2357_v45  ;;  %v10228_v7 = vadd.f32 1.0, %v728_v0  ;;  %v10241_v40 = vpop.permute.xlu2 %3548  ;;  %v14311_v33 = vld [vmem:[#allocation115_spill] sm:$0xff]  ;;  %v14312_v0 = vld [vmem:[#allocation36_spill] sm:$0xff] }
 0x27b   : > { %14300 = vst [vmem:[#allocation129_spill] sm:$0xff] %v10210_v42  ;;  %v2716_v61 = vmul.f32 %v14303_v28, %v10210_v42  ;;  %v1751_v12 = vmul.f32 %v1719_v53, %v663_v14  ;;  %v729_v36 = vmul.f32 0.3275911, %v10202_v9  ;;  %v14307_v20 = vrot.slane %v10187_v11, 7 }
 0x27c   : > { %14302 = vst [vmem:[#allocation114_spill] sm:$0xff] %v10217_v19  ;;  %v14309_v49 = vrot.slane %v14308_v47, 7  ;;  %v2426_v39 = vadd.f32 %v2394_v13, %v2132_v38  ;;  %v567_v14 = vmul.f32 0.5, %v14311_v33  ;;  %v3047_v53 = vmul.f32 %v10121_v17, %v3010_v55  ;;  %v14314_v13 = vld [vmem:[#allocation35_spill] sm:$0xff]  ;;  %v14315_v33 = vld [vmem:[#allocation34_spill] sm:$0xff] }
 0x27d   : > { %14306 = vst [vmem:[#allocation137_spill] sm:$0xff] %v10225_v24  ;;  %v2753_v45 = vmul.f32 %v9789_v56, %v2716_v61  ;;  %v3140_v3 = vmul.f32 %v9678_v62, %v14312_v0  ;;  %v1783_v42 = vadd.f32 1.0, %v1751_v12  ;;  %6752 = vrcp.f32 %v10228_v7  ;;  %v14317_v61 = vld [vmem:[#allocation9_spill] sm:$0xff] }
 0x27e   : > { %v10237_v28 = vsel %vm1870_vm6, %v14309_v49, %v14307_v20  ;;  %v14313_v20 = vld [vmem:[#allocation90_spill] sm:$0xff]  ;;  %v3139_v49 = vmul.f32 %v9678_v62, %v14314_v13  ;;  %v3373_v56 = vmul.f32 %v14316_v18, %v14315_v33  ;;  %v14319_v0 = vld [vmem:[#allocation37_spill] sm:$0xff]  ;;  %v3539_v13 = vpop.permute.xlu0 %3538  ;;  %vm965_vm0 = vweird.f32 %v10228_v7 }
 0x27f   : > { %v3019_v52 = vmul.f32 %v14310_v46, %v10237_v28  ;;  %v10251_v38 = vadd.f32 %v9697_v50, %v14313_v20  ;;  %v10255_v46 = vadd.f32 1.0, %v729_v36  ;;  %v10260_v55 = vadd.f32 %v3140_v3, %v14317_v61  ;;  %v14321_v20 = vld [vmem:[#allocation108_spill] sm:$0xff] }
 0x280   : > { %v2785_v59 = vadd.f32 %v2753_v45, %v2426_v39  ;;  %v10264_v24 = vadd.f32 %v3139_v49, %v14319_v0  ;;  %v3116_v63 = vmul.f32 %v9678_v62, %v14321_v20  ;;  %v10268_v35 = vmul.f32 %v1783_v42, %v567_v14  ;;  %v14322_v45 = vld [vmem:[#allocation42_spill] sm:$0xff]  ;;  %v14324_v0 = vld [vmem:[#allocation32_spill] sm:$0xff]  ;;  %v14325_v14 = vld [vmem:[#allocation127_spill] sm:$0xff] }
 0x281   : > { %14318 = vst [vmem:[#allocation138_spill] sm:$0xff] %v10260_v55  ;;  %v3056_v12 = vmul.f32 %v10121_v17, %v3019_v52  ;;  %v10271_v36 = vmul.f32 0.70710677, %v10251_v38  ;;  %6754 = vrcp.f32 %v10255_v46  ;;  %v3410_v3 = vmul.f32 %v9824_v58, %v3373_v56 }
 0x282   : > { %14320 = vst [vmem:[#allocation83_spill] sm:$0xff] %v10264_v24  ;;  %v3079_v34 = vadd.f32 %v3047_v53, %v2785_v59  ;;  %v13738_v52 = vrot.slane %v10268_v35, 1  ;;  %v14323_v53 = vld [vmem:[#allocation6_spill] sm:$0xff]  ;;  %v3125_v42 = vmul.f32 %v9678_v62, %v10187_v11  ;;  %v3704_v61 = vmul.f32 %v14324_v0, %v14325_v14  ;;  %v3828_v14 = vpop.permute.xlu1 %3827 }
 0x283   : > { %v10276_v39 = vpop.eup %6752  ;;  %v3088_v59 = vadd.f32 %v3056_v12, %v14322_v45  ;;  %v3708_v49 = vmul.f32 %v14324_v0, %v14323_v53  ;;  %v10287_v33 = vand.u32 2147483647, %v10271_v36  ;;  %v14326_v56 = vrot.slane %v10187_v11, 1  ;;  %v6404_v45 = vld [vmem:[%s13558_s3 + $0x688] sm:$0xff]  ;;  %v6372_v53 = vld [vmem:[%s13558_s3 + $0x590] sm:$0xff] }
 0x284   : > { %v3148_v18 = vadd.f32 %v3116_v63, %v3079_v34  ;;  %v6467_v63 = vld [vmem:[%s13558_s3 + $0x870] sm:$0xff]  ;;  %v3265_v34 = vpop.permute.xlu2 %3264  ;;  %3593 = vperm.xlu2 %6631, %v6404_v45   ;;  %3304 = vperm.xlu1 %6630, %v6372_v53   ;;  %v961_v55 = vmul.f32 %v10276_v39, %v10228_v7  ;;  %v3672_v19 = vmul.f32 %v3539_v13, %v14267_v10  ;;  %v14329_v10 = vld [vmem:[#allocation77_spill] sm:$0xff]  ;;  %vm966_vm2 = vweird.f32 %v10276_v39 }
 0x285   : > { %v10295_v12 = vsel %vm2489_vm11, %v14326_v56, %v13738_v52  ;;  %v3740_v20 = vadd.f32 %v3708_v49, %v10028_v15  ;;  %v14327_v52 = vld [vmem:[#allocation39_spill] sm:$0xff]  ;;  %4166 = vperm.xlu0 %6629, %v6467_v63   ;;  %v3157_v30 = vadd.f32 %v3125_v42, %v3088_v59  ;;  %v14328_v49 = vld [vmem:[#allocation134_spill] sm:$0xff]  ;;  %vm10386_vm3 = vmor %vm965_vm0, %vm966_vm2  ;;  %vm980_vm5 = vweird.f32 %v10255_v46 }
 0x286   : > { %v3382_v56 = vmul.f32 %v3265_v34, %v10295_v12  ;;  %v3965_v24 = vmul.f32 %v3828_v14, %v14327_v52  ;;  %v3442_v54 = vadd.f32 %v3410_v3, %v3148_v18  ;;  %v3143_v45 = vmul.f32 %v9678_v62, %v14328_v49  ;;  %v14333_v14 = vld [vmem:[#allocation101_spill] sm:$0xff] }
 0x287   : > { %v10312_v29 = vpop.eup %6754  ;;  %v730_v18 = vmul.f32 0.3275911, %v10287_v33  ;;  %v3709_v3 = vmul.f32 %v14324_v0, %v3672_v19  ;;  %v962_v42 = vsub.f32 1.0, %v961_v55  ;;  %v14331_v19 = vld [vmem:[#allocation54_spill] sm:$0xff]  ;;  %v984_v60 = vand.u32 2147483647, %v10255_v46 }
 0x288   : > { %v3419_v22 = vmul.f32 %v9824_v58, %v3382_v56  ;;  %v4002_v15 = vmul.f32 %v9849_v31, %v3965_v24  ;;  %v10318_v53 = vadd.f32 %v3704_v61, %v3442_v54  ;;  %v10327_v13 = vadd.f32 %v3143_v45, %v14329_v10  ;;  %v6373_v24 = vld [vmem:[%s13558_s3 + $0x598] sm:$0xff] }
 0x289   : > { %v10330_v63 = vadd.f32 %v3709_v3, %v10030_v37  ;;  %v6468_v54 = vld [vmem:[%s13558_s3 + $0x878] sm:$0xff]  ;;  %v6436_v37 = vld [vmem:[%s13558_s3 + $0x780] sm:$0xff]  ;;  %v10349_v61 = vadd.f32 1.0, %v730_v18  ;;  %v3255_v3 = vpop.permute.xlu0 %3254  ;;  %v963_v10 = vmul.f32 %v10276_v39, %v962_v42  ;;  %vm981_vm7 = vweird.f32 %v10312_v29 }
 0x28a   : > { %v10322_v52 = vadd.f32 %v3419_v22, %v3157_v30  ;;  %v10324_v59 = vadd.f32 %v4002_v15, %v3740_v20  ;;  %14330 = vst [vmem:[#allocation92_spill] sm:$0xff] %v10327_v13  ;;  %v3142_v22 = vmul.f32 %v9678_v62, %v14331_v19  ;;  %v976_v30 = vmul.f32 %v10312_v29, %v10255_v46  ;;  %v14332_v20 = vld [vmem:[#allocation95_spill] sm:$0xff]  ;;  %v3544_v34 = vpop.permute.xlu1 %3543  ;;  %v14335_v15 = vld [vmem:[#allocation78_spill] sm:$0xff]  ;;  %vm982_vm8 = vmor %vm980_vm5, %vm981_vm7 }
 0x28b   : > { %v10344_v55 = vadd.f32 %v9697_v50, %v14332_v20  ;;  %v3673_v45 = vmul.f32 %v3544_v34, %v14335_v15  ;;  %v14336_v20 = vld [vmem:[#allocation2_spill] sm:$0xff]  ;;  %v969_v19 = vand.u32 2147483647, %v10228_v7  ;;  %6756 = vrcp.f32 %v10349_v61  ;;  %v14338_v34 = vld [vmem:[#allocation107_spill] sm:$0xff] }
 0x28c   : > { %v10352_v56 = vadd.f32 %v3142_v22, %v14333_v14  ;;  %3309 = vperm.xlu2 %6631, %v6373_v24   ;;  %4171 = vperm.xlu1 %6630, %v6468_v54   ;;  %v3380_v49 = vmul.f32 %v3255_v3, %v14336_v20  ;;  %v977_v18 = vsub.f32 1.0, %v976_v30  ;;  %v14337_v24 = vld [vmem:[#allocation98_spill] sm:$0xff]  ;;  %v964_v30 = vadd.f32 %v10276_v39, %v963_v10 }
 0x28d   : > { %3882 = vperm.xlu0 %6629, %v6436_v37   ;;  %v10360_v13 = vmul.f32 0.70710677, %v10344_v55  ;;  %v3710_v22 = vmul.f32 %v14324_v0, %v3673_v45  ;;  %v10367_v42 = vadd.f32 %v9697_v50, %v14337_v24  ;;  %v971_v37 = vand.u32 2147483648, %v10228_v7  ;;  %v6469_v0 = vld [vmem:[%s13558_s3 + $0x880] sm:$0xff]  ;;  %v6437_v50 = vld [vmem:[%s13558_s3 + $0x788] sm:$0xff] }
 0x28e   : > { %14334 = vst [vmem:[#allocation18_spill] sm:$0xff] %v10352_v56  ;;  %v3417_v54 = vmul.f32 %v9824_v58, %v3380_v49  ;;  %v978_v45 = vmul.f32 %v10312_v29, %v977_v18  ;;  %vm10399_vm4 = vcmp.eq.f32.partialorder %v969_v19, 8.507059e+37  ;;  %v14344_v18 = vrot.slane %v14308_v47, 1 }
 0x28f   : > { %v10372_v14 = vadd.f32 %v3710_v22, %v14338_v34  ;;  %v10392_v10 = vand.u32 2147483647, %v10360_v13  ;;  %v3124_v22 = vmul.f32 %v9678_v62, %v14308_v47  ;;  %v10404_v7 = vmul.f32 0.70710677, %v10367_v42 }
 0x290   : > { %v10376_v3 = vadd.f32 %v3417_v54, %v10049_v43  ;;  %v6405_v43 = vld [vmem:[%s13558_s3 + $0x690] sm:$0xff]  ;;  %v14343_v54 = vrot.slane %v10187_v11, 1  ;;  %v972_v27 = vor.u32 1.1754944e-38, %v971_v37  ;;  %v968_v48 = vsel %vm10386_vm3, %v10276_v39, %v964_v30  ;;  %v14345_v37 = vld [vmem:[#allocation117_spill] sm:$0xff] }
 0x291   : > { %v4122_v19 = vpop.permute.xlu0 %4121  ;;  %v6757_v25 = vpop.eup %6756  ;;  %v979_v26 = vadd.f32 %v10312_v29, %v978_v45  ;;  %v10432_v39 = vand.u32 2147483647, %v10404_v7  ;;  %vm985_vm9 = vcmp.eq.f32.partialorder %v984_v60, 8.507059e+37  ;;  %vm995_vm10 = vweird.f32 %v10349_v61 }
 0x292   : > { %v10412_v34 = vsel %vm2489_vm11, %v14344_v18, %v14343_v54  ;;  %v3260_v56 = vpop.permute.xlu1 %3259  ;;  %v986_v54 = vand.u32 2147483648, %v10255_v46  ;;  %v4259_v18 = vmul.f32 %v4122_v19, %v14345_v37  ;;  %v10437_v49 = vsel %vm10399_vm4, %v972_v27, %v968_v48 }
 0x293   : > { %v3381_v62 = vmul.f32 %v3260_v56, %v10412_v34  ;;  %v991_v45 = vmul.f32 %v6757_v25, %v10349_v61  ;;  %v983_v46 = vsel %vm982_vm8, %v10312_v29, %v979_v26  ;;  %v1272_v19 = vmul.f32 1.0614054, %v10437_v49 }
 0x294   : > { %4176 = vperm.xlu2 %6631, %v6469_v0   ;;  %3887 = vperm.xlu1 %6630, %v6437_v50   ;;  %v731_v0 = vmul.f32 0.3275911, %v10392_v10  ;;  %v14346_v50 = vld [vmem:[#allocation33_spill] sm:$0xff]  ;;  %v4296_v30 = vmul.f32 %v9928_v44, %v4259_v18  ;;  %v732_v37 = vmul.f32 0.3275911, %v10432_v39  ;;  %vm996_vm12 = vweird.f32 %v6757_v25 }
 0x295   : > { %3598 = vperm.xlu0 %6629, %v6405_v43   ;;  %v3156_v2 = vadd.f32 %v3124_v22, %v14346_v50  ;;  %v3418_v56 = vmul.f32 %v9824_v58, %v3381_v62  ;;  %v987_v22 = vor.u32 1.1754944e-38, %v986_v54  ;;  %v992_v24 = vsub.f32 1.0, %v991_v45  ;;  %vm997_vm13 = vmor %vm995_vm10, %vm996_vm12 }
 0x296   : > { %v10443_v58 = vadd.f32 %v4296_v30, %v10324_v59  ;;  %v10446_v62 = vadd.f32 1.0, %v731_v0  ;;  %v10453_v27 = vadd.f32 1.0, %v732_v37  ;;  %v1001_v29 = vand.u32 2147483648, %v10349_v61 }
 0x297   : > { %v10440_v43 = vadd.f32 %v3418_v56, %v3156_v2  ;;  %v10450_v48 = vsel %vm985_vm9, %v987_v22, %v983_v46  ;;  %v1304_v2 = vadd.f32 -1.4531521, %v1272_v19  ;;  %v993_v54 = vmul.f32 %v6757_v25, %v992_v24  ;;  %v14348_v24 = vld [vmem:[#allocation47_spill] sm:$0xff] }
 0x298   : > { %14347 = vst [vmem:[#allocation128_spill] sm:$0xff] %v10443_v58  ;;  %6758 = vrcp.f32 %v10446_v62  ;;  %v1273_v59 = vmul.f32 1.0614054, %v10450_v48  ;;  %v999_v50 = vand.u32 2147483647, %v10349_v61  ;;  %v1002_v30 = vor.u32 1.1754944e-38, %v1001_v29 }
 0x299   : > { %v1336_v26 = vmul.f32 %v1304_v2, %v10437_v49  ;;  %6760 = vrcp.f32 %v10453_v27  ;;  %v994_v0 = vadd.f32 %v6757_v25, %v993_v54  ;;  %v1560_v37 = vsub.f32 0.0, %v10182_v16  ;;  %v14350_v58 = vld [vmem:[#allocation56_spill] sm:$0xff] }
 0x29a   : > { %v1305_v18 = vadd.f32 -1.4531521, %v1273_v59  ;;  %vm1000_vm14 = vcmp.eq.f32.partialorder %v999_v50, 8.507059e+37  ;;  %v3998_v2 = vmul.f32 %v9849_v31, %v14348_v24  ;;  %v4003_v1 = vmul.f32 %v9849_v31, %v14350_v58  ;;  %v6374_v31 = vld [vmem:[%s13558_s3 + $0x5a0] sm:$0xff] }
 0x29b   : > { %v1368_v56 = vadd.f32 1.4214138, %v1336_v26  ;;  %v998_v46 = vsel %vm997_vm13, %v6757_v25, %v994_v0  ;;  %v14349_v0 = vld [vmem:[#allocation99_spill] sm:$0xff]  ;;  %vm1010_vm15 = vweird.f32 %v10446_v62  ;;  %vm1025_vm3 = vweird.f32 %v10453_v27 }
 0x29c   : > { %v1337_v22 = vmul.f32 %v1305_v18, %v10450_v48  ;;  %v10472_v61 = vsel %vm1000_vm14, %v1002_v30, %v998_v46  ;;  %v1592_v18 = vmul.f32 %v1560_v37, %v10182_v16  ;;  %v4292_v50 = vmul.f32 %v9928_v44, %v14349_v0  ;;  %v6438_v16 = vld [vmem:[%s13558_s3 + $0x790] sm:$0xff]  ;;  %v6406_v37 = vld [vmem:[%s13558_s3 + $0x698] sm:$0xff] }
 0x29d   : > { %v1400_v59 = vmul.f32 %v1368_v56, %v10437_v49  ;;  %v1274_v25 = vmul.f32 1.0614054, %v10472_v61  ;;  %v4030_v24 = vadd.f32 %v3998_v2, %v10318_v53  ;;  %v1561_v30 = vsub.f32 0.0, %v10202_v9  ;;  %v4127_v53 = vpop.permute.xlu1 %4126  ;;  %3892 = vperm.xlu2 %6631, %v6438_v16   ;;  %3603 = vperm.xlu1 %6630, %v6406_v37  }
 0x29e   : > { %v10460_v60 = vpop.eup %6758  ;;  %v1369_v26 = vadd.f32 1.4214138, %v1337_v22  ;;  %v4035_v58 = vadd.f32 %v4003_v1, %v10330_v63  ;;  %3314 = vperm.xlu0 %6629, %v6374_v31   ;;  %v1014_v1 = vand.u32 2147483647, %v10446_v62  ;;  %v1029_v37 = vand.u32 2147483647, %v10453_v27 }
 0x29f   : > { %v1006_v45 = vmul.f32 %v10460_v60, %v10446_v62  ;;  %v10466_v19 = vpop.eup %6760  ;;  %v1432_v56 = vadd.f32 -0.28449672, %v1400_v59  ;;  %v10496_v2 = vadd.f32 %v4292_v50, %v4030_v24  ;;  %v1636_v59 = vmul.f32 1.442695, %v1592_v18 }
 0x2a0   : > { %v1021_v29 = vmul.f32 %v10466_v19, %v10453_v27  ;;  %v1401_v22 = vmul.f32 %v1369_v26, %v10450_v48  ;;  %vm1011_vm0 = vweird.f32 %v10460_v60  ;;  %v1306_v26 = vadd.f32 -1.4531521, %v1274_v25 }
 0x2a1   : > { %v1007_v54 = vsub.f32 1.0, %v1006_v45  ;;  %v1593_v0 = vmul.f32 %v1561_v30, %v10202_v9  ;;  %v1464_v18 = vmul.f32 %v1432_v56, %v10437_v49  ;;  %vm10507_vm2 = vmor %vm1010_vm15, %vm1011_vm0  ;;  %6762 = vpow2.f32 %v1636_v59 }
 0x2a2   : > { %v1022_v46 = vsub.f32 1.0, %v1021_v29  ;;  %v1016_v29 = vand.u32 2147483648, %v10446_v62  ;;  %v1433_v50 = vadd.f32 -0.28449672, %v1401_v22  ;;  %v1338_v9 = vmul.f32 %v1306_v26, %v10472_v61 }
 0x2a3   : > { %v1008_v45 = vmul.f32 %v10460_v60, %v1007_v54  ;;  %v4260_v54 = vmul.f32 %v4127_v53, %v14336_v20  ;;  %vm1026_vm4 = vweird.f32 %v10466_v19  ;;  %v1638_v62 = vmul.f32 1.442695, %v1593_v0 }
 0x2a4   : > { %v1023_v20 = vmul.f32 %v10466_v19, %v1022_v46  ;;  %v1017_v30 = vor.u32 1.1754944e-38, %v1016_v29  ;;  %vm1015_vm5 = vcmp.eq.f32.partialorder %v1014_v1, 8.507059e+37  ;;  %v1496_v22 = vadd.f32 0.2548296, %v1464_v18  ;;  %vm1027_vm7 = vmor %vm1025_vm3, %vm1026_vm4 }
 0x2a5   : > { %v1009_v4 = vadd.f32 %v10460_v60, %v1008_v45  ;;  %v4297_v63 = vmul.f32 %v9928_v44, %v4260_v54  ;;  %v1031_v45 = vand.u32 2147483648, %v10453_v27  ;;  %v1465_v46 = vmul.f32 %v1433_v50, %v10450_v48 }
 0x2a6   : > { %v1024_v16 = vadd.f32 %v10466_v19, %v1023_v20  ;;  %v1370_v31 = vadd.f32 1.4214138, %v1338_v9  ;;  %6764 = vpow2.f32 %v1638_v62  ;;  %v1528_v54 = vmul.f32 %v1496_v22, %v10437_v49  ;;  %v4132_v22 = vpop.permute.xlu2 %4131 }
 0x2a7   : > { %v10512_v25 = vadd.f32 %v4297_v63, %v4035_v58  ;;  %v1013_v56 = vsel %vm10507_vm2, %v10460_v60, %v1009_v4  ;;  %v6763_v58 = vpop.eup %6762  ;;  %v1032_v59 = vor.u32 1.1754944e-38, %v1031_v45  ;;  %v1497_v4 = vadd.f32 0.2548296, %v1465_v46 }
 0x2a8   : > { %v10524_v53 = vsel %vm1015_vm5, %v1017_v30, %v1013_v56  ;;  %v1028_v60 = vsel %vm1027_vm7, %v10466_v19, %v1024_v16  ;;  %vm1030_vm8 = vcmp.eq.f32.partialorder %v1029_v37, 8.507059e+37  ;;  %v1562_v26 = vsub.f32 0.0, %v10287_v33 }
 0x2a9   : > { %v1275_v29 = vmul.f32 1.0614054, %v10524_v53  ;;  %v1402_v0 = vmul.f32 %v1370_v31, %v10472_v61  ;;  %v10531_v27 = vsel %vm1030_vm8, %v1032_v59, %v1028_v60  ;;  %v1688_v1 = vmul.f32 %v6763_v58, %v1528_v54 }
 0x2aa   : > { %v1529_v63 = vmul.f32 %v1497_v4, %v10450_v48  ;;  %v1594_v50 = vmul.f32 %v1562_v26, %v10287_v33  ;;  %vm632_vm9 = vcmp.ge.f32.partialorder %v10161_v57, 0.0  ;;  %v1276_v19 = vmul.f32 1.0614054, %v10531_v27 }
 0x2ab   : > { %v1307_v24 = vadd.f32 -1.4531521, %v1275_v29  ;;  %v1434_v49 = vadd.f32 -0.28449672, %v1402_v0  ;;  %v1720_v20 = vsub.f32 1.0, %v1688_v1  ;;  %v664_v30 = vsel %vm632_vm9, 1.0, %v13918_v8 }
 0x2ac   : > { %v6765_v18 = vpop.eup %6764  ;;  %v1640_v62 = vmul.f32 1.442695, %v1594_v50  ;;  %vm633_vm10 = vcmp.ge.f32.partialorder %v10185_v41, 0.0  ;;  %v1308_v45 = vadd.f32 -1.4531521, %v1276_v19  ;;  %v568_v58 = vmul.f32 0.5, %v10150_v5  ;;  %v3838_v41 = vpop.permute.xlu0 %3837 }
 0x2ad   : > { %v1689_v9 = vmul.f32 %v6765_v18, %v1529_v63  ;;  %v1339_v56 = vmul.f32 %v1307_v24, %v10524_v53  ;;  %v1466_v48 = vmul.f32 %v1434_v49, %v10472_v61  ;;  %v1752_v33 = vmul.f32 %v1720_v20, %v664_v30  ;;  %v10554_v5 = vld [vmem:[%s13559_s4 + $0x7] ss:$0 sm:$0xff] }
 0x2ae   : > { %v665_v57 = vsel %vm633_vm10, 1.0, %v13918_v8  ;;  %6766 = vpow2.f32 %v1640_v62  ;;  %v1340_v31 = vmul.f32 %v1308_v45, %v10531_v27  ;;  %v1563_v4 = vsub.f32 0.0, %v10392_v10  ;;  %v10563_v30 = vpop.permute.xlu2 %3847 }
 0x2af   : > { %v1721_v46 = vsub.f32 1.0, %v1689_v9  ;;  %v1371_v16 = vadd.f32 1.4214138, %v1339_v56  ;;  %v1498_v37 = vadd.f32 0.2548296, %v1466_v48  ;;  %v1784_v59 = vadd.f32 1.0, %v1752_v33 }
 0x2b0   : > { %v4261_v26 = vmul.f32 %v4132_v22, %v10412_v34  ;;  %v3967_v29 = vmul.f32 %v3838_v41, %v14308_v47  ;;  %v1372_v1 = vadd.f32 1.4214138, %v1340_v31  ;;  %v3674_v63 = vmul.f32 %v10241_v40, %v10237_v28 }
 0x2b1   : > { %v1753_v54 = vmul.f32 %v1721_v46, %v665_v57  ;;  %v1403_v60 = vmul.f32 %v1371_v16, %v10524_v53  ;;  %v1530_v0 = vmul.f32 %v1498_v37, %v10472_v61  ;;  %v10557_v24 = vmul.f32 %v1784_v59, %v568_v58 }
 0x2b2   : > { %v4004_v50 = vmul.f32 %v10554_v5, %v3967_v29  ;;  %v569_v49 = vmul.f32 0.5, %v10165_v21  ;;  %v1595_v20 = vmul.f32 %v1563_v4, %v10392_v10  ;;  %v1564_v9 = vsub.f32 0.0, %v10432_v39  ;;  %v10571_v21 = vld [vmem:[%s13559_s4 + $0x6] ss:$0 sm:$0xff] }
 0x2b3   : > { %v1785_v19 = vadd.f32 1.0, %v1753_v54  ;;  %v1435_v61 = vadd.f32 -0.28449672, %v1403_v60  ;;  %v4298_v40 = vmul.f32 %v9928_v44, %v4261_v26  ;;  %v1404_v48 = vmul.f32 %v1372_v1, %v10531_v27  ;;  %v14355_v60 = vld [vmem:[#allocation24_spill] sm:$0xff] }
 0x2b4   : > { %v6767_v18 = vpop.eup %6766  ;;  %v4036_v62 = vadd.f32 %v4004_v50, %v10372_v14  ;;  %v1847_v45 = vrot.slane %v10268_v35, 7  ;;  %v3711_v10 = vmul.f32 %v10571_v21, %v3674_v63  ;;  %vm634_vm12 = vcmp.ge.f32.partialorder %v10271_v36, 0.0  ;;  %v14356_v63 = vld [vmem:[#allocation68_spill] sm:$0xff] }
 0x2b5   : > { %v1690_v56 = vmul.f32 %v6767_v18, %v1530_v0  ;;  %v10577_v44 = vmul.f32 %v1785_v19, %v569_v49  ;;  %v1642_v33 = vmul.f32 1.442695, %v1595_v20  ;;  %v2469_v14 = vrot.slane %v10557_v24, 1  ;;  %v14357_v50 = vld [vmem:[#allocation104_spill] sm:$0xff] }
 0x2b6   : > { %v10575_v22 = vadd.f32 %v4298_v40, %v4036_v62  ;;  %v10581_v46 = vadd.f32 %v3711_v10, %v10376_v3  ;;  %v1467_v57 = vmul.f32 %v1435_v61, %v10524_v53  ;;  %v1596_v16 = vmul.f32 %v1564_v9, %v10432_v39  ;;  %v10611_v19 = vpop.permute.xlu2 %3563  ;;  %v14358_v40 = vld [vmem:[#allocation49_spill] sm:$0xff] }
 0x2b7   : > { %v1722_v37 = vsub.f32 1.0, %v1690_v56  ;;  %v1436_v31 = vadd.f32 -0.28449672, %v1404_v48  ;;  %v14353_v36 = vrot.slane %v10187_v11, 7  ;;  %v666_v59 = vsel %vm634_vm12, 1.0, %v13918_v8 }
 0x2b8   : > { %6768 = vpow2.f32 %v1642_v33  ;;  %v14354_v3 = vrot.slane %v10268_v35, 1  ;;  %v1849_v54 = vrot.slane %v10577_v44, 7  ;;  %v1499_v4 = vadd.f32 0.2548296, %v1467_v57  ;;  %v10629_v57 = vld [vmem:[%s13559_s4 + $0x1] ss:$0 sm:$0xff] }
 0x2b9   : > { %v10591_v58 = vsel %vm1870_vm6, %v14353_v36, %v1847_v45  ;;  %v1644_v41 = vmul.f32 1.442695, %v1596_v16  ;;  %v1754_v29 = vmul.f32 %v1722_v37, %v666_v59  ;;  %v1468_v0 = vmul.f32 %v1436_v31, %v10531_v27  ;;  %v14359_v31 = vld [vmem:[#allocation5_spill] sm:$0xff] }
 0x2ba   : > { %v10600_v39 = vsel %vm2489_vm11, %v14354_v3, %v2469_v14  ;;  %v2108_v26 = vmul.f32 %v14355_v60, %v10591_v58  ;;  %v1848_v1 = vrot.slane %v10557_v24, 7  ;;  %v2369_v18 = vmul.f32 %v14356_v63, %v10268_v35 }
 0x2bb   : > { %v2728_v49 = vmul.f32 %v14357_v50, %v10600_v39  ;;  %v1531_v61 = vmul.f32 %v1499_v4, %v10524_v53  ;;  %6770 = vpow2.f32 %v1644_v41  ;;  %v570_v48 = vmul.f32 0.5, %v10251_v38  ;;  %v10635_v53 = vld [vmem:[%s13559_s4 + $0x2] ss:$0 sm:$0xff]  ;;  %v14360_v38 = vld [vmem:[#allocation61_spill] sm:$0xff] }
 0x2bc   : > { %v10619_v20 = vsel %vm1870_vm6, %v1848_v1, %v1849_v54  ;;  %v2144_v9 = vmul.f32 %v10108_v23, %v2108_v26  ;;  %v1786_v10 = vadd.f32 1.0, %v1754_v29  ;;  %v1500_v33 = vadd.f32 0.2548296, %v1468_v0  ;;  %v14361_v29 = vld [vmem:[#allocation111_spill] sm:$0xff] }
 0x2bd   : > { %v3022_v62 = vmul.f32 %v14358_v40, %v10619_v20  ;;  %v2406_v16 = vmul.f32 %v10629_v57, %v2369_v18  ;;  %v2765_v37 = vmul.f32 %v10635_v53, %v2728_v49  ;;  %v2106_v36 = vmul.f32 %v14359_v31, %v14335_v15  ;;  %v6407_v15 = vld [vmem:[%s13558_s3 + $0x6a0] sm:$0xff]  ;;  %v6470_v18 = vld [vmem:[%s13558_s3 + $0x888] sm:$0xff] }
 0x2be   : > { %v6769_v56 = vpop.eup %6768  ;;  %v2367_v59 = vmul.f32 %v14360_v38, %v14308_v47  ;;  %v10643_v60 = vmul.f32 %v1786_v10, %v570_v48  ;;  %v1532_v26 = vmul.f32 %v1500_v33, %v10531_v27  ;;  %v2726_v0 = vmul.f32 %v14361_v29, %v10412_v34  ;;  %v6375_v47 = vld [vmem:[%s13558_s3 + $0x5a8] sm:$0xff]  ;;  %3608 = vperm.xlu2 %6631, %v6407_v15   ;;  %v14362_v27 = vld [vmem:[#allocation12_spill] sm:$0xff]  ;;  %v3280_v48 = vpop.permute.xlu2 %3279  ;;  %v10667_v10 = vld [vmem:[%s13559_s4 + $0x4] ss:$0 sm:$0xff] }
 0x2bf   : > { %v1691_v3 = vmul.f32 %v6769_v56, %v1531_v61  ;;  %v2438_v4 = vadd.f32 %v2406_v16, %v2144_v9  ;;  %v3059_v41 = vmul.f32 %v10121_v17, %v3022_v62  ;;  %v2470_v63 = vrot.slane %v10577_v44, 1  ;;  %3319 = vperm.xlu1 %6630, %v6375_v47   ;;  %4181 = vperm.xlu0 %6629, %v6470_v18   ;;  %v3843_v16 = vpop.permute.xlu1 %3842 }
 0x2c0   : > { %vm635_vm13 = vcmp.ge.f32.partialorder %v10360_v13, 0.0  ;;  %v2471_v34 = vrot.slane %v10643_v60, 1  ;;  %v3020_v61 = vmul.f32 %v14362_v27, %v10591_v58  ;;  %v2142_v9 = vmul.f32 %v10108_v23, %v2106_v36  ;;  %v6439_v27 = vld [vmem:[%s13558_s3 + $0x798] sm:$0xff] }
 0x2c1   : > { %v6771_v50 = vpop.eup %6770  ;;  %v2797_v49 = vadd.f32 %v2765_v37, %v2438_v4  ;;  %v2404_v40 = vmul.f32 %v10629_v57, %v2367_v59  ;;  %v1723_v62 = vsub.f32 1.0, %v1691_v3  ;;  %v3128_v33 = vmul.f32 %v10667_v10, %v10577_v44  ;;  %v3554_v59 = vpop.permute.xlu0 %3553 }
 0x2c2   : > { %v1692_v37 = vmul.f32 %v6771_v50, %v1532_v26  ;;  %v2763_v31 = vmul.f32 %v10635_v53, %v2726_v0  ;;  %v10678_v36 = vsel %vm2489_vm11, %v2470_v63, %v2471_v34  ;;  %v3969_v38 = vmul.f32 %v10563_v30, %v10268_v35  ;;  %v10693_v30 = vld [vmem:[%s13559_s4 + $0x5] ss:$0 sm:$0xff] }
 0x2c3   : > { %v3091_v56 = vadd.f32 %v3059_v41, %v2797_v49  ;;  %v667_v3 = vsel %vm635_vm13, 1.0, %v13918_v8  ;;  %v3385_v4 = vmul.f32 %v3280_v48, %v10678_v36  ;;  %v3968_v41 = vmul.f32 %v3843_v16, %v10187_v11 }
 0x2c4   : > { %v3675_v26 = vmul.f32 %v3554_v59, %v10591_v58  ;;  %vm636_vm14 = vcmp.ge.f32.partialorder %v10404_v7, 0.0  ;;  %v3057_v29 = vmul.f32 %v10121_v17, %v3020_v61  ;;  %v2436_v0 = vadd.f32 %v2404_v40, %v2142_v9  ;;  %v6376_v17 = vld [vmem:[%s13558_s3 + $0x5b0] sm:$0xff] }
 0x2c5   : > { %v3160_v15 = vadd.f32 %v3128_v33, %v3091_v56  ;;  %v3422_v13 = vmul.f32 %v10693_v30, %v3385_v4  ;;  %v4005_v47 = vmul.f32 %v10554_v5, %v3968_v41  ;;  %v1755_v50 = vmul.f32 %v1723_v62, %v667_v3  ;;  %v6471_v7 = vld [vmem:[%s13558_s3 + $0x890] sm:$0xff] }
 0x2c6   : > { %v3712_v18 = vmul.f32 %v10571_v21, %v3675_v26  ;;  %v1724_v49 = vsub.f32 1.0, %v1692_v37  ;;  %v4006_v58 = vmul.f32 %v10554_v5, %v3969_v38  ;;  %v2795_v61 = vadd.f32 %v2763_v31, %v2436_v0  ;;  %3324 = vperm.xlu2 %6631, %v6376_v17   ;;  %v4147_v33 = vpop.permute.xlu2 %4146  ;;  %v6408_v0 = vld [vmem:[%s13558_s3 + $0x6a8] sm:$0xff] }
 0x2c7   : > { %v668_v9 = vsel %vm636_vm14, 1.0, %v13918_v8  ;;  %v10709_v40 = vadd.f32 %v3422_v13, %v3160_v15  ;;  %v4037_v62 = vadd.f32 %v4005_v47, %v10581_v46  ;;  %4186 = vperm.xlu1 %6630, %v6471_v7   ;;  %3897 = vperm.xlu0 %6629, %v6439_v27   ;;  %v10719_v48 = vsel %vm1870_vm6, %v1847_v45, %v1848_v1  ;;  %v3559_v16 = vpop.permute.xlu1 %3558 }
 0x2c8   : > { %v3744_v56 = vadd.f32 %v3712_v18, %v10440_v43  ;;  %v3089_v37 = vadd.f32 %v3057_v29, %v2795_v61  ;;  %v3126_v31 = vmul.f32 %v10667_v10, %v10268_v35  ;;  %v571_v43 = vmul.f32 0.5, %v10344_v55  ;;  %v6472_v35 = vld [vmem:[%s13558_s3 + $0x898] sm:$0xff]  ;;  %v6440_v55 = vld [vmem:[%s13558_s3 + $0x7a0] sm:$0xff] }
 0x2c9   : > { %v1787_v38 = vadd.f32 1.0, %v1755_v50  ;;  %v1756_v59 = vmul.f32 %v1724_v49, %v668_v9  ;;  %v3676_v3 = vmul.f32 %v3559_v16, %v10719_v48  ;;  %v3270_v4 = vpop.permute.xlu0 %3269  ;;  %v3677_v41 = vmul.f32 %v10611_v19, %v10619_v20 }
 0x2ca   : > { %v10723_v46 = vadd.f32 %v4006_v58, %v3744_v56  ;;  %v3383_v45 = vmul.f32 %v3270_v4, %v10600_v39  ;;  %v3158_v26 = vadd.f32 %v3126_v31, %v3089_v37  ;;  %v572_v15 = vmul.f32 0.5, %v10367_v42  ;;  %v10768_v56 = vld [vmem:[%s13559_s4 + $0x8] ss:$0 sm:$0xff] }
 0x2cb   : > { %v3713_v1 = vmul.f32 %v10571_v21, %v3676_v3  ;;  %v10741_v19 = vmul.f32 %v1787_v38, %v571_v43  ;;  %v1788_v13 = vadd.f32 1.0, %v1756_v59  ;;  %v1850_v18 = vrot.slane %v10643_v60, 7  ;;  %v6441_v38 = vld [vmem:[%s13558_s3 + $0x7a8] sm:$0xff]  ;;  %v6409_v59 = vld [vmem:[%s13558_s3 + $0x6b0] sm:$0xff]  ;;  %v6377_v3 = vld [vmem:[%s13558_s3 + $0x5b8] sm:$0xff] }
 0x2cc   : > { %v3420_v29 = vmul.f32 %v10693_v30, %v3383_v45  ;;  %v3714_v50 = vmul.f32 %v10571_v21, %v3677_v41  ;;  %v14365_v41 = vld [vmem:[#allocation76_spill] sm:$0xff] }
 0x2cd   : > { %v3745_v47 = vadd.f32 %v3713_v1, %v10322_v52  ;;  %v10753_v27 = vmul.f32 %v1788_v13, %v572_v15  ;;  %v2472_v42 = vrot.slane %v10741_v19, 1  ;;  %v10762_v52 = vsel %vm1870_vm6, %v1849_v54, %v1850_v18  ;;  %v14363_v54 = vld [vmem:[#allocation27_spill] sm:$0xff]  ;;  %v14366_v1 = vld [vmem:[#allocation73_spill] sm:$0xff] }
 0x2ce   : > { %v3452_v49 = vadd.f32 %v3420_v29, %v3158_v26  ;;  %4191 = vperm.xlu2 %6631, %v6472_v35   ;;  %v10747_v58 = vpop.permute.xlu2 %3862  ;;  %v2111_v31 = vmul.f32 %v14363_v54, %v10762_v52  ;;  %v2372_v45 = vmul.f32 %v14365_v41, %v10643_v60  ;;  %v10834_v41 = vld [vmem:[%s13559_s4] ss:$0 sm:$0xff] }
 0x2cf   : > { %3902 = vperm.xlu1 %6630, %v6440_v55   ;;  %3613 = vperm.xlu0 %6629, %v6408_v0   ;;  %v10749_v17 = vpop.permute.xlu1 %3274  ;;  %v10777_v37 = vsel %vm2489_vm11, %v2471_v34, %v2472_v42  ;;  %v1852_v43 = vrot.slane %v10753_v27, 7  ;;  %v1851_v34 = vrot.slane %v10741_v19, 7  ;;  %v2508_v55 = vsel %vm2489_vm11, %v2469_v14, %v2470_v63  ;;  %v14367_v0 = vld [vmem:[#allocation25_spill] sm:$0xff]  ;;  %v14368_v14 = vld [vmem:[#allocation87_spill] sm:$0xff] }
 0x2d0   : > { %v10751_v7 = vadd.f32 %v3714_v50, %v3452_v49  ;;  %v2731_v35 = vmul.f32 %v14366_v1, %v10777_v37  ;;  %v2147_v29 = vmul.f32 %v10108_v23, %v2111_v31  ;;  %v2107_v15 = vmul.f32 %v14367_v0, %v10237_v28  ;;  %v6378_v0 = vld [vmem:[%s13558_s3 + $0x5c0] sm:$0xff] }
 0x2d1   : > { %v4137_v61 = vpop.permute.xlu0 %4136  ;;  %v10815_v13 = vsel %vm1870_vm6, %v1851_v34, %v1852_v43  ;;  %v2409_v31 = vmul.f32 %v10629_v57, %v2372_v45 }
 0x2d2   : > { %v4262_v9 = vmul.f32 %v4137_v61, %v10295_v12  ;;  %v3025_v63 = vmul.f32 %v14368_v14, %v10815_v13  ;;  %v4264_v61 = vmul.f32 %v4147_v33, %v2508_v55 }
 0x2d3   : > { %v2441_v1 = vadd.f32 %v2409_v31, %v2147_v29 }
 0x2d4   : > { %v4299_v16 = vmul.f32 %v10768_v56, %v4262_v9  ;;  %v14369_v9 = vld [vmem:[#allocation109_spill] sm:$0xff]  ;;  %v4301_v29 = vmul.f32 %v10768_v56, %v4264_v61 }
 0x2d5   : > { %v2727_v28 = vmul.f32 %v14369_v9, %v10295_v12  ;;  %v2143_v12 = vmul.f32 %v10834_v41, %v2107_v15  ;;  %v10854_v15 = vld [vmem:[%s13559_s4 + $0x3] ss:$0 sm:$0xff] }
 0x2d6   : > { %v10791_v4 = vadd.f32 %v4299_v16, %v4037_v62  ;;  %3907 = vperm.xlu2 %6631, %v6441_v38   ;;  %v10804_v62 = vpop.permute.xlu2 %3578  ;;  %v14370_v16 = vld [vmem:[#allocation46_spill] sm:$0xff] }
 0x2d7   : > { %3618 = vperm.xlu1 %6630, %v6409_v59   ;;  %3329 = vperm.xlu0 %6629, %v6377_v3   ;;  %v4142_v26 = vpop.permute.xlu1 %4141  ;;  %v2368_v54 = vmul.f32 %v14370_v16, %v10187_v11  ;;  %v2768_v59 = vmul.f32 %v10635_v53, %v2731_v35  ;;  %v2473_v3 = vrot.slane %v10753_v27, 1  ;;  %v14371_v11 = vld [vmem:[#allocation88_spill] sm:$0xff]  ;;  %v6410_v35 = vld [vmem:[%s13558_s3 + $0x6b8] sm:$0xff]  ;;  %v2764_v14 = vmul.f32 %v10635_v53, %v2727_v28 }
 0x2d8   : > { %14364 = vst [vmem:[#allocation81_spill] sm:$0xff] %v10791_v4  ;;  %v4263_v50 = vmul.f32 %v4142_v26, %v10600_v39  ;;  %v13748_v39 = vrot.slane %v10058_v51, 1  ;;  %v3021_v45 = vmul.f32 %v14371_v11, %v10719_v48  ;;  %v14374_v11 = vld [vmem:[#allocation8_spill] sm:$0xff] }
 0x2d9   : > { %v3853_v49 = vpop.permute.xlu0 %3852  ;;  %v2800_v9 = vadd.f32 %v2768_v59, %v2441_v1  ;;  %v2109_v1 = vmul.f32 %v14374_v11, %v10719_v48  ;;  %v6379_v48 = vld [vmem:[%s13558_s3 + $0x5c8] sm:$0xff]  ;;  %v14408_v4 = vld [vmem:[#allocation20_spill] sm:$0xff] }
 0x2da   : > { %v3970_v23 = vmul.f32 %v3853_v49, %v10557_v24  ;;  %v4300_v38 = vmul.f32 %v10768_v56, %v4263_v50  ;;  %v6473_v50 = vld [vmem:[%s13558_s3 + $0x8a0] sm:$0xff]  ;;  %v3058_v61 = vmul.f32 %v10854_v15, %v3021_v45  ;;  %v14377_v45 = vld [vmem:[#allocation113_spill] sm:$0xff] }
 0x2db   : > { %v2145_v11 = vmul.f32 %v10834_v41, %v2109_v1 }
 0x2dc   : > { %v4007_v33 = vmul.f32 %v10554_v5, %v3970_v23  ;;  %v10840_v26 = vadd.f32 %v4300_v38, %v10723_v46  ;;  %v3062_v46 = vmul.f32 %v10854_v15, %v3025_v63  ;;  %v2405_v23 = vmul.f32 %v10629_v57, %v2368_v54 }
 0x2dd   : > { %v10868_v63 = vsel %vm2489_vm11, %v2473_v3, %v13748_v39  ;;  %v3131_v54 = vmul.f32 %v10667_v10, %v10753_v27 }
 0x2de   : > { %14372 = vst [vmem:[#allocation51_spill] sm:$0xff] %v10840_v26  ;;  %v4039_v49 = vadd.f32 %v4007_v33, %v3745_v47  ;;  %3623 = vperm.xlu2 %6631, %v6410_v35   ;;  %v3295_v31 = vpop.permute.xlu2 %3294  ;;  %v2437_v47 = vadd.f32 %v2405_v23, %v2143_v12  ;;  %v3094_v33 = vadd.f32 %v3062_v46, %v2800_v9  ;;  %v14378_v46 = vld [vmem:[#allocation28_spill] sm:$0xff] }
 0x2df   : > { %3334 = vperm.xlu1 %6630, %v6378_v0   ;;  %4196 = vperm.xlu0 %6629, %v6473_v50   ;;  %v3858_v38 = vpop.permute.xlu1 %3857  ;;  %v3388_v59 = vmul.f32 %v3295_v31, %v10868_v63  ;;  %v14375_v0 = vld [vmem:[#allocation67_spill] sm:$0xff]  ;;  %v3384_v12 = vmul.f32 %v10749_v17, %v2508_v55  ;;  %v2729_v23 = vmul.f32 %v14377_v45, %v2508_v55  ;;  %v6442_v17 = vld [vmem:[%s13558_s3 + $0x7b0] sm:$0xff] }
 0x2e0   : > { %v10860_v16 = vadd.f32 %v4301_v29, %v4039_v49  ;;  %v2796_v35 = vadd.f32 %v2764_v14, %v2437_v47  ;;  %v2370_v50 = vmul.f32 %v14375_v0, %v10557_v24  ;;  %v14376_v29 = vld [vmem:[#allocation85_spill] sm:$0xff]  ;;  %v2110_v9 = vmul.f32 %v14378_v46, %v10619_v20  ;;  %v6474_v14 = vld [vmem:[%s13558_s3 + $0x8a8] sm:$0xff] }
 0x2e1   : > { %v3569_v28 = vpop.permute.xlu0 %3568  ;;  %v2730_v49 = vmul.f32 %v14376_v29, %v10678_v36  ;;  %v3127_v31 = vmul.f32 %v10667_v10, %v10557_v24  ;;  %v3163_v55 = vadd.f32 %v3131_v54, %v3094_v33  ;;  %v3425_v47 = vmul.f32 %v10693_v30, %v3388_v59  ;;  %v14379_v24 = vld [vmem:[#allocation3_spill] sm:$0xff]  ;;  %v14380_v33 = vld [vmem:[#allocation52_spill] sm:$0xff] }
 0x2e2   : > { %14373 = vst [vmem:[#allocation112_spill] sm:$0xff] %v10860_v16  ;;  %v3090_v39 = vadd.f32 %v3058_v61, %v2796_v35  ;;  %v3971_v20 = vmul.f32 %v3858_v38, %v10577_v44  ;;  %v3023_v61 = vmul.f32 %v14379_v24, %v10762_v52  ;;  %v10906_v35 = vsel %vm1870_vm6, %v1850_v18, %v1851_v34  ;;  %v14407_v16 = vld [vmem:[#allocation57_spill] sm:$0xff] }
 0x2e3   : > { %v2371_v54 = vmul.f32 %v14380_v33, %v10577_v44  ;;  %v3421_v38 = vmul.f32 %v10693_v30, %v3384_v12  ;;  %v10911_v59 = vadd.f32 %v3425_v47, %v3163_v55  ;;  %v3678_v1 = vmul.f32 %v3569_v28, %v10762_v52  ;;  %v14381_v44 = vld [vmem:[#allocation23_spill] sm:$0xff]  ;;  %v10925_v12 = vld [vmem:[%s13560_s5] ss:$0 sm:$0xff] }
 0x2e4   : > { %v4008_v0 = vmul.f32 %v10554_v5, %v3971_v20  ;;  %v2407_v46 = vmul.f32 %v10629_v57, %v2370_v50  ;;  %v2766_v18 = vmul.f32 %v10635_v53, %v2729_v23  ;;  %v2146_v34 = vmul.f32 %v10834_v41, %v2110_v9  ;;  %v14382_v9 = vld [vmem:[#allocation130_spill] sm:$0xff] }
 0x2e5   : > { %v3060_v52 = vmul.f32 %v10854_v15, %v3023_v61  ;;  %v2408_v55 = vmul.f32 %v10629_v57, %v2371_v54  ;;  %v2767_v23 = vmul.f32 %v10635_v53, %v2730_v49  ;;  %v10933_v47 = vadd.f32 %v10925_v12, %v14382_v9  ;;  %v6411_v49 = vld [vmem:[%s13558_s3 + $0x6c0] sm:$0xff] }
 0x2e6   : > { %3339 = vperm.xlu2 %6631, %v6379_v48   ;;  %v10915_v29 = vpop.permute.xlu2 %4161  ;;  %v3024_v48 = vmul.f32 %v14381_v44, %v10906_v35  ;;  %v2439_v28 = vadd.f32 %v2407_v46, %v2145_v11  ;;  %v4040_v50 = vadd.f32 %v4008_v0, %v10751_v7  ;;  %v3715_v24 = vmul.f32 %v10571_v21, %v3678_v1  ;;  %v6443_v7 = vld [vmem:[%s13558_s3 + $0x7b8] sm:$0xff] }
 0x2e7   : > { %4201 = vperm.xlu1 %6630, %v6474_v14   ;;  %3912 = vperm.xlu0 %6629, %v6442_v17   ;;  %v3574_v45 = vpop.permute.xlu1 %3573  ;;  %v3159_v17 = vadd.f32 %v3127_v31, %v3090_v39  ;;  %14383 = vst [vmem:[#allocation93_spill] sm:$0xff] %v10933_v47  ;;  %v2440_v33 = vadd.f32 %v2408_v55, %v2146_v34  ;;  %v6475_v31 = vld [vmem:[%s13558_s3 + $0x8b0] sm:$0xff] }
 0x2e8   : > { %v3061_v44 = vmul.f32 %v10854_v15, %v3024_v48  ;;  %v2798_v39 = vadd.f32 %v2766_v18, %v2439_v28  ;;  %v3972_v61 = vmul.f32 %v10747_v58, %v10643_v60  ;;  %v3679_v54 = vmul.f32 %v3574_v45, %v10906_v35 }
 0x2e9   : > { %v3285_v14 = vpop.permute.xlu0 %3284  ;;  %v3453_v20 = vadd.f32 %v3421_v38, %v3159_v17  ;;  %v3129_v0 = vmul.f32 %v10667_v10, %v10643_v60  ;;  %v2799_v46 = vadd.f32 %v2767_v23, %v2440_v33  ;;  %v10953_v18 = vmul.f32 0.70710677, %v10933_v47 }
 0x2ea   : > { %v3092_v38 = vadd.f32 %v3060_v52, %v2798_v39  ;;  %v3386_v1 = vmul.f32 %v3285_v14, %v10777_v37  ;;  %v3680_v58 = vmul.f32 %v10804_v62, %v10815_v13  ;;  %v3716_v45 = vmul.f32 %v10571_v21, %v3679_v54 }
 0x2eb   : > { %v3747_v11 = vadd.f32 %v3715_v24, %v3453_v20  ;;  %14384 = vst [vmem:[#allocation79_spill] sm:$0xff] %v10953_v18  ;;  %v3093_v52 = vadd.f32 %v3061_v44, %v2799_v46  ;;  %v4009_v28 = vmul.f32 %v10554_v5, %v3972_v61  ;;  %v3130_v60 = vmul.f32 %v10667_v10, %v10741_v19 }
 0x2ec   : > { %v10969_v14 = vsel %vm2489_vm11, %v2472_v42, %v2473_v3  ;;  %v3748_v55 = vadd.f32 %v3716_v45, %v10709_v40  ;;  %v3161_v62 = vadd.f32 %v3129_v0, %v3092_v38  ;;  %v3423_v23 = vmul.f32 %v10693_v30, %v3386_v1  ;;  %v6444_v42 = vld [vmem:[%s13558_s3 + $0x7c0] sm:$0xff]  ;;  %v6412_v40 = vld [vmem:[%s13558_s3 + $0x6c8] sm:$0xff]  ;;  %v6380_v3 = vld [vmem:[%s13558_s3 + $0x5d0] sm:$0xff] }
 0x2ed   : > { %v10974_v9 = vand.u32 2147483647, %v10953_v18  ;;  %v4041_v33 = vadd.f32 %v4009_v28, %v3747_v11  ;;  %v3717_v44 = vmul.f32 %v10571_v21, %v3680_v58  ;;  %v11003_v58 = vadd.f32 %v10925_v12, %v10043_v6 }
 0x2ee   : > { %4206 = vperm.xlu2 %6631, %v6475_v31   ;;  %v10955_v34 = vpop.permute.xlu2 %3877  ;;  %v3455_v39 = vadd.f32 %v3423_v23, %v3161_v62  ;;  %v3162_v31 = vadd.f32 %v3130_v60, %v3093_v52  ;;  %v4267_v45 = vmul.f32 %v10915_v29, %v10969_v14  ;;  %v6381_v62 = vld [vmem:[%s13558_s3 + $0x5d8] sm:$0xff]  ;;  %v2374_v26 = vmul.f32 %v14407_v16, %v10753_v27 }
 0x2ef   : > { %3917 = vperm.xlu1 %6630, %v6443_v7   ;;  %3628 = vperm.xlu0 %6629, %v6411_v49   ;;  %v3290_v48 = vpop.permute.xlu1 %3289  ;;  %v4551_v61 = vmul.f32 0.3275911, %v10974_v9  ;;  %14386 = vst [vmem:[#allocation10_spill] sm:$0xff] %v11003_v58  ;;  %v6476_v23 = vld [vmem:[%s13558_s3 + $0x8b8] sm:$0xff] }
 0x2f0   : > { %v3387_v20 = vmul.f32 %v3290_v48, %v10969_v14  ;;  %v10990_v49 = vadd.f32 %v3717_v44, %v3455_v39  ;;  %v6414_v16 = vld [vmem:[%s13558_s3 + $0x6d8] sm:$0xff] }
 0x2f1   : > { %v4152_v17 = vpop.permute.xlu0 %4151 }
 0x2f2   : > { %v4265_v24 = vmul.f32 %v4152_v17, %v10678_v36  ;;  %v3424_v7 = vmul.f32 %v10693_v30, %v3387_v20  ;;  %v11007_v17 = vadd.f32 1.0, %v4551_v61  ;;  %v11031_v20 = vmul.f32 0.70710677, %v11003_v58 }
 0x2f4   : > { %v4302_v36 = vmul.f32 %v10768_v56, %v4265_v24  ;;  %v10993_v11 = vadd.f32 %v3424_v7, %v3162_v31  ;;  %14389 = vst [vmem:[#allocation48_spill] sm:$0xff] %v11031_v20  ;;  %v4304_v24 = vmul.f32 %v10768_v56, %v4267_v45  ;;  %6772 = vrcp.f32 %v11007_v17 }
 0x2f5   : > { %vm4620_vm15 = vweird.f32 %v11007_v17 }
 0x2f6   : > { %3922 = vperm.xlu2 %6631, %v6444_v42   ;;  %v10995_v54 = vpop.permute.xlu2 %3593  ;;  %v10997_v0 = vadd.f32 %v4302_v36, %v4040_v50  ;;  %v6413_v50 = vld [vmem:[%s13558_s3 + $0x6d0] sm:$0xff]  ;;  %v14395_v36 = vld [vmem:[#allocation71_spill] sm:$0xff] }
 0x2f7   : > { %3633 = vperm.xlu1 %6630, %v6412_v40   ;;  %3344 = vperm.xlu0 %6629, %v6380_v3   ;;  %v4157_v38 = vpop.permute.xlu1 %4156  ;;  %v14393_v40 = vld [vmem:[#allocation30_spill] sm:$0xff] }
 0x2f8   : > { %14385 = vst [vmem:[#allocation84_spill] sm:$0xff] %v10997_v0  ;;  %v4266_v46 = vmul.f32 %v4157_v38, %v10777_v37  ;;  %v14387_v37 = vrot.slane %v10058_v51, 7  ;;  %v14396_v38 = vld [vmem:[#allocation82_spill] sm:$0xff] }
 0x2f9   : > { %v3868_v1 = vpop.permute.xlu0 %3867 }
 0x2fa   : > { %v3973_v48 = vmul.f32 %v3868_v1, %v10741_v19  ;;  %v4303_v52 = vmul.f32 %v10768_v56, %v4266_v46  ;;  %v11020_v6 = vsel %vm1870_vm6, %v1852_v43, %v14387_v37  ;;  %v14390_v43 = vld [vmem:[#allocation123_spill] sm:$0xff]  ;;  %v2375_v1 = vmul.f32 %v14396_v38, %v10058_v51 }
 0x2fb   : > { %v2114_v3 = vmul.f32 %v14393_v40, %v11020_v6  ;;  %v11056_v46 = vand.u32 2147483647, %v11031_v20  ;;  %v14413_v20 = vld [vmem:[#allocation80_spill] sm:$0xff] }
 0x2fc   : > { %v4010_v28 = vmul.f32 %v10554_v5, %v3973_v48  ;;  %v11022_v60 = vadd.f32 %v4303_v52, %v4041_v33  ;;  %v14391_v33 = vrot.slane %v14390_v43, 1  ;;  %v14397_v48 = vld [vmem:[#allocation63_spill] sm:$0xff] }
 0x2fd   : > { %v11060_v45 = vadd.f32 %v10925_v12, %v14397_v48  ;;  %v2150_v52 = vmul.f32 %v10834_v41, %v2114_v3  ;;  %v4553_v40 = vmul.f32 0.3275911, %v11056_v46 }
 0x2fe   : > { %14388 = vst [vmem:[#allocation96_spill] sm:$0xff] %v11022_v60  ;;  %v4042_v29 = vadd.f32 %v4010_v28, %v3748_v55  ;;  %3638 = vperm.xlu2 %6631, %v6413_v50   ;;  %v14392_v55 = vrot.slane %v10058_v51, 1  ;;  %v3310_v39 = vpop.permute.xlu2 %3309  ;;  %v14399_v28 = vld [vmem:[#allocation55_spill] sm:$0xff]  ;;  %v14400_v50 = vld [vmem:[#allocation45_spill] sm:$0xff] }
 0x2ff   : > { %3349 = vperm.xlu1 %6630, %v6381_v62   ;;  %4211 = vperm.xlu0 %6629, %v6476_v23   ;;  %v11043_v42 = vpop.permute.xlu1 %3872  ;;  %14398 = vst [vmem:[#allocation19_spill] sm:$0xff] %v11060_v45  ;;  %v3028_v37 = vmul.f32 %v14400_v50, %v14399_v28  ;;  %v6477_v62 = vld [vmem:[%s13558_s3 + $0x8c0] sm:$0xff]  ;;  %v6445_v23 = vld [vmem:[%s13558_s3 + $0x7c8] sm:$0xff]  ;;  %v11080_v3 = vmul.f32 0.70710677, %v11060_v45 }
 0x300   : > { %v11040_v44 = vsel %vm2489_vm11, %v14392_v55, %v14391_v33  ;;  %v11047_v31 = vadd.f32 %v4304_v24, %v4042_v29  ;;  %v6382_v29 = vld [vmem:[%s13558_s3 + $0x5e0] sm:$0xff]  ;;  %v11074_v24 = vpop.eup %6772  ;;  %v2412_v55 = vmul.f32 %v10629_v57, %v2375_v1  ;;  %v14402_v1 = vld [vmem:[#allocation44_spill] sm:$0xff]  ;;  %v14403_v60 = vld [vmem:[#allocation31_spill] sm:$0xff] }
 0x301   : > { %v11049_v7 = vpop.permute.xlu0 %3583  ;;  %v2734_v61 = vmul.f32 %v14395_v36, %v11040_v44  ;;  %14401 = vst [vmem:[#allocation62_spill] sm:$0xff] %v11080_v3  ;;  %v3065_v50 = vmul.f32 %v10854_v15, %v3028_v37  ;;  %v2113_v0 = vmul.f32 %v14403_v60, %v10815_v13  ;;  %v14406_v37 = vld [vmem:[#allocation11_spill] sm:$0xff]  ;;  %v3134_v13 = vmul.f32 %v10667_v10, %v14408_v4 }
 0x302   : > { %14394 = vst [vmem:[#allocation86_spill] sm:$0xff] %v11047_v31  ;;  %v2444_v48 = vadd.f32 %v2412_v55, %v2150_v52  ;;  %v3391_v31 = vmul.f32 %v3310_v39, %v14402_v1  ;;  %v14405_v52 = vld [vmem:[#allocation121_spill] sm:$0xff]  ;;  %v2112_v58 = vmul.f32 %v14406_v37, %v10906_v35  ;;  %v6478_v60 = vld [vmem:[%s13558_s3 + $0x8c8] sm:$0xff]  ;;  %vm4621_vm6 = vweird.f32 %v11074_v24 }
 0x303   : > { %v2771_v33 = vmul.f32 %v10635_v53, %v2734_v61  ;;  %v2733_v55 = vmul.f32 %v14405_v52, %v10868_v63  ;;  %v14410_v35 = vld [vmem:[#allocation75_spill] sm:$0xff]  ;;  %vm11171_vm0 = vmor %vm4620_vm15, %vm4621_vm6 }
 0x305   : > { %v2803_v45 = vadd.f32 %v2771_v33, %v2444_v48  ;;  %v6446_v33 = vld [vmem:[%s13558_s3 + $0x7d0] sm:$0xff]  ;;  %v2770_v52 = vmul.f32 %v10635_v53, %v2733_v55 }
 0x306   : > { %3354 = vperm.xlu2 %6631, %v6382_v29   ;;  %v11082_v36 = vpop.permute.xlu2 %4176  ;;  %v4616_v29 = vmul.f32 %v11074_v24, %v11007_v17 }
 0x307   : > { %4216 = vperm.xlu1 %6630, %v6477_v62   ;;  %3927 = vperm.xlu0 %6629, %v6445_v23   ;;  %v11084_v38 = vpop.permute.xlu1 %3588  ;;  %v11094_v62 = vadd.f32 1.0, %v4553_v40  ;;  %v11097_v23 = vand.u32 2147483647, %v11080_v3  ;;  %v3097_v47 = vadd.f32 %v3065_v50, %v2803_v45  ;;  %v14409_v40 = vld [vmem:[#allocation122_spill] sm:$0xff]  ;;  %v2373_v45 = vmul.f32 %v14410_v35, %v10741_v19 }
 0x308   : > { %v4617_v39 = vsub.f32 1.0, %v4616_v29  ;;  %v2732_v48 = vmul.f32 %v14409_v40, %v10969_v14  ;;  %v2149_v50 = vmul.f32 %v10834_v41, %v2113_v0  ;;  %v14411_v14 = vld [vmem:[#allocation116_spill] sm:$0xff]  ;;  %v2148_v19 = vmul.f32 %v10834_v41, %v2112_v58  ;;  %v14412_v0 = vld [vmem:[#allocation119_spill] sm:$0xff] }
 0x309   : > { %v11089_v61 = vpop.permute.xlu0 %3299  ;;  %14404 = vst [vmem:[#allocation41_spill] sm:$0xff] %v11097_v23  ;;  %6774 = vrcp.f32 %v11094_v62  ;;  %v4554_v29 = vmul.f32 0.3275911, %v11097_v23  ;;  %v3026_v37 = vmul.f32 %v14411_v14, %v11020_v6  ;;  %v2411_v3 = vmul.f32 %v10629_v57, %v2374_v26  ;;  %v14414_v14 = vld [vmem:[#allocation102_spill] sm:$0xff] }
 0x30a   : > { %v3027_v8 = vmul.f32 %v14413_v20, %v14412_v0  ;;  %v4618_v18 = vmul.f32 %v11074_v24, %v4617_v39  ;;  %v2769_v55 = vmul.f32 %v10635_v53, %v2732_v48  ;;  %v2410_v32 = vmul.f32 %v10629_v57, %v2373_v45 }
 0x30b   : > { %v11136_v41 = vadd.f32 %v10925_v12, %v14414_v14  ;;  %v2443_v58 = vadd.f32 %v2411_v3, %v2149_v50  ;;  %v3974_v26 = vmul.f32 %v11043_v42, %v10753_v27  ;;  %v3063_v20 = vmul.f32 %v10854_v15, %v3026_v37  ;;  %v6415_v3 = vld [vmem:[%s13558_s3 + $0x6e0] sm:$0xff]  ;;  %v6383_v27 = vld [vmem:[%s13558_s3 + $0x5e8] sm:$0xff] }
 0x30c   : > { %v3064_v57 = vmul.f32 %v10854_v15, %v3027_v8  ;;  %v4626_v8 = vand.u32 2147483648, %v11007_v17  ;;  %v4624_v42 = vand.u32 2147483647, %v11007_v17  ;;  %v3681_v45 = vmul.f32 %v11049_v7, %v11020_v6 }
 0x30d   : > { %v2802_v53 = vadd.f32 %v2770_v52, %v2443_v58  ;;  %v11162_v15 = vmul.f32 0.70710677, %v11136_v41  ;;  %v4011_v48 = vmul.f32 %v10554_v5, %v3974_v26  ;;  %v3132_v17 = vmul.f32 %v10667_v10, %v10058_v51 }
 0x30e   : > { %4221 = vperm.xlu2 %6631, %v6478_v60   ;;  %v3428_v60 = vmul.f32 %v10693_v30, %v3391_v31  ;;  %v3893_v40 = vpop.permute.xlu2 %3892  ;;  %v11138_v31 = vadd.f32 1.0, %v4554_v29  ;;  %v3682_v58 = vmul.f32 %v11084_v38, %v14412_v0  ;;  %v3133_v26 = vmul.f32 %v10667_v10, %v14390_v43  ;;  %v14417_v0 = vld [vmem:[#allocation65_spill] sm:$0xff] }
 0x30f   : > { %3932 = vperm.xlu1 %6630, %v6446_v33   ;;  %3643 = vperm.xlu0 %6629, %v6414_v16   ;;  %v3305_v35 = vpop.permute.xlu1 %3304  ;;  %v3166_v33 = vadd.f32 %v3134_v13, %v3097_v47  ;;  %v2442_v47 = vadd.f32 %v2410_v32, %v2148_v19  ;;  %v11145_v39 = vpop.eup %6774  ;;  %v4619_v13 = vadd.f32 %v11074_v24, %v4618_v18  ;;  %v6351_v32 = vld [vmem:[%s13558_s3 + $0x3f8] sm:$0xff]  ;;  %v11185_v14 = vand.u32 2147483647, %v11162_v15 }
 0x310   : > { %6776 = vrcp.f32 %v11138_v31  ;;  %v4646_v29 = vmul.f32 %v11145_v39, %v11094_v62  ;;  %v4043_v7 = vadd.f32 %v4011_v48, %v10990_v49  ;;  %vm4625_vm2 = vcmp.eq.f32.partialorder %v4624_v42, 8.507059e+37 }
 0x311   : > { %v4167_v16 = vpop.permute.xlu0 %4166  ;;  %v11140_v23 = vadd.f32 %v3428_v60, %v3166_v33  ;;  %v2801_v18 = vadd.f32 %v2769_v55, %v2442_v47  ;;  %v3096_v60 = vadd.f32 %v3064_v57, %v2802_v53  ;;  %v4623_v6 = vsel %vm11171_vm0, %v11074_v24, %v4619_v13 }
 0x312   : > { %v3718_v33 = vmul.f32 %v10571_v21, %v3681_v45  ;;  %v4627_v55 = vor.u32 1.1754944e-38, %v4626_v8  ;;  %v3975_v47 = vmul.f32 %v10955_v34, %v10058_v51  ;;  %v3389_v49 = vmul.f32 %v11089_v61, %v11040_v44  ;;  %v6384_v34 = vld [vmem:[%s13558_s3 + $0x5f0] sm:$0xff] }
 0x313   : > { %v3095_v52 = vadd.f32 %v3063_v20, %v2801_v18  ;;  %v4647_v57 = vsub.f32 1.0, %v4646_v29  ;;  %v3719_v38 = vmul.f32 %v10571_v21, %v3682_v58  ;;  %v4555_v61 = vmul.f32 0.3275911, %v11185_v14  ;;  %v14419_v8 = vld [vmem:[#allocation128_spill] sm:$0xff] }
 0x314   : > { %v3750_v24 = vadd.f32 %v3718_v33, %v10993_v11  ;;  %v11196_v53 = vsel %vm4625_vm2, %v4627_v55, %v4623_v6  ;;  %v3426_v10 = vmul.f32 %v10693_v30, %v3389_v49  ;;  %v6479_v11 = vld [vmem:[%s13558_s3 + $0x8d0] sm:$0xff]  ;;  %v11215_v18 = vadd.f32 %v10925_v12, %v14419_v8  ;;  %v14420_v33 = vld [vmem:[#allocation17_spill] sm:$0xff] }
 0x315   : > { %v3164_v13 = vadd.f32 %v3132_v17, %v3095_v52  ;;  %v3165_v42 = vadd.f32 %v3133_v26, %v3096_v60  ;;  %v4012_v48 = vmul.f32 %v10554_v5, %v3975_v47  ;;  %v3751_v45 = vadd.f32 %v3719_v38, %v10911_v59 }
 0x316   : > { %3648 = vperm.xlu2 %6631, %v6415_v3   ;;  %v11198_v3 = vpop.eup %6776  ;;  %v5095_v52 = vmul.f32 1.0614054, %v11196_v53  ;;  %v4648_v17 = vmul.f32 %v11145_v39, %v4647_v57  ;;  %v11235_v26 = vadd.f32 1.0, %v4555_v61  ;;  %v11238_v47 = vmul.f32 0.70710677, %v11215_v18  ;;  %v14425_v61 = vld [vmem:[#allocation106_spill] sm:$0xff] }
 0x317   : > { %3359 = vperm.xlu1 %6630, %v6383_v27   ;;  %3006 = vperm.xlu0 %6629, %v6351_v32   ;;  %v4172_v19 = vpop.permute.xlu1 %4171  ;;  %v11203_v27 = vmul.f32 %v3893_v40, %v14417_v0  ;;  %v14418_v32 = vld [vmem:[#allocation69_spill] sm:$0xff]  ;;  %v4268_v40 = vmul.f32 %v4167_v16, %v10868_v63  ;;  %v3458_v50 = vadd.f32 %v3426_v10, %v3164_v13  ;;  %v14422_v10 = vld [vmem:[#allocation131_spill] sm:$0xff]  ;;  %vm4651_vm3 = vweird.f32 %v11145_v39 }
 0x318   : > { %v3609_v37 = vpop.permute.xlu2 %3608  ;;  %v3390_v51 = vmul.f32 %v3305_v35, %v14418_v32  ;;  %v6447_v35 = vld [vmem:[%s13558_s3 + $0x7d8] sm:$0xff]  ;;  %v4661_v63 = vmul.f32 %v11198_v3, %v11138_v31  ;;  %v4044_v59 = vadd.f32 %v4012_v48, %v3750_v24  ;;  %v4269_v58 = vmul.f32 %v4172_v19, %v11040_v44 }
 0x319   : > { %v3883_v20 = vpop.permute.xlu0 %3882  ;;  %v4305_v16 = vmul.f32 %v10768_v56, %v4268_v40  ;;  %v11232_v55 = vmul.f32 %v3609_v37, %v14420_v33  ;;  %v3683_v49 = vmul.f32 %v10995_v54, %v14399_v28  ;;  %v11251_v44 = vadd.f32 %v10925_v12, %v10496_v2  ;;  %v6416_v2 = vld [vmem:[%s13558_s3 + $0x6e8] sm:$0xff] }
 0x31a   : > { %v3427_v29 = vmul.f32 %v10693_v30, %v3390_v51  ;;  %v4306_v38 = vmul.f32 %v10768_v56, %v4269_v58  ;;  %v3976_v37 = vmul.f32 %v3883_v20, %v14390_v43  ;;  %v4662_v19 = vsub.f32 1.0, %v4661_v63  ;;  %v6480_v43 = vld [vmem:[%s13558_s3 + $0x8d8] sm:$0xff] }
 0x31b   : > { %v11242_v57 = vadd.f32 %v4305_v16, %v4043_v7  ;;  %14423 = vst [vmem:[#allocation90_spill] sm:$0xff] %v11251_v44  ;;  %v5127_v51 = vadd.f32 -1.4531521, %v5095_v52  ;;  %v6448_v7 = vld [vmem:[%s13558_s3 + $0x7e0] sm:$0xff]  ;;  %v4649_v20 = vadd.f32 %v11145_v39, %v4648_v17  ;;  %6778 = vrcp.f32 %v11235_v26 }
 0x31c   : > { %v11229_v6 = vadd.f32 %v3427_v29, %v3165_v42  ;;  %v4013_v54 = vmul.f32 %v10554_v5, %v3976_v37  ;;  %v3720_v5 = vmul.f32 %v10571_v21, %v3683_v49  ;;  %v11279_v42 = vmul.f32 0.70710677, %v11251_v44  ;;  %v6449_v49 = vld [vmem:[%s13558_s3 + $0x7e8] sm:$0xff] }
 0x31d   : > { %14421 = vst [vmem:[#allocation115_spill] sm:$0xff] %v11242_v57  ;;  %v4663_v40 = vmul.f32 %v11198_v3, %v4662_v19  ;;  %v5159_v29 = vmul.f32 %v5127_v51, %v11196_v53  ;;  %vm4650_vm4 = vweird.f32 %v11094_v62  ;;  %v4654_v17 = vand.u32 2147483647, %v11094_v62  ;;  %v6385_v19 = vld [vmem:[%s13558_s3 + $0x5f8] sm:$0xff] }
 0x31e   : > { %3364 = vperm.xlu2 %6631, %v6384_v34   ;;  %v11255_v34 = vadd.f32 %v4306_v38, %v4044_v59  ;;  %v11284_v48 = vadd.f32 %v3720_v5, %v3458_v50  ;;  %vm11293_vm5 = vmor %vm4650_vm4, %vm4651_vm3  ;;  %v11303_v50 = vand.u32 2147483647, %v11279_v42  ;;  %vm4666_vm7 = vweird.f32 %v11198_v3  ;;  %v6417_v38 = vld [vmem:[%s13558_s3 + $0x6f0] sm:$0xff] }
 0x31f   : > { %4226 = vperm.xlu1 %6630, %v6479_v11   ;;  %3937 = vperm.xlu0 %6629, %v6447_v35   ;;  %v11244_v13 = vpop.permute.xlu1 %3887  ;;  %v4045_v11 = vadd.f32 %v4013_v54, %v3751_v45  ;;  %v4270_v35 = vmul.f32 %v11082_v36, %v14418_v32  ;;  %v4656_v45 = vand.u32 2147483648, %v11094_v62  ;;  %v4653_v36 = vsel %vm11293_vm5, %v11145_v39, %v4649_v20 }
 0x320   : > { %v3325_v60 = vpop.permute.xlu2 %3324  ;;  %14424 = vst [vmem:[#allocation70_spill] sm:$0xff] %v11255_v34  ;;  %v4664_v16 = vadd.f32 %v11198_v3, %v4663_v40  ;;  %v5191_v39 = vadd.f32 1.4214138, %v5159_v29  ;;  %v4671_v58 = vand.u32 2147483648, %v11138_v31  ;;  %vm4655_vm8 = vcmp.eq.f32.partialorder %v4654_v17, 8.507059e+37  ;;  %v6450_v17 = vld [vmem:[%s13558_s3 + $0x7f0] sm:$0xff] }
 0x321   : > { %v3394_v24 = vmul.f32 %v3325_v60, %v14422_v10  ;;  %v11253_v0 = vpop.permute.xlu0 %3598  ;;  %v11305_v63 = vpop.eup %6778  ;;  %v11311_v60 = vadd.f32 %v10925_v12, %v10512_v25  ;;  %v4307_v62 = vmul.f32 %v10768_v56, %v4270_v35  ;;  %v4657_v59 = vor.u32 1.1754944e-38, %v4656_v45 }
 0x322   : > { %vm4665_vm9 = vweird.f32 %v11138_v31  ;;  %v4669_v25 = vand.u32 2147483647, %v11138_v31  ;;  %v4676_v54 = vmul.f32 %v11305_v63, %v11235_v26  ;;  %v4552_v31 = vmul.f32 0.3275911, %v11303_v50 }
 0x323   : > { %v3431_v28 = vmul.f32 %v10693_v30, %v3394_v24  ;;  %v11273_v30 = vand.u32 2147483647, %v11238_v47  ;;  %14428 = vst [vmem:[#allocation9_spill] sm:$0xff] %v11311_v60  ;;  %v11325_v37 = vadd.f32 %v4307_v62, %v4045_v11  ;;  %v11332_v51 = vsel %vm4655_vm8, %v4657_v59, %v4653_v36  ;;  %vm4667_vm10 = vmor %vm4665_vm9, %vm4666_vm7  ;;  %v6418_v36 = vld [vmem:[%s13558_s3 + $0x6f8] sm:$0xff] }
 0x324   : > { %v5223_v20 = vmul.f32 %v5191_v39, %v11196_v53  ;;  %v4672_v5 = vor.u32 1.1754944e-38, %v4671_v58  ;;  %v5383_v11 = vsub.f32 0.0, %v10974_v9  ;;  %vm4670_vm12 = vcmp.eq.f32.partialorder %v4669_v25, 8.507059e+37  ;;  %v11379_v58 = vld [vmem:[%s13559_s4 + $0x7] ss:$0 sm:$0xff] }
 0x325   : > { %v11276_v8 = vadd.f32 %v3431_v28, %v14425_v61  ;;  %v4556_v32 = vmul.f32 0.3275911, %v11273_v30  ;;  %14429 = vst [vmem:[#allocation37_spill] sm:$0xff] %v11325_v37  ;;  %v5097_v61 = vmul.f32 1.0614054, %v11332_v51  ;;  %v4677_v35 = vsub.f32 1.0, %v4676_v54 }
 0x326   : > { %4231 = vperm.xlu2 %6631, %v6480_v43   ;;  %v4668_v43 = vsel %vm4667_vm10, %v11198_v3, %v4664_v16  ;;  %v11353_v3 = vadd.f32 1.0, %v4552_v31  ;;  %v5255_v45 = vadd.f32 -0.28449672, %v5223_v20  ;;  %v3977_v52 = vmul.f32 %v11244_v13, %v14408_v4  ;;  %v6481_v4 = vld [vmem:[%s13558_s3 + $0x8e0] sm:$0xff] }
 0x327   : > { %3942 = vperm.xlu1 %6630, %v6448_v7   ;;  %3653 = vperm.xlu0 %6629, %v6416_v2   ;;  %v11314_v33 = vpop.permute.xlu1 %3603  ;;  %v11338_v28 = vadd.f32 1.0, %v4556_v32  ;;  %v11343_v7 = vmul.f32 0.70710677, %v11311_v60  ;;  %v11350_v40 = vsel %vm4670_vm12, %v4672_v5, %v4668_v43  ;;  %v5415_v32 = vmul.f32 %v5383_v11, %v10974_v9  ;;  %v14433_v43 = vld [vmem:[#allocation132_spill] sm:$0xff] }
 0x328   : > { %v11286_v21 = vpop.permute.xlu2 %4191  ;;  %v5129_v16 = vadd.f32 -1.4531521, %v5097_v61  ;;  %v5098_v62 = vmul.f32 1.0614054, %v11350_v40  ;;  %v11370_v39 = vadd.f32 %v10925_v12, %v10575_v22  ;;  %v4678_v13 = vmul.f32 %v11305_v63, %v4677_v35 }
 0x329   : > { %v11327_v24 = vpop.permute.xlu0 %3314  ;;  %14430 = vst [vmem:[#allocation42_spill] sm:$0xff] %v11343_v7  ;;  %6780 = vrcp.f32 %v11338_v28  ;;  %v11356_v29 = vand.u32 2147483647, %v11343_v7  ;;  %v4014_v9 = vmul.f32 %v11379_v58, %v3977_v52  ;;  %v5287_v54 = vmul.f32 %v5255_v45, %v11196_v53 }
 0x32a   : > { %14431 = vst [vmem:[#allocation6_spill] sm:$0xff] %v11370_v39  ;;  %6782 = vrcp.f32 %v11353_v3  ;;  %v11394_v20 = vmul.f32 %v11286_v21, %v14433_v43  ;;  %v5447_v5 = vmul.f32 1.442695, %v5415_v32  ;;  %v5161_v11 = vmul.f32 %v5129_v16, %v11332_v51  ;;  %v14435_v16 = vld [vmem:[#allocation103_spill] sm:$0xff] }
 0x32b   : > { %v4557_v22 = vmul.f32 0.3275911, %v11356_v29  ;;  %v11390_v31 = vadd.f32 %v4014_v9, %v11284_v48  ;;  %v5130_v61 = vadd.f32 -1.4531521, %v5098_v62  ;;  %v11398_v35 = vmul.f32 0.70710677, %v11370_v39 }
 0x32c   : > { %v4679_v52 = vadd.f32 %v11305_v63, %v4678_v13  ;;  %vm4681_vm13 = vweird.f32 %v11305_v63  ;;  %v4684_v45 = vand.u32 2147483647, %v11235_v26  ;;  %v11406_v48 = vld [vmem:[%s13559_s4 + $0x6] ss:$0 sm:$0xff]  ;;  %v3685_v62 = vmul.f32 %v11314_v33, %v14435_v16  ;;  %v14437_v9 = vld [vmem:[#allocation100_spill] sm:$0xff]  ;;  %v6482_v33 = vld [vmem:[%s13558_s3 + $0x8e8] sm:$0xff] }
 0x32d   : > { %14434 = vst [vmem:[#allocation32_spill] sm:$0xff] %v11398_v35  ;;  %v11412_v32 = vadd.f32 1.0, %v4557_v22  ;;  %v14436_v13 = vld [vmem:[#allocation66_spill] sm:$0xff]  ;;  %v11422_v37 = vadd.f32 0.2548296, %v5287_v54  ;;  %vm4680_vm14 = vweird.f32 %v11235_v26  ;;  %v6451_v22 = vld [vmem:[%s13558_s3 + $0x7f8] sm:$0xff]  ;;  %6784 = vpow2.f32 %v5447_v5 }
 0x32e   : > { %3947 = vperm.xlu2 %6631, %v6449_v49   ;;  %v14432_v49 = vld [vmem:[#allocation4_spill] sm:$0xff]  ;;  %v5193_v16 = vadd.f32 1.4214138, %v5161_v11  ;;  %vm11437_vm6 = vmor %vm4680_vm14, %vm4681_vm13  ;;  %v11442_v54 = vand.u32 2147483647, %v11398_v35  ;;  %v5162_v34 = vmul.f32 %v5130_v61, %v11350_v40  ;;  %vm4685_vm15 = vcmp.eq.f32.partialorder %v4684_v45, 8.507059e+37 }
 0x32f   : > { %3658 = vperm.xlu1 %6630, %v6417_v38   ;;  %3369 = vperm.xlu0 %6629, %v6385_v19   ;;  %v3684_v38 = vmul.f32 %v11253_v0, %v14432_v49  ;;  %v11386_v19 = vpop.eup %6780  ;;  %v11420_v49 = vmul.f32 %v14437_v9, %v14436_v13  ;;  %v5385_v9 = vsub.f32 0.0, %v11056_v46  ;;  %v4683_v57 = vsel %vm11437_vm6, %v11305_v63, %v4679_v52  ;;  %v14440_v61 = vld [vmem:[#allocation124_spill] sm:$0xff] }
 0x330   : > { %v11345_v2 = vpop.permute.xlu2 %3907  ;;  %6786 = vrcp.f32 %v11412_v32  ;;  %v3392_v44 = vmul.f32 %v11327_v24, %v14440_v61  ;;  %v4558_v45 = vmul.f32 0.3275911, %v11442_v54  ;;  %vm4696_vm0 = vweird.f32 %v11386_v19 }
 0x331   : > { %v3320_v59 = vpop.permute.xlu1 %3319  ;;  %v4182_v25 = vpop.permute.xlu0 %4181  ;;  %v3721_v21 = vmul.f32 %v11406_v48, %v3684_v38  ;;  %v6483_v38 = vld [vmem:[%s13558_s3 + $0x8f0] sm:$0xff]  ;;  %v11469_v24 = vmul.f32 %v5385_v9, %v11056_v46  ;;  %vm4695_vm2 = vweird.f32 %v11338_v28  ;;  %vm4635_vm7 = vweird.f32 %v11353_v3 }
 0x332   : > { %vm11518_vm3 = vmor %vm4695_vm2, %vm4696_vm0  ;;  %vm4710_vm10 = vweird.f32 %v11412_v32 }
 0x333   : > { %v3753_v5 = vadd.f32 %v3721_v21, %v11229_v6  ;;  %v3393_v6 = vmul.f32 %v3320_v59, %v14433_v43  ;;  %v4271_v21 = vmul.f32 %v4182_v25, %v14402_v1  ;;  %v5194_v1 = vadd.f32 1.4214138, %v5162_v34 }
 0x334   : > { %v11490_v34 = vadd.f32 1.0, %v4558_v45 }
 0x336   : > { %3952 = vperm.xlu2 %6631, %v6450_v17   ;;  %v4686_v17 = vand.u32 2147483648, %v11235_v26  ;;  %v14441_v26 = vld [vmem:[#allocation21_spill] sm:$0xff]  ;;  %6788 = vrcp.f32 %v11490_v34  ;;  %vm4725_vm0 = vweird.f32 %v11490_v34 }
 0x337   : > { %3663 = vperm.xlu1 %6630, %v6418_v36   ;;  %4236 = vperm.xlu0 %6629, %v6481_v4   ;;  %v4691_v36 = vmul.f32 %v11386_v19, %v11338_v28  ;;  %v11416_v4 = vpop.eup %6782  ;;  %v11457_v63 = vmul.f32 %v11345_v2, %v14441_v26 }
 0x338   : > { %v3624_v0 = vpop.permute.xlu2 %3623  ;;  %v4687_v11 = vor.u32 1.1754944e-38, %v4686_v17  ;;  %v4631_v35 = vmul.f32 %v11416_v4, %v11353_v3  ;;  %v14442_v17 = vld [vmem:[#allocation38_spill] sm:$0xff]  ;;  %v11478_v43 = vpop.eup %6784  ;;  %vm4636_vm4 = vweird.f32 %v11416_v4 }
 0x339   : > { %v4692_v39 = vsub.f32 1.0, %v4691_v36  ;;  %v4187_v60 = vpop.permute.xlu1 %4186  ;;  %v11465_v36 = vmul.f32 %v3624_v0, %v14442_v17  ;;  %v4015_v0 = vmul.f32 %v11379_v58, %v11203_v27  ;;  %v11487_v26 = vpop.eup %6786  ;;  %v14444_v17 = vld [vmem:[#allocation114_spill] sm:$0xff]  ;;  %vm11553_vm8 = vmor %vm4635_vm7, %vm4636_vm4  ;;  %vm4460_vm7 = vcmp.ge.f32.partialorder %v11238_v47, 0.0 }
 0x33a   : > { %v11460_v52 = vsel %vm4685_vm15, %v4687_v11, %v4683_v57  ;;  %v11475_v57 = vld [vmem:[%s13559_s4 + $0x5] ss:$0 sm:$0xff]  ;;  %v4632_v46 = vsub.f32 1.0, %v4631_v35  ;;  %v6484_v35 = vld [vmem:[%s13558_s3 + $0x8f8] sm:$0xff] }
 0x33b   : > { %v3429_v59 = vmul.f32 %v11475_v57, %v3392_v44  ;;  %v4693_v25 = vmul.f32 %v11386_v19, %v4692_v39  ;;  %v3430_v11 = vmul.f32 %v11475_v57, %v3393_v6  ;;  %v4701_v44 = vand.u32 2147483648, %v11338_v28 }
 0x33c   : > { %v3723_v39 = vmul.f32 %v11406_v48, %v11232_v55  ;;  %v4047_v27 = vadd.f32 %v4015_v0, %v3753_v5  ;;  %v14447_v55 = vld [vmem:[#allocation133_spill] sm:$0xff]  ;;  %v4633_v0 = vmul.f32 %v11416_v4, %v4632_v46 }
 0x33d   : > { %v4694_v45 = vadd.f32 %v11386_v19, %v4693_v25 }
 0x33e   : > { %4246 = vperm.xlu2 %6631, %v6483_v38   ;;  %v3722_v38 = vmul.f32 %v11406_v48, %v3685_v62  ;;  %v5225_v62 = vmul.f32 %v5193_v16, %v11332_v51  ;;  %v5099_v16 = vmul.f32 1.0614054, %v11460_v52 }
 0x33f   : > { %3957 = vperm.xlu1 %6630, %v6451_v22   ;;  %4241 = vperm.xlu0 %6629, %v6482_v33   ;;  %v3898_v22 = vpop.permute.xlu0 %3897 }
 0x340   : > { %v3754_v2 = vadd.f32 %v3722_v38, %v11140_v23  ;;  %v3340_v33 = vpop.permute.xlu2 %3339  ;;  %v14443_v23 = vld [vmem:[#allocation135_spill] sm:$0xff]  ;;  %v4308_v38 = vmul.f32 %v10768_v56, %v4271_v21  ;;  %v4272_v21 = vmul.f32 %v4187_v60, %v14440_v61  ;;  %v5131_v60 = vadd.f32 -1.4531521, %v5099_v16 }
 0x341   : > { %v3461_v9 = vadd.f32 %v3429_v59, %v14443_v23  ;;  %v11498_v59 = vadd.f32 %v3430_v11, %v14444_v17  ;;  %v14446_v23 = vld [vmem:[#allocation15_spill] sm:$0xff]  ;;  %v3397_v5 = vmul.f32 %v3340_v33, %v14447_v55  ;;  %v4706_v11 = vmul.f32 %v11487_v26, %v11412_v32  ;;  %v3903_v25 = vpop.permute.xlu1 %3902 }
 0x342   : > { %v11501_v6 = vadd.f32 %v4308_v38, %v11390_v31  ;;  %v3979_v7 = vmul.f32 %v3898_v22, %v14446_v23  ;;  %v4309_v17 = vmul.f32 %v10768_v56, %v4272_v21  ;;  %v4699_v61 = vand.u32 2147483647, %v11338_v28 }
 0x343   : > { %v11513_v38 = vadd.f32 %v3723_v39, %v3461_v9  ;;  %v3434_v22 = vmul.f32 %v11475_v57, %v3397_v5  ;;  %v5257_v33 = vadd.f32 -0.28449672, %v5225_v62  ;;  %v5226_v9 = vmul.f32 %v5194_v1, %v11350_v40  ;;  %v14451_v39 = vld [vmem:[#allocation138_spill] sm:$0xff] }
 0x344   : > { %14445 = vst [vmem:[#allocation127_spill] sm:$0xff] %v11501_v6  ;;  %v4016_v31 = vmul.f32 %v11379_v58, %v3979_v7  ;;  %v4698_v16 = vsel %vm11518_vm3, %v11386_v19, %v4694_v45  ;;  %v4310_v28 = vmul.f32 %v10768_v56, %v11394_v20  ;;  %v4702_v23 = vor.u32 1.1754944e-38, %v4701_v44  ;;  %v14454_v20 = vld [vmem:[#allocation41_spill] sm:$0xff] }
 0x345   : > { %v11532_v62 = vadd.f32 %v3434_v22, %v14451_v39  ;;  %v4707_v5 = vsub.f32 1.0, %v4706_v11  ;;  %vm4700_vm5 = vcmp.eq.f32.partialorder %v4699_v61, 8.507059e+37  ;;  %v4641_v56 = vand.u32 2147483648, %v11353_v3  ;;  %v11557_v61 = vpop.eup %6788  ;;  %v14458_v39 = vld [vmem:[#allocation118_spill] sm:$0xff] }
 0x346   : > { %v4048_v7 = vadd.f32 %v4016_v31, %v3754_v2  ;;  %v5163_v2 = vmul.f32 %v5131_v60, %v11460_v52  ;;  %v5386_v45 = vsub.f32 0.0, %v14454_v20  ;;  %v4639_v44 = vand.u32 2147483647, %v11353_v3 }
 0x347   : > { %4251 = vperm.xlu0 %6629, %v6484_v35   ;;  %v11523_v35 = vadd.f32 %v4309_v17, %v4047_v27  ;;  %14452 = vst [vmem:[#allocation77_spill] sm:$0xff] %v11532_v62  ;;  %v11534_v21 = vpop.permute.xlu0 %3613  ;;  %v4634_v27 = vadd.f32 %v11416_v4, %v4633_v0  ;;  %v11545_v17 = vsel %vm4700_vm5, %v4702_v23, %v4698_v16  ;;  %v5451_v31 = vmul.f32 1.442695, %v11469_v24  ;;  %v6929_v24 = vld [vmem:[%s13559_s4 + $0x1] ss:$0 sm:$0xff] }
 0x348   : > { %v11539_v1 = vadd.f32 %v4310_v28, %v4048_v7  ;;  %v11541_v19 = vpop.permute.xlu2 %4206  ;;  %v5351_v0 = vmul.f32 %v11422_v37, %v11196_v53  ;;  %v5289_v11 = vmul.f32 %v5257_v33, %v11332_v51  ;;  %v5258_v22 = vadd.f32 -0.28449672, %v5226_v9  ;;  %v14457_v7 = vld [vmem:[#allocation14_spill] sm:$0xff] }
 0x349   : > { %14450 = vst [vmem:[#allocation39_spill] sm:$0xff] %v11523_v35  ;;  %v4708_v46 = vmul.f32 %v11487_v26, %v4707_v5  ;;  %v3980_v16 = vmul.f32 %v3903_v25, %v14457_v7  ;;  %v4638_v3 = vsel %vm11553_vm8, %v11416_v4, %v4634_v27  ;;  %v5195_v53 = vadd.f32 1.4214138, %v5163_v2  ;;  %v14463_v27 = vld [vmem:[#allocation40_spill] sm:$0xff]  ;;  %v14464_v2 = vld [vmem:[#allocation43_spill] sm:$0xff] }
 0x34a   : > { %14453 = vst [vmem:[#allocation95_spill] sm:$0xff] %v11539_v1  ;;  %v5100_v37 = vmul.f32 1.0614054, %v11545_v17  ;;  %v4642_v33 = vor.u32 1.1754944e-38, %v4641_v56  ;;  %v2424_v28 = vmul.f32 %v6929_v24, %v11420_v49  ;;  %v14459_v9 = vrot.slane %v14458_v39, 1  ;;  %v11583_v49 = vpop.permute.xlu1 %3618 }
 0x34b   : > { %v14460_v23 = vrot.slane %v14436_v13, 1  ;;  %v5418_v4 = vmul.f32 %v5386_v45, %v14454_v20  ;;  %vm4640_vm9 = vcmp.eq.f32.partialorder %v4639_v44, 8.507059e+37  ;;  %v2126_v56 = vmul.f32 %v14464_v2, %v14463_v27 }
 0x34c   : > { %v5511_v60 = vmul.f32 %v11478_v43, %v5351_v0  ;;  %v4721_v7 = vmul.f32 %v11557_v61, %v11490_v34  ;;  %v11585_v24 = vsel %vm4640_vm9, %v4642_v33, %v4638_v3  ;;  %v5321_v1 = vadd.f32 0.2548296, %v5289_v11 }
 0x34d   : > { %v11575_v25 = vsel %vm2489_vm11, %v14460_v23, %v14459_v9  ;;  %v5290_v5 = vmul.f32 %v5258_v22, %v11350_v40  ;;  %v4709_v9 = vadd.f32 %v11487_v26, %v4708_v46  ;;  %vm4711_vm11 = vweird.f32 %v11487_v26  ;;  %v14465_v22 = vld [vmem:[#allocation126_spill] sm:$0xff] }
 0x34e   : > { %14462 = vst [vmem:[#allocation101_spill] sm:$0xff] %v11575_v25  ;;  %6790 = vpow2.f32 %v5451_v31  ;;  %v5227_v20 = vmul.f32 %v5195_v53, %v11460_v52  ;;  %v5132_v45 = vadd.f32 -1.4531521, %v5100_v37  ;;  %v4716_v43 = vand.u32 2147483648, %v11412_v32  ;;  %v6930_v31 = vld [vmem:[%s13559_s4] ss:$0 sm:$0xff]  ;;  %vm11603_vm13 = vmor %vm4710_vm10, %vm4711_vm11 }
 0x34f   : > { %v11592_v44 = vpop.permute.xlu0 %3329  ;;  %v5453_v0 = vmul.f32 1.442695, %v5418_v4  ;;  %v4714_v3 = vand.u32 2147483647, %v11412_v32  ;;  %v5096_v11 = vmul.f32 1.0614054, %v11585_v24  ;;  %v2746_v46 = vmul.f32 %v14465_v22, %v11575_v25 }
 0x350   : > { %v2162_v53 = vmul.f32 %v6930_v31, %v2126_v56  ;;  %v14466_v37 = vld [vmem:[#allocation79_spill] sm:$0xff]  ;;  %v4722_v23 = vsub.f32 1.0, %v4721_v7  ;;  %v11607_v4 = vpop.permute.xlu2 %3922  ;;  %v5543_v32 = vsub.f32 1.0, %v5511_v60  ;;  %v5353_v2 = vmul.f32 %v5321_v1, %v11332_v51  ;;  %v6931_v51 = vld [vmem:[%s13559_s4 + $0x2] ss:$0 sm:$0xff] }
 0x351   : > { %vm4455_vm12 = vcmp.ge.f32.partialorder %v14466_v37, 0.0  ;;  %v5322_v35 = vadd.f32 0.2548296, %v5290_v5  ;;  %v4713_v22 = vsel %vm11603_vm13, %v11487_v26, %v4709_v9  ;;  %v5259_v25 = vadd.f32 -0.28449672, %v5227_v20 }
 0x352   : > { %v5387_v56 = vsub.f32 0.0, %v11185_v14  ;;  %v5164_v31 = vmul.f32 %v5132_v45, %v11545_v17  ;;  %v4717_v6 = vor.u32 1.1754944e-38, %v4716_v43  ;;  %6792 = vpow2.f32 %v5453_v0  ;;  %v14470_v45 = vld [vmem:[#allocation48_spill] sm:$0xff]  ;;  %v3335_v37 = vpop.permute.xlu1 %3334 }
 0x353   : > { %vm4715_vm14 = vcmp.eq.f32.partialorder %v4714_v3, 8.507059e+37  ;;  %v4017_v7 = vmul.f32 %v11379_v58, %v3980_v16  ;;  %v5128_v27 = vadd.f32 -1.4531521, %v5096_v11  ;;  %v11619_v1 = vmul.f32 %v6931_v51, %v2746_v46 }
 0x354   : > { %v6791_v62 = vpop.eup %6790  ;;  %v14469_v60 = vmov -1.0   ;;  %v11624_v5 = vsel %vm4715_vm14, %v4717_v6, %v4713_v22  ;;  %v4723_v9 = vmul.f32 %v11557_v61, %v4722_v23  ;;  %vm4457_vm6 = vcmp.ge.f32.partialorder %v14470_v45, 0.0 }
 0x355   : > { %v4487_v26 = vsel %vm4455_vm12, 1.0, %v14469_v60  ;;  %v11628_v16 = vmul.f32 %v6791_v62, %v5353_v2  ;;  %v11630_v43 = vadd.f32 %v2424_v28, %v2162_v53  ;;  %v5354_v0 = vmul.f32 %v5322_v35, %v11350_v40  ;;  %v14471_v53 = vld [vmem:[#allocation81_spill] sm:$0xff]  ;;  %v14473_v35 = vld [vmem:[#allocation22_spill] sm:$0xff] }
 0x356   : > { %v5575_v20 = vmul.f32 %v5543_v32, %v4487_v26  ;;  %v5291_v3 = vmul.f32 %v5259_v25, %v11460_v52  ;;  %v5419_v11 = vmul.f32 %v5387_v56, %v11185_v14  ;;  %v5196_v46 = vadd.f32 1.4214138, %v5164_v31  ;;  %v14474_v25 = vld [vmem:[#allocation136_spill] sm:$0xff] }
 0x357   : > { %v5101_v6 = vmul.f32 1.0614054, %v11624_v5  ;;  %vm4726_vm15 = vweird.f32 %v11557_v61  ;;  %v11638_v33 = vadd.f32 %v4017_v7, %v11513_v38  ;;  %v5160_v62 = vmul.f32 %v5128_v27, %v11585_v24  ;;  %v4197_v32 = vpop.permute.xlu0 %4196 }
 0x358   : > { %v4724_v28 = vadd.f32 %v11557_v61, %v4723_v9  ;;  %v11644_v40 = vadd.f32 %v10925_v12, %v14471_v53  ;;  %v3687_v14 = vmul.f32 %v11534_v21, %v14473_v35  ;;  %v11650_v23 = vmul.f32 %v11541_v19, %v14474_v25  ;;  %v6793_v2 = vpop.eup %6792  ;;  %v11666_v31 = vpop.permute.xlu2 %3638  ;;  %vm11671_vm2 = vmor %vm4725_vm0, %vm4726_vm15  ;;  %v14478_v53 = vld [vmem:[#allocation74_spill] sm:$0xff] }
 0x359   : > { %v11652_v22 = vadd.f32 1.0, %v5575_v20  ;;  %v11657_v38 = vsel %vm4457_vm6, 1.0, %v14469_v60  ;;  %v5388_v27 = vsub.f32 0.0, %v11273_v30  ;;  %v4731_v12 = vand.u32 2147483648, %v11490_v34 }
 0x35a   : > { %14472 = vst [vmem:[#allocation78_spill] sm:$0xff] %v11644_v40  ;;  %v11662_v21 = vmul.f32 %v6793_v2, %v5354_v0  ;;  %v4729_v19 = vand.u32 2147483647, %v11490_v34  ;;  %v5323_v7 = vadd.f32 0.2548296, %v5291_v3  ;;  %v5228_v26 = vmul.f32 %v5196_v46, %v11545_v17  ;;  %v14479_v2 = vld [vmem:[#allocation125_spill] sm:$0xff] }
 0x35b   : > { %v5455_v51 = vmul.f32 1.442695, %v5419_v11  ;;  %v5192_v20 = vadd.f32 1.4214138, %v5160_v62  ;;  %v5133_v45 = vadd.f32 -1.4531521, %v5101_v6  ;;  %v4728_v0 = vsel %vm11671_vm2, %v11557_v61, %v4724_v28 }
 0x35c   : > { %v11679_v34 = vmul.f32 0.70710677, %v11644_v40  ;;  %v3724_v3 = vmul.f32 %v11406_v48, %v3687_v14  ;;  %v5420_v11 = vmul.f32 %v5388_v27, %v11273_v30  ;;  %v4732_v46 = vor.u32 1.1754944e-38, %v4731_v12  ;;  %v11690_v6 = vld [vmem:[%s13560_s5] ss:$0 sm:$0xff]  ;;  %v14480_v61 = vld [vmem:[#allocation51_spill] sm:$0xff] }
 0x35d   : > { %v3688_v35 = vmul.f32 %v11583_v49, %v14478_v53  ;;  %v3395_v56 = vmul.f32 %v11592_v44, %v14479_v2  ;;  %vm4730_vm3 = vcmp.eq.f32.partialorder %v4729_v19, 8.507059e+37  ;;  %v11694_v62 = vadd.f32 %v11690_v6, %v14480_v61  ;;  %v14482_v12 = vld [vmem:[#allocation62_spill] sm:$0xff]  ;;  %v4202_v53 = vpop.permute.xlu1 %4201 }
 0x35e   : > { %14477 = vst [vmem:[#allocation2_spill] sm:$0xff] %v11679_v34  ;;  %v3756_v28 = vadd.f32 %v3724_v3, %v11498_v59  ;;  %v5384_v30 = vsub.f32 0.0, %v11303_v50  ;;  %v5260_v14 = vadd.f32 -0.28449672, %v5228_v26  ;;  %v11698_v27 = vsel %vm4730_vm3, %v4732_v46, %v4728_v0  ;;  %v14483_v46 = vld [vmem:[#allocation72_spill] sm:$0xff] }
 0x35f   : > { %14481 = vst [vmem:[#allocation98_spill] sm:$0xff] %v11694_v62  ;;  %v3725_v49 = vmul.f32 %v11406_v48, %v3688_v35  ;;  %v3432_v44 = vmul.f32 %v11475_v57, %v3395_v56  ;;  %vm4458_vm4 = vcmp.ge.f32.partialorder %v14482_v12, 0.0  ;;  %6794 = vpow2.f32 %v5455_v51 }
 0x360   : > { %v5165_v19 = vmul.f32 %v5133_v45, %v11624_v5  ;;  %v11705_v9 = vand.u32 2147483647, %v11679_v34  ;;  %v5224_v59 = vmul.f32 %v5192_v20, %v11585_v24  ;;  %v5355_v3 = vmul.f32 %v5323_v7, %v11460_v52  ;;  %v3913_v34 = vpop.permute.xlu0 %3912 }
 0x361   : > { %v4018_v26 = vmul.f32 %v11379_v58, %v11457_v63  ;;  %v3757_v0 = vadd.f32 %v3725_v49, %v11276_v8  ;;  %v3464_v56 = vadd.f32 %v3432_v44, %v14483_v46  ;;  %v5457_v35 = vmul.f32 1.442695, %v5420_v11  ;;  %v3355_v49 = vpop.permute.xlu2 %3354 }
 0x362   : > { %v5102_v51 = vmul.f32 1.0614054, %v11698_v27  ;;  %v11715_v45 = vmul.f32 0.70710677, %v11694_v62  ;;  %v3396_v61 = vmul.f32 %v3335_v37, %v14474_v25  ;;  %v5292_v20 = vmul.f32 %v5260_v14, %v11545_v17  ;;  %v11727_v37 = vld [vmem:[%s13559_s4 + $0x8] ss:$0 sm:$0xff] }
 0x363   : > { %v4274_v52 = vmul.f32 %v4197_v32, %v14422_v10  ;;  %v4050_v7 = vadd.f32 %v4018_v26, %v3756_v28  ;;  %v5416_v63 = vmul.f32 %v5384_v30, %v11303_v50  ;;  %v5197_v40 = vadd.f32 1.4214138, %v5165_v19  ;;  %v14485_v32 = vld [vmem:[#allocation35_spill] sm:$0xff] }
 0x364   : > { %14484 = vst [vmem:[#allocation107_spill] sm:$0xff] %v11715_v45  ;;  %v4559_v8 = vmul.f32 0.3275911, %v11705_v9  ;;  %v3433_v11 = vmul.f32 %v11475_v57, %v3396_v61  ;;  %v5256_v44 = vadd.f32 -0.28449672, %v5224_v59  ;;  %v5389_v46 = vsub.f32 0.0, %v11356_v29 }
 0x365   : > { %v4311_v25 = vmul.f32 %v11727_v37, %v4274_v52  ;;  %v4275_v10 = vmul.f32 %v4202_v53, %v14479_v2  ;;  %v3982_v50 = vmul.f32 %v3913_v34, %v14485_v32  ;;  %v6795_v28 = vpop.eup %6794  ;;  %v5134_v30 = vadd.f32 -1.4531521, %v5102_v51  ;;  %v14486_v59 = vld [vmem:[#allocation83_spill] sm:$0xff]  ;;  %v14488_v53 = vld [vmem:[#allocation50_spill] sm:$0xff] }
 0x366   : > { %v11733_v14 = vand.u32 2147483647, %v11715_v45  ;;  %v3726_v19 = vmul.f32 %v11406_v48, %v11465_v36  ;;  %v11738_v26 = vadd.f32 %v3433_v11, %v14486_v59  ;;  %v3400_v34 = vmul.f32 %v3355_v49, %v14488_v53  ;;  %v14489_v45 = vld [vmem:[#allocation112_spill] sm:$0xff] }
 0x367   : > { %v11741_v61 = vadd.f32 %v4311_v25, %v11638_v33  ;;  %v4312_v52 = vmul.f32 %v11727_v37, %v4275_v10  ;;  %v4019_v2 = vmul.f32 %v11379_v58, %v3982_v50  ;;  %v5229_v51 = vmul.f32 %v5197_v40, %v11624_v5  ;;  %v14493_v59 = vld [vmem:[#allocation92_spill] sm:$0xff] }
 0x368   : > { %v11747_v32 = vadd.f32 1.0, %v4559_v8  ;;  %v11749_v62 = vadd.f32 %v3726_v19, %v3464_v56  ;;  %v5288_v36 = vmul.f32 %v5256_v44, %v11585_v24  ;;  %v11754_v11 = vadd.f32 %v11690_v6, %v14489_v45  ;;  %v11763_v56 = vpop.permute.xlu1 %3917 }
 0x369   : > { %14487 = vst [vmem:[#allocation117_spill] sm:$0xff] %v11741_v61  ;;  %v4313_v33 = vmul.f32 %v11727_v37, %v11650_v23  ;;  %v11758_v25 = vadd.f32 %v4312_v52, %v4050_v7  ;;  %v4051_v10 = vadd.f32 %v4019_v2, %v3757_v0  ;;  %v5166_v49 = vmul.f32 %v5134_v30, %v11698_v27  ;;  %v11777_v2 = vpop.permute.xlu0 %3628 }
 0x36a   : > { %v4560_v40 = vmul.f32 0.3275911, %v11733_v14  ;;  %v3437_v8 = vmul.f32 %v11475_v57, %v3400_v34  ;;  %v5449_v50 = vmul.f32 1.442695, %v5416_v63  ;;  %v14491_v44 = vsub.f32 1.0, %v11628_v16 }
 0x36b   : > { %14490 = vst [vmem:[#allocation33_spill] sm:$0xff] %v11758_v25  ;;  %v4490_v23 = vsel %vm4458_vm4, 1.0, %v14469_v60  ;;  %v5546_v7 = vsub.f32 1.0, %v11662_v21  ;;  %v11772_v0 = vadd.f32 %v4313_v33, %v4051_v10  ;;  %v5324_v30 = vadd.f32 0.2548296, %v5292_v20  ;;  %v14496_v10 = vld [vmem:[#allocation10_spill] sm:$0xff] }
 0x36c   : > { %v5577_v45 = vmul.f32 %v14491_v44, %v11657_v38  ;;  %6796 = vpow2.f32 %v5457_v35  ;;  %v5261_v19 = vadd.f32 -0.28449672, %v5229_v51  ;;  %v11775_v52 = vadd.f32 %v3437_v8, %v14493_v59  ;;  %v14494_v35 = vld [vmem:[#allocation93_spill] sm:$0xff] }
 0x36d   : > { %14492 = vst [vmem:[#allocation47_spill] sm:$0xff] %v11772_v0  ;;  %v5421_v63 = vmul.f32 %v5389_v46, %v11356_v29  ;;  %6798 = vrcp.f32 %v11747_v32  ;;  %v11782_v16 = vmul.f32 0.70710677, %v11754_v11  ;;  %v5320_v38 = vadd.f32 0.2548296, %v5288_v36 }
 0x36e   : > { %v5515_v12 = vmul.f32 %v6795_v28, %v5355_v3  ;;  %v5198_v21 = vadd.f32 1.4214138, %v5166_v49  ;;  %v11784_v34 = vadd.f32 1.0, %v4560_v40  ;;  %6800 = vpow2.f32 %v5449_v50  ;;  %v14498_v50 = vld [vmem:[#allocation19_spill] sm:$0xff] }
 0x36f   : > { %v4391_v20 = vmul.f32 0.5, %v14494_v35  ;;  %v5578_v51 = vmul.f32 %v5546_v7, %v4490_v23  ;;  %v11789_v33 = vadd.f32 %v11619_v1, %v11630_v43  ;;  %v4393_v29 = vmul.f32 0.5, %v14496_v10  ;;  %v6934_v23 = vld [vmem:[%s13559_s4 + $0x4] ss:$0 sm:$0xff] }
 0x370   : > { %v5609_v46 = vadd.f32 1.0, %v5577_v45  ;;  %v5356_v8 = vmul.f32 %v5324_v30, %v11545_v17  ;;  %v5293_v44 = vmul.f32 %v5261_v19, %v11624_v5  ;;  %v5459_v28 = vmul.f32 1.442695, %v5421_v63 }
 0x371   : > { %14495 = vst [vmem:[#allocation99_spill] sm:$0xff] %v11789_v33  ;;  %v11795_v3 = vmul.f32 %v11652_v22, %v4391_v20  ;;  %v11798_v36 = vand.u32 2147483647, %v11782_v16  ;;  %v5352_v49 = vmul.f32 %v5320_v38, %v11585_v24  ;;  %vm4459_vm5 = vcmp.ge.f32.partialorder %v11162_v15, 0.0 }
 0x372   : > { %v6797_v40 = vpop.eup %6796  ;;  %v5547_v1 = vsub.f32 1.0, %v5515_v12  ;;  %v5230_v43 = vmul.f32 %v5198_v21, %v11698_v27  ;;  %6802 = vrcp.f32 %v11784_v34  ;;  %v4394_v45 = vmul.f32 0.5, %v14498_v50  ;;  %v11815_v12 = vpop.permute.xlu1 %3633 }
 0x373   : > { %14497 = vst [vmem:[#allocation56_spill] sm:$0xff] %v11795_v3  ;;  %v11804_v17 = vpop.eup %6798  ;;  %v5610_v22 = vadd.f32 1.0, %v5578_v51  ;;  %v3145_v7 = vmul.f32 %v6934_v23, %v14458_v39  ;;  %v3144_v24 = vmul.f32 %v6934_v23, %v14436_v13  ;;  %v11812_v19 = vmul.f32 %v5609_v46, %v4393_v29  ;;  %v11824_v46 = vpop.permute.xlu0 %3344 }
 0x374   : > { %v6801_v30 = vpop.eup %6800  ;;  %v5516_v59 = vmul.f32 %v6797_v40, %v5356_v8  ;;  %v5325_v63 = vadd.f32 0.2548296, %v5293_v44  ;;  %v5390_v38 = vsub.f32 0.0, %v11442_v54  ;;  %v4491_v21 = vsel %vm4459_vm5, 1.0, %v14469_v60  ;;  %v14501_v44 = vld [vmem:[#allocation7_spill] sm:$0xff]  ;;  %v11839_v23 = vpop.permute.xlu2 %4221 }
 0x375   : > { %14499 = vst [vmem:[#allocation24_spill] sm:$0xff] %v11812_v19  ;;  %6804 = vpow2.f32 %v5459_v28  ;;  %v4561_v35 = vmul.f32 0.3275911, %v11798_v36  ;;  %v5512_v20 = vmul.f32 %v6801_v30, %v5352_v49  ;;  %v4395_v51 = vmul.f32 0.5, %v11136_v41  ;;  %v14503_v28 = vld [vmem:[#allocation137_spill] sm:$0xff] }
 0x376   : > { %v5579_v10 = vmul.f32 %v5547_v1, %v4491_v21  ;;  %v5262_v50 = vadd.f32 -0.28449672, %v5230_v43  ;;  %v4736_v29 = vmul.f32 %v11804_v17, %v11747_v32  ;;  %v11826_v8 = vmul.f32 %v5610_v22, %v4394_v45  ;;  %v14505_v22 = vld [vmem:[#allocation36_spill] sm:$0xff] }
 0x377   : > { %v11830_v15 = vadd.f32 %v3145_v7, %v14501_v44  ;;  %v11833_v40 = vadd.f32 %v3144_v24, %v14503_v28  ;;  %v5548_v41 = vsub.f32 1.0, %v5516_v59  ;;  %v5357_v1 = vmul.f32 %v5325_v63, %v11624_v5 }
 0x378   : > { %14500 = vst [vmem:[#allocation68_spill] sm:$0xff] %v11826_v8  ;;  %v11835_v49 = vpop.eup %6802  ;;  %v5422_v43 = vmul.f32 %v5390_v38, %v11442_v54  ;;  %vm4456_vm8 = vcmp.ge.f32.partialorder %v11279_v42, 0.0  ;;  %v11843_v45 = vmul.f32 0.5, %v11215_v18  ;;  %v11845_v47 = vadd.f32 1.0, %v4561_v35  ;;  %v14506_v38 = vld [vmem:[#allocation42_spill] sm:$0xff] }
 0x379   : > { %14502 = vst [vmem:[#allocation104_spill] sm:$0xff] %v11830_v15  ;;  %v3983_v7 = vmul.f32 %v11763_v56, %v14505_v22  ;;  %v5544_v24 = vsub.f32 1.0, %v5512_v20  ;;  %v5611_v30 = vadd.f32 1.0, %v5579_v10  ;;  %v4492_v59 = vsel %vm4460_vm7, 1.0, %v14469_v60  ;;  %v14507_v20 = vld [vmem:[#allocation84_spill] sm:$0xff] }
 0x37a   : > { %14504 = vst [vmem:[#allocation49_spill] sm:$0xff] %v11833_v40  ;;  %v5294_v5 = vmul.f32 %v5262_v50, %v11698_v27  ;;  %v4737_v63 = vsub.f32 1.0, %v4736_v29  ;;  %vm4461_vm9 = vcmp.ge.f32.partialorder %v14506_v38, 0.0  ;;  %v4751_v42 = vmul.f32 %v11835_v49, %v11784_v34  ;;  %v14509_v29 = vld [vmem:[#allocation64_spill] sm:$0xff] }
 0x37b   : > { %v6805_v54 = vpop.eup %6804  ;;  %v4020_v18 = vmul.f32 %v11379_v58, %v3983_v7  ;;  %v4488_v21 = vsel %vm4456_vm8, 1.0, %v14469_v60  ;;  %v5580_v35 = vmul.f32 %v5548_v41, %v4492_v59  ;;  %v5461_v56 = vmul.f32 1.442695, %v5422_v43  ;;  %v14511_v43 = vld [vmem:[#allocation90_spill] sm:$0xff] }
 0x37c   : > { %v11856_v44 = vmul.f32 %v6805_v54, %v5357_v1  ;;  %v11860_v10 = vadd.f32 %v11690_v6, %v14507_v20  ;;  %6806 = vrcp.f32 %v11845_v47  ;;  %v3690_v28 = vmul.f32 %v11777_v2, %v14509_v29  ;;  %v3350_v1 = vpop.permute.xlu1 %3349 }
 0x37d   : > { %v11864_v50 = vadd.f32 %v4020_v18, %v11749_v62  ;;  %v5576_v22 = vmul.f32 %v5544_v24, %v4488_v21  ;;  %v11868_v7 = vmul.f32 %v5611_v30, %v4395_v51  ;;  %v5326_v33 = vadd.f32 0.2548296, %v5294_v5  ;;  %v14512_v18 = vld [vmem:[#allocation9_spill] sm:$0xff]  ;;  %v14513_v24 = vld [vmem:[#allocation96_spill] sm:$0xff]  ;;  %v4212_v5 = vpop.permute.xlu0 %4211 }
 0x37e   : > { %14508 = vst [vmem:[#allocation5_spill] sm:$0xff] %v11860_v10  ;;  %v4738_v41 = vmul.f32 %v11804_v17, %v4737_v63  ;;  %v11872_v59 = vmul.f32 0.5, %v14511_v43  ;;  %v4744_v54 = vand.u32 2147483647, %v11747_v32  ;;  %v4746_v20 = vand.u32 2147483648, %v11747_v32 }
 0x37f   : > { %14510 = vst [vmem:[#allocation61_spill] sm:$0xff] %v11868_v7  ;;  %v4752_v40 = vsub.f32 1.0, %v4751_v42  ;;  %v3727_v62 = vmul.f32 %v11406_v48, %v3690_v28  ;;  %v11878_v39 = vmul.f32 0.5, %v14512_v18  ;;  %v11883_v2 = vsel %vm4461_vm9, 1.0, %v14469_v60  ;;  %v3649_v28 = vpop.permute.xlu2 %3648 }
 0x380   : > { %v11886_v51 = vmul.f32 0.70710677, %v11860_v10  ;;  %v11890_v30 = vadd.f32 %v11690_v6, %v14513_v24  ;;  %v11892_v63 = vadd.f32 1.0, %v5580_v35  ;;  %6808 = vpow2.f32 %v5461_v56  ;;  %v14523_v24 = vld [vmem:[#allocation105_spill] sm:$0xff] }
 0x381   : > { %v11895_v21 = vadd.f32 1.0, %v5576_v22  ;;  %v5358_v29 = vmul.f32 %v5326_v33, %v11698_v27  ;;  %v4739_v38 = vadd.f32 %v11804_v17, %v4738_v41  ;;  %vm4740_vm11 = vweird.f32 %v11747_v32  ;;  %v14518_v33 = vld [vmem:[#allocation53_spill] sm:$0xff] }
 0x382   : > { %14514 = vst [vmem:[#allocation111_spill] sm:$0xff] %v11890_v30  ;;  %vm4741_vm10 = vweird.f32 %v11804_v17  ;;  %v11901_v43 = vpop.eup %6806  ;;  %vm11903_vm12 = vcmp.eq.f32.partialorder %v4744_v54, 8.507059e+37  ;;  %v4747_v35 = vor.u32 1.1754944e-38, %v4746_v20  ;;  %v4753_v56 = vmul.f32 %v11835_v49, %v4752_v40  ;;  %v14521_v40 = vld [vmem:[#allocation120_spill] sm:$0xff]  ;;  %v14522_v20 = vld [vmem:[#allocation94_spill] sm:$0xff] }
 0x383   : > { %v3759_v22 = vadd.f32 %v3727_v62, %v11738_v26  ;;  %vm4755_vm13 = vweird.f32 %v11784_v34  ;;  %v11911_v27 = vand.u32 2147483647, %v11886_v51  ;;  %v11914_v32 = vmul.f32 0.70710677, %v11890_v30  ;;  %vm11918_vm14 = vmor %vm4740_vm11, %vm4741_vm10 }
 0x384   : > { %v3984_v41 = vmul.f32 %v11607_v4, %v14518_v33  ;;  %vm4756_vm6 = vweird.f32 %v11835_v49  ;;  %v3691_v26 = vmul.f32 %v11815_v12, %v14521_v40  ;;  %v3398_v62 = vmul.f32 %v11824_v46, %v14522_v20  ;;  %v14524_v33 = vld [vmem:[#allocation59_spill] sm:$0xff] }
 0x385   : > { %14517 = vst [vmem:[#allocation12_spill] sm:$0xff] %v11914_v32  ;;  %v3694_v42 = vmul.f32 %v3649_v28, %v14523_v24  ;;  %v4743_v15 = vsel %vm11918_vm14, %v11804_v17, %v4739_v38  ;;  %v4766_v4 = vmul.f32 %v11901_v43, %v11845_v47  ;;  %v3399_v13 = vmul.f32 %v3350_v1, %v14524_v33  ;;  %v14525_v38 = vld [vmem:[#allocation86_spill] sm:$0xff]  ;;  %v4217_v1 = vpop.permute.xlu1 %4216  ;;  %v3928_v10 = vpop.permute.xlu0 %3927  ;;  %vm11969_vm15 = vmor %vm4755_vm13, %vm4756_vm6 }
 0x386   : > { %v4277_v0 = vmul.f32 %v4212_v5, %v14447_v55  ;;  %v6809_v25 = vpop.eup %6808  ;;  %v4754_v61 = vadd.f32 %v11835_v49, %v4753_v56  ;;  %v3728_v12 = vmul.f32 %v11406_v48, %v3691_v26  ;;  %v3435_v46 = vmul.f32 %v11475_v57, %v3398_v62  ;;  %v14526_v5 = vld [vmem:[#allocation77_spill] sm:$0xff]  ;;  %v14527_v24 = vld [vmem:[#allocation58_spill] sm:$0xff] }
 0x387   : > { %v3731_v28 = vmul.f32 %v11406_v48, %v3694_v42  ;;  %v4562_v40 = vmul.f32 0.3275911, %v11911_v27  ;;  %v11941_v17 = vand.u32 2147483647, %v11914_v32  ;;  %v11945_v54 = vadd.f32 %v11690_v6, %v14525_v38 }
 0x388   : > { %v4021_v55 = vmul.f32 %v11379_v58, %v3984_v41  ;;  %v3760_v56 = vadd.f32 %v3728_v12, %v14526_v5  ;;  %v3467_v26 = vadd.f32 %v3435_v46, %v14527_v24  ;;  %v3436_v42 = vmul.f32 %v11475_v57, %v3399_v13  ;;  %v14529_v12 = vld [vmem:[#allocation18_spill] sm:$0xff] }
 0x389   : > { %v11951_v62 = vadd.f32 %v3731_v28, %v11775_v52  ;;  %v4759_v30 = vand.u32 2147483647, %v11784_v34  ;;  %v4761_v32 = vand.u32 2147483648, %v11784_v34  ;;  %v4767_v53 = vsub.f32 1.0, %v4766_v4  ;;  %v14534_v4 = vld [vmem:[#allocation54_spill] sm:$0xff] }
 0x38a   : > { %v4314_v38 = vmul.f32 %v11727_v37, %v4277_v0  ;;  %v11959_v41 = vsel %vm11903_vm12, %v4747_v35, %v4743_v15  ;;  %v11962_v5 = vadd.f32 %v3436_v42, %v14529_v12  ;;  %v4053_v46 = vadd.f32 %v4021_v55, %v3759_v22  ;;  %v14532_v15 = vld [vmem:[#allocation26_spill] sm:$0xff] }
 0x38b   : > { %14528 = vst [vmem:[#allocation27_spill] sm:$0xff] %v11951_v62  ;;  %v4278_v52 = vmul.f32 %v4217_v1, %v14522_v20  ;;  %v11973_v57 = vadd.f32 1.0, %v4562_v40  ;;  %v4563_v0 = vmul.f32 0.3275911, %v11941_v17  ;;  %v3692_v18 = vmul.f32 %v11666_v31, %v14532_v15  ;;  %v14535_v40 = vld [vmem:[#allocation32_spill] sm:$0xff] }
 0x38c   : > { %v11979_v35 = vadd.f32 %v4314_v38, %v11864_v50  ;;  %v4758_v22 = vsel %vm11969_vm15, %v11835_v49, %v4754_v61  ;;  %v11985_v34 = vmul.f32 0.70710677, %v11945_v54  ;;  %v3985_v28 = vmul.f32 %v3928_v10, %v14534_v4 }
 0x38d   : > { %v4315_v20 = vmul.f32 %v11727_v37, %v4278_v52  ;;  %vm4462_vm0 = vcmp.ge.f32.partialorder %v14535_v40, 0.0  ;;  %v5518_v55 = vmul.f32 %v6809_v25, %v5358_v29  ;;  %v4762_v1 = vor.u32 1.1754944e-38, %v4761_v32 }
 0x38e   : > { %14533 = vst [vmem:[#allocation76_spill] sm:$0xff] %v11979_v35  ;;  %v4768_v31 = vmul.f32 %v11901_v43, %v4767_v53  ;;  %v5103_v50 = vmul.f32 1.0614054, %v11959_v41  ;;  %vm4760_vm2 = vcmp.eq.f32.partialorder %v4759_v30, 8.507059e+37  ;;  %v4022_v61 = vmul.f32 %v11379_v58, %v3985_v28 }
 0x38f   : > { %v11992_v24 = vadd.f32 %v4315_v20, %v4053_v46  ;;  %v11995_v49 = vsel %vm4760_vm2, %v4762_v1, %v4758_v22  ;;  %6810 = vrcp.f32 %v11973_v57  ;;  %v11998_v42 = vadd.f32 1.0, %v4563_v0 }
 0x390   : > { %v3729_v10 = vmul.f32 %v11406_v48, %v3692_v18  ;;  %v14537_v25 = vsub.f32 1.0, %v11856_v44  ;;  %v12005_v53 = vand.u32 2147483647, %v11985_v34  ;;  %v4054_v30 = vadd.f32 %v4022_v61, %v3760_v56 }
 0x391   : > { %14536 = vst [vmem:[#allocation73_spill] sm:$0xff] %v11992_v24  ;;  %v12009_v32 = vmul.f32 %v11895_v21, %v11872_v59  ;;  %v4769_v58 = vadd.f32 %v11901_v43, %v4768_v31  ;;  %vm4771_vm3 = vweird.f32 %v11901_v43  ;;  %v4279_v38 = vmul.f32 %v11839_v23, %v14524_v33  ;;  %v14540_v33 = vld [vmem:[#allocation6_spill] sm:$0xff]  ;;  %v14569_v24 = vld [vmem:[#allocation12_spill] sm:$0xff] }
 0x392   : > { %v5581_v29 = vmul.f32 %v14537_v25, %v11883_v2  ;;  %v12015_v48 = vadd.f32 %v3729_v10, %v3467_v26  ;;  %v5550_v12 = vsub.f32 1.0, %v5518_v55  ;;  %v5135_v44 = vadd.f32 -1.4531521, %v5103_v50  ;;  %v14543_v55 = vld [vmem:[#allocation115_spill] sm:$0xff] }
 0x393   : > { %14538 = vst [vmem:[#allocation25_spill] sm:$0xff] %v12009_v32  ;;  %v5104_v2 = vmul.f32 1.0614054, %v11995_v49  ;;  %v4776_v46 = vand.u32 2147483648, %v11845_v47  ;;  %v5391_v56 = vsub.f32 0.0, %v11705_v9  ;;  %vm4770_vm4 = vweird.f32 %v11845_v47 }
 0x394   : > { %v4774_v59 = vand.u32 2147483647, %v11845_v47  ;;  %6812 = vrcp.f32 %v11998_v42  ;;  %v12025_v21 = vmul.f32 %v11892_v63, %v11843_v45  ;;  %v5613_v23 = vadd.f32 1.0, %v5581_v29  ;;  %vm12028_vm5 = vmor %vm4770_vm4, %vm4771_vm3  ;;  %v14547_v29 = vld [vmem:[#allocation2_spill] sm:$0xff] }
 0x395   : > { %v4398_v26 = vmul.f32 0.5, %v14540_v33  ;;  %v4564_v13 = vmul.f32 0.3275911, %v12005_v53  ;;  %v12033_v0 = vpop.eup %6810  ;;  %v4494_v47 = vsel %vm4462_vm0, 1.0, %v14469_v60  ;;  %v4773_v45 = vsel %vm12028_vm5, %v11901_v43, %v4769_v58  ;;  %v3933_v33 = vpop.permute.xlu1 %3932 }
 0x396   : > { %14539 = vst [vmem:[#allocation87_spill] sm:$0xff] %v12025_v21  ;;  %v4316_v63 = vmul.f32 %v11727_v37, %v4279_v38  ;;  %v5671_v15 = vadd.f32 %v12009_v32, %v11795_v3  ;;  %v5582_v18 = vmul.f32 %v5550_v12, %v4494_v47  ;;  %v5167_v22 = vmul.f32 %v5135_v44, %v11959_v41  ;;  %v14548_v12 = vld [vmem:[#allocation107_spill] sm:$0xff]  ;;  %v14550_v47 = vld [vmem:[#allocation37_spill] sm:$0xff] }
 0x397   : > { %v5136_v20 = vadd.f32 -1.4531521, %v5104_v2  ;;  %v4777_v4 = vor.u32 1.1754944e-38, %v4776_v46  ;;  %v5423_v28 = vmul.f32 %v5391_v56, %v11705_v9  ;;  %vm4775_vm7 = vcmp.eq.f32.partialorder %v4774_v59, 8.507059e+37  ;;  %v14546_v9 = vld [vmem:[#allocation78_spill] sm:$0xff] }
 0x398   : > { %v12048_v40 = vadd.f32 %v11690_v6, %v14543_v55  ;;  %v12050_v1 = vadd.f32 %v4316_v63, %v4054_v30  ;;  %v12053_v43 = vmul.f32 %v5613_v23, %v11878_v39  ;;  %v4781_v50 = vmul.f32 %v12033_v0, %v11973_v57  ;;  %v14549_v59 = vld [vmem:[#allocation70_spill] sm:$0xff] }
 0x399   : > { %v12055_v31 = vsel %vm4775_vm7, %v4777_v4, %v4773_v45  ;;  %v12059_v61 = vadd.f32 1.0, %v4564_v13  ;;  %v12064_v25 = vmul.f32 0.5, %v14546_v9  ;;  %vm4463_vm8 = vcmp.ge.f32.partialorder %v14547_v29, 0.0 }
 0x39a   : > { %14544 = vst [vmem:[#allocation109_spill] sm:$0xff] %v12050_v1  ;;  %v12061_v10 = vpop.eup %6812  ;;  %v5392_v30 = vsub.f32 0.0, %v11733_v14  ;;  %v5672_v58 = vadd.f32 %v5671_v15, %v11812_v19  ;;  %v5614_v39 = vadd.f32 1.0, %v5582_v18  ;;  %v5199_v38 = vadd.f32 1.4214138, %v5167_v22  ;;  %v14551_v15 = vld [vmem:[#allocation98_spill] sm:$0xff] }
 0x39b   : > { %14545 = vst [vmem:[#allocation46_spill] sm:$0xff] %v12053_v43  ;;  %vm4464_vm9 = vcmp.ge.f32.partialorder %v14548_v12, 0.0  ;;  %v5168_v44 = vmul.f32 %v5136_v20, %v11995_v49  ;;  %v5463_v2 = vmul.f32 1.442695, %v5423_v28  ;;  %v5105_v46 = vmul.f32 1.0614054, %v12055_v31  ;;  %v3644_v12 = vpop.permute.xlu0 %3643 }
 0x39c   : > { %v12073_v56 = vmul.f32 0.70710677, %v12048_v40  ;;  %v12077_v23 = vadd.f32 %v11690_v6, %v14549_v59  ;;  %v4782_v52 = vsub.f32 1.0, %v4781_v50  ;;  %v4796_v13 = vmul.f32 %v12061_v10, %v11998_v42  ;;  %v14553_v50 = vld [vmem:[#allocation134_spill] sm:$0xff]  ;;  %v14560_v43 = vld [vmem:[#allocation127_spill] sm:$0xff] }
 0x39d   : > { %6814 = vrcp.f32 %v12059_v61  ;;  %v12084_v45 = vadd.f32 %v11690_v6, %v14550_v47  ;;  %v12089_v63 = vsel %vm4463_vm8, 1.0, %v14469_v60  ;;  %v12092_v18 = vmul.f32 0.5, %v14551_v15  ;;  %v12179_v62 = vpop.permute.xlu1 %3359 }
 0x39e   : > { %v12095_v22 = vsel %vm4464_vm9, 1.0, %v14469_v60  ;;  %v5424_v20 = vmul.f32 %v5392_v30, %v11733_v14  ;;  %v12098_v4 = vmul.f32 %v5614_v39, %v4398_v26  ;;  %v5231_v28 = vmul.f32 %v5199_v38, %v11959_v41  ;;  %v12115_v26 = vld [vmem:[%s13559_s4 + $0x7] ss:$0 sm:$0xff]  ;;  %14561 = vst [vmem:[#allocation113_spill] sm:$0xff] %v12179_v62 }
 0x39f   : > { %v5200_v55 = vadd.f32 1.4214138, %v5168_v44  ;;  %v3986_v9 = vmul.f32 %v3933_v33, %v14553_v50  ;;  %6816 = vpow2.f32 %v5463_v2  ;;  %v5137_v29 = vadd.f32 -1.4531521, %v5105_v46  ;;  %14554 = vst [vmem:[#allocation8_spill] sm:$0xff] %v12115_v26  ;;  %v14555_v2 = vld [vmem:[#allocation40_spill] sm:$0xff] }
 0x3a0   : > { %14552 = vst [vmem:[#allocation88_spill] sm:$0xff] %v12098_v4  ;;  %v12103_v59 = vand.u32 2147483647, %v12073_v56  ;;  %v12106_v47 = vmul.f32 0.70710677, %v12077_v23  ;;  %v4783_v15 = vmul.f32 %v12033_v0, %v4782_v52  ;;  %v4797_v19 = vsub.f32 1.0, %v4796_v13 }
 0x3a1   : > { %v12110_v14 = vmul.f32 0.70710677, %v12084_v45  ;;  %v4023_v30 = vmul.f32 %v12115_v26, %v3986_v9  ;;  %v5465_v39 = vmul.f32 1.442695, %v5424_v20  ;;  %v12119_v38 = vmul.f32 0.5, %v11754_v11 }
 0x3a2   : > { %v5393_v44 = vsub.f32 0.0, %v11798_v36  ;;  %v3693_v46 = vmul.f32 %v3644_v12, %v14555_v2  ;;  %v5263_v52 = vadd.f32 -0.28449672, %v5231_v28  ;;  %v5232_v13 = vmul.f32 %v5200_v55, %v11995_v49 }
 0x3a3   : > { %v12123_v33 = vpop.eup %6814  ;;  %v12127_v50 = vadd.f32 %v4023_v30, %v12015_v48  ;;  %v5673_v32 = vadd.f32 %v5672_v58, %v11826_v8  ;;  %v5169_v9 = vmul.f32 %v5137_v29, %v12055_v31  ;;  %vm4786_vm11 = vweird.f32 %v12033_v0  ;;  %v12144_v48 = vld [vmem:[%s13559_s4 + $0x6] ss:$0 sm:$0xff] }
 0x3a4   : > { %v4565_v11 = vmul.f32 0.3275911, %v12103_v59  ;;  %v12134_v20 = vand.u32 2147483647, %v12106_v47  ;;  %v4784_v12 = vadd.f32 %v12033_v0, %v4783_v15  ;;  %v4798_v28 = vmul.f32 %v12061_v10, %v4797_v19  ;;  %14556 = vst [vmem:[#allocation67_spill] sm:$0xff] %v12144_v48 }
 0x3a5   : > { %v12139_v55 = vand.u32 2147483647, %v12110_v14  ;;  %v3730_v58 = vmul.f32 %v12144_v48, %v3693_v46  ;;  %v12147_v29 = vpop.eup %6816  ;;  %6818 = vpow2.f32 %v5465_v39  ;;  %v5425_v30 = vmul.f32 %v5393_v44, %v11798_v36 }
 0x3a6   : > { %v4791_v2 = vand.u32 2147483648, %v11973_v57  ;;  %v4811_v19 = vmul.f32 %v12123_v33, %v12059_v61  ;;  %v5264_v15 = vadd.f32 -0.28449672, %v5232_v13  ;;  %vm4785_vm10 = vweird.f32 %v11973_v57 }
 0x3a7   : > { %v4789_v8 = vand.u32 2147483647, %v11973_v57  ;;  %v12156_v3 = vadd.f32 %v3730_v58, %v11962_v5  ;;  %v5295_v46 = vmul.f32 %v5263_v52, %v11959_v41  ;;  %v5201_v4 = vadd.f32 1.4214138, %v5169_v9  ;;  %vm12161_vm12 = vmor %vm4785_vm10, %vm4786_vm11 }
 0x3a8   : > { %v12165_v39 = vadd.f32 1.0, %v4565_v11  ;;  %v4566_v44 = vmul.f32 0.3275911, %v12134_v20  ;;  %v4788_v57 = vsel %vm12161_vm12, %v12033_v0, %v4784_v12  ;;  %v4799_v5 = vadd.f32 %v12061_v10, %v4798_v28 }
 0x3a9   : > { %14557 = vst [vmem:[#allocation85_spill] sm:$0xff] %v12156_v3  ;;  %vm4801_vm13 = vweird.f32 %v12061_v10  ;;  %v4567_v52 = vmul.f32 0.3275911, %v12139_v55  ;;  %v4792_v13 = vor.u32 1.1754944e-38, %v4791_v2  ;;  %v4806_v9 = vand.u32 2147483648, %v11998_v42 }
 0x3aa   : > { %v4812_v58 = vsub.f32 1.0, %v4811_v19  ;;  %v12177_v11 = vadd.f32 %v11690_v6, %v14560_v43  ;;  %v5467_v48 = vmul.f32 1.442695, %v5425_v30  ;;  %vm4790_vm14 = vcmp.eq.f32.partialorder %v4789_v8, 8.507059e+37 }
 0x3ab   : > { %vm4800_vm6 = vweird.f32 %v11998_v42  ;;  %v4804_v0 = vand.u32 2147483647, %v11998_v42  ;;  %v12183_v12 = vpop.eup %6818  ;;  %vm4465_vm15 = vcmp.ge.f32.partialorder %v11782_v16, 0.0  ;;  %v12186_v28 = vsel %vm4790_vm14, %v4792_v13, %v4788_v57 }
 0x3ac   : > { %vm12188_vm0 = vmor %vm4800_vm6, %vm4801_vm13  ;;  %6820 = vrcp.f32 %v12165_v39  ;;  %v12193_v43 = vadd.f32 1.0, %v4566_v44  ;;  %v5327_v30 = vadd.f32 0.2548296, %v5295_v46  ;;  %v5296_v8 = vmul.f32 %v5264_v15, %v11995_v49 }
 0x3ad   : > { %v4803_v42 = vsel %vm12188_vm0, %v12061_v10, %v4799_v5  ;;  %v12199_v19 = vadd.f32 1.0, %v4567_v52  ;;  %v5233_v16 = vmul.f32 %v5201_v4, %v12055_v31  ;;  %v4807_v36 = vor.u32 1.1754944e-38, %v4806_v9 }
 0x3ae   : > { %v4813_v57 = vmul.f32 %v12123_v33, %v4812_v58  ;;  %v12204_v13 = vmul.f32 0.70710677, %v12177_v11  ;;  %v12207_v44 = vsel %vm4465_vm15, 1.0, %v14469_v60  ;;  %6822 = vpow2.f32 %v5467_v48 }
 0x3af   : > { %v5106_v15 = vmul.f32 1.0614054, %v12186_v28  ;;  %vm4805_vm2 = vcmp.eq.f32.partialorder %v4804_v0, 8.507059e+37  ;;  %v5394_v46 = vsub.f32 0.0, %v11911_v27  ;;  %6824 = vrcp.f32 %v12193_v43 }
 0x3b0   : > { %v12211_v10 = vsel %vm4805_vm2, %v4807_v36, %v4803_v42  ;;  %v5674_v4 = vadd.f32 %v5673_v32, %v11868_v7  ;;  %v5359_v5 = vmul.f32 %v5327_v30, %v11959_v41  ;;  %v5328_v52 = vadd.f32 0.2548296, %v5296_v8  ;;  %v14565_v8 = vld [vmem:[#allocation5_spill] sm:$0xff] }
 0x3b1   : > { %vm4466_vm3 = vcmp.ge.f32.partialorder %v11886_v51, 0.0  ;;  %6826 = vrcp.f32 %v12199_v19  ;;  %v5265_v48 = vadd.f32 -0.28449672, %v5233_v16  ;;  %v4814_v58 = vadd.f32 %v12123_v33, %v4813_v57  ;;  %v4227_v57 = vpop.permute.xlu1 %4226 }
 0x3b2   : > { %v12218_v9 = vpop.eup %6820  ;;  %vm4816_vm4 = vweird.f32 %v12123_v33  ;;  %v12223_v0 = vand.u32 2147483647, %v12204_v13  ;;  %v5138_v2 = vadd.f32 -1.4531521, %v5106_v15  ;;  %v5107_v32 = vmul.f32 1.0614054, %v12211_v10 }
 0x3b3   : > { %v4821_v41 = vand.u32 2147483648, %v12059_v61  ;;  %v12228_v30 = vadd.f32 %v5674_v4, %v12025_v21  ;;  %v12231_v42 = vmul.f32 0.5, %v14565_v8  ;;  %v5426_v16 = vmul.f32 %v5394_v46, %v11911_v27  ;;  %v14568_v46 = vld [vmem:[#allocation50_spill] sm:$0xff] }
 0x3b4   : > { %vm4815_vm5 = vweird.f32 %v12059_v61  ;;  %v4819_v36 = vand.u32 2147483647, %v12059_v61  ;;  %v6823_v7 = vpop.eup %6822  ;;  %v5519_v15 = vmul.f32 %v12147_v29, %v5359_v5  ;;  %v12240_v62 = vsel %vm4466_vm3, 1.0, %v14469_v60 }
 0x3b5   : > { %14564 = vst [vmem:[#allocation28_spill] sm:$0xff] %v12228_v30  ;;  %vm12242_vm7 = vmor %vm4815_vm5, %vm4816_vm4  ;;  %v4826_v27 = vmul.f32 %v12218_v9, %v12165_v39  ;;  %v4280_v8 = vmul.f32 %v4227_v57, %v14568_v46  ;;  %v12249_v21 = vpop.eup %6824  ;;  %v5360_v61 = vmul.f32 %v5328_v52, %v11995_v49  ;;  %v5297_v29 = vmul.f32 %v5265_v48, %v12055_v31  ;;  %v14570_v49 = vld [vmem:[#allocation39_spill] sm:$0xff] }
 0x3b6   : > { %v4818_v51 = vsel %vm12242_vm7, %v12123_v33, %v4814_v58  ;;  %v4568_v5 = vmul.f32 0.3275911, %v12223_v0  ;;  %v5170_v3 = vmul.f32 %v5138_v2, %v12186_v28  ;;  %v5139_v1 = vadd.f32 -1.4531521, %v5107_v32 }
 0x3b7   : > { %v12257_v30 = vpop.eup %6826  ;;  %v4822_v26 = vor.u32 1.1754944e-38, %v4821_v41  ;;  %v4317_v57 = vmul.f32 %v11727_v37, %v4280_v8  ;;  %v5469_v46 = vmul.f32 1.442695, %v5426_v16  ;;  %vm4467_vm8 = vcmp.ge.f32.partialorder %v14569_v24, 0.0 }
 0x3b8   : > { %vm4820_vm9 = vcmp.eq.f32.partialorder %v4819_v36, 8.507059e+37  ;;  %v12264_v52 = vadd.f32 %v11690_v6, %v14570_v49  ;;  %v5551_v48 = vsub.f32 1.0, %v5519_v15  ;;  %v4827_v58 = vsub.f32 1.0, %v4826_v27 }
 0x3b9   : > { %v12266_v33 = vsel %vm4820_vm9, %v4822_v26, %v4818_v51  ;;  %v12269_v4 = vadd.f32 %v4317_v57, %v12127_v50  ;;  %v5520_v2 = vmul.f32 %v12183_v12, %v5360_v61  ;;  %v4841_v37 = vmul.f32 %v12249_v21, %v12193_v43  ;;  %v14572_v26 = vld [vmem:[#allocation95_spill] sm:$0xff] }
 0x3ba   : > { %v4856_v32 = vmul.f32 %v12257_v30, %v12199_v19  ;;  %v12276_v41 = vadd.f32 1.0, %v4568_v5  ;;  %v5329_v16 = vadd.f32 0.2548296, %v5297_v29  ;;  %v5202_v36 = vadd.f32 1.4214138, %v5170_v3  ;;  %v14574_v50 = vld [vmem:[#allocation111_spill] sm:$0xff] }
 0x3bb   : > { %14571 = vst [vmem:[#allocation3_spill] sm:$0xff] %v12269_v4  ;;  %v5171_v15 = vmul.f32 %v5139_v1, %v12211_v10  ;;  %v12281_v27 = vadd.f32 %v11690_v6, %v14572_v26  ;;  %v12284_v8 = vmul.f32 0.5, %v14574_v50  ;;  %v12289_v12 = vsel %vm4467_vm8, 1.0, %v14469_v60 }
 0x3bc   : > { %v5108_v61 = vmul.f32 1.0614054, %v12266_v33  ;;  %v12293_v51 = vmul.f32 0.70710677, %v12264_v52  ;;  %v5583_v3 = vmul.f32 %v5551_v48, %v12089_v63  ;;  %v5395_v1 = vsub.f32 0.0, %v11941_v17 }
 0x3bd   : > { %14573 = vst [vmem:[#allocation52_spill] sm:$0xff] %v12281_v27  ;;  %v12298_v29 = vmul.f32 0.5, %v11945_v54  ;;  %v4828_v5 = vmul.f32 %v12218_v9, %v4827_v58  ;;  %v5552_v57 = vsub.f32 1.0, %v5520_v2  ;;  %v4842_v49 = vsub.f32 1.0, %v4841_v37 }
 0x3be   : > { %14575 = vst [vmem:[#allocation23_spill] sm:$0xff] %v12293_v51  ;;  %v4857_v26 = vsub.f32 1.0, %v4856_v32  ;;  %6828 = vrcp.f32 %v12276_v41  ;;  %v5361_v24 = vmul.f32 %v5329_v16, %v12055_v31  ;;  %v5234_v50 = vmul.f32 %v5202_v36, %v12186_v28 }
 0x3bf   : > { %v5203_v4 = vadd.f32 1.4214138, %v5171_v15  ;;  %v12305_v35 = vmul.f32 0.70710677, %v12281_v27  ;;  %6830 = vpow2.f32 %v5469_v46  ;;  %v5140_v63 = vadd.f32 -1.4531521, %v5108_v61 }
 0x3c0   : > { %v4834_v54 = vand.u32 2147483647, %v12165_v39  ;;  %v12309_v48 = vand.u32 2147483647, %v12293_v51  ;;  %v12311_v58 = vadd.f32 1.0, %v5583_v3  ;;  %v4829_v2 = vadd.f32 %v12218_v9, %v4828_v5 }
 0x3c1   : > { %14576 = vst [vmem:[#allocation130_spill] sm:$0xff] %v12305_v35  ;;  %vm4831_vm11 = vweird.f32 %v12218_v9  ;;  %v4836_v31 = vand.u32 2147483648, %v12165_v39  ;;  %v5584_v37 = vmul.f32 %v5552_v57, %v12095_v22  ;;  %v5427_v32 = vmul.f32 %v5395_v1, %v11941_v17 }
 0x3c2   : > { %14577 = vst [vmem:[#allocation123_spill] sm:$0xff] %v12309_v48  ;;  %v4843_v46 = vmul.f32 %v12249_v21, %v4842_v49  ;;  %v4858_v16 = vmul.f32 %v12257_v30, %v4857_v26  ;;  %v5521_v36 = vmul.f32 %v6823_v7, %v5361_v24  ;;  %v5266_v15 = vadd.f32 -0.28449672, %v5234_v50 }
 0x3c3   : > { %vm4830_vm10 = vweird.f32 %v12165_v39  ;;  %v12322_v61 = vand.u32 2147483647, %v12305_v35  ;;  %v5235_v5 = vmul.f32 %v5203_v4, %v12211_v10  ;;  %v5172_v27 = vmul.f32 %v5140_v63, %v12266_v33 }
 0x3c4   : > { %v12324_v3 = vpop.eup %6828  ;;  %vm12328_vm12 = vmor %vm4830_vm10, %vm4831_vm11  ;;  %vm12332_vm13 = vcmp.eq.f32.partialorder %v4834_v54, 8.507059e+37  ;;  %v4569_v7 = vmul.f32 0.3275911, %v12309_v48  ;;  %vm4468_vm14 = vcmp.ge.f32.partialorder %v11985_v34, 0.0  ;;  %v4837_v1 = vor.u32 1.1754944e-38, %v4836_v31 }
 0x3c5   : > { %14578 = vst [vmem:[#allocation30_spill] sm:$0xff] %v12322_v61  ;;  %v4833_v39 = vsel %vm12328_vm12, %v12218_v9, %v4829_v2  ;;  %vm4845_vm6 = vweird.f32 %v12193_v43  ;;  %vm4846_vm15 = vweird.f32 %v12249_v21  ;;  %v12343_v4 = vpop.eup %6830  ;;  %v4844_v57 = vadd.f32 %v12249_v21, %v4843_v46 }
 0x3c6   : > { %v4851_v49 = vand.u32 2147483648, %v12193_v43  ;;  %v4859_v26 = vadd.f32 %v12257_v30, %v4858_v16  ;;  %vm4861_vm0 = vweird.f32 %v12257_v30  ;;  %v4849_v24 = vand.u32 2147483647, %v12193_v43  ;;  %vm12358_vm2 = vmor %vm4845_vm6, %vm4846_vm15 }
 0x3c7   : > { %v4866_v50 = vand.u32 2147483648, %v12199_v19  ;;  %v4871_v9 = vmul.f32 %v12324_v3, %v12276_v41  ;;  %v4570_v63 = vmul.f32 0.3275911, %v12322_v61  ;;  %v12356_v54 = vsel %vm12332_vm13, %v4837_v1, %v4833_v39 }
 0x3c8   : > { %vm4860_vm3 = vweird.f32 %v12199_v19  ;;  %v4864_v31 = vand.u32 2147483647, %v12199_v19  ;;  %v12364_v43 = vadd.f32 1.0, %v4569_v7  ;;  %v5553_v46 = vsub.f32 1.0, %v5521_v36 }
 0x3c9   : > { %v5298_v16 = vmul.f32 %v5266_v15, %v12186_v28  ;;  %v5267_v22 = vadd.f32 -0.28449672, %v5235_v5  ;;  %v5396_v35 = vsub.f32 0.0, %v12005_v53  ;;  %vm12368_vm4 = vmor %vm4860_vm3, %vm4861_vm0  ;;  %v5204_v39 = vadd.f32 1.4214138, %v5172_v27 }
 0x3ca   : > { %v4848_v1 = vsel %vm12358_vm2, %v12249_v21, %v4844_v57  ;;  %v4852_v51 = vor.u32 1.1754944e-38, %v4851_v49  ;;  %v4863_v19 = vsel %vm12368_vm4, %v12257_v30, %v4859_v26  ;;  %v5109_v36 = vmul.f32 1.0614054, %v12356_v54  ;;  %v14587_v57 = vld [vmem:[#allocation117_spill] sm:$0xff] }
 0x3cb   : > { %v4867_v15 = vor.u32 1.1754944e-38, %v4866_v50  ;;  %v4872_v5 = vsub.f32 1.0, %v4871_v9  ;;  %v12379_v7 = vadd.f32 1.0, %v4570_v63  ;;  %v5471_v61 = vmul.f32 1.442695, %v5427_v32 }
 0x3cc   : > { %vm4850_vm5 = vcmp.eq.f32.partialorder %v4849_v24, 8.507059e+37  ;;  %vm4865_vm7 = vcmp.eq.f32.partialorder %v4864_v31, 8.507059e+37  ;;  %6832 = vrcp.f32 %v12364_v43  ;;  %v5616_v27 = vadd.f32 1.0, %v5584_v37  ;;  %v14588_v31 = vld [vmem:[#allocation33_spill] sm:$0xff] }
 0x3cd   : > { %v12382_v48 = vsel %vm4850_vm5, %v4852_v51, %v4848_v1  ;;  %v12384_v21 = vsel %vm4865_vm7, %v4867_v15, %v4863_v19  ;;  %v12388_v49 = vadd.f32 %v11690_v6, %v14587_v57  ;;  %v5585_v30 = vmul.f32 %v5553_v46, %v12207_v44 }
 0x3ce   : > { %v5330_v26 = vadd.f32 0.2548296, %v5298_v16  ;;  %v5236_v50 = vmul.f32 %v5204_v39, %v12266_v33  ;;  %v5428_v32 = vmul.f32 %v5396_v35, %v12005_v53  ;;  %v5299_v24 = vmul.f32 %v5267_v22, %v12211_v10 }
 0x3cf   : > { %v5141_v9 = vadd.f32 -1.4531521, %v5109_v36  ;;  %v4873_v37 = vmul.f32 %v12324_v3, %v4872_v5  ;;  %6834 = vrcp.f32 %v12379_v7  ;;  %v12398_v51 = vmul.f32 %v12311_v58, %v12064_v25 }
 0x3d0   : > { %v12403_v44 = vsel %vm4468_vm14, 1.0, %v14469_v60  ;;  %v5110_v63 = vmul.f32 1.0614054, %v12382_v48  ;;  %v5111_v35 = vmul.f32 1.0614054, %v12384_v21  ;;  %v12408_v53 = vmul.f32 %v5616_v27, %v12092_v18 }
 0x3d1   : > { %6836 = vpow2.f32 %v5471_v61  ;;  %v12411_v2 = vmul.f32 0.70710677, %v12388_v49  ;;  %v12415_v25 = vadd.f32 %v11690_v6, %v14588_v31  ;;  %v5617_v34 = vadd.f32 1.0, %v5585_v30 }
 0x3d2   : > { %v12417_v58 = vpop.eup %6832  ;;  %v5362_v46 = vmul.f32 %v5330_v26, %v12186_v28  ;;  %v5268_v16 = vadd.f32 -0.28449672, %v5236_v50  ;;  %v5473_v22 = vmul.f32 1.442695, %v5428_v32  ;;  %v5331_v17 = vadd.f32 0.2548296, %v5299_v24 }
 0x3d3   : > { %v5173_v39 = vmul.f32 %v5141_v9, %v12356_v54  ;;  %v4874_v18 = vadd.f32 %v12324_v3, %v4873_v37  ;;  %vm4876_vm8 = vweird.f32 %v12324_v3  ;;  %v5142_v61 = vadd.f32 -1.4531521, %v5110_v63 }
 0x3d4   : > { %v5143_v1 = vadd.f32 -1.4531521, %v5111_v35  ;;  %vm4875_vm9 = vweird.f32 %v12276_v41  ;;  %v4881_v6 = vand.u32 2147483648, %v12276_v41  ;;  %v4879_v36 = vand.u32 2147483647, %v12276_v41 }
 0x3d5   : > { %v12425_v19 = vpop.eup %6834  ;;  %v4886_v28 = vmul.f32 %v12417_v58, %v12364_v43  ;;  %v12431_v15 = vand.u32 2147483647, %v12411_v2  ;;  %v12434_v5 = vmul.f32 0.70710677, %v12415_v25  ;;  %v12437_v27 = vmul.f32 %v5617_v34, %v12119_v38  ;;  %vm12441_vm11 = vmor %vm4875_vm9, %vm4876_vm8 }
 0x3d6   : > { %v5522_v57 = vmul.f32 %v12343_v4, %v5362_v46  ;;  %v5300_v30 = vmul.f32 %v5268_v16, %v12266_v33  ;;  %6838 = vpow2.f32 %v5473_v22  ;;  %v5363_v50 = vmul.f32 %v5331_v17, %v12211_v10 }
 0x3d7   : > { %v6837_v41 = vpop.eup %6836  ;;  %v5205_v32 = vadd.f32 1.4214138, %v5173_v39  ;;  %v5397_v24 = vsub.f32 0.0, %v12103_v59  ;;  %v4878_v38 = vsel %vm12441_vm11, %v12324_v3, %v4874_v18  ;;  %v5174_v9 = vmul.f32 %v5142_v61, %v12382_v48 }
 0x3d8   : > { %v5175_v4 = vmul.f32 %v5143_v1, %v12384_v21  ;;  %v4882_v37 = vor.u32 1.1754944e-38, %v4881_v6  ;;  %v4901_v63 = vmul.f32 %v12425_v19, %v12379_v7  ;;  %vm4880_vm10 = vcmp.eq.f32.partialorder %v4879_v36, 8.507059e+37 }
 0x3d9   : > { %v4887_v35 = vsub.f32 1.0, %v4886_v28  ;;  %v4571_v31 = vmul.f32 0.3275911, %v12431_v15  ;;  %v12456_v10 = vand.u32 2147483647, %v12434_v5  ;;  %v5554_v34 = vsub.f32 1.0, %v5522_v57 }
 0x3da   : > { %v5332_v46 = vadd.f32 0.2548296, %v5300_v30  ;;  %v12459_v16 = vmul.f32 0.5, %v12048_v40  ;;  %v12461_v3 = vsel %vm4880_vm10, %v4882_v37, %v4878_v38  ;;  %v12463_v22 = vmul.f32 %v6837_v41, %v5363_v50  ;;  %v14591_v38 = vld [vmem:[#allocation47_spill] sm:$0xff] }
 0x3db   : > { %vm4469_vm12 = vcmp.ge.f32.partialorder %v12073_v56, 0.0  ;;  %v5237_v17 = vmul.f32 %v5205_v32, %v12356_v54  ;;  %v5429_v39 = vmul.f32 %v5397_v24, %v12103_v59  ;;  %v12469_v61 = vmul.f32 0.5, %v12077_v23  ;;  %v12486_v24 = vld [vmem:[%s13560_s5] ss:$0 sm:$0xff] }
 0x3dc   : > { %v6839_v18 = vpop.eup %6838  ;;  %v5206_v1 = vadd.f32 1.4214138, %v5174_v9  ;;  %v5207_v6 = vadd.f32 1.4214138, %v5175_v4  ;;  %v4902_v36 = vsub.f32 1.0, %v4901_v63  ;;  %v4888_v28 = vmul.f32 %v12417_v58, %v4887_v35 }
 0x3dd   : > { %v5112_v40 = vmul.f32 1.0614054, %v12461_v3  ;;  %v12473_v57 = vadd.f32 1.0, %v4571_v31  ;;  %v4572_v30 = vmul.f32 0.3275911, %v12456_v10  ;;  %v5586_v56 = vmul.f32 %v5554_v34, %v12240_v62 }
 0x3de   : > { %v5364_v26 = vmul.f32 %v5332_v46, %v12266_v33  ;;  %v12479_v59 = vsel %vm4469_vm12, 1.0, %v14469_v60  ;;  %v5398_v23 = vsub.f32 0.0, %v12134_v20  ;;  %v5555_v41 = vsub.f32 1.0, %v12463_v22 }
 0x3df   : > { %v5269_v50 = vadd.f32 -0.28449672, %v5237_v17  ;;  %v5475_v32 = vmul.f32 1.442695, %v5429_v39  ;;  %v12490_v9 = vadd.f32 %v12486_v24, %v14591_v38  ;;  %v5238_v62 = vmul.f32 %v5206_v1, %v12382_v48 }
 0x3e0   : > { %v5239_v33 = vmul.f32 %v5207_v6, %v12384_v21  ;;  %vm4891_vm13 = vweird.f32 %v12417_v58  ;;  %v4903_v4 = vmul.f32 %v12425_v19, %v4902_v36  ;;  %vm4470_vm14 = vcmp.ge.f32.partialorder %v12106_v47, 0.0 }
 0x3e1   : > { %v5144_v37 = vadd.f32 -1.4531521, %v5112_v40  ;;  %v4889_v63 = vadd.f32 %v12417_v58, %v4888_v28  ;;  %6840 = vrcp.f32 %v12473_v57  ;;  %v12499_v35 = vadd.f32 1.0, %v4572_v30 }
 0x3e2   : > { %v5524_v31 = vmul.f32 %v6839_v18, %v5364_v26  ;;  %v5430_v34 = vmul.f32 %v5398_v23, %v12134_v20  ;;  %v5399_v46 = vsub.f32 0.0, %v12139_v55  ;;  %v4896_v22 = vand.u32 2147483648, %v12364_v43 }
 0x3e3   : > { %v5301_v17 = vmul.f32 %v5269_v50, %v12356_v54  ;;  %vm4890_vm6 = vweird.f32 %v12364_v43  ;;  %v4894_v39 = vand.u32 2147483647, %v12364_v43  ;;  %v12508_v1 = vmul.f32 0.70710677, %v12490_v9 }
 0x3e4   : > { %v5270_v6 = vadd.f32 -0.28449672, %v5238_v62  ;;  %v5271_v36 = vadd.f32 -0.28449672, %v5239_v33  ;;  %vm12512_vm15 = vmor %vm4890_vm6, %vm4891_vm13  ;;  %v4904_v20 = vadd.f32 %v12425_v19, %v4903_v4  ;;  %vm4906_vm0 = vweird.f32 %v12425_v19  ;;  %v12566_v62 = vpop.permute.xlu2 %3364 }
 0x3e5   : > { %v5176_v40 = vmul.f32 %v5144_v37, %v12461_v3  ;;  %v4893_v43 = vsel %vm12512_vm15, %v12417_v58, %v4889_v63  ;;  %v4911_v28 = vand.u32 2147483648, %v12379_v7  ;;  %6842 = vrcp.f32 %v12499_v35 }
 0x3e6   : > { %v5431_v30 = vmul.f32 %v5399_v46, %v12139_v55  ;;  %v4897_v26 = vor.u32 1.1754944e-38, %v4896_v22  ;;  %vm4905_vm2 = vweird.f32 %v12379_v7  ;;  %v4909_v23 = vand.u32 2147483647, %v12379_v7 }
 0x3e7   : > { %v12527_v50 = vpop.eup %6840  ;;  %v5333_v38 = vadd.f32 0.2548296, %v5301_v17  ;;  %6844 = vpow2.f32 %v5475_v32  ;;  %vm4895_vm3 = vcmp.eq.f32.partialorder %v4894_v39, 8.507059e+37  ;;  %vm12529_vm4 = vmor %vm4905_vm2, %vm4906_vm0  ;;  %v12534_v58 = vand.u32 2147483647, %v12508_v1 }
 0x3e8   : > { %v5556_v33 = vsub.f32 1.0, %v5524_v31  ;;  %v5477_v4 = vmul.f32 1.442695, %v5430_v34  ;;  %v12536_v55 = vsel %vm4895_vm3, %v4897_v26, %v4893_v43  ;;  %v4908_v7 = vsel %vm12529_vm4, %v12425_v19, %v4904_v20 }
 0x3e9   : > { %v5302_v37 = vmul.f32 %v5270_v6, %v12382_v48  ;;  %v5303_v32 = vmul.f32 %v5271_v36, %v12384_v21  ;;  %v5208_v63 = vadd.f32 1.4214138, %v5176_v40  ;;  %v4912_v46 = vor.u32 1.1754944e-38, %v4911_v28 }
 0x3ea   : > { %v5587_v22 = vmul.f32 %v5555_v41, %v12289_v12  ;;  %v5479_v17 = vmul.f32 1.442695, %v5431_v30  ;;  %vm4910_vm5 = vcmp.eq.f32.partialorder %v4909_v23, 8.507059e+37  ;;  %v4916_v31 = vmul.f32 %v12527_v50, %v12473_v57 }
 0x3eb   : > { %v12546_v34 = vpop.eup %6842  ;;  %v5365_v39 = vmul.f32 %v5333_v38, %v12356_v54  ;;  %v5113_v18 = vmul.f32 1.0614054, %v12536_v55  ;;  %v12550_v19 = vsel %vm4910_vm5, %v4912_v46, %v4908_v7  ;;  %v4573_v6 = vmul.f32 0.3275911, %v12534_v58 }
 0x3ec   : > { %v5618_v36 = vadd.f32 1.0, %v5586_v56  ;;  %v5588_v20 = vmul.f32 %v5556_v33, %v12403_v44  ;;  %v12557_v12 = vsel %vm4470_vm14, 1.0, %v14469_v60  ;;  %v5400_v41 = vsub.f32 0.0, %v12223_v0 }
 0x3ed   : > { %v6845_v40 = vpop.eup %6844  ;;  %v5334_v43 = vadd.f32 0.2548296, %v5302_v37  ;;  %6846 = vpow2.f32 %v5477_v4  ;;  %v5335_v54 = vadd.f32 0.2548296, %v5303_v32  ;;  %v5240_v28 = vmul.f32 %v5208_v63, %v12461_v3 }
 0x3ee   : > { %6848 = vpow2.f32 %v5479_v17  ;;  %v5114_v30 = vmul.f32 1.0614054, %v12550_v19  ;;  %v4917_v26 = vsub.f32 1.0, %v4916_v31  ;;  %v4931_v44 = vmul.f32 %v12546_v34, %v12499_v35 }
 0x3ef   : > { %v5619_v56 = vadd.f32 1.0, %v5587_v22  ;;  %v5525_v23 = vmul.f32 %v6845_v40, %v5365_v39  ;;  %v5145_v47 = vadd.f32 -1.4531521, %v5113_v18  ;;  %v12564_v38 = vadd.f32 1.0, %v4573_v6 }
 0x3f0   : > { %v12569_v33 = vmul.f32 %v5618_v36, %v12231_v42  ;;  %v5620_v4 = vadd.f32 1.0, %v5588_v20  ;;  %v12572_v7 = vmul.f32 0.5, %v12084_v45  ;;  %v5432_v37 = vmul.f32 %v5400_v41, %v12223_v0 }
 0x3f1   : > { %v5366_v32 = vmul.f32 %v5334_v43, %v12382_v48  ;;  %vm4471_vm7 = vcmp.ge.f32.partialorder %v12110_v14, 0.0  ;;  %v5367_v63 = vmul.f32 %v5335_v54, %v12384_v21  ;;  %v5272_v46 = vadd.f32 -0.28449672, %v5240_v28 }
 0x3f2   : > { %vm4472_vm8 = vcmp.ge.f32.partialorder %v12204_v13, 0.0  ;;  %v5146_v22 = vadd.f32 -1.4531521, %v5114_v30  ;;  %v4918_v17 = vmul.f32 %v12527_v50, %v4917_v26  ;;  %v4932_v42 = vsub.f32 1.0, %v4931_v44  ;;  %v14598_v30 = vld [vmem:[#allocation123_spill] sm:$0xff] }
 0x3f3   : > { %v6847_v31 = vpop.eup %6846  ;;  %v12581_v39 = vmul.f32 %v5619_v56, %v12284_v8  ;;  %v5557_v45 = vsub.f32 1.0, %v5525_v23  ;;  %v5177_v0 = vmul.f32 %v5145_v47, %v12536_v55  ;;  %6850 = vrcp.f32 %v12564_v38 }
 0x3f4   : > { %v6849_v48 = vpop.eup %6848  ;;  %v12586_v14 = vmul.f32 %v5620_v4, %v12298_v29  ;;  %v4503_v21 = vsel %vm4471_vm7, 1.0, %v14469_v60  ;;  %v12590_v18 = vmul.f32 0.5, %v12177_v11  ;;  %v5481_v6 = vmul.f32 1.442695, %v5432_v37  ;;  %v14599_v37 = vld [vmem:[#allocation30_spill] sm:$0xff] }
 0x3f5   : > { %14596 = vst [vmem:[#allocation71_spill] sm:$0xff] %v12581_v39  ;;  %v5526_v36 = vmul.f32 %v6847_v31, %v5366_v32  ;;  %v5527_v20 = vmul.f32 %v6849_v48, %v5367_v63  ;;  %v12595_v8 = vsel %vm4472_vm8, 1.0, %v14469_v60  ;;  %v5304_v41 = vmul.f32 %v5272_v46, %v12461_v3  ;;  %v12619_v32 = vpop.permute.xlu2 %4231 }
 0x3f6   : > { %14597 = vst [vmem:[#allocation82_spill] sm:$0xff] %v12586_v14  ;;  %v5178_v40 = vmul.f32 %v5146_v22, %v12550_v19  ;;  %v4919_v29 = vadd.f32 %v12527_v50, %v4918_v17  ;;  %vm4921_vm9 = vweird.f32 %v12527_v50  ;;  %v4933_v43 = vmul.f32 %v12546_v34, %v4932_v42  ;;  %v12626_v22 = vpop.permute.xlu0 %3006 }
 0x3f7   : > { %v5589_v11 = vmul.f32 %v5557_v45, %v12479_v59  ;;  %v12604_v54 = vmul.f32 0.5, %v12264_v52  ;;  %v5209_v28 = vadd.f32 1.4214138, %v5177_v0  ;;  %v4926_v13 = vand.u32 2147483648, %v12473_v57  ;;  %v14602_v45 = vld [vmem:[#allocation76_spill] sm:$0xff] }
 0x3f8   : > { %6852 = vpow2.f32 %v5481_v6  ;;  %v5401_v26 = vsub.f32 0.0, %v14598_v30  ;;  %vm4920_vm11 = vweird.f32 %v12473_v57  ;;  %v4924_v44 = vand.u32 2147483647, %v12473_v57 }
 0x3f9   : > { %v12610_v56 = vpop.eup %6850  ;;  %v5558_v23 = vsub.f32 1.0, %v5526_v36  ;;  %v5559_v47 = vsub.f32 1.0, %v5527_v20  ;;  %v5336_v4 = vadd.f32 0.2548296, %v5304_v41  ;;  %v5402_v59 = vsub.f32 0.0, %v14599_v37  ;;  %vm12615_vm10 = vmor %vm4920_vm11, %vm4921_vm9  ;;  %v14603_v36 = vld [vmem:[#allocation23_spill] sm:$0xff] }
 0x3fa   : > { %v5210_v63 = vadd.f32 1.4214138, %v5178_v40  ;;  %v4923_v57 = vsel %vm12615_vm10, %v12527_v50, %v4919_v29  ;;  %v4934_v46 = vadd.f32 %v12546_v34, %v4933_v43  ;;  %vm4936_vm12 = vweird.f32 %v12546_v34  ;;  %v12679_v40 = vpop.permute.xlu1 %3942 }
 0x3fb   : > { %v5241_v17 = vmul.f32 %v5209_v28, %v12536_v55  ;;  %v4927_v42 = vor.u32 1.1754944e-38, %v4926_v13  ;;  %v4941_v31 = vand.u32 2147483648, %v12499_v35  ;;  %v12632_v0 = vadd.f32 %v12486_v24, %v14602_v45 }
 0x3fc   : > { %vm4925_vm13 = vcmp.eq.f32.partialorder %v4924_v44, 8.507059e+37  ;;  %vm4935_vm14 = vweird.f32 %v12499_v35  ;;  %v4939_v50 = vand.u32 2147483647, %v12499_v35  ;;  %v4946_v48 = vmul.f32 %v12610_v56, %v12564_v38 }
 0x3fd   : > { %v5590_v6 = vmul.f32 %v5558_v23, %v12557_v12  ;;  %vm4473_vm6 = vcmp.ge.f32.partialorder %v14603_v36, 0.0  ;;  %v5433_v20 = vmul.f32 %v5401_v26, %v14598_v30  ;;  %v12641_v41 = vsel %vm4925_vm13, %v4927_v42, %v4923_v57  ;;  %vm12643_vm15 = vmor %vm4935_vm14, %vm4936_vm12  ;;  %v12672_v45 = vpop.permute.xlu2 %3947 }
 0x3fe   : > { %v6853_v29 = vpop.eup %6852  ;;  %v5591_v43 = vmul.f32 %v5559_v47, %v4503_v21  ;;  %v5242_v28 = vmul.f32 %v5210_v63, %v12550_v19  ;;  %v5434_v35 = vmul.f32 %v5402_v59, %v14599_v37  ;;  %v4938_v12 = vsel %vm12643_vm15, %v12546_v34, %v4934_v46 }
 0x3ff   : > { %v5368_v13 = vmul.f32 %v5336_v4, %v12461_v3  ;;  %v5273_v44 = vadd.f32 -0.28449672, %v5241_v17  ;;  %v4942_v30 = vor.u32 1.1754944e-38, %v4941_v31  ;;  %v12654_v26 = vmul.f32 0.70710677, %v12632_v0  ;;  %v14606_v4 = vld [vmem:[#allocation130_spill] sm:$0xff] }
 0x400   : > { %v5621_v23 = vadd.f32 1.0, %v5589_v11  ;;  %v5115_v52 = vmul.f32 1.0614054, %v12641_v41  ;;  %vm4940_vm0 = vcmp.eq.f32.partialorder %v4939_v50, 8.507059e+37  ;;  %v4947_v21 = vsub.f32 1.0, %v4946_v48  ;;  %v14607_v17 = vld [vmem:[#allocation52_spill] sm:$0xff] }
 0x401   : > { %v5622_v47 = vadd.f32 1.0, %v5590_v6  ;;  %v12660_v37 = vsel %vm4473_vm6, 1.0, %v14469_v60  ;;  %v5483_v59 = vmul.f32 1.442695, %v5433_v20  ;;  %v12662_v34 = vsel %vm4940_vm0, %v4942_v30, %v4938_v12  ;;  %v3938_v20 = vpop.permute.xlu0 %3937 }
 0x402   : > { %v5623_v3 = vadd.f32 1.0, %v5591_v43  ;;  %vm4474_vm2 = vcmp.ge.f32.partialorder %v14606_v4, 0.0  ;;  %v5274_v63 = vadd.f32 -0.28449672, %v5242_v28  ;;  %v5485_v57 = vmul.f32 1.442695, %v5434_v35 }
 0x403   : > { %v5528_v46 = vmul.f32 %v6853_v29, %v5368_v13  ;;  %v5305_v11 = vmul.f32 %v5273_v44, %v12536_v55  ;;  %v12667_v42 = vmul.f32 0.5, %v14607_v17  ;;  %v12670_v31 = vand.u32 2147483647, %v12654_v26  ;;  %v14610_v28 = vld [vmem:[#allocation73_spill] sm:$0xff] }
 0x404   : > { %v12675_v50 = vmul.f32 %v5621_v23, %v12459_v16  ;;  %v5147_v48 = vadd.f32 -1.4531521, %v5115_v52  ;;  %v5116_v6 = vmul.f32 1.0614054, %v12662_v34  ;;  %v4948_v36 = vmul.f32 %v12610_v56, %v4947_v21 }
 0x405   : > { %v12682_v29 = vmul.f32 %v5622_v47, %v12469_v61  ;;  %6854 = vpow2.f32 %v5483_v59  ;;  %v12687_v43 = vsel %vm4474_vm2, 1.0, %v14469_v60  ;;  %v12691_v16 = vadd.f32 %v12486_v24, %v14610_v28  ;;  %v14612_v59 = vld [vmem:[#allocation66_spill] sm:$0xff] }
 0x406   : > { %14608 = vst [vmem:[#allocation63_spill] sm:$0xff] %v12675_v50  ;;  %v12694_v35 = vmul.f32 %v5623_v3, %v12572_v7  ;;  %v5306_v12 = vmul.f32 %v5274_v63, %v12550_v19  ;;  %6856 = vpow2.f32 %v5485_v57  ;;  %v12698_v13 = vmul.f32 0.5, %v12388_v49 }
 0x407   : > { %14609 = vst [vmem:[#allocation55_spill] sm:$0xff] %v12682_v29  ;;  %v5560_v61 = vsub.f32 1.0, %v5528_v46  ;;  %v5337_v44 = vadd.f32 0.2548296, %v5305_v11  ;;  %vm4475_vm3 = vcmp.ge.f32.partialorder %v12411_v2, 0.0  ;;  %v5179_v23 = vmul.f32 %v5147_v48, %v12641_v41  ;;  %v14624_v29 = vld [vmem:[#allocation89_spill] sm:$0xff] }
 0x408   : > { %14611 = vst [vmem:[#allocation45_spill] sm:$0xff] %v12694_v35  ;;  %v4574_v30 = vmul.f32 0.3275911, %v12670_v31  ;;  %v5148_v52 = vadd.f32 -1.4531521, %v5116_v6  ;;  %v4949_v21 = vadd.f32 %v12610_v56, %v4948_v36  ;;  %vm4951_vm4 = vweird.f32 %v12610_v56 }
 0x409   : > { %v5403_v7 = vsub.f32 0.0, %v12431_v15  ;;  %v4956_v47 = vand.u32 2147483648, %v12564_v38  ;;  %v12708_v49 = vmul.f32 0.70710677, %v12691_v16  ;;  %v3987_v3 = vmul.f32 %v3938_v20, %v14612_v59  ;;  %v14616_v59 = vld [vmem:[#allocation8_spill] sm:$0xff] }
 0x40a   : > { %v5338_v4 = vadd.f32 0.2548296, %v5306_v12  ;;  %v12712_v63 = vmul.f32 0.5, %v12415_v25  ;;  %vm4950_vm5 = vweird.f32 %v12564_v38  ;;  %v4954_v57 = vand.u32 2147483647, %v12564_v38 }
 0x40b   : > { %v6855_v46 = vpop.eup %6854  ;;  %v5592_v11 = vmul.f32 %v5560_v61, %v12595_v8  ;;  %v12720_v17 = vsel %vm4475_vm3, 1.0, %v14469_v60  ;;  %vm4476_vm7 = vcmp.ge.f32.partialorder %v12434_v5, 0.0  ;;  %vm12723_vm8 = vmor %vm4950_vm5, %vm4951_vm4  ;;  %v12727_v25 = vadd.f32 1.0, %v4574_v30  ;;  %v3953_v61 = vpop.permute.xlu2 %3952 }
 0x40c   : > { %14613 = vst [vmem:[#allocation44_spill] sm:$0xff] %v12712_v63  ;;  %v6857_v6 = vpop.eup %6856  ;;  %v5369_v36 = vmul.f32 %v5337_v44, %v12536_v55  ;;  %v5211_v38 = vadd.f32 1.4214138, %v5179_v23  ;;  %v5180_v20 = vmul.f32 %v5148_v52, %v12662_v34  ;;  %v4953_v2 = vsel %vm12723_vm8, %v12610_v56, %v4949_v21  ;;  %v14617_v44 = vld [vmem:[#allocation109_spill] sm:$0xff]  ;;  %v12745_v52 = vpop.permute.xlu0 %3653  ;;  %v14619_v21 = vld [vmem:[#allocation110_spill] sm:$0xff] }
 0x40d   : > { %v5435_v8 = vmul.f32 %v5403_v7, %v12431_v15  ;;  %v4957_v28 = vor.u32 1.1754944e-38, %v4956_v47  ;;  %v12736_v12 = vand.u32 2147483647, %v12708_v49  ;;  %v4024_v30 = vmul.f32 %v14616_v59, %v3987_v3  ;;  %v3659_v56 = vpop.permute.xlu1 %3658  ;;  %v14620_v47 = vld [vmem:[#allocation101_spill] sm:$0xff] }
 0x40e   : > { %v5370_v35 = vmul.f32 %v5338_v4, %v12550_v19  ;;  %v5404_v55 = vsub.f32 0.0, %v12456_v10  ;;  %vm4955_vm9 = vcmp.eq.f32.partialorder %v4954_v57, 8.507059e+37  ;;  %v12743_v23 = vadd.f32 %v12486_v24, %v14617_v44  ;;  %v14621_v44 = vld [vmem:[#allocation3_spill] sm:$0xff] }
 0x40f   : > { %v12747_v15 = vsel %vm4955_vm9, %v4957_v28, %v4953_v2  ;;  %6858 = vrcp.f32 %v12727_v25  ;;  %v3402_v7 = vmul.f32 %v12566_v62, %v14619_v21  ;;  %v4281_v19 = vmul.f32 %v12619_v32, %v14620_v47  ;;  %v14623_v2 = vld [vmem:[#allocation85_spill] sm:$0xff] }
 0x410   : > { %14618 = vst [vmem:[#allocation31_spill] sm:$0xff] %v12743_v23  ;;  %v5624_v3 = vadd.f32 1.0, %v5592_v11  ;;  %v5529_v4 = vmul.f32 %v6855_v46, %v5369_v36  ;;  %v5243_v57 = vmul.f32 %v5211_v38, %v12641_v41  ;;  %v5212_v48 = vadd.f32 1.4214138, %v5180_v20  ;;  %v12775_v36 = vld [vmem:[%s13559_s4 + $0x5] ss:$0 sm:$0xff] }
 0x411   : > { %v4575_v59 = vmul.f32 0.3275911, %v12736_v12  ;;  %v12758_v63 = vadd.f32 %v12486_v24, %v14621_v44  ;;  %v4056_v28 = vadd.f32 %v4024_v30, %v14623_v2  ;;  %v3696_v50 = vmul.f32 %v3659_v56, %v14624_v29 }
 0x412   : > { %v5530_v14 = vmul.f32 %v6857_v6, %v5370_v35  ;;  %v5487_v62 = vmul.f32 1.442695, %v5435_v8  ;;  %v5117_v39 = vmul.f32 1.0614054, %v12747_v15  ;;  %v12764_v32 = vmul.f32 0.70710677, %v12743_v23 }
 0x413   : > { %14622 = vst [vmem:[#allocation121_spill] sm:$0xff] %v12758_v63  ;;  %v12769_v46 = vsel %vm4476_vm7, 1.0, %v14469_v60  ;;  %v5436_v11 = vmul.f32 %v5404_v55, %v12456_v10  ;;  %v3439_v29 = vmul.f32 %v12775_v36, %v3402_v7  ;;  %v12781_v35 = vld [vmem:[%s13559_s4 + $0x8] ss:$0 sm:$0xff]  ;;  %v12785_v5 = vmul.f32 %v5624_v3, %v12590_v18  ;;  %v14630_v23 = vld [vmem:[#allocation97_spill] sm:$0xff] }
 0x414   : > { %14625 = vst [vmem:[#allocation11_spill] sm:$0xff] %v12764_v32  ;;  %v4318_v6 = vmul.f32 %v12781_v35, %v4281_v19  ;;  %v5561_v38 = vsub.f32 1.0, %v5529_v4  ;;  %v5275_v20 = vadd.f32 -0.28449672, %v5243_v57  ;;  %v5244_v10 = vmul.f32 %v5212_v48, %v12662_v34  ;;  %v14628_v7 = vld [vmem:[#allocation67_spill] sm:$0xff]  ;;  %v14629_v57 = vld [vmem:[#allocation104_spill] sm:$0xff] }
 0x415   : > { %14626 = vst [vmem:[#allocation57_spill] sm:$0xff] %v12785_v5  ;;  %v12788_v8 = vpop.eup %6858  ;;  %v12790_v30 = vadd.f32 1.0, %v4575_v59  ;;  %v12793_v55 = vmul.f32 0.70710677, %v12758_v63  ;;  %v3733_v44 = vmul.f32 %v14628_v7, %v3696_v50  ;;  %v5562_v2 = vsub.f32 1.0, %v5530_v14  ;;  %v4247_v50 = vpop.permute.xlu2 %4246  ;;  %v14633_v7 = vld [vmem:[#allocation118_spill] sm:$0xff] }
 0x416   : > { %v4350_v56 = vadd.f32 %v4318_v6, %v4056_v28  ;;  %6860 = vpow2.f32 %v5487_v62  ;;  %v5149_v19 = vadd.f32 -1.4531521, %v5117_v39  ;;  %v12797_v18 = vand.u32 2147483647, %v12764_v32  ;;  %v12806_v39 = vpop.permute.xlu0 %3369 }
 0x417   : > { %14627 = vst [vmem:[#allocation20_spill] sm:$0xff] %v12793_v55  ;;  %v5489_v3 = vmul.f32 1.442695, %v5436_v11  ;;  %v5405_v4 = vsub.f32 0.0, %v12534_v58  ;;  %v3471_v48 = vadd.f32 %v3439_v29, %v14629_v57  ;;  %v3990_v59 = vmul.f32 %v3953_v61, %v14630_v23 }
 0x418   : > { %v5593_v5 = vmul.f32 %v5561_v38, %v12660_v37  ;;  %v5307_v63 = vmul.f32 %v5275_v20, %v12641_v41  ;;  %v5276_v28 = vadd.f32 -0.28449672, %v5244_v10  ;;  %v4961_v14 = vmul.f32 %v12788_v8, %v12727_v25  ;;  %v12823_v38 = vld [vmem:[%s13559_s4 + $0x7] ss:$0 sm:$0xff]  ;;  %v14632_v10 = vld [vmem:[#allocation91_spill] sm:$0xff] }
 0x419   : > { %6862 = vrcp.f32 %v12790_v30  ;;  %v12810_v62 = vand.u32 2147483647, %v12793_v55  ;;  %v12813_v11 = vadd.f32 %v12486_v24, %v4350_v56  ;;  %v3765_v61 = vadd.f32 %v3733_v44, %v3471_v48 }
 0x41a   : > { %v5594_v37 = vmul.f32 %v5562_v2, %v12687_v43  ;;  %vm4477_vm11 = vcmp.ge.f32.partialorder %v12508_v1, 0.0  ;;  %v5181_v23 = vmul.f32 %v5149_v19, %v12747_v15  ;;  %v4576_v29 = vmul.f32 0.3275911, %v12797_v18 }
 0x41b   : > { %14631 = vst [vmem:[#allocation122_spill] sm:$0xff] %v12813_v11  ;;  %v5437_v6 = vmul.f32 %v5405_v4, %v12534_v58  ;;  %v4027_v20 = vmul.f32 %v12823_v38, %v3990_v59  ;;  %v4284_v56 = vmul.f32 %v4247_v50, %v14632_v10  ;;  %v3988_v43 = vmul.f32 %v12679_v40, %v14633_v7 }
 0x41c   : > { %v6861_v44 = vpop.eup %6860  ;;  %v5625_v2 = vadd.f32 1.0, %v5593_v5  ;;  %v5339_v57 = vadd.f32 0.2548296, %v5307_v63  ;;  %v5308_v19 = vmul.f32 %v5276_v28, %v12662_v34  ;;  %v4962_v48 = vsub.f32 1.0, %v4961_v14 }
 0x41d   : > { %v12831_v58 = vmul.f32 0.5, %v12490_v9  ;;  %v4577_v4 = vmul.f32 0.3275911, %v12810_v62  ;;  %v12835_v55 = vmul.f32 0.70710677, %v12813_v11  ;;  %v4059_v59 = vadd.f32 %v4027_v20, %v3765_v61 }
 0x41e   : > { %v5626_v32 = vadd.f32 1.0, %v5594_v37  ;;  %6864 = vpow2.f32 %v5489_v3  ;;  %v5213_v50 = vadd.f32 1.4214138, %v5181_v23  ;;  %v12837_v10 = vadd.f32 1.0, %v4576_v29  ;;  %v4237_v23 = vpop.permute.xlu0 %4236 }
 0x41f   : > { %14634 = vst [vmem:[#allocation75_spill] sm:$0xff] %v12835_v55  ;;  %v12839_v40 = vpop.eup %6862  ;;  %v12844_v63 = vsel %vm4477_vm11, 1.0, %v14469_v60  ;;  %v5491_v9 = vmul.f32 1.442695, %v5437_v6  ;;  %v4321_v5 = vmul.f32 %v12781_v35, %v4284_v56  ;;  %v4025_v28 = vmul.f32 %v12823_v38, %v3988_v43  ;;  %v14635_v43 = vld [vmem:[#allocation27_spill] sm:$0xff] }
 0x420   : > { %v12849_v14 = vmul.f32 %v5625_v2, %v12604_v54  ;;  %v5371_v3 = vmul.f32 %v5339_v57, %v12641_v41  ;;  %v5340_v61 = vadd.f32 0.2548296, %v5308_v19  ;;  %v4963_v37 = vmul.f32 %v12788_v8, %v4962_v48 }
 0x421   : > { %v12853_v29 = vadd.f32 1.0, %v4577_v4  ;;  %v12856_v1 = vand.u32 2147483647, %v12835_v55  ;;  %v4353_v20 = vadd.f32 %v4321_v5, %v4059_v59  ;;  %v4282_v6 = vmul.f32 %v4237_v23, %v14619_v21 }
 0x422   : > { %v12860_v56 = vmul.f32 %v5626_v32, %v12667_v42  ;;  %v5245_v54 = vmul.f32 %v5213_v50, %v12747_v15  ;;  %v4976_v41 = vmul.f32 %v12839_v40, %v12790_v30  ;;  %6866 = vrcp.f32 %v12837_v10 }
 0x423   : > { %6868 = vpow2.f32 %v5491_v9  ;;  %v5406_v7 = vsub.f32 0.0, %v12670_v31  ;;  %v4057_v2 = vadd.f32 %v4025_v28, %v14635_v43  ;;  %v4319_v57 = vmul.f32 %v12781_v35, %v4282_v6 }
 0x424   : > { %v6865_v19 = vpop.eup %6864  ;;  %v5531_v48 = vmul.f32 %v6861_v44, %v5371_v3  ;;  %v5372_v21 = vmul.f32 %v5340_v61, %v12662_v34  ;;  %v4964_v42 = vadd.f32 %v12788_v8, %v4963_v37  ;;  %vm4966_vm10 = vweird.f32 %v12788_v8 }
 0x425   : > { %6870 = vrcp.f32 %v12853_v29  ;;  %v4578_v32 = vmul.f32 0.3275911, %v12856_v1  ;;  %v12875_v4 = vadd.f32 %v12486_v24, %v4353_v20  ;;  %v4351_v59 = vadd.f32 %v4319_v57, %v4057_v2 }
 0x426   : > { %v5277_v50 = vadd.f32 -0.28449672, %v5245_v54  ;;  %v12878_v9 = vmul.f32 0.5, %v12632_v0  ;;  %v4971_v44 = vand.u32 2147483648, %v12727_v25  ;;  %v4977_v5 = vsub.f32 1.0, %v4976_v41 }
 0x427   : > { %14636 = vst [vmem:[#allocation116_spill] sm:$0xff] %v12875_v4  ;;  %vm4478_vm12 = vcmp.ge.f32.partialorder %v12654_v26, 0.0  ;;  %vm4965_vm13 = vweird.f32 %v12727_v25  ;;  %v4969_v34 = vand.u32 2147483647, %v12727_v25  ;;  %v12885_v28 = vadd.f32 %v12486_v24, %v4351_v59 }
 0x428   : > { %v12887_v3 = vpop.eup %6866  ;;  %v5563_v61 = vsub.f32 1.0, %v5531_v48  ;;  %v5532_v37 = vmul.f32 %v6865_v19, %v5372_v21  ;;  %vm12891_vm14 = vmor %vm4965_vm13, %vm4966_vm10  ;;  %v5438_v23 = vmul.f32 %v5406_v7, %v12670_v31  ;;  %v5407_v20 = vsub.f32 0.0, %v12736_v12 }
 0x429   : > { %14637 = vst [vmem:[#allocation119_spill] sm:$0xff] %v12885_v28  ;;  %v6869_v6 = vpop.eup %6868  ;;  %v4968_v25 = vsel %vm12891_vm14, %v12788_v8, %v4964_v42  ;;  %v12900_v54 = vadd.f32 1.0, %v4578_v32  ;;  %v12903_v41 = vmul.f32 0.70710677, %v12875_v4  ;;  %v12906_v43 = vmul.f32 0.70710677, %v12885_v28 }
 0x42a   : > { %v5309_v2 = vmul.f32 %v5277_v50, %v12747_v15  ;;  %v4972_v57 = vor.u32 1.1754944e-38, %v4971_v44  ;;  %v12910_v31 = vmul.f32 0.5, %v12691_v16  ;;  %v4978_v7 = vmul.f32 %v12839_v40, %v4977_v5  ;;  %v14645_v28 = vld [vmem:[#allocation113_spill] sm:$0xff] }
 0x42b   : > { %14640 = vst [vmem:[#allocation80_spill] sm:$0xff] %v12903_v41  ;;  %v12913_v19 = vpop.eup %6870  ;;  %vm4970_vm6 = vcmp.eq.f32.partialorder %v4969_v34, 8.507059e+37  ;;  %vm4479_vm15 = vcmp.ge.f32.partialorder %v12708_v49, 0.0  ;;  %v4991_v8 = vmul.f32 %v12887_v3, %v12837_v10  ;;  %v12919_v48 = vand.u32 2147483647, %v12906_v43 }
 0x42c   : > { %14641 = vst [vmem:[#allocation102_spill] sm:$0xff] %v12906_v43  ;;  %v5595_v21 = vmul.f32 %v5563_v61, %v12720_v17  ;;  %v5564_v42 = vsub.f32 1.0, %v5532_v37  ;;  %v12922_v32 = vsel %vm4970_vm6, %v4972_v57, %v4968_v25  ;;  %v5493_v16 = vmul.f32 1.442695, %v5438_v23 }
 0x42d   : > { %14642 = vst [vmem:[#allocation65_spill] sm:$0xff] %v12910_v31  ;;  %v5439_v59 = vmul.f32 %v5407_v20, %v12736_v12  ;;  %6872 = vrcp.f32 %v12900_v54  ;;  %v12927_v50 = vand.u32 2147483647, %v12903_v41  ;;  %v4579_v44 = vmul.f32 0.3275911, %v12919_v48 }
 0x42e   : > { %v5341_v5 = vadd.f32 0.2548296, %v5309_v2  ;;  %v4979_v34 = vadd.f32 %v12839_v40, %v4978_v7  ;;  %vm4981_vm0 = vweird.f32 %v12839_v40  ;;  %v5006_v17 = vmul.f32 %v12913_v19, %v12853_v29 }
 0x42f   : > { %v5118_v61 = vmul.f32 1.0614054, %v12922_v32  ;;  %v4986_v37 = vand.u32 2147483648, %v12790_v30  ;;  %v4992_v12 = vsub.f32 1.0, %v4991_v8  ;;  %v12936_v0 = vadd.f32 1.0, %v4579_v44 }
 0x430   : > { %v5627_v23 = vadd.f32 1.0, %v5595_v21  ;;  %v5596_v20 = vmul.f32 %v5564_v42, %v12769_v46  ;;  %vm4980_vm2 = vweird.f32 %v12790_v30  ;;  %v4984_v25 = vand.u32 2147483647, %v12790_v30 }
 0x431   : > { %v12944_v2 = vsel %vm4478_vm12, 1.0, %v14469_v60  ;;  %vm12946_vm3 = vmor %vm4980_vm2, %vm4981_vm0  ;;  %v5495_v7 = vmul.f32 1.442695, %v5439_v59  ;;  %v4581_v8 = vmul.f32 0.3275911, %v12927_v50  ;;  %6874 = vrcp.f32 %v12936_v0 }
 0x432   : > { %v5373_v46 = vmul.f32 %v5341_v5, %v12747_v15  ;;  %v12956_v30 = vsel %vm4479_vm15, 1.0, %v14469_v60  ;;  %v4983_v26 = vsel %vm12946_vm3, %v12839_v40, %v4979_v34  ;;  %v5007_v21 = vsub.f32 1.0, %v5006_v17  ;;  %v14646_v40 = vld [vmem:[#allocation13_spill] sm:$0xff] }
 0x433   : > { %v12961_v42 = vpop.eup %6872  ;;  %v5150_v44 = vadd.f32 -1.4531521, %v5118_v61  ;;  %v4987_v59 = vor.u32 1.1754944e-38, %v4986_v37  ;;  %v4993_v4 = vmul.f32 %v12887_v3, %v4992_v12  ;;  %v3401_v41 = vmul.f32 %v14645_v28, %v14620_v47  ;;  %v14647_v37 = vld [vmem:[#allocation60_spill] sm:$0xff] }
 0x434   : > { %v12967_v15 = vmul.f32 %v5627_v23, %v12698_v13  ;;  %v12969_v49 = vadd.f32 1.0, %v5596_v20  ;;  %6876 = vpow2.f32 %v5493_v16  ;;  %vm4985_vm4 = vcmp.eq.f32.partialorder %v4984_v25, 8.507059e+37 }
 0x435   : > { %v12971_v5 = vsel %vm4985_vm4, %v4987_v59, %v4983_v26  ;;  %6878 = vpow2.f32 %v5495_v7  ;;  %v3695_v34 = vmul.f32 %v12745_v52, %v14646_v40  ;;  %v12975_v17 = vadd.f32 1.0, %v4581_v8  ;;  %v14650_v59 = vld [vmem:[#allocation49_spill] sm:$0xff] }
 0x436   : > { %v12977_v61 = vmul.f32 %v6869_v6, %v5373_v46  ;;  %v3989_v47 = vmul.f32 %v12672_v45, %v14647_v37  ;;  %v5008_v13 = vmul.f32 %v12913_v19, %v5007_v21  ;;  %v5021_v28 = vmul.f32 %v12961_v42, %v12900_v54  ;;  %v14653_v8 = vld [vmem:[#allocation129_spill] sm:$0xff] }
 0x437   : > { %v12984_v16 = vpop.eup %6874  ;;  %v5182_v12 = vmul.f32 %v5150_v44, %v12922_v32  ;;  %v4994_v23 = vadd.f32 %v12887_v3, %v4993_v4  ;;  %vm4996_vm5 = vweird.f32 %v12887_v3  ;;  %v3438_v52 = vmul.f32 %v12775_v36, %v3401_v41  ;;  %v13000_v4 = vld [vmem:[%s13559_s4 + $0x6] ss:$0 sm:$0xff] }
 0x438   : > { %v5119_v6 = vmul.f32 1.0614054, %v12971_v5  ;;  %v5001_v20 = vand.u32 2147483648, %v12837_v10  ;;  %v5408_v45 = vsub.f32 0.0, %v12797_v18  ;;  %v3040_v25 = vmul.f32 %v12626_v22, %v14646_v40 }
 0x439   : > { %vm4995_vm7 = vweird.f32 %v12837_v10  ;;  %v4999_v57 = vand.u32 2147483647, %v12837_v10  ;;  %v3732_v41 = vmul.f32 %v13000_v4, %v3695_v34  ;;  %6880 = vrcp.f32 %v12975_v17 }
 0x43a   : > { %v13004_v7 = vpop.eup %6876  ;;  %vm13006_vm8 = vmor %vm4995_vm7, %vm4996_vm5  ;;  %v5009_v22 = vadd.f32 %v12913_v19, %v5008_v13  ;;  %vm5011_vm9 = vweird.f32 %v12913_v19  ;;  %v5022_v10 = vsub.f32 1.0, %v5021_v28  ;;  %v5036_v46 = vmul.f32 %v12984_v16, %v12936_v0 }
 0x43b   : > { %v13014_v26 = vpop.eup %6878  ;;  %v5214_v21 = vadd.f32 1.4214138, %v5182_v12  ;;  %v4998_v44 = vsel %vm13006_vm8, %v12887_v3, %v4994_v23  ;;  %v3470_v40 = vadd.f32 %v3438_v52, %v14650_v59  ;;  %v5016_v34 = vand.u32 2147483648, %v12853_v29  ;;  %v14655_v59 = vld [vmem:[#allocation28_spill] sm:$0xff]  ;;  %v3664_v12 = vpop.permute.xlu1 %3663 }
 0x43c   : > { %v5151_v11 = vadd.f32 -1.4531521, %v5119_v6  ;;  %v5002_v43 = vor.u32 1.1754944e-38, %v5001_v20  ;;  %vm5010_vm11 = vweird.f32 %v12853_v29  ;;  %v5014_v13 = vand.u32 2147483647, %v12853_v29 }
 0x43d   : > { %v5565_v28 = vsub.f32 1.0, %v12977_v61  ;;  %vm5000_vm10 = vcmp.eq.f32.partialorder %v4999_v57, 8.507059e+37  ;;  %v4026_v31 = vmul.f32 %v12823_v38, %v3989_v47  ;;  %vm13027_vm12 = vmor %vm5010_vm11, %vm5011_vm9  ;;  %v3764_v3 = vadd.f32 %v3732_v41, %v3470_v40  ;;  %v6593_v61 = vld [vmem:[%s13561_s6 + $0x38] sm:$0xff]  ;;  %v4242_v47 = vpop.permute.xlu0 %4241 }
 0x43e   : > { %v13031_v23 = vsel %vm5000_vm10, %v5002_v43, %v4998_v44  ;;  %v5013_v52 = vsel %vm13027_vm12, %v12913_v19, %v5009_v22  ;;  %v5023_v29 = vmul.f32 %v12961_v42, %v5022_v10  ;;  %v5037_v6 = vsub.f32 1.0, %v5036_v46  ;;  %v6942_v22 = vld [vmem:[%s13559_s4 + $0x3] ss:$0 sm:$0xff]  ;;  %5774 = vmatpush.bf16.msrb.mxu2 %v6593_v61 }
 0x43f   : > { %v13040_v20 = vpop.eup %6880  ;;  %v5246_v57 = vmul.f32 %v5214_v21, %v12922_v32  ;;  %v13044_v41 = vmul.f32 %v5408_v45, %v12797_v18  ;;  %v5017_v43 = vor.u32 1.1754944e-38, %v5016_v34  ;;  %v4283_v44 = vmul.f32 %v4242_v47, %v14653_v8  ;;  %v14654_v46 = vld [vmem:[#allocation46_spill] sm:$0xff] }
 0x440   : > { %v5183_v19 = vmul.f32 %v5151_v11, %v12971_v5  ;;  %v3077_v10 = vmul.f32 %v6942_v22, %v3040_v25  ;;  %v5676_v40 = vadd.f32 %v14655_v59, %v14654_v46  ;;  %vm5015_vm13 = vcmp.eq.f32.partialorder %v5014_v13, 8.507059e+37  ;;  %v14657_v59 = vld [vmem:[#allocation88_spill] sm:$0xff] }
 0x441   : > { %v5120_v21 = vmul.f32 1.0614054, %v13031_v23  ;;  %v13054_v18 = vsel %vm5015_vm13, %v5017_v43, %v5013_v52  ;;  %v4058_v45 = vadd.f32 %v4026_v31, %v3764_v3  ;;  %v4320_v34 = vmul.f32 %v12781_v35, %v4283_v44  ;;  %v14656_v31 = vld [vmem:[#allocation99_spill] sm:$0xff] }
 0x442   : > { %v5024_v11 = vadd.f32 %v12961_v42, %v5023_v29  ;;  %vm5026_vm14 = vweird.f32 %v12961_v42  ;;  %v5066_v25 = vmul.f32 %v13040_v20, %v12975_v17  ;;  %v5038_v47 = vmul.f32 %v12984_v16, %v5037_v6 }
 0x443   : > { %v13063_v13 = vmul.f32 %v5565_v28, %v12844_v63  ;;  %v5278_v61 = vadd.f32 -0.28449672, %v5246_v57  ;;  %v5031_v22 = vand.u32 2147483648, %v12900_v54  ;;  %v4352_v52 = vadd.f32 %v4320_v34, %v4058_v45 }
 0x444   : > { %v5215_v43 = vadd.f32 1.4214138, %v5183_v19  ;;  %v3109_v3 = vadd.f32 %v3077_v10, %v14656_v31  ;;  %vm5025_vm6 = vweird.f32 %v12900_v54  ;;  %v5029_v29 = vand.u32 2147483647, %v12900_v54  ;;  %v14662_v31 = vld [vmem:[#allocation29_spill] sm:$0xff] }
 0x445   : > { %v5152_v44 = vadd.f32 -1.4531521, %v5120_v21  ;;  %v5677_v46 = vadd.f32 %v5676_v40, %v14657_v59  ;;  %v5121_v55 = vmul.f32 1.0614054, %v13054_v18  ;;  %vm13071_vm15 = vmor %vm5025_vm6, %vm5026_vm14  ;;  %v13076_v63 = vadd.f32 %v12486_v24, %v4352_v52 }
 0x446   : > { %v5028_v28 = vsel %vm13071_vm15, %v12961_v42, %v5024_v11  ;;  %v5067_v57 = vsub.f32 1.0, %v5066_v25  ;;  %v5039_v19 = vadd.f32 %v12984_v16, %v5038_v47  ;;  %vm5041_vm0 = vweird.f32 %v12984_v16 }
 0x447   : > { %v5310_v54 = vmul.f32 %v5278_v61, %v12922_v32  ;;  %v5032_v10 = vor.u32 1.1754944e-38, %v5031_v22  ;;  %v5046_v40 = vand.u32 2147483648, %v12936_v0  ;;  %v13086_v21 = vmul.f32 0.70710677, %v13076_v63 }
 0x448   : > { %v5247_v24 = vmul.f32 %v5215_v43, %v12971_v5  ;;  %vm5030_vm2 = vcmp.eq.f32.partialorder %v5029_v29, 8.507059e+37  ;;  %vm5040_vm3 = vweird.f32 %v12936_v0  ;;  %v5044_v42 = vand.u32 2147483647, %v12936_v0 }
 0x449   : > { %v5678_v45 = vadd.f32 %v5677_v46, %v12398_v51  ;;  %v13092_v34 = vsel %vm5030_vm2, %v5032_v10, %v5028_v28  ;;  %v3403_v11 = vmul.f32 %v12806_v39, %v14653_v8  ;;  %vm13096_vm4 = vmor %vm5040_vm3, %vm5041_vm0  ;;  %v13101_v47 = vand.u32 2147483647, %v13086_v21  ;;  %v3958_v46 = vpop.permute.xlu1 %3957 }
 0x44a   : > { %v5184_v61 = vmul.f32 %v5152_v44, %v13031_v23  ;;  %v5153_v22 = vadd.f32 -1.4531521, %v5121_v55  ;;  %v5068_v52 = vmul.f32 %v13040_v20, %v5067_v57  ;;  %v5043_v0 = vsel %vm13096_vm4, %v12984_v16, %v5039_v19  ;;  %v6943_v55 = vld [vmem:[%s13559_s4 + $0x4] ss:$0 sm:$0xff]  ;;  %v14663_v19 = vld [vmem:[#allocation108_spill] sm:$0xff] }
 0x44b   : > { %v5342_v43 = vadd.f32 0.2548296, %v5310_v54  ;;  %v3697_v39 = vmul.f32 %v3664_v12, %v14662_v31  ;;  %v5047_v8 = vor.u32 1.1754944e-38, %v5046_v40  ;;  %v4580_v29 = vmul.f32 0.3275911, %v13101_v47 }
 0x44c   : > { %v5279_v6 = vadd.f32 -0.28449672, %v5247_v24  ;;  %v5122_v28 = vmul.f32 1.0614054, %v13092_v34  ;;  %v3146_v44 = vmul.f32 %v6943_v55, %v14647_v37  ;;  %vm5045_vm5 = vcmp.eq.f32.partialorder %v5044_v42, 8.507059e+37 }
 0x44d   : > { %v3440_v57 = vmul.f32 %v12775_v36, %v3403_v11  ;;  %v13116_v16 = vsel %vm5045_vm5, %v5047_v8, %v5043_v0  ;;  %v3991_v54 = vmul.f32 %v3958_v46, %v14663_v19  ;;  %v13119_v12 = vadd.f32 1.0, %v4580_v29  ;;  %v4252_v0 = vpop.permute.xlu0 %4251 }
 0x44e   : > { %v5216_v10 = vadd.f32 1.4214138, %v5184_v61  ;;  %v5185_v40 = vmul.f32 %v5153_v22, %v13054_v18  ;;  %v5069_v24 = vadd.f32 %v13040_v20, %v5068_v52  ;;  %vm5071_vm7 = vweird.f32 %v13040_v20 }
 0x44f   : > { %v5076_v25 = vand.u32 2147483648, %v12975_v17  ;;  %v3178_v31 = vadd.f32 %v3146_v44, %v3109_v3  ;;  %v3734_v37 = vmul.f32 %v13000_v4, %v3697_v39  ;;  %6882 = vrcp.f32 %v13119_v12  ;;  %v14666_v39 = vld [vmem:[#allocation34_spill] sm:$0xff] }
 0x450   : > { %v5497_v36 = vmul.f32 1.442695, %v13044_v41  ;;  %vm5070_vm8 = vweird.f32 %v12975_v17  ;;  %v5074_v42 = vand.u32 2147483647, %v12975_v17  ;;  %v5123_v11 = vmul.f32 1.0614054, %v13116_v16 }
 0x451   : > { %v5679_v61 = vadd.f32 %v5678_v45, %v12408_v53  ;;  %v5154_v22 = vadd.f32 -1.4531521, %v5122_v28  ;;  %vm13132_vm9 = vmor %vm5070_vm8, %vm5071_vm7  ;;  %v3472_v3 = vadd.f32 %v3440_v57, %v3178_v31  ;;  %v4028_v4 = vmul.f32 %v12823_v38, %v3991_v54 }
 0x452   : > { %v5374_v46 = vmul.f32 %v5342_v43, %v12922_v32  ;;  %v5311_v41 = vmul.f32 %v5279_v6, %v12971_v5  ;;  %v5073_v17 = vsel %vm13132_vm9, %v13040_v20, %v5069_v24  ;;  %v4285_v8 = vmul.f32 %v4252_v0, %v14666_v39 }
 0x453   : > { %v5248_v45 = vmul.f32 %v5216_v10, %v13031_v23  ;;  %v5217_v29 = vadd.f32 1.4214138, %v5185_v40  ;;  %v5077_v28 = vor.u32 1.1754944e-38, %v5076_v25  ;;  %v3766_v55 = vadd.f32 %v3734_v37, %v3472_v3  ;;  %v14667_v3 = vld [vmem:[#allocation11_spill] sm:$0xff] }
 0x454   : > { %v13145_v44 = vadd.f32 1.0, %v13063_v13  ;;  %vm5075_vm11 = vcmp.eq.f32.partialorder %v5074_v42, 8.507059e+37  ;;  %v5155_v38 = vadd.f32 -1.4531521, %v5123_v11  ;;  %v4322_v32 = vmul.f32 %v12781_v35, %v4285_v8 }
 0x455   : > { %v6883_v43 = vpop.eup %6882  ;;  %v5409_v6 = vsub.f32 0.0, %v12810_v62  ;;  %v5186_v57 = vmul.f32 %v5154_v22, %v13092_v34  ;;  %v13150_v20 = vsel %vm5075_vm11, %v5077_v28, %v5073_v17  ;;  %v4060_v19 = vadd.f32 %v4028_v4, %v3766_v55  ;;  %v14668_v4 = vld [vmem:[#allocation71_spill] sm:$0xff] }
 0x456   : > { %v5534_v54 = vmul.f32 %v13004_v7, %v5374_v46  ;;  %6884 = vpow2.f32 %v5497_v36  ;;  %v5680_v10 = vadd.f32 %v5679_v61, %v12437_v27  ;;  %v5051_v13 = vmul.f32 %v6883_v43, %v13119_v12  ;;  %v6944_v61 = vld [vmem:[%s13560_s5] ss:$0 sm:$0xff] }
 0x457   : > { %v5343_v40 = vadd.f32 0.2548296, %v5311_v41  ;;  %v5280_v24 = vadd.f32 -0.28449672, %v5248_v45  ;;  %v5249_v25 = vmul.f32 %v5217_v29, %v13054_v18  ;;  %v4354_v35 = vadd.f32 %v4322_v32, %v4060_v19 }
 0x458   : > { %v5681_v31 = vadd.f32 %v5680_v10, %v12569_v33  ;;  %v5125_v37 = vmul.f32 1.0614054, %v13150_v20  ;;  %v5187_v42 = vmul.f32 %v5155_v38, %v13116_v16  ;;  %v5052_v11 = vsub.f32 1.0, %v5051_v13  ;;  %v6592_v38 = vld [vmem:[%s13561_s6 + $0x30] sm:$0xff] }
 0x459   : > { %v5441_v22 = vmul.f32 %v5409_v6, %v12810_v62  ;;  %v5218_v7 = vadd.f32 1.4214138, %v5186_v57  ;;  %v5061_v36 = vand.u32 2147483648, %v13119_v12  ;;  %v13164_v52 = vadd.f32 %v6944_v61, %v4354_v35  ;;  %5775 = vmatpush.bf16.msrb.mxu2 %v6592_v38  ;;  %v14670_v35 = vld [vmem:[#allocation63_spill] sm:$0xff] }
 0x45a   : > { %vm4480_vm10 = vcmp.ge.f32.partialorder %v14667_v3, 0.0  ;;  %v5682_v0 = vadd.f32 %v5681_v31, %v14668_v4  ;;  %v5053_v46 = vmul.f32 %v6883_v43, %v5052_v11  ;;  %vm5056_vm12 = vweird.f32 %v6883_v43 }
 0x45b   : > { %v5059_v41 = vand.u32 2147483647, %v13119_v12  ;;  %v5566_v17 = vsub.f32 1.0, %v5534_v54  ;;  %v5375_v62 = vmul.f32 %v5343_v40, %v12971_v5  ;;  %v5281_v39 = vadd.f32 -0.28449672, %v5249_v25  ;;  %v14669_v54 = vld [vmem:[#allocation82_spill] sm:$0xff] }
 0x45c   : > { %v13171_v8 = vmul.f32 0.70710677, %v13164_v52  ;;  %v13173_v45 = vpop.eup %6884  ;;  %v5157_v29 = vadd.f32 -1.4531521, %v5125_v37  ;;  %v5219_v28 = vadd.f32 1.4214138, %v5187_v42  ;;  %v5054_v55 = vadd.f32 %v6883_v43, %v5053_v46 }
 0x45d   : > { %vm5055_vm13 = vweird.f32 %v13119_v12  ;;  %v5312_v32 = vmul.f32 %v5280_v24, %v13031_v23  ;;  %v5250_v6 = vmul.f32 %v5218_v7, %v13092_v34  ;;  %v5062_v5 = vor.u32 1.1754944e-38, %v5061_v36  ;;  %v14671_v46 = vld [vmem:[#allocation55_spill] sm:$0xff] }
 0x45e   : > { %vm5057_vm14 = vmor %vm5055_vm13, %vm5056_vm12  ;;  %v13182_v57 = vand.u32 2147483647, %v13171_v8  ;;  %v5499_v19 = vmul.f32 1.442695, %v5441_v22  ;;  %v5683_v10 = vadd.f32 %v5682_v0, %v14669_v54  ;;  %vm5060_vm6 = vcmp.eq.f32.partialorder %v5059_v41, 8.507059e+37 }
 0x45f   : > { %v5058_v13 = vsel %vm5057_vm14, %v6883_v43, %v5054_v55  ;;  %v5313_v12 = vmul.f32 %v5281_v39, %v13054_v18  ;;  %v5410_v40 = vsub.f32 0.0, %v12856_v1  ;;  %v5189_v37 = vmul.f32 %v5157_v29, %v13150_v20 }
 0x460   : > { %v13187_v25 = vsel %vm5060_vm6, %v5062_v5, %v5058_v13  ;;  %v4582_v24 = vmul.f32 0.3275911, %v13182_v57  ;;  %v5684_v31 = vadd.f32 %v5683_v10, %v14670_v35  ;;  %v5251_v42 = vmul.f32 %v5219_v28, %v13116_v16 }
 0x461   : > { %v5124_v11 = vmul.f32 1.0614054, %v13187_v25  ;;  %v5598_v43 = vmul.f32 %v5566_v17, %v12944_v2  ;;  %v5282_v22 = vadd.f32 -0.28449672, %v5250_v6  ;;  %v5411_v7 = vsub.f32 0.0, %v12919_v48  ;;  %v14672_v6 = vld [vmem:[#allocation44_spill] sm:$0xff] }
 0x462   : > { %v13196_v36 = vadd.f32 1.0, %v4582_v24  ;;  %v5535_v61 = vmul.f32 %v13014_v26, %v5375_v62  ;;  %v5344_v0 = vadd.f32 0.2548296, %v5312_v32  ;;  %v5685_v41 = vadd.f32 %v5684_v31, %v14671_v46 }
 0x463   : > { %v5156_v39 = vadd.f32 -1.4531521, %v5124_v11  ;;  %v5345_v55 = vadd.f32 0.2548296, %v5313_v12  ;;  %v5442_v29 = vmul.f32 %v5410_v40, %v12856_v1  ;;  %v5412_v28 = vsub.f32 0.0, %v13101_v47  ;;  %v14673_v12 = vld [vmem:[#allocation45_spill] sm:$0xff] }
 0x464   : > { %6886 = vrcp.f32 %v13196_v36  ;;  %v5221_v2 = vadd.f32 1.4214138, %v5189_v37  ;;  %v5283_v17 = vadd.f32 -0.28449672, %v5251_v42  ;;  %v13206_v5 = vmul.f32 %v12969_v49, %v14672_v6  ;;  %v14674_v42 = vld [vmem:[#allocation20_spill] sm:$0xff] }
 0x465   : > { %6888 = vpow2.f32 %v5499_v19  ;;  %v5188_v38 = vmul.f32 %v5156_v39, %v13187_v25  ;;  %v13211_v26 = vsel %vm4480_vm10, 1.0, %v14469_v60  ;;  %v5314_v1 = vmul.f32 %v5282_v22, %v13092_v34 }
 0x466   : > { %v5443_v62 = vmul.f32 %v5411_v7, %v12919_v48  ;;  %v13217_v32 = vmul.f32 %v13145_v44, %v12831_v58  ;;  %v5567_v19 = vsub.f32 1.0, %v5535_v61  ;;  %v5376_v10 = vmul.f32 %v5344_v0, %v13031_v23  ;;  %v14675_v23 = vld [vmem:[#allocation57_spill] sm:$0xff] }
 0x467   : > { %v5220_v13 = vadd.f32 1.4214138, %v5188_v38  ;;  %v5377_v49 = vmul.f32 %v5345_v55, %v13054_v18  ;;  %v5686_v40 = vadd.f32 %v5685_v41, %v14673_v12  ;;  %v5501_v24 = vmul.f32 1.442695, %v5442_v29 }
 0x468   : > { %v5444_v3 = vmul.f32 %v5412_v28, %v13101_v47  ;;  %v13223_v31 = vadd.f32 1.0, %v5598_v43  ;;  %v5253_v37 = vmul.f32 %v5221_v2, %v13150_v20  ;;  %v5315_v48 = vmul.f32 %v5283_v17, %v13116_v16 }
 0x469   : > { %v5252_v58 = vmul.f32 %v5220_v13, %v13187_v25  ;;  %vm4481_vm15 = vcmp.ge.f32.partialorder %v14674_v42, 0.0  ;;  %v5687_v11 = vadd.f32 %v5686_v40, %v14675_v23  ;;  %v5346_v22 = vadd.f32 0.2548296, %v5314_v1  ;;  %v14677_v42 = vld [vmem:[#allocation75_spill] sm:$0xff] }
 0x46a   : > { %v6887_v44 = vpop.eup %6886  ;;  %v5413_v18 = vsub.f32 0.0, %v12927_v50  ;;  %v5503_v7 = vmul.f32 1.442695, %v5443_v62  ;;  %v5599_v47 = vmul.f32 %v5567_v19, %v12956_v30  ;;  %v5536_v43 = vmul.f32 %v13173_v45, %v5376_v10  ;;  %v6591_v10 = vld [vmem:[%s13561_s6 + $0x28] sm:$0xff] }
 0x46b   : > { %v6889_v61 = vpop.eup %6888  ;;  %v5284_v0 = vadd.f32 -0.28449672, %v5252_v58  ;;  %v5081_v41 = vmul.f32 %v6887_v44, %v13196_v36  ;;  %v5688_v55 = vadd.f32 %v5687_v11, %v12849_v14  ;;  %6890 = vpow2.f32 %v5501_v24  ;;  %5776 = vmatpush.bf16.msrb.mxu2 %v6591_v10 }
 0x46c   : > { %v5537_v39 = vmul.f32 %v6889_v61, %v5377_v49  ;;  %v5505_v29 = vmul.f32 1.442695, %v5444_v3  ;;  %v5285_v28 = vadd.f32 -0.28449672, %v5253_v37  ;;  %v5347_v2 = vadd.f32 0.2548296, %v5315_v48 }
 0x46d   : > { %v5316_v17 = vmul.f32 %v5284_v0, %v13187_v25  ;;  %v5082_v38 = vsub.f32 1.0, %v5081_v41  ;;  %v5378_v6 = vmul.f32 %v5346_v22, %v13092_v34  ;;  %v5445_v1 = vmul.f32 %v5413_v18, %v12927_v50  ;;  %v6590_v3 = vld [vmem:[%s13561_s6 + $0x20] sm:$0xff] }
 0x46e   : > { %6892 = vpow2.f32 %v5503_v7  ;;  %v5091_v30 = vand.u32 2147483648, %v13196_v36  ;;  %vm5086_vm0 = vweird.f32 %v6887_v44  ;;  %v5089_v19 = vand.u32 2147483647, %v13196_v36 }
 0x46f   : > { %v5348_v45 = vadd.f32 0.2548296, %v5316_v17  ;;  %v5083_v62 = vmul.f32 %v6887_v44, %v5082_v38  ;;  %v5631_v13 = vadd.f32 1.0, %v5599_v47  ;;  %v5568_v49 = vsub.f32 1.0, %v5536_v43  ;;  %5777 = vmatpush.bf16.msrb.mxu2 %v6590_v3 }
 0x470   : > { %v5689_v40 = vadd.f32 %v5688_v55, %v12860_v56  ;;  %6894 = vpow2.f32 %v5505_v29  ;;  %v5317_v34 = vmul.f32 %v5285_v28, %v13150_v20  ;;  %v5379_v50 = vmul.f32 %v5347_v2, %v13116_v16  ;;  %v14676_v28 = vld [vmem:[#allocation31_spill] sm:$0xff] }
 0x471   : > { %v5084_v24 = vadd.f32 %v6887_v44, %v5083_v62  ;;  %vm5085_vm2 = vweird.f32 %v13196_v36  ;;  %v6891_v37 = vpop.eup %6890  ;;  %v5569_v48 = vsub.f32 1.0, %v5537_v39  ;;  %v5507_v11 = vmul.f32 1.442695, %v5445_v1 }
 0x472   : > { %v5690_v58 = vadd.f32 %v5689_v40, %v12967_v15  ;;  %vm5087_vm3 = vmor %vm5085_vm2, %vm5086_vm0  ;;  %v5092_v22 = vor.u32 1.1754944e-38, %v5091_v30  ;;  %v5538_v18 = vmul.f32 %v6891_v37, %v5378_v6  ;;  %v5380_v7 = vmul.f32 %v5348_v45, %v13187_v25  ;;  %v6589_v25 = vld [vmem:[%s13561_s6 + $0x18] sm:$0xff] }
 0x473   : > { %v5088_v16 = vsel %vm5087_vm3, %v6887_v44, %v5084_v24  ;;  %vm5090_vm4 = vcmp.eq.f32.partialorder %v5089_v19, 8.507059e+37  ;;  %v5600_v36 = vmul.f32 %v5568_v49, %v13211_v26  ;;  %v5414_v0 = vsub.f32 0.0, %v13182_v57  ;;  %v14678_v30 = vld [vmem:[#allocation65_spill] sm:$0xff]  ;;  %5778 = vmatpush.bf16.msrb.mxu2 %v6589_v25  ;;  %v14681_v25 = vld [vmem:[#allocation122_spill] sm:$0xff] }
 0x474   : > { %v6893_v61 = vpop.eup %6892  ;;  %v5691_v47 = vadd.f32 %v5690_v58, %v13206_v5  ;;  %v13255_v43 = vsel %vm5090_vm4, %v5092_v22, %v5088_v16  ;;  %v4513_v41 = vsel %vm4481_vm15, 1.0, %v14469_v60  ;;  %v5349_v39 = vadd.f32 0.2548296, %v5317_v34  ;;  %v6588_v34 = vld [vmem:[%s13561_s6 + $0x10] sm:$0xff] }
 0x475   : > { %v5539_v55 = vmul.f32 %v6893_v61, %v5379_v50  ;;  %v5126_v29 = vmul.f32 1.0614054, %v13255_v43  ;;  %v13267_v44 = vmul.f32 %v13223_v31, %v12878_v9  ;;  %v4416_v2 = vmul.f32 0.5, %v14676_v28  ;;  %v14679_v31 = vld [vmem:[#allocation102_spill] sm:$0xff]  ;;  %v14680_v50 = vld [vmem:[#allocation121_spill] sm:$0xff]  ;;  %v14682_v28 = vld [vmem:[#allocation80_spill] sm:$0xff] }
 0x476   : > { %v6895_v26 = vpop.eup %6894  ;;  %v5601_v17 = vmul.f32 %v5569_v48, %v4513_v41  ;;  %6896 = vpow2.f32 %v5507_v11  ;;  %vm4482_vm5 = vcmp.ge.f32.partialorder %v14677_v42, 0.0  ;;  %v5570_v38 = vsub.f32 1.0, %v5538_v18 }
 0x477   : > { %v5540_v6 = vmul.f32 %v6895_v26, %v5380_v7  ;;  %v5158_v1 = vadd.f32 -1.4531521, %v5126_v29  ;;  %v13272_v45 = vmul.f32 %v5631_v13, %v14678_v30  ;;  %v5632_v62 = vadd.f32 1.0, %v5600_v36  ;;  %5779 = vmatpush.bf16.msrb.mxu2 %v6588_v34  ;;  %v14683_v30 = vld [vmem:[#allocation119_spill] sm:$0xff] }
 0x478   : > { %v5692_v19 = vadd.f32 %v5691_v47, %v13217_v32  ;;  %v5446_v10 = vmul.f32 %v5414_v0, %v13182_v57  ;;  %v5381_v9 = vmul.f32 %v5349_v39, %v13150_v20  ;;  %vm4483_vm7 = vcmp.ge.f32.partialorder %v14679_v31, 0.0 }
 0x479   : > { %v5571_v49 = vsub.f32 1.0, %v5539_v55  ;;  %v5190_v40 = vmul.f32 %v5158_v1, %v13255_v43  ;;  %v4417_v13 = vmul.f32 0.5, %v14680_v50  ;;  %v5633_v24 = vadd.f32 1.0, %v5601_v17 }
 0x47a   : > { %v5693_v3 = vadd.f32 %v5692_v19, %v13267_v44  ;;  %v4514_v57 = vsel %vm4482_vm5, 1.0, %v14469_v60  ;;  %vm4484_vm8 = vcmp.ge.f32.partialorder %v13086_v21, 0.0  ;;  %v5572_v37 = vsub.f32 1.0, %v5540_v6  ;;  %v6587_v21 = vld [vmem:[%s13561_s6 + $0x8] sm:$0xff] }
 0x47b   : > { %v5602_v20 = vmul.f32 %v5570_v38, %v4514_v57  ;;  %v5222_v48 = vadd.f32 1.4214138, %v5190_v40  ;;  %v13288_v11 = vmul.f32 %v5632_v62, %v4416_v2  ;;  %v4515_v18 = vsel %vm4483_vm7, 1.0, %v14469_v60  ;;  %5780 = vmatpush.bf16.msrb.mxu2 %v6587_v21  ;;  %v6586_v38 = vld [vmem:[%s13561_s6] sm:$0xff] }
 0x47c   : > { %v6897_v58 = vpop.eup %6896  ;;  %v5694_v22 = vadd.f32 %v5693_v3, %v13272_v45  ;;  %v5509_v7 = vmul.f32 1.442695, %v5446_v10  ;;  %v5603_v61 = vmul.f32 %v5571_v49, %v4515_v18  ;;  %v13298_v47 = vmul.f32 %v5633_v24, %v4417_v13 }
 0x47d   : > { %v5541_v16 = vmul.f32 %v6897_v58, %v5381_v9  ;;  %v5254_v36 = vmul.f32 %v5222_v48, %v13255_v43  ;;  %v4516_v0 = vsel %vm4484_vm8, 1.0, %v14469_v60  ;;  %v5634_v41 = vadd.f32 1.0, %v5602_v20  ;;  %v14684_v58 = vld [vmem:[#allocation116_spill] sm:$0xff] }
 0x47e   : > { %v5604_v39 = vmul.f32 %v5572_v37, %v4516_v0  ;;  %v5695_v29 = vadd.f32 %v5694_v22, %v13288_v11  ;;  %v4418_v26 = vmul.f32 0.5, %v14681_v25  ;;  %6898 = vpow2.f32 %v5509_v7 }
 0x47f   : > { %v5286_v55 = vadd.f32 -0.28449672, %v5254_v36  ;;  %vm4485_vm9 = vcmp.ge.f32.partialorder %v14682_v28, 0.0  ;;  %v5573_v2 = vsub.f32 1.0, %v5541_v16  ;;  %v5635_v17 = vadd.f32 1.0, %v5603_v61  ;;  %5781 = vmatpush.bf16.msrb.mxu2 %v6586_v38 }
 0x480   : > { %v5696_v6 = vadd.f32 %v5695_v29, %v13298_v47  ;;  %v13309_v1 = vmul.f32 %v5634_v41, %v4418_v26  ;;  %v4419_v62 = vmul.f32 0.5, %v14683_v30  ;;  %v5636_v19 = vadd.f32 1.0, %v5604_v39  ;;  %v6598_v30 = vld [vmem:[%s13562_s7 + $0x20] sm:$0xff] }
 0x481   : > { %v5318_v42 = vmul.f32 %v5286_v55, %v13255_v43  ;;  %v4517_v9 = vsel %vm4485_vm9, 1.0, %v14469_v60  ;;  %v4420_v40 = vmul.f32 0.5, %v13076_v63  ;;  %vm4486_vm11 = vcmp.ge.f32.partialorder %v13171_v8, 0.0 }
 0x482   : > { %v5605_v31 = vmul.f32 %v5573_v2, %v4517_v9  ;;  %v13313_v49 = vmul.f32 %v5635_v17, %v4419_v62  ;;  %v5697_v13 = vadd.f32 %v5696_v6, %v13309_v1  ;;  %v4518_v48 = vsel %vm4486_vm11, 1.0, %v14469_v60  ;;  %v6600_v17 = vld [vmem:[%s13562_s7 + $0x30] sm:$0xff] }
 0x483   : > { %v5350_v10 = vadd.f32 0.2548296, %v5318_v42  ;;  %v13318_v24 = vmul.f32 %v5636_v19, %v4420_v40  ;;  %v4421_v22 = vmul.f32 0.5, %v14684_v58  ;;  %v4422_v7 = vmul.f32 0.5, %v13164_v52  ;;  %v6601_v52 = vld [vmem:[%s13562_s7 + $0x38] sm:$0xff]  ;;  %v6599_v42 = vld [vmem:[%s13562_s7 + $0x28] sm:$0xff] }
 0x484   : > { %v6899_v50 = vpop.eup %6898  ;;  %v5637_v57 = vadd.f32 1.0, %v5605_v31  ;;  %v5698_v20 = vadd.f32 %v5697_v13, %v13313_v49  ;;  %5872 = vmatpush.bf16.msra.mxu2 %v6601_v52  ;;  %v6597_v19 = vld [vmem:[%s13562_s7 + $0x18] sm:$0xff] }
 0x485   : > { %v5382_v34 = vmul.f32 %v5350_v10, %v13255_v43  ;;  %v6596_v10 = vld [vmem:[%s13562_s7 + $0x10] sm:$0xff] }
 0x486   : > { %v5699_v63 = vadd.f32 %v5698_v20, %v13318_v24  ;;  %v13325_v18 = vmul.f32 %v5637_v57, %v4421_v22  ;;  %v6594_v20 = vld [vmem:[%s13562_s7] sm:$0xff] }
 0x487   : > { %v5542_v3 = vmul.f32 %v6899_v50, %v5382_v34  ;;  %v6595_v34 = vld [vmem:[%s13562_s7 + $0x8] sm:$0xff] }
 0x488   : > { %v5700_v8 = vadd.f32 %v5699_v63, %v13325_v18  ;;  %5873 = vmatpush.bf16.msra.mxu2 %v6600_v17 }
 0x489   : > { %v5574_v37 = vsub.f32 1.0, %v5542_v3 }
 0x48b   : > { %v5606_v43 = vmul.f32 %v5574_v37, %v4518_v48 }
 0x48c   : > { %5874 = vmatpush.bf16.msra.mxu2 %v6599_v42 }
 0x48d   : > { %v5638_v16 = vadd.f32 1.0, %v5606_v43  ;;  %v6609_v43 = vld [vmem:[%s13563_s8 + $0x38] sm:$0xff] }
 0x48e   : > { %6021 = vmatpush.bf16.msra.mxu1 %v6609_v43  ;;  %6611 = vmatpush.bf16.msra.mxu3 %v6609_v43 }
 0x48f   : > { %v13328_v61 = vmul.f32 %v5638_v16, %v4422_v7 }
 0x490   : > { %5875 = vmatpush.bf16.msra.mxu2 %v6598_v30 }
 0x491   : > { %v5701_v36 = vadd.f32 %v5700_v8, %v13328_v61  ;;  %v6608_v8 = vld [vmem:[%s13563_s8 + $0x30] sm:$0xff] }
 0x492   : > { %6022 = vmatpush.bf16.msra.mxu1 %v6608_v8  ;;  %6612 = vmatpush.bf16.msra.mxu3 %v6608_v8  ;;  %v14690_v8 = vld [vmem:[#allocation87_spill] sm:$0xff] }
 0x493   : > { %v5702_v21 = vrot.slane %v5701_v36, 4 }
 0x494   : > { %5876 = vmatpush.bf16.msra.mxu2 %v6597_v19 }
 0x495   : > { %v5703_v0 = vadd.f32 %v5702_v21, %v5701_v36  ;;  %v6607_v21 = vld [vmem:[%s13563_s8 + $0x28] sm:$0xff] }
 0x496   : > { %6023 = vmatpush.bf16.msra.mxu1 %v6607_v21  ;;  %6613 = vmatpush.bf16.msra.mxu3 %v6607_v21 }
 0x497   : > { %v5704_v41 = vrot.slane %v5703_v0, 2 }
 0x498   : > { %5877 = vmatpush.bf16.msra.mxu2 %v6596_v10 }
 0x499   : > { %v5705_v60 = vadd.f32 %v5704_v41, %v5703_v0  ;;  %v6606_v41 = vld [vmem:[%s13563_s8 + $0x20] sm:$0xff] }
 0x49a   : > { %6024 = vmatpush.bf16.msra.mxu1 %v6606_v41  ;;  %6614 = vmatpush.bf16.msra.mxu3 %v6606_v41 }
 0x49b   : > { %v5706_v39 = vrot.slane %v5705_v60, 1 }
 0x49c   : > { %5878 = vmatpush.bf16.msra.mxu2 %v6595_v34 }
 0x49d   : > { %v5707_v55 = vadd.f32 %v5706_v39, %v5705_v60 }
 0x49f   : > { %v5708_v29 = vmul.f32 0.00390625, %v5707_v55  ;;  %v6605_v55 = vld [vmem:[%s13563_s8 + $0x18] sm:$0xff] }
 0x4a0   : > { %5879 = vmatpush.bf16.msra.mxu2 %v6594_v20  ;;  %6025 = vmatpush.bf16.msra.mxu1 %v6605_v55  ;;  %v14687_v20 = vld [vmem:[#allocation24_spill] sm:$0xff] }
 0x4a1   : > { %v5709_v25 = vpack.c.bf16 %v5708_v29, %v5708_v29  ;;  %6615 = vmatpush.bf16.msra.mxu3 %v6605_v55  ;;  %v6604_v29 = vld [vmem:[%s13563_s8 + $0x10] sm:$0xff] }
 0x4a3   : > { %5782 = vmatmul.bf16.vlgmr.msrb.gmra.mxu2 %v5709_v25 }
 0x4a4   : > { %6026 = vmatpush.bf16.msra.mxu1 %v6604_v29 }
 0x4a5   : > { %6616 = vmatpush.bf16.msra.mxu3 %v6604_v29 }
 0x526   : > { %v5783_v26 = vpop.f32.mrf.mxu2 }
 0x527   : > { %v5787_v28 = vsub.f32 0.0, %v5783_v26 }
 0x529   : > { %v5788_v2 = vmul.f32 1.442695, %v5787_v28  ;;  %v6603_v28 = vld [vmem:[%s13563_s8 + $0x8] sm:$0xff] }
 0x52a   : > { %6027 = vmatpush.bf16.msra.mxu1 %v6603_v28  ;;  %6617 = vmatpush.bf16.msra.mxu3 %v6603_v28 }
 0x52b   : > { %6900 = vpow2.f32 %v5788_v2 }
 0x52e   : > { %v5785_v38 = vpop.f32.mrf.mxu2 }
 0x52f   : > { %v6602_v38 = vld [vmem:[%s13563_s8] sm:$0xff] }
 0x530   : > { %6028 = vmatpush.bf16.msra.mxu1 %v6602_v38  ;;  %6618 = vmatpush.bf16.msra.mxu3 %v6602_v38 }
 0x531   : > { %v6901_v6 = vpop.eup %6900 }
 0x532   : > { %v5790_v62 = vadd.f32 1.0, %v6901_v6 }
 0x534   : > { %6902 = vrcp.f32 %v5790_v62  ;;  %v5802_v50 = vand.u32 2147483648, %v5790_v62  ;;  %v5800_v3 = vand.u32 2147483647, %v5790_v62  ;;  %vm5796_vm12 = vweird.f32 %v5790_v62 }
 0x536   : > { %v5803_v37 = vor.u32 1.1754944e-38, %v5802_v50  ;;  %vm5801_vm14 = vcmp.eq.f32.partialorder %v5800_v3, 8.507059e+37 }
 0x53a   : > { %v6903_v9 = vpop.eup %6902 }
 0x53b   : > { %v5792_v31 = vmul.f32 %v6903_v9, %v5790_v62  ;;  %vm5797_vm10 = vweird.f32 %v6903_v9 }
 0x53c   : > { %vm5798_vm13 = vmor %vm5796_vm12, %vm5797_vm10 }
 0x53d   : > { %v5793_v40 = vsub.f32 1.0, %v5792_v31 }
 0x53f   : > { %v5794_v13 = vmul.f32 %v6903_v9, %v5793_v40  ;;  %v14686_v40 = vld [vmem:[#allocation25_spill] sm:$0xff] }
 0x541   : > { %v5795_v57 = vadd.f32 %v6903_v9, %v5794_v13 }
 0x543   : > { %v5799_v48 = vsel %vm5798_vm13, %v6903_v9, %v5795_v57  ;;  %v14685_v9 = vld [vmem:[#allocation56_spill] sm:$0xff] }
 0x544   : > { %v5804_v58 = vsel %vm5801_vm14, %v5803_v37, %v5799_v48  ;;  %v14688_v48 = vld [vmem:[#allocation68_spill] sm:$0xff] }
 0x545   : > { %v5806_v22 = vmul.f32 %v5804_v58, %v5783_v26 }
 0x547   : > { %v5807_v63 = vpack.c.bf16 %v5806_v22, %v5806_v22 }
 0x549   : > { %5880 = vmatmul.bf16.vlgmr.msra.gmra.mxu2 %v5807_v63 }
 0x5cc   : > { %v5881_v7 = vpop.f32.mrf.mxu2 }
 0x5cd   : > { %v5885_v16 = vsub.f32 0.0, %v5881_v7 }
 0x5cf   : > { %v5886_v36 = vmul.f32 1.442695, %v5885_v16  ;;  %v14689_v16 = vld [vmem:[#allocation61_spill] sm:$0xff] }
 0x5d1   : > { %6904 = vpow2.f32 %v5886_v36 }
 0x5d4   : > { %v5883_v0 = vpop.f32.mrf.mxu2 }
 0x5d7   : > { %v6905_v60 = vpop.eup %6904 }
 0x5d8   : > { %v5888_v39 = vadd.f32 1.0, %v6905_v60  ;;  %v14691_v60 = vld [vmem:[#allocation46_spill] sm:$0xff] }
 0x5da   : > { %6906 = vrcp.f32 %v5888_v39  ;;  %v5900_v2 = vand.u32 2147483648, %v5888_v39  ;;  %v5898_v42 = vand.u32 2147483647, %v5888_v39  ;;  %vm5894_vm15 = vweird.f32 %v5888_v39 }
 0x5dc   : > { %v5901_v30 = vor.u32 1.1754944e-38, %v5900_v2  ;;  %vm5899_vm2 = vcmp.eq.f32.partialorder %v5898_v42, 8.507059e+37 }
 0x5e0   : > { %v6907_v25 = vpop.eup %6906 }
 0x5e1   : > { %v5890_v26 = vmul.f32 %v6907_v25, %v5888_v39  ;;  %vm5895_vm6 = vweird.f32 %v6907_v25 }
 0x5e2   : > { %vm5896_vm0 = vmor %vm5894_vm15, %vm5895_vm6 }
 0x5e3   : > { %v5891_v52 = vsub.f32 1.0, %v5890_v26 }
 0x5e5   : > { %v5892_v17 = vmul.f32 %v6907_v25, %v5891_v52 }
 0x5e7   : > { %v5893_v6 = vadd.f32 %v6907_v25, %v5892_v17 }
 0x5e9   : > { %v5897_v62 = vsel %vm5896_vm0, %v6907_v25, %v5893_v6 }
 0x5ea   : > { %v5902_v19 = vsel %vm5899_vm2, %v5901_v30, %v5897_v62 }
 0x5eb   : > { %v5904_v10 = vperm.slane %v5902_v19, 0 }
 0x5ed   : > { %v5905_v31 = vmul.f32 %v5904_v10, %v14685_v9  ;;  %v5906_v34 = vmul.f32 %v5904_v10, %v14686_v40  ;;  %v5921_v50 = vmul.f32 %v5904_v10, %v14673_v12  ;;  %v5922_v13 = vmul.f32 %v5904_v10, %v14675_v23  ;;  %v6947_v40 = vld [vmem:[%s7070_s26 + $0x8] sm:$0xff] }
 0x5ee   : > { %v5907_v37 = vmul.f32 %v5904_v10, %v14687_v20  ;;  %v5908_v58 = vmul.f32 %v5904_v10, %v14688_v48  ;;  %v5923_v22 = vmul.f32 %v5904_v10, %v12849_v14  ;;  %v5924_v63 = vmul.f32 %v5904_v10, %v12860_v56  ;;  %v6949_v48 = vld [vmem:[%s7070_s26 + $0x10] sm:$0xff] }
 0x5ef   : > { %v5937_v3 = vpack.c.bf16 %v5906_v34, %v5905_v31  ;;  %v5945_v57 = vpack.c.bf16 %v5922_v13, %v5921_v50  ;;  %v5909_v12 = vmul.f32 %v5904_v10, %v14689_v16  ;;  %v5910_v23 = vmul.f32 %v5904_v10, %v14690_v8  ;;  %v6951_v8 = vld [vmem:[%s7070_s26 + $0x18] sm:$0xff] }
 0x5f0   : > { %v5938_v43 = vpack.c.bf16 %v5908_v58, %v5907_v37  ;;  %v5946_v7 = vpack.c.bf16 %v5924_v63, %v5923_v22  ;;  %v5925_v36 = vmul.f32 %v5904_v10, %v12967_v15  ;;  %v5926_v21 = vmul.f32 %v5904_v10, %v13206_v5 }
 0x5f1   : > { %6029 = vmatmul.bf16.vlgmr.msra.gmra.mxu1 %v5937_v3  ;;  %6069 = vmatmul.bf16.vlgmr.msra.gmra.mxu3 %v5945_v57  ;;  %v5939_v0 = vpack.c.bf16 %v5910_v23, %v5909_v12  ;;  %v5911_v14 = vmul.f32 %v5904_v10, %v14691_v60  ;;  %v5912_v56 = vmul.f32 %v5904_v10, %v14657_v59  ;;  %v6948_v57 = vld [vmem:[%s7070_s26 + $0x88] sm:$0xff] }
 0x5f2   : > { %v5947_v41 = vpack.c.bf16 %v5926_v21, %v5925_v36  ;;  %v5927_v39 = vmul.f32 %v5904_v10, %v13217_v32  ;;  %v5928_v55 = vmul.f32 %v5904_v10, %v13267_v44  ;;  %v5913_v15 = vmul.f32 %v5904_v10, %v12398_v51 }
 0x5f3   : > { %v5940_v29 = vpack.c.bf16 %v5912_v56, %v5911_v14  ;;  %v5914_v5 = vmul.f32 %v5904_v10, %v12408_v53  ;;  %v5929_v26 = vmul.f32 %v5904_v10, %v13272_v45  ;;  %v5930_v28 = vmul.f32 %v5904_v10, %v13288_v11  ;;  %v6953_v56 = vld [vmem:[%s7070_s26 + $0x20] sm:$0xff] }
 0x5f4   : > { %v5948_v25 = vpack.c.bf16 %v5928_v55, %v5927_v39  ;;  %v5915_v59 = vmul.f32 %v5904_v10, %v12437_v27  ;;  %v5916_v32 = vmul.f32 %v5904_v10, %v12569_v33  ;;  %v5931_v44 = vmul.f32 %v5904_v10, %v13298_v47 }
 0x5f5   : > { %v5941_v52 = vpack.c.bf16 %v5914_v5, %v5913_v15  ;;  %v5949_v2 = vpack.c.bf16 %v5930_v28, %v5929_v26  ;;  %v5932_v17 = vmul.f32 %v5904_v10, %v13309_v1  ;;  %v5917_v53 = vmul.f32 %v5904_v10, %v14668_v4  ;;  %v6954_v15 = vld [vmem:[%s7070_s26 + $0xa0] sm:$0xff]  ;;  %v6955_v28 = vld [vmem:[%s7070_s26 + $0x28] sm:$0xff] }
 0x5f6   : > { %v5942_v42 = vpack.c.bf16 %v5916_v32, %v5915_v59  ;;  %v5918_v45 = vmul.f32 %v5904_v10, %v14669_v54  ;;  %v5933_v11 = vmul.f32 %v5904_v10, %v13313_v49  ;;  %v5934_v38 = vmul.f32 %v5904_v10, %v13318_v24  ;;  %v13415_v49 = vld [vmem:[%s13564_s9] ss:$0 sm:$0xff] }
 0x5f7   : > { %v5950_v51 = vpack.c.bf16 %v5932_v17, %v5931_v44  ;;  %v5919_v47 = vmul.f32 %v5904_v10, %v14670_v35  ;;  %v5920_v1 = vmul.f32 %v5904_v10, %v14671_v46  ;;  %v5935_v6 = vmul.f32 %v5904_v10, %v13325_v18  ;;  %v6945_v46 = vld [vmem:[%s7070_s26] sm:$0xff]  ;;  %v6956_v44 = vld [vmem:[%s7070_s26 + $0xa8] sm:$0xff] }
 0x5f8   : > { %v5943_v27 = vpack.c.bf16 %v5918_v45, %v5917_v53  ;;  %v5951_v33 = vpack.c.bf16 %v5934_v38, %v5933_v11  ;;  %v5936_v4 = vmul.f32 %v5904_v10, %v13328_v61  ;;  %v6946_v10 = vld [vmem:[%s7070_s26 + $0x80] sm:$0xff] }
 0x5f9   : > { %v5944_v54 = vpack.c.bf16 %v5920_v1, %v5919_v47  ;;  %v6959_v1 = vld [vmem:[%s7070_s26 + $0x38] sm:$0xff] }
 0x5fa   : > { %v5952_v30 = vpack.c.bf16 %v5936_v4, %v5935_v6 }
 0x601   : > { %6034 = vmatmul.bf16.gmra.mxu1 %v5938_v43  ;;  %6074 = vmatmul.bf16.gmra.mxu3 %v5946_v7  ;;  %v6950_v7 = vld [vmem:[%s7070_s26 + $0x90] sm:$0xff] }
 0x611   : > { %6039 = vmatmul.bf16.gmra.mxu1 %v5939_v0  ;;  %6079 = vmatmul.bf16.gmra.mxu3 %v5947_v41  ;;  %v6952_v41 = vld [vmem:[%s7070_s26 + $0x98] sm:$0xff] }
 0x621   : > { %6044 = vmatmul.bf16.gmra.mxu1 %v5940_v29  ;;  %6084 = vmatmul.bf16.gmra.mxu3 %v5948_v25 }
 0x631   : > { %6049 = vmatmul.bf16.gmra.mxu1 %v5941_v52  ;;  %6089 = vmatmul.bf16.gmra.mxu3 %v5949_v2 }
 0x641   : > { %6054 = vmatmul.bf16.gmra.mxu1 %v5942_v42  ;;  %6094 = vmatmul.bf16.gmra.mxu3 %v5950_v51  ;;  %v6957_v51 = vld [vmem:[%s7070_s26 + $0x30] sm:$0xff] }
 0x651   : > { %6059 = vmatmul.bf16.gmra.mxu1 %v5943_v27  ;;  %6099 = vmatmul.bf16.gmra.mxu3 %v5951_v33  ;;  %v6958_v27 = vld [vmem:[%s7070_s26 + $0xb0] sm:$0xff] }
 0x661   : > { %6064 = vmatmul.bf16.gmra.mxu1 %v5944_v54  ;;  %6104 = vmatmul.bf16.gmra.mxu3 %v5952_v30 }
 0x66e   : > { %v6030_v24 = vpop.f32.mrf.mxu1 }
 0x66f   : > { %v6031_v35 = vadd.f32 %v13415_v49, %v6030_v24  ;;  %v6960_v24 = vld [vmem:[%s7070_s26 + $0xb8] sm:$0xff] }
 0x671   : > { %v6110_v18 = vadd.f32 %v6945_v46, %v6031_v35 }
 0x673   : > { %6142 = vst.msk [vmem:[%s13423_s24] sm:$0xff] %vm414_vm1, %v6110_v18  ;;  %v6961_v18 = vld [vmem:[%s7070_s26 + $0x40] sm:$0xff] }
 0x674   : > { %v6070_v61 = vpop.f32.mrf.mxu3 }
 0x675   : > { %v6071_v62 = vadd.f32 %v13415_v49, %v6070_v61 }
 0x676   : > { %v6032_v19 = vpop.f32.mrf.mxu1 }
 0x677   : > { %v6126_v9 = vadd.f32 %v6946_v10, %v6071_v62  ;;  %v6033_v31 = vadd.f32 %v13415_v49, %v6032_v19 }
 0x679   : > { %6158 = vst.msk [vmem:[%s13423_s24 + $0x80] sm:$0xff] %vm414_vm1, %v6126_v9  ;;  %v6111_v34 = vadd.f32 %v6947_v40, %v6033_v31  ;;  %v6962_v9 = vld [vmem:[%s7070_s26 + $0xc0] sm:$0xff] }
 0x67b   : > { %6143 = vst.msk [vmem:[%s13423_s24 + $0x8] sm:$0xff] %vm414_vm1, %v6111_v34  ;;  %v6963_v34 = vld [vmem:[%s7070_s26 + $0x48] sm:$0xff] }
 0x67c   : > { %v6072_v50 = vpop.f32.mrf.mxu3 }
 0x67d   : > { %v6073_v13 = vadd.f32 %v13415_v49, %v6072_v50 }
 0x67e   : > { %v6035_v3 = vpop.f32.mrf.mxu1 }
 0x67f   : > { %v6127_v20 = vadd.f32 %v6948_v57, %v6073_v13  ;;  %v6036_v37 = vadd.f32 %v13415_v49, %v6035_v3 }
 0x681   : > { %6159 = vst.msk [vmem:[%s13423_s24 + $0x88] sm:$0xff] %vm414_vm1, %v6127_v20  ;;  %v6112_v58 = vadd.f32 %v6949_v48, %v6036_v37  ;;  %v6964_v20 = vld [vmem:[%s7070_s26 + $0xc8] sm:$0xff] }
 0x683   : > { %6144 = vst.msk [vmem:[%s13423_s24 + $0x10] sm:$0xff] %vm414_vm1, %v6112_v58  ;;  %v6965_v58 = vld [vmem:[%s7070_s26 + $0x50] sm:$0xff] }
 0x684   : > { %v6075_v22 = vpop.f32.mrf.mxu3 }
 0x685   : > { %v6076_v63 = vadd.f32 %v13415_v49, %v6075_v22 }
 0x686   : > { %v6037_v43 = vpop.f32.mrf.mxu1 }
 0x687   : > { %v6128_v16 = vadd.f32 %v6950_v7, %v6076_v63  ;;  %v6038_v12 = vadd.f32 %v13415_v49, %v6037_v43 }
 0x689   : > { %6160 = vst.msk [vmem:[%s13423_s24 + $0x90] sm:$0xff] %vm414_vm1, %v6128_v16  ;;  %v6113_v23 = vadd.f32 %v6951_v8, %v6038_v12  ;;  %v6966_v16 = vld [vmem:[%s7070_s26 + $0xd0] sm:$0xff] }
 0x68b   : > { %6145 = vst.msk [vmem:[%s13423_s24 + $0x18] sm:$0xff] %vm414_vm1, %v6113_v23  ;;  %v6967_v23 = vld [vmem:[%s7070_s26 + $0x58] sm:$0xff] }
 0x68c   : > { %v6077_v36 = vpop.f32.mrf.mxu3 }
 0x68d   : > { %v6078_v21 = vadd.f32 %v13415_v49, %v6077_v36 }
 0x68e   : > { %v6040_v0 = vpop.f32.mrf.mxu1 }
 0x68f   : > { %v6129_v60 = vadd.f32 %v6952_v41, %v6078_v21  ;;  %v6041_v14 = vadd.f32 %v13415_v49, %v6040_v0 }
 0x691   : > { %6161 = vst.msk [vmem:[%s13423_s24 + $0x98] sm:$0xff] %vm414_vm1, %v6129_v60  ;;  %v6114_v39 = vadd.f32 %v6953_v56, %v6041_v14  ;;  %v6968_v60 = vld [vmem:[%s7070_s26 + $0xd8] sm:$0xff] }
 0x693   : > { %6146 = vst.msk [vmem:[%s13423_s24 + $0x20] sm:$0xff] %vm414_vm1, %v6114_v39  ;;  %v6969_v39 = vld [vmem:[%s7070_s26 + $0x60] sm:$0xff] }
 0x694   : > { %v6080_v55 = vpop.f32.mrf.mxu3 }
 0x695   : > { %v6081_v29 = vadd.f32 %v13415_v49, %v6080_v55 }
 0x696   : > { %v6042_v25 = vpop.f32.mrf.mxu1 }
 0x697   : > { %v6130_v5 = vadd.f32 %v6954_v15, %v6081_v29  ;;  %v6043_v26 = vadd.f32 %v13415_v49, %v6042_v25 }
 0x699   : > { %6162 = vst.msk [vmem:[%s13423_s24 + $0xa0] sm:$0xff] %vm414_vm1, %v6130_v5  ;;  %v6115_v52 = vadd.f32 %v6955_v28, %v6043_v26  ;;  %v6970_v5 = vld [vmem:[%s7070_s26 + $0xe0] sm:$0xff] }
 0x69b   : > { %6147 = vst.msk [vmem:[%s13423_s24 + $0x28] sm:$0xff] %vm414_vm1, %v6115_v52  ;;  %v6971_v52 = vld [vmem:[%s7070_s26 + $0x68] sm:$0xff] }
 0x69c   : > { %v6082_v2 = vpop.f32.mrf.mxu3 }
 0x69d   : > { %v6083_v59 = vadd.f32 %v13415_v49, %v6082_v2 }
 0x69e   : > { %v6045_v32 = vpop.f32.mrf.mxu1 }
 0x69f   : > { %v6131_v17 = vadd.f32 %v6956_v44, %v6083_v59  ;;  %v6046_v42 = vadd.f32 %v13415_v49, %v6045_v32 }
 0x6a1   : > { %6163 = vst.msk [vmem:[%s13423_s24 + $0xa8] sm:$0xff] %vm414_vm1, %v6131_v17  ;;  %v6116_v53 = vadd.f32 %v6957_v51, %v6046_v42  ;;  %v6972_v17 = vld [vmem:[%s7070_s26 + $0xe8] sm:$0xff] }
 0x6a3   : > { %6148 = vst.msk [vmem:[%s13423_s24 + $0x30] sm:$0xff] %vm414_vm1, %v6116_v53  ;;  %v6973_v53 = vld [vmem:[%s7070_s26 + $0x70] sm:$0xff] }
 0x6a4   : > { %v6085_v45 = vpop.f32.mrf.mxu3 }
 0x6a5   : > { %v6086_v11 = vadd.f32 %v13415_v49, %v6085_v45 }
 0x6a6   : > { %v6047_v38 = vpop.f32.mrf.mxu1 }
 0x6a7   : > { %v6132_v33 = vadd.f32 %v6958_v27, %v6086_v11  ;;  %v6048_v47 = vadd.f32 %v13415_v49, %v6047_v38 }
 0x6a9   : > { %6164 = vst.msk [vmem:[%s13423_s24 + $0xb0] sm:$0xff] %vm414_vm1, %v6132_v33  ;;  %v6117_v6 = vadd.f32 %v6959_v1, %v6048_v47  ;;  %v6974_v33 = vld [vmem:[%s7070_s26 + $0xf0] sm:$0xff] }
 0x6ab   : > { %6149 = vst.msk [vmem:[%s13423_s24 + $0x38] sm:$0xff] %vm414_vm1, %v6117_v6  ;;  %v6975_v6 = vld [vmem:[%s7070_s26 + $0x78] sm:$0xff] }
 0x6ac   : > { %v6087_v4 = vpop.f32.mrf.mxu3 }
 0x6ad   : > { %v6088_v54 = vadd.f32 %v13415_v49, %v6087_v4 }
 0x6ae   : > { %v6050_v30 = vpop.f32.mrf.mxu1 }
 0x6af   : > { %v6133_v35 = vadd.f32 %v6960_v24, %v6088_v54  ;;  %v6051_v46 = vadd.f32 %v13415_v49, %v6050_v30  ;;  %v6976_v24 = vld [vmem:[%s7070_s26 + $0xf8] sm:$0xff] }
 0x6b1   : > { %6165 = vst.msk [vmem:[%s13423_s24 + $0xb8] sm:$0xff] %vm414_vm1, %v6133_v35  ;;  %v6118_v61 = vadd.f32 %v6961_v18, %v6051_v46 }
 0x6b3   : > { %6150 = vst.msk [vmem:[%s13423_s24 + $0x40] sm:$0xff] %vm414_vm1, %v6118_v61 }
 0x6b4   : > { %v6090_v62 = vpop.f32.mrf.mxu3 }
 0x6b5   : > { %v6091_v19 = vadd.f32 %v13415_v49, %v6090_v62 }
 0x6b6   : > { %v6052_v10 = vpop.f32.mrf.mxu1 }
 0x6b7   : > { %v6134_v31 = vadd.f32 %v6962_v9, %v6091_v19  ;;  %v6053_v40 = vadd.f32 %v13415_v49, %v6052_v10 }
 0x6b9   : > { %6166 = vst.msk [vmem:[%s13423_s24 + $0xc0] sm:$0xff] %vm414_vm1, %v6134_v31  ;;  %v6119_v50 = vadd.f32 %v6963_v34, %v6053_v40 }
 0x6bb   : > { %6151 = vst.msk [vmem:[%s13423_s24 + $0x48] sm:$0xff] %vm414_vm1, %v6119_v50 }
 0x6bc   : > { %v6092_v13 = vpop.f32.mrf.mxu3 }
 0x6bd   : > { %v6093_v3 = vadd.f32 %v13415_v49, %v6092_v13 }
 0x6be   : > { %v6055_v57 = vpop.f32.mrf.mxu1 }
 0x6bf   : > { %v6135_v37 = vadd.f32 %v6964_v20, %v6093_v3  ;;  %v6056_v48 = vadd.f32 %v13415_v49, %v6055_v57 }
 0x6c1   : > { %6167 = vst.msk [vmem:[%s13423_s24 + $0xc8] sm:$0xff] %vm414_vm1, %v6135_v37  ;;  %v6120_v22 = vadd.f32 %v6965_v58, %v6056_v48 }
 0x6c3   : > { %6152 = vst.msk [vmem:[%s13423_s24 + $0x50] sm:$0xff] %vm414_vm1, %v6120_v22 }
 0x6c4   : > { %v6095_v63 = vpop.f32.mrf.mxu3 }
 0x6c5   : > { %v6096_v43 = vadd.f32 %v13415_v49, %v6095_v63 }
 0x6c6   : > { %v6057_v7 = vpop.f32.mrf.mxu1 }
 0x6c7   : > { %v6136_v12 = vadd.f32 %v6966_v16, %v6096_v43  ;;  %v6058_v8 = vadd.f32 %v13415_v49, %v6057_v7 }
 0x6c9   : > { %6168 = vst.msk [vmem:[%s13423_s24 + $0xd0] sm:$0xff] %vm414_vm1, %v6136_v12  ;;  %v6121_v36 = vadd.f32 %v6967_v23, %v6058_v8 }
 0x6cb   : > { %6153 = vst.msk [vmem:[%s13423_s24 + $0x58] sm:$0xff] %vm414_vm1, %v6121_v36 }
 0x6cc   : > { %v6097_v21 = vpop.f32.mrf.mxu3 }
 0x6cd   : > { %v6098_v0 = vadd.f32 %v13415_v49, %v6097_v21 }
 0x6ce   : > { %v6060_v41 = vpop.f32.mrf.mxu1 }
 0x6cf   : > { %v6137_v14 = vadd.f32 %v6968_v60, %v6098_v0  ;;  %v6061_v56 = vadd.f32 %v13415_v49, %v6060_v41 }
 0x6d1   : > { %6169 = vst.msk [vmem:[%s13423_s24 + $0xd8] sm:$0xff] %vm414_vm1, %v6137_v14  ;;  %v6122_v55 = vadd.f32 %v6969_v39, %v6061_v56 }
 0x6d3   : > { %6154 = vst.msk [vmem:[%s13423_s24 + $0x60] sm:$0xff] %vm414_vm1, %v6122_v55 }
 0x6d4   : > { %v6100_v29 = vpop.f32.mrf.mxu3 }
 0x6d5   : > { %v6101_v25 = vadd.f32 %v13415_v49, %v6100_v29 }
 0x6d6   : > { %v6062_v15 = vpop.f32.mrf.mxu1 }
 0x6d7   : > { %v6138_v26 = vadd.f32 %v6970_v5, %v6101_v25  ;;  %v6063_v28 = vadd.f32 %v13415_v49, %v6062_v15 }
 0x6d9   : > { %6170 = vst.msk [vmem:[%s13423_s24 + $0xe0] sm:$0xff] %vm414_vm1, %v6138_v26  ;;  %v6123_v2 = vadd.f32 %v6971_v52, %v6063_v28 }
 0x6db   : > { %6155 = vst.msk [vmem:[%s13423_s24 + $0x68] sm:$0xff] %vm414_vm1, %v6123_v2 }
 0x6dc   : > { %v6102_v59 = vpop.f32.mrf.mxu3 }
 0x6dd   : > { %v6103_v32 = vadd.f32 %v13415_v49, %v6102_v59 }
 0x6de   : > { %v6065_v44 = vpop.f32.mrf.mxu1 }
 0x6df   : > { %v6139_v42 = vadd.f32 %v6972_v17, %v6103_v32  ;;  %v6066_v51 = vadd.f32 %v13415_v49, %v6065_v44 }
 0x6e1   : > { %6171 = vst.msk [vmem:[%s13423_s24 + $0xe8] sm:$0xff] %vm414_vm1, %v6139_v42  ;;  %v6124_v45 = vadd.f32 %v6973_v53, %v6066_v51 }
 0x6e3   : > { %6156 = vst.msk [vmem:[%s13423_s24 + $0x70] sm:$0xff] %vm414_vm1, %v6124_v45 }
 0x6e4   : > { %v6105_v11 = vpop.f32.mrf.mxu3 }
 0x6e5   : > { %v6106_v38 = vadd.f32 %v13415_v49, %v6105_v11 }
 0x6e6   : > { %v6067_v27 = vpop.f32.mrf.mxu1 }
 0x6e7   : > { %v6140_v47 = vadd.f32 %v6974_v33, %v6106_v38  ;;  %v6068_v1 = vadd.f32 %v13415_v49, %v6067_v27 }
 0x6e9   : > { %6172 = vst.msk [vmem:[%s13423_s24 + $0xf0] sm:$0xff] %vm414_vm1, %v6140_v47  ;;  %v6125_v4 = vadd.f32 %v6975_v6, %v6068_v1 }
 0x6eb   : > { %6157 = vst.msk [vmem:[%s13423_s24 + $0x78] sm:$0xff] %vm414_vm1, %v6125_v4 }
 0x6ec   : > { %v6107_v54 = vpop.f32.mrf.mxu3 }
 0x6ed   : > { %v6108_v30 = vadd.f32 %v13415_v49, %v6107_v54 }
 0x6ef   : > { %v6141_v35 = vadd.f32 %v6976_v24, %v6108_v30 }
 0x6f1   : > { %6173 = vst.msk [vmem:[%s13423_s24 + $0xf8] sm:$0xff] %vm414_vm1, %v6141_v35 }
 0x6f2 PF: > { %s20_s13 = sadd.s32 1, %s6983_s13  }
 0x6f3   : > { %p17_p4 = scmp.ge.s32.totalorder %s20_s13, 4  }
 0x6f5   :  { %19 = sbr.rel (!%p17_p4) target bundleno = 1 (0x1), region = 105 }

</bundles_post_ra>
